<compile_context>
chip_gen: v7x
topology: tpu7x:2x2x1
jax: 0.10.0
libtpu: 0.0.40
codegen_flags: <defaults>
</compile_context>

<pallas_src>
import math
from math import factorial

import numpy as np
import jax
import jax.numpy as jnp
from jax.experimental import pallas as pl
from jax.experimental.pallas import tpu as pltpu

MATMUL_DTYPE = jnp.bfloat16     # MXU operand dtype (f32 accumulation via preferred_element_type)


# ----------------------------------------------------------------------------
# Wigner-d matrices and spectral transform tensors (deterministic numpy setup)
# ----------------------------------------------------------------------------
_wig_cache = {}


def wigner_d_matrix(l, beta):
    """d^l_{m',m}(beta), indexed [m'+l, m+l] (explicit Wigner formula)."""
    key = (l, round(float(beta), 12))
    if key in _wig_cache:
        return _wig_cache[key]
    d = np.zeros((2 * l + 1, 2 * l + 1), dtype=np.float64)
    cb = math.cos(beta / 2.0)
    sb = math.sin(beta / 2.0)
    for mp in range(-l, l + 1):
        for m in range(-l, l + 1):
            pref = math.sqrt(factorial(l + mp) * factorial(l - mp)
                             * factorial(l + m) * factorial(l - m))
            s_min = max(0, m - mp)
            s_max = min(l + m, l - mp)
            acc = 0.0
            for s in range(s_min, s_max + 1):
                num = (-1.0) ** (mp - m + s)
                den = (factorial(l + m - s) * factorial(s)
                       * factorial(mp - m + s) * factorial(l - mp - s))
                acc += (num / den) * (cb ** (2 * l + m - mp - 2 * s)) * (sb ** (mp - m + 2 * s))
            d[mp + l, m + l] = pref * acc
    _wig_cache[key] = d
    return d


def beta_grid(b):
    return np.pi * (2.0 * np.arange(2 * b) + 1.0) / (4.0 * b)


def quad_weights(b):
    # TODO(synk): lie_learn's exact Driscoll-Healy quadrature weights are not
    # reproduced; simple sin(beta)*dbeta Riemann weights (self-consistent).
    return np.sin(beta_grid(b)) * (np.pi / (2.0 * b))


def freq_idx(b_out, size):
    lmax = b_out - 1
    return np.array([m % size for m in range(-lmax, lmax + 1)], dtype=np.int32)


_tensor_cache = {}


def so3_analysis_tensor(b_in, b_out):
    key = ('so3_ana', b_in, b_out)
    if key in _tensor_cache:
        return _tensor_cache[key]
    P, lmax = 2 * b_out - 1, b_out - 1
    betas = beta_grid(b_in)
    w = quad_weights(b_in) * (2.0 * np.pi / (2.0 * b_in)) ** 2
    W = np.zeros((b_out, 2 * b_in, P, P), dtype=np.float32)
    for l in range(b_out):
        for j, bta in enumerate(betas):
            d = wigner_d_matrix(l, bta)
            W[l, j, lmax - l:lmax + l + 1, lmax - l:lmax + l + 1] = w[j] * d
    _tensor_cache[key] = W
    return W


def s2_analysis_tensor(b_in, b_out):
    key = ('s2_ana', b_in, b_out)
    if key in _tensor_cache:
        return _tensor_cache[key]
    P, lmax = 2 * b_out - 1, b_out - 1
    betas = beta_grid(b_in)
    w = quad_weights(b_in) * (2.0 * np.pi / (2.0 * b_in))
    W = np.zeros((b_out, 2 * b_in, P), dtype=np.float32)
    for l in range(b_out):
        for j, bta in enumerate(betas):
            d = wigner_d_matrix(l, bta)
            W[l, j, lmax - l:lmax + l + 1] = w[j] * d[:, l]  # d^l_{m,0}
    _tensor_cache[key] = W
    return W


def so3_synthesis_tensor(b_out):
    key = ('so3_syn', b_out)
    if key in _tensor_cache:
        return _tensor_cache[key]
    P, lmax = 2 * b_out - 1, b_out - 1
    betas = beta_grid(b_out)
    S = np.zeros((b_out, 2 * b_out, P, P), dtype=np.float32)
    for l in range(b_out):
        for j, bta in enumerate(betas):
            d = wigner_d_matrix(l, bta)
            S[l, j, lmax - l:lmax + l + 1, lmax - l:lmax + l + 1] = \
                (2 * l + 1) / (8.0 * np.pi ** 2) * d
    _tensor_cache[key] = S
    return S


def s2_kernel_basis(b_out, grid):
    P, lmax, G = 2 * b_out - 1, b_out - 1, len(grid)
    Bk = np.zeros((b_out, P, G), dtype=np.complex64)
    for g, (bta, alp) in enumerate(grid):
        for l in range(b_out):
            d = wigner_d_matrix(l, bta)
            mv = np.arange(-l, l + 1)
            Bk[l, lmax - l:lmax + l + 1, g] = d[:, l] * np.exp(-1j * mv * alp)
    return Bk


def so3_kernel_basis(b_out, grid):
    P, lmax, G = 2 * b_out - 1, b_out - 1, len(grid)
    Bk = np.zeros((b_out, P, P, G), dtype=np.complex64)
    for g, (bta, alp, gam) in enumerate(grid):
        for l in range(b_out):
            d = wigner_d_matrix(l, bta)
            mv = np.arange(-l, l + 1)
            em = np.exp(-1j * mv * alp)[:, None]
            en = np.exp(-1j * mv * gam)[None, :]
            Bk[l, lmax - l:lmax + l + 1, lmax - l:lmax + l + 1, g] = d * em * en
    return Bk


def s2_near_identity_grid(n_alpha=6, max_beta=np.pi / 16, n_beta=1):
    # TODO(synk): matches s2cnn's near-identity grid up to endpoint conventions.
    betas = np.arange(1, n_beta + 1) * max_beta / n_beta
    alphas = np.linspace(0, 2 * np.pi, n_alpha, endpoint=False)
    return [(float(b), float(a)) for b in betas for a in alphas]


def so3_near_identity_grid(n_alpha=6, max_beta=np.pi / 16, n_beta=1,
                           max_gamma=2 * np.pi, n_gamma=6):
    betas = np.arange(1, n_beta + 1) * max_beta / n_beta
    alphas = np.linspace(0, 2 * np.pi, n_alpha, endpoint=False)
    gammas = np.linspace(-max_gamma, max_gamma, n_gamma, endpoint=False)
    return [(float(b), float(a), float(c)) for b in betas for a in alphas for c in gammas]


# ----------------------------------------------------------------------------
# small helpers
# ----------------------------------------------------------------------------
def _round_up(x, m):
    return ((x + m - 1) // m) * m


_budget_cache = []


def _matmul_budgets():
    """(block-budget bytes, vmem_limit bytes) sized per TPU generation."""
    if _budget_cache:
        return _budget_cache[0]
    vmem = 64 * 1024 * 1024
    try:
        info = pltpu.get_tpu_info()
        vmem = int(getattr(info, 'vmem_capacity_bytes', vmem))
    except Exception:
        pass
    if vmem >= 100 * 1024 * 1024:                       # v5e / v6e: 128 MiB VMEM
        budgets = (12 * 1024 * 1024, 64 * 1024 * 1024)
    else:                                               # v7x: 64 MiB per TensorCore
        budgets = (8 * 1024 * 1024, 48 * 1024 * 1024)
    _budget_cache.append(budgets)
    return budgets


def _pick_lb(L, per_l_bytes, budget):
    """Degrees per grid step: fill ~budget bytes counting Pallas 2x double-buffering,
    and keep >=2 grid steps on the parallel L axis (both v7x TensorCores busy)."""
    lb = max(1, budget // max(2 * per_l_bytes, 1))
    lb = min(lb, L)
    if L >= 2:
        lb = min(lb, (L + 1) // 2)
    return int(lb)


def _pick_d_tile(R, D, budget=2 * 1024 * 1024):
    """Lane-dense tile along a flattened spatial axis (multiple of 128 dividing D)."""
    if R * D * 4 <= budget or D <= 128:
        return D
    best = None
    t = 128
    while t <= D:
        if D % t == 0 and R * t * 4 <= budget:
            best = t
        t += 128
    return best if best is not None else D


# ----------------------------------------------------------------------------
# Pallas kernels
# ----------------------------------------------------------------------------
def _make_cbmm_kernel(lb):
    """Lb complex matmuls per grid step, real/imag split: 4 bf16 MXU dots per degree."""
    def kernel(xr_ref, xi_ref, yr_ref, yi_ref, zr_ref, zi_ref):
        def body(i, carry):
            xr = xr_ref[i]
            xi = xi_ref[i]
            yr = yr_ref[i]
            yi = yi_ref[i]
            zr_ref[i] = (jnp.dot(xr, yr, preferred_element_type=jnp.float32)
                         - jnp.dot(xi, yi, preferred_element_type=jnp.float32))
            zi_ref[i] = (jnp.dot(xr, yi, preferred_element_type=jnp.float32)
                         + jnp.dot(xi, yr, preferred_element_type=jnp.float32))
            return carry
        jax.lax.fori_loop(0, lb, body, 0, unroll=True)
    return kernel


def pack_rhs(Ym):
    """Split complex RHS (L,K,N) into bf16 yr/yi, padded once at init.
    K_pad only to 8 (sublane), N_pad to 128 (lane-dense, vreg-tile aligned outputs)."""
    L, K, N = Ym.shape
    K_pad = _round_up(K, 8)
    N_pad = _round_up(N, 128)
    pad = ((0, 0), (0, K_pad - K), (0, N_pad - N))
    yr = jnp.pad(jnp.real(Ym).astype(MATMUL_DTYPE), pad)
    yi = jnp.pad(jnp.imag(Ym).astype(MATMUL_DTYPE), pad)
    return dict(yr=yr, yi=yi, K=K, N=N, K_pad=K_pad, N_pad=N_pad)


def complex_bmm_split(xr, xi, rhs):
    """Per-degree complex matmul (s2_mm / so3_mm hot path).
    Real/imag LHS enter as two bf16 inputs; real/imag results leave as two lane-dense
    f32 outputs (no packed concat, no lane-offset slice, no complex interleave)."""
    L, M, K = xr.shape
    K_pad, N_pad, N = rhs['K_pad'], rhs['N_pad'], rhs['N']
    yr, yi = rhs['yr'], rhs['yi']
    M_pad = _round_up(max(M, 8), 8)

    # VMEM sizing: xr+xi (bf16) + yr+yi (bf16) + zr+zi (f32), x2 double buffering.
    per_l = (2 * M_pad * K_pad * 2) + (2 * K_pad * N_pad * 2) + (2 * M_pad * N_pad * 4)
    budget, vmem_limit = _matmul_budgets()
    lb = _pick_lb(L, per_l, budget)
    steps = pl.cdiv(L, lb)
    L_pad = steps * lb

    def pad_lhs(a):
        return jnp.pad(a.astype(MATMUL_DTYPE),
                       ((0, L_pad - L), (0, M_pad - M), (0, K_pad - K)))

    Xr = pad_lhs(xr)
    Xi = pad_lhs(xi)
    if L_pad > L:                         # zero degrees for the ragged last grid step
        yr = jnp.pad(yr, ((0, L_pad - L), (0, 0), (0, 0)))
        yi = jnp.pad(yi, ((0, L_pad - L), (0, 0), (0, 0)))

    zr, zi = pl.pallas_call(
        _make_cbmm_kernel(lb),
        out_shape=(jax.ShapeDtypeStruct((L_pad, M_pad, N_pad), jnp.float32),
                   jax.ShapeDtypeStruct((L_pad, M_pad, N_pad), jnp.float32)),
        grid=(steps,),
        in_specs=[pl.BlockSpec((lb, M_pad, K_pad), lambda l: (l, 0, 0)),
                  pl.BlockSpec((lb, M_pad, K_pad), lambda l: (l, 0, 0)),
                  pl.BlockSpec((lb, K_pad, N_pad), lambda l: (l, 0, 0)),
                  pl.BlockSpec((lb, K_pad, N_pad), lambda l: (l, 0, 0))],
        out_specs=(pl.BlockSpec((lb, M_pad, N_pad), lambda l: (l, 0, 0)),
                   pl.BlockSpec((lb, M_pad, N_pad), lambda l: (l, 0, 0))),
        compiler_params=pltpu.CompilerParams(
            dimension_semantics=("parallel",),          # disjoint per-degree blocks
            vmem_limit_bytes=vmem_limit),
    )(Xr, Xi, yr, yi)

    return zr[:L, :M, :N], zi[:L, :M, :N]


def _integrate_kernel(x_ref, b_ref, w_ref, o_ref):
    """so3_integrate with the final layer's bias+ReLU fused into the reduction."""
    @pl.when(pl.program_id(0) == 0)
    def _():
        o_ref[...] = jnp.zeros_like(o_ref)
    v = jnp.maximum(x_ref[...] + b_ref[...], 0.0) * w_ref[...]
    o_ref[...] += jnp.sum(v, axis=-1, keepdims=True)


def so3_integrate_pallas(x, bias, w_beta):
    """Quadrature-weighted SO(3) integral of ReLU(x + bias): tiled VPU reduction
    with a resident accumulator output."""
    B, C, nb, na, ng = x.shape
    R, D = B * C, nb * na * ng
    xf = x.reshape(R, D)
    bf = jnp.broadcast_to(bias[None, :], (B, C)).reshape(R, 1).astype(jnp.float32)
    wfull = jnp.broadcast_to(w_beta[:, None, None], (nb, na, ng)).reshape(1, D).astype(jnp.float32)
    Db = _pick_d_tile(R, D)
    out = pl.pallas_call(
        _integrate_kernel,
        out_shape=jax.ShapeDtypeStruct((R, 1), jnp.float32),
        grid=(D // Db,),
        in_specs=[pl.BlockSpec((R, Db), lambda d: (0, d)),
                  pl.BlockSpec((R, 1), lambda d: (0, 0)),
                  pl.BlockSpec((1, Db), lambda d: (0, d))],
        out_specs=pl.BlockSpec((R, 1), lambda d: (0, 0)),
        compiler_params=pltpu.CompilerParams(dimension_semantics=("arbitrary",)),
    )(xf, bf, wfull)
    return out.reshape(B, C)


def _linear_kernel(x_ref, w_ref, b_ref, o_ref):
    o_ref[...] = jnp.dot(x_ref[...], w_ref[...],
                         preferred_element_type=jnp.float32) + b_ref[...]


def linear_apply(lin, feat):
    """Linear(64,1) — weights padded to a 128-lane slab, real column sliced outside."""
    B = feat.shape[0]
    out = pl.pallas_call(
        _linear_kernel,
        out_shape=jax.ShapeDtypeStruct((B, 128), jnp.float32),
    )(feat, lin['w_pad'], lin['b_pad'])
    return out[:, :1]


# ----------------------------------------------------------------------------
# Spectral convolutions (glue: jnp.fft + real Wigner contractions; matmul in Pallas)
# ----------------------------------------------------------------------------
# TODO(synk): alpha/gamma Fourier stages use jnp.fft (no Pallas FFT primitive);
#             exact s2cnn/lie_learn normalization constants are not reproduced.

def s2_mm(Xr, Xi, rhs, c_out):
    L, B, C, P = Xr.shape

    def to_m(a):
        return jnp.transpose(a, (0, 1, 3, 2)).reshape(L, B * P, C)

    Zr, Zi = complex_bmm_split(to_m(Xr), to_m(Xi), rhs)      # (L, B*P, Co*P) each

    def from_m(z):
        return jnp.transpose(z.reshape(L, B, P, c_out, P), (0, 1, 3, 2, 4))

    return from_m(Zr), from_m(Zi)


def so3_mm(Xr, Xi, rhs, c_out):
    L, B, C, P, _ = Xr.shape

    def to_m(a):
        return jnp.transpose(a, (0, 1, 3, 2, 4)).reshape(L, B * P, C * P)

    Zr, Zi = complex_bmm_split(to_m(Xr), to_m(Xi), rhs)      # (L, B*P, Co*P) each

    def from_m(z):
        return jnp.transpose(z.reshape(L, B, P, c_out, P), (0, 1, 3, 2, 4))

    return from_m(Zr), from_m(Zi)


def so3_ifft(Zr, Zi, cfg, bias=None):
    """Wigner synthesis (two real einsums) + frequency scatter + ifft2, with the
    per-channel bias + ReLU fused into the XLA epilogue when `bias` is given."""
    b_out = cfg['b_out']
    n = 2 * b_out
    zfr = jnp.einsum('ljmn,lbcmn->bcjmn', cfg['S_syn'], Zr)
    zfi = jnp.einsum('ljmn,lbcmn->bcjmn', cfg['S_syn'], Zi)
    B, C = zfr.shape[0], zfr.shape[1]
    idx = cfg['idx_out']
    zf = jnp.zeros((B, C, n, n, n), dtype=jnp.complex64)
    zf = zf.at[:, :, :, idx[:, None], idx[None, :]].set(jax.lax.complex(zfr, zfi))
    z = jnp.real(jnp.fft.ifft2(zf, axes=(-2, -1))).astype(jnp.float32) * float(n * n)
    if bias is not None:
        z = jnp.maximum(z + bias[None, :, None, None, None], 0.0)
    return z


def s2_conv_apply(cfg, x, apply_bias_relu=True):
    # x: (B, C_in, 2b_in, 2b_in)
    xf = jnp.fft.fft(x.astype(jnp.complex64), axis=-1)
    xf = jnp.take(xf, cfg['idx_in'], axis=-1)
    xfr = jnp.real(xf).astype(jnp.float32)
    xfi = jnp.imag(xf).astype(jnp.float32)
    Xr = jnp.einsum('ljm,bcjm->lbcm', cfg['W_ana'], xfr)
    Xi = jnp.einsum('ljm,bcjm->lbcm', cfg['W_ana'], xfi)
    Zr, Zi = s2_mm(Xr, Xi, cfg['rhs'], cfg['c_out'])
    return so3_ifft(Zr, Zi, cfg, bias=cfg['bias'] if apply_bias_relu else None)


def so3_conv_apply(cfg, x, apply_bias_relu=True):
    # x: (B, C_in, 2b_in, 2b_in, 2b_in)
    xf = jnp.fft.fft2(x.astype(jnp.complex64), axes=(-2, -1))
    idx = cfg['idx_in']
    xf = xf[:, :, :, idx[:, None], idx[None, :]]
    xfr = jnp.real(xf).astype(jnp.float32)
    xfi = jnp.imag(xf).astype(jnp.float32)
    Xr = jnp.einsum('ljmn,bcjmn->lbcmn', cfg['W_ana'], xfr)
    Xi = jnp.einsum('ljmn,bcjmn->lbcmn', cfg['W_ana'], xfi)
    Zr, Zi = so3_mm(Xr, Xi, cfg['rhs'], cfg['c_out'])
    return so3_ifft(Zr, Zi, cfg, bias=cfg['bias'] if apply_bias_relu else None)


def make_s2_conv(key, c_in, c_out, b_in, b_out, grid):
    n_grid = len(grid)
    scaling = 1.0 / math.sqrt(n_grid * c_in * (b_out ** 4.0) / (b_in ** 2.0))
    kernel = scaling * jax.random.uniform(key, (c_in, c_out, n_grid),
                                          minval=-1.0, maxval=1.0, dtype=jnp.float32)
    basis = jnp.asarray(s2_kernel_basis(b_out, grid))            # (L, P, G) complex64
    Yhat = jnp.einsum('lmg,iog->liom', basis, kernel.astype(jnp.complex64))  # (L,C,Co,P)
    L, P = b_out, 2 * b_out - 1
    rhs = pack_rhs(Yhat.reshape(L, c_in, c_out * P))             # split/padded once at init
    return dict(b_in=b_in, b_out=b_out, c_out=c_out,
                W_ana=jnp.asarray(s2_analysis_tensor(b_in, b_out)),
                S_syn=jnp.asarray(so3_synthesis_tensor(b_out)),
                idx_in=jnp.asarray(freq_idx(b_out, 2 * b_in)),
                idx_out=jnp.asarray(freq_idx(b_out, 2 * b_out)),
                rhs=rhs, bias=jnp.zeros((c_out,), jnp.float32))


def make_so3_conv(key, c_in, c_out, b_in, b_out, grid):
    n_grid = len(grid)
    scaling = 1.0 / math.sqrt(n_grid * c_in * (b_out ** 4.0) / (b_in ** 2.0))
    kernel = scaling * jax.random.uniform(key, (c_in, c_out, n_grid),
                                          minval=-1.0, maxval=1.0, dtype=jnp.float32)
    basis = jnp.asarray(so3_kernel_basis(b_out, grid))           # (L, P, P, G) complex64
    Yhat = jnp.einsum('lmng,iog->liomn', basis, kernel.astype(jnp.complex64))  # (L,C,Co,P,P)
    L, P = b_out, 2 * b_out - 1
    Ym = jnp.transpose(Yhat, (0, 1, 3, 2, 4)).reshape(L, c_in * P, c_out * P)
    rhs = pack_rhs(Ym)                                           # split/padded once at init
    return dict(b_in=b_in, b_out=b_out, c_out=c_out,
                W_ana=jnp.asarray(so3_analysis_tensor(b_in, b_out)),
                S_syn=jnp.asarray(so3_synthesis_tensor(b_out)),
                idx_in=jnp.asarray(freq_idx(b_out, 2 * b_in)),
                idx_out=jnp.asarray(freq_idx(b_out, 2 * b_out)),
                rhs=rhs, bias=jnp.zeros((c_out,), jnp.float32))


# ----------------------------------------------------------------------------
# Model init / forward (matches s2cnn_dhcp2: 4->8->16->16->24->24->32->64)
# ----------------------------------------------------------------------------
def init_model(key, bandwidth):
    assert bandwidth % 8 == 0, "bandwidth must survive 3 halvings"
    ks = jax.random.split(key, 10)

    grid_s2 = s2_near_identity_grid(n_alpha=6, max_beta=np.pi / 16, n_beta=1)
    grid_so3_1 = so3_near_identity_grid(n_alpha=6, max_beta=np.pi / 16, n_beta=1,
                                        max_gamma=2 * np.pi, n_gamma=6)
    grid_so3_2 = so3_near_identity_grid(n_alpha=6, max_beta=np.pi / 8, n_beta=1,
                                        max_gamma=2 * np.pi, n_gamma=6)
    grid_so3_3 = so3_near_identity_grid(n_alpha=6, max_beta=np.pi / 4, n_beta=1,
                                        max_gamma=2 * np.pi, n_gamma=6)
    grid_so3_4 = so3_near_identity_grid(n_alpha=6, max_beta=np.pi / 2, n_beta=1,
                                        max_gamma=2 * np.pi, n_gamma=6)

    bw = bandwidth
    params = {}
    params['conv1'] = make_s2_conv(ks[0], 4, 8, bw, bw, grid_s2)
    so3_cfgs = [
        (8, 16, bw, bw // 2, grid_so3_1),
        (16, 16, bw // 2, bw // 2, grid_so3_2),
        (16, 24, bw // 2, bw // 4, grid_so3_2),
        (24, 24, bw // 4, bw // 4, grid_so3_3),
        (24, 32, bw // 4, bw // 8, grid_so3_3),
        (32, 64, bw // 8, bw // 8, grid_so3_4),
    ]
    params['so3_convs'] = [make_so3_conv(ks[i + 1], *cfg) for i, cfg in enumerate(so3_cfgs)]

    b_final = bw // 8
    w_int = quad_weights(b_final) * (2.0 * np.pi / (2.0 * b_final)) ** 2 / (8.0 * np.pi ** 2)
    params['int_w'] = jnp.asarray(w_int, jnp.float32)

    # Linear(64, 1) — padded to 128 lanes for unmasked stores.
    F = 64
    bd = 1.0 / math.sqrt(F)
    kw, kb = jax.random.split(ks[8])
    w = jax.random.uniform(kw, (F, 1), minval=-bd, maxval=bd, dtype=jnp.float32)
    b = jax.random.uniform(kb, (1,), minval=-bd, maxval=bd, dtype=jnp.float32)
    w_pad = jnp.zeros((F, 128), jnp.float32).at[:, :1].set(w)
    b_pad = jnp.zeros((1, 128), jnp.float32).at[:, 0].set(b)
    params['linear'] = dict(w_pad=w_pad, b_pad=b_pad)
    return params


def forward(params, x):
    # bias+ReLU is fused into each conv's XLA ifft epilogue; the LAST conv's
    # bias+ReLU is instead fused into the Pallas so3_integrate reduction.
    h = s2_conv_apply(params['conv1'], x, apply_bias_relu=True)
    convs = params['so3_convs']
    for cfg in convs[:-1]:
        h = so3_conv_apply(cfg, h, apply_bias_relu=True)
    last = convs[-1]
    h = so3_conv_apply(last, h, apply_bias_relu=False)
    feat = so3_integrate_pallas(h, last['bias'], params['int_w'])   # (B, 64)
    return linear_apply(params['linear'], feat)                     # Linear(64, 1)


if __name__ == "__main__":
    bandwidth = 16          # small stand-in for the default 85 (must be % 8 == 0)
    B = 2

    key = jax.random.PRNGKey(0)
    kp, kx = jax.random.split(key)
    params = init_model(kp, bandwidth)

    x = jax.random.normal(kx, (B, 4, 2 * bandwidth, 2 * bandwidth), dtype=jnp.float32)

    fwd = jax.jit(lambda xx: forward(params, xx))
    out = jax.block_until_ready(fwd(x))
    assert out.shape == (B, 1) and out.dtype == jnp.float32
    print("KERNEL_OK")
</pallas_src>

<mosaic_0001>
module attributes {stable_mosaic.version = 11 : i64} {
  func.func @kernel(%arg0: i32, %arg1: memref<8x64x8xbf16, #tpu.memory_space<vmem>>, %arg2: memref<8x64x8xbf16, #tpu.memory_space<vmem>>, %arg3: memref<8x8x256xbf16, #tpu.memory_space<vmem>>, %arg4: memref<8x8x256xbf16, #tpu.memory_space<vmem>>, %arg5: memref<8x64x256xf32, #tpu.memory_space<vmem>>, %arg6: memref<8x64x256xf32, #tpu.memory_space<vmem>>) attributes {dimension_semantics = [#tpu.dimension_semantics<parallel>], iteration_bounds = array<i64: 2>, scalar_prefetch = 0 : i64, scratch_operands = 0 : i64, tpu.core_type = #tpu.core_type<tc>, window_params = [{transform_indices = @transform_0, window_bounds = array<i64: 8, 64, 8>}, {transform_indices = @transform_1, window_bounds = array<i64: 8, 64, 8>}, {transform_indices = @transform_2, window_bounds = array<i64: 8, 8, 256>}, {transform_indices = @transform_3, window_bounds = array<i64: 8, 8, 256>}, {transform_indices = @transform_4, window_bounds = array<i64: 8, 64, 256>}, {transform_indices = @transform_5, window_bounds = array<i64: 8, 64, 256>}]} {
    %c0_i32 = arith.constant 0 : i32
    %0 = arith.index_cast %c0_i32 : i32 to index
    %c0 = arith.constant 0 : index
    %c0_0 = arith.constant 0 : index
    %1 = vector.load %arg1[%0, %c0, %c0_0] : memref<8x64x8xbf16, #tpu.memory_space<vmem>>, vector<1x64x8xbf16>
    %2 = vector.shape_cast %1 : vector<1x64x8xbf16> to vector<64x8xbf16>
    %3 = arith.index_cast %c0_i32 : i32 to index
    %c0_1 = arith.constant 0 : index
    %c0_2 = arith.constant 0 : index
    %4 = vector.load %arg2[%3, %c0_1, %c0_2] : memref<8x64x8xbf16, #tpu.memory_space<vmem>>, vector<1x64x8xbf16>
    %5 = vector.shape_cast %4 : vector<1x64x8xbf16> to vector<64x8xbf16>
    %6 = arith.index_cast %c0_i32 : i32 to index
    %c0_3 = arith.constant 0 : index
    %c0_4 = arith.constant 0 : index
    %7 = vector.load %arg3[%6, %c0_3, %c0_4] : memref<8x8x256xbf16, #tpu.memory_space<vmem>>, vector<1x8x256xbf16>
    %8 = vector.shape_cast %7 : vector<1x8x256xbf16> to vector<8x256xbf16>
    %9 = arith.index_cast %c0_i32 : i32 to index
    %c0_5 = arith.constant 0 : index
    %c0_6 = arith.constant 0 : index
    %10 = vector.load %arg4[%9, %c0_5, %c0_6] : memref<8x8x256xbf16, #tpu.memory_space<vmem>>, vector<1x8x256xbf16>
    %11 = vector.shape_cast %10 : vector<1x8x256xbf16> to vector<8x256xbf16>
    %cst = arith.constant dense<0.000000e+00> : vector<64x256xf32>
    %12 = tpu.matmul %2, %8, %cst {dimension_numbers = #tpu.dot_dimension_numbers<[1], [0], [0], [1], [0, 0, 1, 1], [], []>} : vector<64x8xbf16>, vector<8x256xbf16>, vector<64x256xf32> -> vector<64x256xf32>
    %cst_7 = arith.constant dense<0.000000e+00> : vector<64x256xf32>
    %13 = tpu.matmul %5, %11, %cst_7 {dimension_numbers = #tpu.dot_dimension_numbers<[1], [0], [0], [1], [0, 0, 1, 1], [], []>} : vector<64x8xbf16>, vector<8x256xbf16>, vector<64x256xf32> -> vector<64x256xf32>
    %14 = arith.subf %12, %13 : vector<64x256xf32>
    %15 = arith.index_cast %c0_i32 : i32 to index
    %c0_8 = arith.constant 0 : index
    %c0_9 = arith.constant 0 : index
    %16 = vector.load %arg5[%15, %c0_8, %c0_9] : memref<8x64x256xf32, #tpu.memory_space<vmem>>, vector<1x64x256xf32>
    %17 = vector.shape_cast %16 : vector<1x64x256xf32> to vector<64x256xf32>
    %18 = vector.shape_cast %14 : vector<64x256xf32> to vector<1x64x256xf32>
    tpu.vector_store %arg5[%15, %c0_8, %c0_9], %18 {strides = array<i32>} : memref<8x64x256xf32, #tpu.memory_space<vmem>>, vector<1x64x256xf32>,
    %cst_10 = arith.constant dense<0.000000e+00> : vector<64x256xf32>
    %19 = tpu.matmul %2, %11, %cst_10 {dimension_numbers = #tpu.dot_dimension_numbers<[1], [0], [0], [1], [0, 0, 1, 1], [], []>} : vector<64x8xbf16>, vector<8x256xbf16>, vector<64x256xf32> -> vector<64x256xf32>
    %cst_11 = arith.constant dense<0.000000e+00> : vector<64x256xf32>
    %20 = tpu.matmul %5, %8, %cst_11 {dimension_numbers = #tpu.dot_dimension_numbers<[1], [0], [0], [1], [0, 0, 1, 1], [], []>} : vector<64x8xbf16>, vector<8x256xbf16>, vector<64x256xf32> -> vector<64x256xf32>
    %21 = arith.addf %19, %20 : vector<64x256xf32>
    %22 = arith.index_cast %c0_i32 : i32 to index
    %c0_12 = arith.constant 0 : index
    %c0_13 = arith.constant 0 : index
    %23 = vector.load %arg6[%22, %c0_12, %c0_13] : memref<8x64x256xf32, #tpu.memory_space<vmem>>, vector<1x64x256xf32>
    %24 = vector.shape_cast %23 : vector<1x64x256xf32> to vector<64x256xf32>
    %25 = vector.shape_cast %21 : vector<64x256xf32> to vector<1x64x256xf32>
    tpu.vector_store %arg6[%22, %c0_12, %c0_13], %25 {strides = array<i32>} : memref<8x64x256xf32, #tpu.memory_space<vmem>>, vector<1x64x256xf32>,
    %c1_i32 = arith.constant 1 : i32
    %26 = arith.index_cast %c1_i32 : i32 to index
    %c0_14 = arith.constant 0 : index
    %c0_15 = arith.constant 0 : index
    %27 = vector.load %arg1[%26, %c0_14, %c0_15] : memref<8x64x8xbf16, #tpu.memory_space<vmem>>, vector<1x64x8xbf16>
    %28 = vector.shape_cast %27 : vector<1x64x8xbf16> to vector<64x8xbf16>
    %29 = arith.index_cast %c1_i32 : i32 to index
    %c0_16 = arith.constant 0 : index
    %c0_17 = arith.constant 0 : index
    %30 = vector.load %arg2[%29, %c0_16, %c0_17] : memref<8x64x8xbf16, #tpu.memory_space<vmem>>, vector<1x64x8xbf16>
    %31 = vector.shape_cast %30 : vector<1x64x8xbf16> to vector<64x8xbf16>
    %32 = arith.index_cast %c1_i32 : i32 to index
    %c0_18 = arith.constant 0 : index
    %c0_19 = arith.constant 0 : index
    %33 = vector.load %arg3[%32, %c0_18, %c0_19] : memref<8x8x256xbf16, #tpu.memory_space<vmem>>, vector<1x8x256xbf16>
    %34 = vector.shape_cast %33 : vector<1x8x256xbf16> to vector<8x256xbf16>
    %35 = arith.index_cast %c1_i32 : i32 to index
    %c0_20 = arith.constant 0 : index
    %c0_21 = arith.constant 0 : index
    %36 = vector.load %arg4[%35, %c0_20, %c0_21] : memref<8x8x256xbf16, #tpu.memory_space<vmem>>, vector<1x8x256xbf16>
    %37 = vector.shape_cast %36 : vector<1x8x256xbf16> to vector<8x256xbf16>
    %cst_22 = arith.constant dense<0.000000e+00> : vector<64x256xf32>
    %38 = tpu.matmul %28, %34, %cst_22 {dimension_numbers = #tpu.dot_dimension_numbers<[1], [0], [0], [1], [0, 0, 1, 1], [], []>} : vector<64x8xbf16>, vector<8x256xbf16>, vector<64x256xf32> -> vector<64x256xf32>
    %cst_23 = arith.constant dense<0.000000e+00> : vector<64x256xf32>
    %39 = tpu.matmul %31, %37, %cst_23 {dimension_numbers = #tpu.dot_dimension_numbers<[1], [0], [0], [1], [0, 0, 1, 1], [], []>} : vector<64x8xbf16>, vector<8x256xbf16>, vector<64x256xf32> -> vector<64x256xf32>
    %40 = arith.subf %38, %39 : vector<64x256xf32>
    %41 = arith.index_cast %c1_i32 : i32 to index
    %c0_24 = arith.constant 0 : index
    %c0_25 = arith.constant 0 : index
    %42 = vector.load %arg5[%41, %c0_24, %c0_25] : memref<8x64x256xf32, #tpu.memory_space<vmem>>, vector<1x64x256xf32>
    %43 = vector.shape_cast %42 : vector<1x64x256xf32> to vector<64x256xf32>
    %44 = vector.shape_cast %40 : vector<64x256xf32> to vector<1x64x256xf32>
    tpu.vector_store %arg5[%41, %c0_24, %c0_25], %44 {strides = array<i32>} : memref<8x64x256xf32, #tpu.memory_space<vmem>>, vector<1x64x256xf32>,
    %cst_26 = arith.constant dense<0.000000e+00> : vector<64x256xf32>
    %45 = tpu.matmul %28, %37, %cst_26 {dimension_numbers = #tpu.dot_dimension_numbers<[1], [0], [0], [1], [0, 0, 1, 1], [], []>} : vector<64x8xbf16>, vector<8x256xbf16>, vector<64x256xf32> -> vector<64x256xf32>
    %cst_27 = arith.constant dense<0.000000e+00> : vector<64x256xf32>
    %46 = tpu.matmul %31, %34, %cst_27 {dimension_numbers = #tpu.dot_dimension_numbers<[1], [0], [0], [1], [0, 0, 1, 1], [], []>} : vector<64x8xbf16>, vector<8x256xbf16>, vector<64x256xf32> -> vector<64x256xf32>
    %47 = arith.addf %45, %46 : vector<64x256xf32>
    %48 = arith.index_cast %c1_i32 : i32 to index
    %c0_28 = arith.constant 0 : index
    %c0_29 = arith.constant 0 : index
    %49 = vector.load %arg6[%48, %c0_28, %c0_29] : memref<8x64x256xf32, #tpu.memory_space<vmem>>, vector<1x64x256xf32>
    %50 = vector.shape_cast %49 : vector<1x64x256xf32> to vector<64x256xf32>
    %51 = vector.shape_cast %47 : vector<64x256xf32> to vector<1x64x256xf32>
    tpu.vector_store %arg6[%48, %c0_28, %c0_29], %51 {strides = array<i32>} : memref<8x64x256xf32, #tpu.memory_space<vmem>>, vector<1x64x256xf32>,
    %c2_i32 = arith.constant 2 : i32
    %52 = arith.index_cast %c2_i32 : i32 to index
    %c0_30 = arith.constant 0 : index
    %c0_31 = arith.constant 0 : index
    %53 = vector.load %arg1[%52, %c0_30, %c0_31] : memref<8x64x8xbf16, #tpu.memory_space<vmem>>, vector<1x64x8xbf16>
    %54 = vector.shape_cast %53 : vector<1x64x8xbf16> to vector<64x8xbf16>
    %55 = arith.index_cast %c2_i32 : i32 to index
    %c0_32 = arith.constant 0 : index
    %c0_33 = arith.constant 0 : index
    %56 = vector.load %arg2[%55, %c0_32, %c0_33] : memref<8x64x8xbf16, #tpu.memory_space<vmem>>, vector<1x64x8xbf16>
    %57 = vector.shape_cast %56 : vector<1x64x8xbf16> to vector<64x8xbf16>
    %58 = arith.index_cast %c2_i32 : i32 to index
    %c0_34 = arith.constant 0 : index
    %c0_35 = arith.constant 0 : index
    %59 = vector.load %arg3[%58, %c0_34, %c0_35] : memref<8x8x256xbf16, #tpu.memory_space<vmem>>, vector<1x8x256xbf16>
    %60 = vector.shape_cast %59 : vector<1x8x256xbf16> to vector<8x256xbf16>
    %61 = arith.index_cast %c2_i32 : i32 to index
    %c0_36 = arith.constant 0 : index
    %c0_37 = arith.constant 0 : index
    %62 = vector.load %arg4[%61, %c0_36, %c0_37] : memref<8x8x256xbf16, #tpu.memory_space<vmem>>, vector<1x8x256xbf16>
    %63 = vector.shape_cast %62 : vector<1x8x256xbf16> to vector<8x256xbf16>
    %cst_38 = arith.constant dense<0.000000e+00> : vector<64x256xf32>
    %64 = tpu.matmul %54, %60, %cst_38 {dimension_numbers = #tpu.dot_dimension_numbers<[1], [0], [0], [1], [0, 0, 1, 1], [], []>} : vector<64x8xbf16>, vector<8x256xbf16>, vector<64x256xf32> -> vector<64x256xf32>
    %cst_39 = arith.constant dense<0.000000e+00> : vector<64x256xf32>
    %65 = tpu.matmul %57, %63, %cst_39 {dimension_numbers = #tpu.dot_dimension_numbers<[1], [0], [0], [1], [0, 0, 1, 1], [], []>} : vector<64x8xbf16>, vector<8x256xbf16>, vector<64x256xf32> -> vector<64x256xf32>
    %66 = arith.subf %64, %65 : vector<64x256xf32>
    %67 = arith.index_cast %c2_i32 : i32 to index
    %c0_40 = arith.constant 0 : index
    %c0_41 = arith.constant 0 : index
    %68 = vector.load %arg5[%67, %c0_40, %c0_41] : memref<8x64x256xf32, #tpu.memory_space<vmem>>, vector<1x64x256xf32>
    %69 = vector.shape_cast %68 : vector<1x64x256xf32> to vector<64x256xf32>
    %70 = vector.shape_cast %66 : vector<64x256xf32> to vector<1x64x256xf32>
    tpu.vector_store %arg5[%67, %c0_40, %c0_41], %70 {strides = array<i32>} : memref<8x64x256xf32, #tpu.memory_space<vmem>>, vector<1x64x256xf32>,
    %cst_42 = arith.constant dense<0.000000e+00> : vector<64x256xf32>
    %71 = tpu.matmul %54, %63, %cst_42 {dimension_numbers = #tpu.dot_dimension_numbers<[1], [0], [0], [1], [0, 0, 1, 1], [], []>} : vector<64x8xbf16>, vector<8x256xbf16>, vector<64x256xf32> -> vector<64x256xf32>
    %cst_43 = arith.constant dense<0.000000e+00> : vector<64x256xf32>
    %72 = tpu.matmul %57, %60, %cst_43 {dimension_numbers = #tpu.dot_dimension_numbers<[1], [0], [0], [1], [0, 0, 1, 1], [], []>} : vector<64x8xbf16>, vector<8x256xbf16>, vector<64x256xf32> -> vector<64x256xf32>
    %73 = arith.addf %71, %72 : vector<64x256xf32>
    %74 = arith.index_cast %c2_i32 : i32 to index
    %c0_44 = arith.constant 0 : index
    %c0_45 = arith.constant 0 : index
    %75 = vector.load %arg6[%74, %c0_44, %c0_45] : memref<8x64x256xf32, #tpu.memory_space<vmem>>, vector<1x64x256xf32>
    %76 = vector.shape_cast %75 : vector<1x64x256xf32> to vector<64x256xf32>
    %77 = vector.shape_cast %73 : vector<64x256xf32> to vector<1x64x256xf32>
    tpu.vector_store %arg6[%74, %c0_44, %c0_45], %77 {strides = array<i32>} : memref<8x64x256xf32, #tpu.memory_space<vmem>>, vector<1x64x256xf32>,
    %c3_i32 = arith.constant 3 : i32
    %78 = arith.index_cast %c3_i32 : i32 to index
    %c0_46 = arith.constant 0 : index
    %c0_47 = arith.constant 0 : index
    %79 = vector.load %arg1[%78, %c0_46, %c0_47] : memref<8x64x8xbf16, #tpu.memory_space<vmem>>, vector<1x64x8xbf16>
    %80 = vector.shape_cast %79 : vector<1x64x8xbf16> to vector<64x8xbf16>
    %81 = arith.index_cast %c3_i32 : i32 to index
    %c0_48 = arith.constant 0 : index
    %c0_49 = arith.constant 0 : index
    %82 = vector.load %arg2[%81, %c0_48, %c0_49] : memref<8x64x8xbf16, #tpu.memory_space<vmem>>, vector<1x64x8xbf16>
    %83 = vector.shape_cast %82 : vector<1x64x8xbf16> to vector<64x8xbf16>
    %84 = arith.index_cast %c3_i32 : i32 to index
    %c0_50 = arith.constant 0 : index
    %c0_51 = arith.constant 0 : index
    %85 = vector.load %arg3[%84, %c0_50, %c0_51] : memref<8x8x256xbf16, #tpu.memory_space<vmem>>, vector<1x8x256xbf16>
    %86 = vector.shape_cast %85 : vector<1x8x256xbf16> to vector<8x256xbf16>
    %87 = arith.index_cast %c3_i32 : i32 to index
    %c0_52 = arith.constant 0 : index
    %c0_53 = arith.constant 0 : index
    %88 = vector.load %arg4[%87, %c0_52, %c0_53] : memref<8x8x256xbf16, #tpu.memory_space<vmem>>, vector<1x8x256xbf16>
    %89 = vector.shape_cast %88 : vector<1x8x256xbf16> to vector<8x256xbf16>
    %cst_54 = arith.constant dense<0.000000e+00> : vector<64x256xf32>
    %90 = tpu.matmul %80, %86, %cst_54 {dimension_numbers = #tpu.dot_dimension_numbers<[1], [0], [0], [1], [0, 0, 1, 1], [], []>} : vector<64x8xbf16>, vector<8x256xbf16>, vector<64x256xf32> -> vector<64x256xf32>
    %cst_55 = arith.constant dense<0.000000e+00> : vector<64x256xf32>
    %91 = tpu.matmul %83, %89, %cst_55 {dimension_numbers = #tpu.dot_dimension_numbers<[1], [0], [0], [1], [0, 0, 1, 1], [], []>} : vector<64x8xbf16>, vector<8x256xbf16>, vector<64x256xf32> -> vector<64x256xf32>
    %92 = arith.subf %90, %91 : vector<64x256xf32>
    %93 = arith.index_cast %c3_i32 : i32 to index
    %c0_56 = arith.constant 0 : index
    %c0_57 = arith.constant 0 : index
    %94 = vector.load %arg5[%93, %c0_56, %c0_57] : memref<8x64x256xf32, #tpu.memory_space<vmem>>, vector<1x64x256xf32>
    %95 = vector.shape_cast %94 : vector<1x64x256xf32> to vector<64x256xf32>
    %96 = vector.shape_cast %92 : vector<64x256xf32> to vector<1x64x256xf32>
    tpu.vector_store %arg5[%93, %c0_56, %c0_57], %96 {strides = array<i32>} : memref<8x64x256xf32, #tpu.memory_space<vmem>>, vector<1x64x256xf32>,
    %cst_58 = arith.constant dense<0.000000e+00> : vector<64x256xf32>
    %97 = tpu.matmul %80, %89, %cst_58 {dimension_numbers = #tpu.dot_dimension_numbers<[1], [0], [0], [1], [0, 0, 1, 1], [], []>} : vector<64x8xbf16>, vector<8x256xbf16>, vector<64x256xf32> -> vector<64x256xf32>
    %cst_59 = arith.constant dense<0.000000e+00> : vector<64x256xf32>
    %98 = tpu.matmul %83, %86, %cst_59 {dimension_numbers = #tpu.dot_dimension_numbers<[1], [0], [0], [1], [0, 0, 1, 1], [], []>} : vector<64x8xbf16>, vector<8x256xbf16>, vector<64x256xf32> -> vector<64x256xf32>
    %99 = arith.addf %97, %98 : vector<64x256xf32>
    %100 = arith.index_cast %c3_i32 : i32 to index
    %c0_60 = arith.constant 0 : index
    %c0_61 = arith.constant 0 : index
    %101 = vector.load %arg6[%100, %c0_60, %c0_61] : memref<8x64x256xf32, #tpu.memory_space<vmem>>, vector<1x64x256xf32>
    %102 = vector.shape_cast %101 : vector<1x64x256xf32> to vector<64x256xf32>
    %103 = vector.shape_cast %99 : vector<64x256xf32> to vector<1x64x256xf32>
    tpu.vector_store %arg6[%100, %c0_60, %c0_61], %103 {strides = array<i32>} : memref<8x64x256xf32, #tpu.memory_space<vmem>>, vector<1x64x256xf32>,
    %c4_i32 = arith.constant 4 : i32
    %104 = arith.index_cast %c4_i32 : i32 to index
    %c0_62 = arith.constant 0 : index
    %c0_63 = arith.constant 0 : index
    %105 = vector.load %arg1[%104, %c0_62, %c0_63] : memref<8x64x8xbf16, #tpu.memory_space<vmem>>, vector<1x64x8xbf16>
    %106 = vector.shape_cast %105 : vector<1x64x8xbf16> to vector<64x8xbf16>
    %107 = arith.index_cast %c4_i32 : i32 to index
    %c0_64 = arith.constant 0 : index
    %c0_65 = arith.constant 0 : index
    %108 = vector.load %arg2[%107, %c0_64, %c0_65] : memref<8x64x8xbf16, #tpu.memory_space<vmem>>, vector<1x64x8xbf16>
    %109 = vector.shape_cast %108 : vector<1x64x8xbf16> to vector<64x8xbf16>
    %110 = arith.index_cast %c4_i32 : i32 to index
    %c0_66 = arith.constant 0 : index
    %c0_67 = arith.constant 0 : index
    %111 = vector.load %arg3[%110, %c0_66, %c0_67] : memref<8x8x256xbf16, #tpu.memory_space<vmem>>, vector<1x8x256xbf16>
    %112 = vector.shape_cast %111 : vector<1x8x256xbf16> to vector<8x256xbf16>
    %113 = arith.index_cast %c4_i32 : i32 to index
    %c0_68 = arith.constant 0 : index
    %c0_69 = arith.constant 0 : index
    %114 = vector.load %arg4[%113, %c0_68, %c0_69] : memref<8x8x256xbf16, #tpu.memory_space<vmem>>, vector<1x8x256xbf16>
    %115 = vector.shape_cast %114 : vector<1x8x256xbf16> to vector<8x256xbf16>
    %cst_70 = arith.constant dense<0.000000e+00> : vector<64x256xf32>
    %116 = tpu.matmul %106, %112, %cst_70 {dimension_numbers = #tpu.dot_dimension_numbers<[1], [0], [0], [1], [0, 0, 1, 1], [], []>} : vector<64x8xbf16>, vector<8x256xbf16>, vector<64x256xf32> -> vector<64x256xf32>
    %cst_71 = arith.constant dense<0.000000e+00> : vector<64x256xf32>
    %117 = tpu.matmul %109, %115, %cst_71 {dimension_numbers = #tpu.dot_dimension_numbers<[1], [0], [0], [1], [0, 0, 1, 1], [], []>} : vector<64x8xbf16>, vector<8x256xbf16>, vector<64x256xf32> -> vector<64x256xf32>
    %118 = arith.subf %116, %117 : vector<64x256xf32>
    %119 = arith.index_cast %c4_i32 : i32 to index
    %c0_72 = arith.constant 0 : index
    %c0_73 = arith.constant 0 : index
    %120 = vector.load %arg5[%119, %c0_72, %c0_73] : memref<8x64x256xf32, #tpu.memory_space<vmem>>, vector<1x64x256xf32>
    %121 = vector.shape_cast %120 : vector<1x64x256xf32> to vector<64x256xf32>
    %122 = vector.shape_cast %118 : vector<64x256xf32> to vector<1x64x256xf32>
    tpu.vector_store %arg5[%119, %c0_72, %c0_73], %122 {strides = array<i32>} : memref<8x64x256xf32, #tpu.memory_space<vmem>>, vector<1x64x256xf32>,
    %cst_74 = arith.constant dense<0.000000e+00> : vector<64x256xf32>
    %123 = tpu.matmul %106, %115, %cst_74 {dimension_numbers = #tpu.dot_dimension_numbers<[1], [0], [0], [1], [0, 0, 1, 1], [], []>} : vector<64x8xbf16>, vector<8x256xbf16>, vector<64x256xf32> -> vector<64x256xf32>
    %cst_75 = arith.constant dense<0.000000e+00> : vector<64x256xf32>
    %124 = tpu.matmul %109, %112, %cst_75 {dimension_numbers = #tpu.dot_dimension_numbers<[1], [0], [0], [1], [0, 0, 1, 1], [], []>} : vector<64x8xbf16>, vector<8x256xbf16>, vector<64x256xf32> -> vector<64x256xf32>
    %125 = arith.addf %123, %124 : vector<64x256xf32>
    %126 = arith.index_cast %c4_i32 : i32 to index
    %c0_76 = arith.constant 0 : index
    %c0_77 = arith.constant 0 : index
    %127 = vector.load %arg6[%126, %c0_76, %c0_77] : memref<8x64x256xf32, #tpu.memory_space<vmem>>, vector<1x64x256xf32>
    %128 = vector.shape_cast %127 : vector<1x64x256xf32> to vector<64x256xf32>
    %129 = vector.shape_cast %125 : vector<64x256xf32> to vector<1x64x256xf32>
    tpu.vector_store %arg6[%126, %c0_76, %c0_77], %129 {strides = array<i32>} : memref<8x64x256xf32, #tpu.memory_space<vmem>>, vector<1x64x256xf32>,
    %c5_i32 = arith.constant 5 : i32
    %130 = arith.index_cast %c5_i32 : i32 to index
    %c0_78 = arith.constant 0 : index
    %c0_79 = arith.constant 0 : index
    %131 = vector.load %arg1[%130, %c0_78, %c0_79] : memref<8x64x8xbf16, #tpu.memory_space<vmem>>, vector<1x64x8xbf16>
    %132 = vector.shape_cast %131 : vector<1x64x8xbf16> to vector<64x8xbf16>
    %133 = arith.index_cast %c5_i32 : i32 to index
    %c0_80 = arith.constant 0 : index
    %c0_81 = arith.constant 0 : index
    %134 = vector.load %arg2[%133, %c0_80, %c0_81] : memref<8x64x8xbf16, #tpu.memory_space<vmem>>, vector<1x64x8xbf16>
    %135 = vector.shape_cast %134 : vector<1x64x8xbf16> to vector<64x8xbf16>
    %136 = arith.index_cast %c5_i32 : i32 to index
    %c0_82 = arith.constant 0 : index
    %c0_83 = arith.constant 0 : index
    %137 = vector.load %arg3[%136, %c0_82, %c0_83] : memref<8x8x256xbf16, #tpu.memory_space<vmem>>, vector<1x8x256xbf16>
    %138 = vector.shape_cast %137 : vector<1x8x256xbf16> to vector<8x256xbf16>
    %139 = arith.index_cast %c5_i32 : i32 to index
    %c0_84 = arith.constant 0 : index
    %c0_85 = arith.constant 0 : index
    %140 = vector.load %arg4[%139, %c0_84, %c0_85] : memref<8x8x256xbf16, #tpu.memory_space<vmem>>, vector<1x8x256xbf16>
    %141 = vector.shape_cast %140 : vector<1x8x256xbf16> to vector<8x256xbf16>
    %cst_86 = arith.constant dense<0.000000e+00> : vector<64x256xf32>
    %142 = tpu.matmul %132, %138, %cst_86 {dimension_numbers = #tpu.dot_dimension_numbers<[1], [0], [0], [1], [0, 0, 1, 1], [], []>} : vector<64x8xbf16>, vector<8x256xbf16>, vector<64x256xf32> -> vector<64x256xf32>
    %cst_87 = arith.constant dense<0.000000e+00> : vector<64x256xf32>
    %143 = tpu.matmul %135, %141, %cst_87 {dimension_numbers = #tpu.dot_dimension_numbers<[1], [0], [0], [1], [0, 0, 1, 1], [], []>} : vector<64x8xbf16>, vector<8x256xbf16>, vector<64x256xf32> -> vector<64x256xf32>
    %144 = arith.subf %142, %143 : vector<64x256xf32>
    %145 = arith.index_cast %c5_i32 : i32 to index
    %c0_88 = arith.constant 0 : index
    %c0_89 = arith.constant 0 : index
    %146 = vector.load %arg5[%145, %c0_88, %c0_89] : memref<8x64x256xf32, #tpu.memory_space<vmem>>, vector<1x64x256xf32>
    %147 = vector.shape_cast %146 : vector<1x64x256xf32> to vector<64x256xf32>
    %148 = vector.shape_cast %144 : vector<64x256xf32> to vector<1x64x256xf32>
    tpu.vector_store %arg5[%145, %c0_88, %c0_89], %148 {strides = array<i32>} : memref<8x64x256xf32, #tpu.memory_space<vmem>>, vector<1x64x256xf32>,
    %cst_90 = arith.constant dense<0.000000e+00> : vector<64x256xf32>
    %149 = tpu.matmul %132, %141, %cst_90 {dimension_numbers = #tpu.dot_dimension_numbers<[1], [0], [0], [1], [0, 0, 1, 1], [], []>} : vector<64x8xbf16>, vector<8x256xbf16>, vector<64x256xf32> -> vector<64x256xf32>
    %cst_91 = arith.constant dense<0.000000e+00> : vector<64x256xf32>
    %150 = tpu.matmul %135, %138, %cst_91 {dimension_numbers = #tpu.dot_dimension_numbers<[1], [0], [0], [1], [0, 0, 1, 1], [], []>} : vector<64x8xbf16>, vector<8x256xbf16>, vector<64x256xf32> -> vector<64x256xf32>
    %151 = arith.addf %149, %150 : vector<64x256xf32>
    %152 = arith.index_cast %c5_i32 : i32 to index
    %c0_92 = arith.constant 0 : index
    %c0_93 = arith.constant 0 : index
    %153 = vector.load %arg6[%152, %c0_92, %c0_93] : memref<8x64x256xf32, #tpu.memory_space<vmem>>, vector<1x64x256xf32>
    %154 = vector.shape_cast %153 : vector<1x64x256xf32> to vector<64x256xf32>
    %155 = vector.shape_cast %151 : vector<64x256xf32> to vector<1x64x256xf32>
    tpu.vector_store %arg6[%152, %c0_92, %c0_93], %155 {strides = array<i32>} : memref<8x64x256xf32, #tpu.memory_space<vmem>>, vector<1x64x256xf32>,
    %c6_i32 = arith.constant 6 : i32
    %156 = arith.index_cast %c6_i32 : i32 to index
    %c0_94 = arith.constant 0 : index
    %c0_95 = arith.constant 0 : index
    %157 = vector.load %arg1[%156, %c0_94, %c0_95] : memref<8x64x8xbf16, #tpu.memory_space<vmem>>, vector<1x64x8xbf16>
    %158 = vector.shape_cast %157 : vector<1x64x8xbf16> to vector<64x8xbf16>
    %159 = arith.index_cast %c6_i32 : i32 to index
    %c0_96 = arith.constant 0 : index
    %c0_97 = arith.constant 0 : index
    %160 = vector.load %arg2[%159, %c0_96, %c0_97] : memref<8x64x8xbf16, #tpu.memory_space<vmem>>, vector<1x64x8xbf16>
    %161 = vector.shape_cast %160 : vector<1x64x8xbf16> to vector<64x8xbf16>
    %162 = arith.index_cast %c6_i32 : i32 to index
    %c0_98 = arith.constant 0 : index
    %c0_99 = arith.constant 0 : index
    %163 = vector.load %arg3[%162, %c0_98, %c0_99] : memref<8x8x256xbf16, #tpu.memory_space<vmem>>, vector<1x8x256xbf16>
    %164 = vector.shape_cast %163 : vector<1x8x256xbf16> to vector<8x256xbf16>
    %165 = arith.index_cast %c6_i32 : i32 to index
    %c0_100 = arith.constant 0 : index
    %c0_101 = arith.constant 0 : index
    %166 = vector.load %arg4[%165, %c0_100, %c0_101] : memref<8x8x256xbf16, #tpu.memory_space<vmem>>, vector<1x8x256xbf16>
    %167 = vector.shape_cast %166 : vector<1x8x256xbf16> to vector<8x256xbf16>
    %cst_102 = arith.constant dense<0.000000e+00> : vector<64x256xf32>
    %168 = tpu.matmul %158, %164, %cst_102 {dimension_numbers = #tpu.dot_dimension_numbers<[1], [0], [0], [1], [0, 0, 1, 1], [], []>} : vector<64x8xbf16>, vector<8x256xbf16>, vector<64x256xf32> -> vector<64x256xf32>
    %cst_103 = arith.constant dense<0.000000e+00> : vector<64x256xf32>
    %169 = tpu.matmul %161, %167, %cst_103 {dimension_numbers = #tpu.dot_dimension_numbers<[1], [0], [0], [1], [0, 0, 1, 1], [], []>} : vector<64x8xbf16>, vector<8x256xbf16>, vector<64x256xf32> -> vector<64x256xf32>
    %170 = arith.subf %168, %169 : vector<64x256xf32>
    %171 = arith.index_cast %c6_i32 : i32 to index
    %c0_104 = arith.constant 0 : index
    %c0_105 = arith.constant 0 : index
    %172 = vector.load %arg5[%171, %c0_104, %c0_105] : memref<8x64x256xf32, #tpu.memory_space<vmem>>, vector<1x64x256xf32>
    %173 = vector.shape_cast %172 : vector<1x64x256xf32> to vector<64x256xf32>
    %174 = vector.shape_cast %170 : vector<64x256xf32> to vector<1x64x256xf32>
    tpu.vector_store %arg5[%171, %c0_104, %c0_105], %174 {strides = array<i32>} : memref<8x64x256xf32, #tpu.memory_space<vmem>>, vector<1x64x256xf32>,
    %cst_106 = arith.constant dense<0.000000e+00> : vector<64x256xf32>
    %175 = tpu.matmul %158, %167, %cst_106 {dimension_numbers = #tpu.dot_dimension_numbers<[1], [0], [0], [1], [0, 0, 1, 1], [], []>} : vector<64x8xbf16>, vector<8x256xbf16>, vector<64x256xf32> -> vector<64x256xf32>
    %cst_107 = arith.constant dense<0.000000e+00> : vector<64x256xf32>
    %176 = tpu.matmul %161, %164, %cst_107 {dimension_numbers = #tpu.dot_dimension_numbers<[1], [0], [0], [1], [0, 0, 1, 1], [], []>} : vector<64x8xbf16>, vector<8x256xbf16>, vector<64x256xf32> -> vector<64x256xf32>
    %177 = arith.addf %175, %176 : vector<64x256xf32>
    %178 = arith.index_cast %c6_i32 : i32 to index
    %c0_108 = arith.constant 0 : index
    %c0_109 = arith.constant 0 : index
    %179 = vector.load %arg6[%178, %c0_108, %c0_109] : memref<8x64x256xf32, #tpu.memory_space<vmem>>, vector<1x64x256xf32>
    %180 = vector.shape_cast %179 : vector<1x64x256xf32> to vector<64x256xf32>
    %181 = vector.shape_cast %177 : vector<64x256xf32> to vector<1x64x256xf32>
    tpu.vector_store %arg6[%178, %c0_108, %c0_109], %181 {strides = array<i32>} : memref<8x64x256xf32, #tpu.memory_space<vmem>>, vector<1x64x256xf32>,
    %c7_i32 = arith.constant 7 : i32
    %182 = arith.index_cast %c7_i32 : i32 to index
    %c0_110 = arith.constant 0 : index
    %c0_111 = arith.constant 0 : index
    %183 = vector.load %arg1[%182, %c0_110, %c0_111] : memref<8x64x8xbf16, #tpu.memory_space<vmem>>, vector<1x64x8xbf16>
    %184 = vector.shape_cast %183 : vector<1x64x8xbf16> to vector<64x8xbf16>
    %185 = arith.index_cast %c7_i32 : i32 to index
    %c0_112 = arith.constant 0 : index
    %c0_113 = arith.constant 0 : index
    %186 = vector.load %arg2[%185, %c0_112, %c0_113] : memref<8x64x8xbf16, #tpu.memory_space<vmem>>, vector<1x64x8xbf16>
    %187 = vector.shape_cast %186 : vector<1x64x8xbf16> to vector<64x8xbf16>
    %188 = arith.index_cast %c7_i32 : i32 to index
    %c0_114 = arith.constant 0 : index
    %c0_115 = arith.constant 0 : index
    %189 = vector.load %arg3[%188, %c0_114, %c0_115] : memref<8x8x256xbf16, #tpu.memory_space<vmem>>, vector<1x8x256xbf16>
    %190 = vector.shape_cast %189 : vector<1x8x256xbf16> to vector<8x256xbf16>
    %191 = arith.index_cast %c7_i32 : i32 to index
    %c0_116 = arith.constant 0 : index
    %c0_117 = arith.constant 0 : index
    %192 = vector.load %arg4[%191, %c0_116, %c0_117] : memref<8x8x256xbf16, #tpu.memory_space<vmem>>, vector<1x8x256xbf16>
    %193 = vector.shape_cast %192 : vector<1x8x256xbf16> to vector<8x256xbf16>
    %cst_118 = arith.constant dense<0.000000e+00> : vector<64x256xf32>
    %194 = tpu.matmul %184, %190, %cst_118 {dimension_numbers = #tpu.dot_dimension_numbers<[1], [0], [0], [1], [0, 0, 1, 1], [], []>} : vector<64x8xbf16>, vector<8x256xbf16>, vector<64x256xf32> -> vector<64x256xf32>
    %cst_119 = arith.constant dense<0.000000e+00> : vector<64x256xf32>
    %195 = tpu.matmul %187, %193, %cst_119 {dimension_numbers = #tpu.dot_dimension_numbers<[1], [0], [0], [1], [0, 0, 1, 1], [], []>} : vector<64x8xbf16>, vector<8x256xbf16>, vector<64x256xf32> -> vector<64x256xf32>
    %196 = arith.subf %194, %195 : vector<64x256xf32>
    %197 = arith.index_cast %c7_i32 : i32 to index
    %c0_120 = arith.constant 0 : index
    %c0_121 = arith.constant 0 : index
    %198 = vector.load %arg5[%197, %c0_120, %c0_121] : memref<8x64x256xf32, #tpu.memory_space<vmem>>, vector<1x64x256xf32>
    %199 = vector.shape_cast %198 : vector<1x64x256xf32> to vector<64x256xf32>
    %200 = vector.shape_cast %196 : vector<64x256xf32> to vector<1x64x256xf32>
    tpu.vector_store %arg5[%197, %c0_120, %c0_121], %200 {strides = array<i32>} : memref<8x64x256xf32, #tpu.memory_space<vmem>>, vector<1x64x256xf32>,
    %cst_122 = arith.constant dense<0.000000e+00> : vector<64x256xf32>
    %201 = tpu.matmul %184, %193, %cst_122 {dimension_numbers = #tpu.dot_dimension_numbers<[1], [0], [0], [1], [0, 0, 1, 1], [], []>} : vector<64x8xbf16>, vector<8x256xbf16>, vector<64x256xf32> -> vector<64x256xf32>
    %cst_123 = arith.constant dense<0.000000e+00> : vector<64x256xf32>
    %202 = tpu.matmul %187, %190, %cst_123 {dimension_numbers = #tpu.dot_dimension_numbers<[1], [0], [0], [1], [0, 0, 1, 1], [], []>} : vector<64x8xbf16>, vector<8x256xbf16>, vector<64x256xf32> -> vector<64x256xf32>
    %203 = arith.addf %201, %202 : vector<64x256xf32>
    %204 = arith.index_cast %c7_i32 : i32 to index
    %c0_124 = arith.constant 0 : index
    %c0_125 = arith.constant 0 : index
    %205 = vector.load %arg6[%204, %c0_124, %c0_125] : memref<8x64x256xf32, #tpu.memory_space<vmem>>, vector<1x64x256xf32>
    %206 = vector.shape_cast %205 : vector<1x64x256xf32> to vector<64x256xf32>
    %207 = vector.shape_cast %203 : vector<64x256xf32> to vector<1x64x256xf32>
    tpu.vector_store %arg6[%204, %c0_124, %c0_125], %207 {strides = array<i32>} : memref<8x64x256xf32, #tpu.memory_space<vmem>>, vector<1x64x256xf32>,
    %c8_i32 = arith.constant 8 : i32
    return
  }
  func.func @transform_0(%arg0: i32) -> (i32, i32, i32) {
    %c0_i32 = arith.constant 0 : i32
    %c0_i32_0 = arith.constant 0 : i32
    %c0_i32_1 = arith.constant 0 : i32
    return %arg0, %c0_i32, %c0_i32_0 : i32, i32, i32
  }
  func.func @transform_1(%arg0: i32) -> (i32, i32, i32) {
    %c0_i32 = arith.constant 0 : i32
    %c0_i32_0 = arith.constant 0 : i32
    %c0_i32_1 = arith.constant 0 : i32
    return %arg0, %c0_i32, %c0_i32_0 : i32, i32, i32
  }
  func.func @transform_2(%arg0: i32) -> (i32, i32, i32) {
    %c0_i32 = arith.constant 0 : i32
    %c0_i32_0 = arith.constant 0 : i32
    %c0_i32_1 = arith.constant 0 : i32
    return %arg0, %c0_i32, %c0_i32_0 : i32, i32, i32
  }
  func.func @transform_3(%arg0: i32) -> (i32, i32, i32) {
    %c0_i32 = arith.constant 0 : i32
    %c0_i32_0 = arith.constant 0 : i32
    %c0_i32_1 = arith.constant 0 : i32
    return %arg0, %c0_i32, %c0_i32_0 : i32, i32, i32
  }
  func.func @transform_4(%arg0: i32) -> (i32, i32, i32) {
    %c0_i32 = arith.constant 0 : i32
    %c0_i32_0 = arith.constant 0 : i32
    %c0_i32_1 = arith.constant 0 : i32
    return %arg0, %c0_i32, %c0_i32_0 : i32, i32, i32
  }
  func.func @transform_5(%arg0: i32) -> (i32, i32, i32) {
    %c0_i32 = arith.constant 0 : i32
    %c0_i32_0 = arith.constant 0 : i32
    %c0_i32_1 = arith.constant 0 : i32
    return %arg0, %c0_i32, %c0_i32_0 : i32, i32, i32
  }
}

module attributes {stable_mosaic.version = 11 : i64} {
  func.func @kernel(%arg0: i32, %arg1: memref<4x32x120xbf16, #tpu.memory_space<vmem>>, %arg2: memref<4x32x120xbf16, #tpu.memory_space<vmem>>, %arg3: memref<4x120x256xbf16, #tpu.memory_space<vmem>>, %arg4: memref<4x120x256xbf16, #tpu.memory_space<vmem>>, %arg5: memref<4x32x256xf32, #tpu.memory_space<vmem>>, %arg6: memref<4x32x256xf32, #tpu.memory_space<vmem>>) attributes {dimension_semantics = [#tpu.dimension_semantics<parallel>], iteration_bounds = array<i64: 2>, scalar_prefetch = 0 : i64, scratch_operands = 0 : i64, tpu.core_type = #tpu.core_type<tc>, window_params = [{transform_indices = @transform_0, window_bounds = array<i64: 4, 32, 120>}, {transform_indices = @transform_1, window_bounds = array<i64: 4, 32, 120>}, {transform_indices = @transform_2, window_bounds = array<i64: 4, 120, 256>}, {transform_indices = @transform_3, window_bounds = array<i64: 4, 120, 256>}, {transform_indices = @transform_4, window_bounds = array<i64: 4, 32, 256>}, {transform_indices = @transform_5, window_bounds = array<i64: 4, 32, 256>}]} {
    %c0_i32 = arith.constant 0 : i32
    %0 = arith.index_cast %c0_i32 : i32 to index
    %c0 = arith.constant 0 : index
    %c0_0 = arith.constant 0 : index
    %1 = vector.load %arg1[%0, %c0, %c0_0] : memref<4x32x120xbf16, #tpu.memory_space<vmem>>, vector<1x32x120xbf16>
    %2 = vector.shape_cast %1 : vector<1x32x120xbf16> to vector<32x120xbf16>
    %3 = arith.index_cast %c0_i32 : i32 to index
    %c0_1 = arith.constant 0 : index
    %c0_2 = arith.constant 0 : index
    %4 = vector.load %arg2[%3, %c0_1, %c0_2] : memref<4x32x120xbf16, #tpu.memory_space<vmem>>, vector<1x32x120xbf16>
    %5 = vector.shape_cast %4 : vector<1x32x120xbf16> to vector<32x120xbf16>
    %6 = arith.index_cast %c0_i32 : i32 to index
    %c0_3 = arith.constant 0 : index
    %c0_4 = arith.constant 0 : index
    %7 = vector.load %arg3[%6, %c0_3, %c0_4] : memref<4x120x256xbf16, #tpu.memory_space<vmem>>, vector<1x120x256xbf16>
    %8 = vector.shape_cast %7 : vector<1x120x256xbf16> to vector<120x256xbf16>
    %9 = arith.index_cast %c0_i32 : i32 to index
    %c0_5 = arith.constant 0 : index
    %c0_6 = arith.constant 0 : index
    %10 = vector.load %arg4[%9, %c0_5, %c0_6] : memref<4x120x256xbf16, #tpu.memory_space<vmem>>, vector<1x120x256xbf16>
    %11 = vector.shape_cast %10 : vector<1x120x256xbf16> to vector<120x256xbf16>
    %cst = arith.constant dense<0.000000e+00> : vector<32x256xf32>
    %12 = tpu.matmul %2, %8, %cst {dimension_numbers = #tpu.dot_dimension_numbers<[1], [0], [0], [1], [0, 0, 1, 1], [], []>} : vector<32x120xbf16>, vector<120x256xbf16>, vector<32x256xf32> -> vector<32x256xf32>
    %cst_7 = arith.constant dense<0.000000e+00> : vector<32x256xf32>
    %13 = tpu.matmul %5, %11, %cst_7 {dimension_numbers = #tpu.dot_dimension_numbers<[1], [0], [0], [1], [0, 0, 1, 1], [], []>} : vector<32x120xbf16>, vector<120x256xbf16>, vector<32x256xf32> -> vector<32x256xf32>
    %14 = arith.subf %12, %13 : vector<32x256xf32>
    %15 = arith.index_cast %c0_i32 : i32 to index
    %c0_8 = arith.constant 0 : index
    %c0_9 = arith.constant 0 : index
    %16 = vector.load %arg5[%15, %c0_8, %c0_9] : memref<4x32x256xf32, #tpu.memory_space<vmem>>, vector<1x32x256xf32>
    %17 = vector.shape_cast %16 : vector<1x32x256xf32> to vector<32x256xf32>
    %18 = vector.shape_cast %14 : vector<32x256xf32> to vector<1x32x256xf32>
    tpu.vector_store %arg5[%15, %c0_8, %c0_9], %18 {strides = array<i32>} : memref<4x32x256xf32, #tpu.memory_space<vmem>>, vector<1x32x256xf32>,
    %cst_10 = arith.constant dense<0.000000e+00> : vector<32x256xf32>
    %19 = tpu.matmul %2, %11, %cst_10 {dimension_numbers = #tpu.dot_dimension_numbers<[1], [0], [0], [1], [0, 0, 1, 1], [], []>} : vector<32x120xbf16>, vector<120x256xbf16>, vector<32x256xf32> -> vector<32x256xf32>
    %cst_11 = arith.constant dense<0.000000e+00> : vector<32x256xf32>
    %20 = tpu.matmul %5, %8, %cst_11 {dimension_numbers = #tpu.dot_dimension_numbers<[1], [0], [0], [1], [0, 0, 1, 1], [], []>} : vector<32x120xbf16>, vector<120x256xbf16>, vector<32x256xf32> -> vector<32x256xf32>
    %21 = arith.addf %19, %20 : vector<32x256xf32>
    %22 = arith.index_cast %c0_i32 : i32 to index
    %c0_12 = arith.constant 0 : index
    %c0_13 = arith.constant 0 : index
    %23 = vector.load %arg6[%22, %c0_12, %c0_13] : memref<4x32x256xf32, #tpu.memory_space<vmem>>, vector<1x32x256xf32>
    %24 = vector.shape_cast %23 : vector<1x32x256xf32> to vector<32x256xf32>
    %25 = vector.shape_cast %21 : vector<32x256xf32> to vector<1x32x256xf32>
    tpu.vector_store %arg6[%22, %c0_12, %c0_13], %25 {strides = array<i32>} : memref<4x32x256xf32, #tpu.memory_space<vmem>>, vector<1x32x256xf32>,
    %c1_i32 = arith.constant 1 : i32
    %26 = arith.index_cast %c1_i32 : i32 to index
    %c0_14 = arith.constant 0 : index
    %c0_15 = arith.constant 0 : index
    %27 = vector.load %arg1[%26, %c0_14, %c0_15] : memref<4x32x120xbf16, #tpu.memory_space<vmem>>, vector<1x32x120xbf16>
    %28 = vector.shape_cast %27 : vector<1x32x120xbf16> to vector<32x120xbf16>
    %29 = arith.index_cast %c1_i32 : i32 to index
    %c0_16 = arith.constant 0 : index
    %c0_17 = arith.constant 0 : index
    %30 = vector.load %arg2[%29, %c0_16, %c0_17] : memref<4x32x120xbf16, #tpu.memory_space<vmem>>, vector<1x32x120xbf16>
    %31 = vector.shape_cast %30 : vector<1x32x120xbf16> to vector<32x120xbf16>
    %32 = arith.index_cast %c1_i32 : i32 to index
    %c0_18 = arith.constant 0 : index
    %c0_19 = arith.constant 0 : index
    %33 = vector.load %arg3[%32, %c0_18, %c0_19] : memref<4x120x256xbf16, #tpu.memory_space<vmem>>, vector<1x120x256xbf16>
    %34 = vector.shape_cast %33 : vector<1x120x256xbf16> to vector<120x256xbf16>
    %35 = arith.index_cast %c1_i32 : i32 to index
    %c0_20 = arith.constant 0 : index
    %c0_21 = arith.constant 0 : index
    %36 = vector.load %arg4[%35, %c0_20, %c0_21] : memref<4x120x256xbf16, #tpu.memory_space<vmem>>, vector<1x120x256xbf16>
    %37 = vector.shape_cast %36 : vector<1x120x256xbf16> to vector<120x256xbf16>
    %cst_22 = arith.constant dense<0.000000e+00> : vector<32x256xf32>
    %38 = tpu.matmul %28, %34, %cst_22 {dimension_numbers = #tpu.dot_dimension_numbers<[1], [0], [0], [1], [0, 0, 1, 1], [], []>} : vector<32x120xbf16>, vector<120x256xbf16>, vector<32x256xf32> -> vector<32x256xf32>
    %cst_23 = arith.constant dense<0.000000e+00> : vector<32x256xf32>
    %39 = tpu.matmul %31, %37, %cst_23 {dimension_numbers = #tpu.dot_dimension_numbers<[1], [0], [0], [1], [0, 0, 1, 1], [], []>} : vector<32x120xbf16>, vector<120x256xbf16>, vector<32x256xf32> -> vector<32x256xf32>
    %40 = arith.subf %38, %39 : vector<32x256xf32>
    %41 = arith.index_cast %c1_i32 : i32 to index
    %c0_24 = arith.constant 0 : index
    %c0_25 = arith.constant 0 : index
    %42 = vector.load %arg5[%41, %c0_24, %c0_25] : memref<4x32x256xf32, #tpu.memory_space<vmem>>, vector<1x32x256xf32>
    %43 = vector.shape_cast %42 : vector<1x32x256xf32> to vector<32x256xf32>
    %44 = vector.shape_cast %40 : vector<32x256xf32> to vector<1x32x256xf32>
    tpu.vector_store %arg5[%41, %c0_24, %c0_25], %44 {strides = array<i32>} : memref<4x32x256xf32, #tpu.memory_space<vmem>>, vector<1x32x256xf32>,
    %cst_26 = arith.constant dense<0.000000e+00> : vector<32x256xf32>
    %45 = tpu.matmul %28, %37, %cst_26 {dimension_numbers = #tpu.dot_dimension_numbers<[1], [0], [0], [1], [0, 0, 1, 1], [], []>} : vector<32x120xbf16>, vector<120x256xbf16>, vector<32x256xf32> -> vector<32x256xf32>
    %cst_27 = arith.constant dense<0.000000e+00> : vector<32x256xf32>
    %46 = tpu.matmul %31, %34, %cst_27 {dimension_numbers = #tpu.dot_dimension_numbers<[1], [0], [0], [1], [0, 0, 1, 1], [], []>} : vector<32x120xbf16>, vector<120x256xbf16>, vector<32x256xf32> -> vector<32x256xf32>
    %47 = arith.addf %45, %46 : vector<32x256xf32>
    %48 = arith.index_cast %c1_i32 : i32 to index
    %c0_28 = arith.constant 0 : index
    %c0_29 = arith.constant 0 : index
    %49 = vector.load %arg6[%48, %c0_28, %c0_29] : memref<4x32x256xf32, #tpu.memory_space<vmem>>, vector<1x32x256xf32>
    %50 = vector.shape_cast %49 : vector<1x32x256xf32> to vector<32x256xf32>
    %51 = vector.shape_cast %47 : vector<32x256xf32> to vector<1x32x256xf32>
    tpu.vector_store %arg6[%48, %c0_28, %c0_29], %51 {strides = array<i32>} : memref<4x32x256xf32, #tpu.memory_space<vmem>>, vector<1x32x256xf32>,
    %c2_i32 = arith.constant 2 : i32
    %52 = arith.index_cast %c2_i32 : i32 to index
    %c0_30 = arith.constant 0 : index
    %c0_31 = arith.constant 0 : index
    %53 = vector.load %arg1[%52, %c0_30, %c0_31] : memref<4x32x120xbf16, #tpu.memory_space<vmem>>, vector<1x32x120xbf16>
    %54 = vector.shape_cast %53 : vector<1x32x120xbf16> to vector<32x120xbf16>
    %55 = arith.index_cast %c2_i32 : i32 to index
    %c0_32 = arith.constant 0 : index
    %c0_33 = arith.constant 0 : index
    %56 = vector.load %arg2[%55, %c0_32, %c0_33] : memref<4x32x120xbf16, #tpu.memory_space<vmem>>, vector<1x32x120xbf16>
    %57 = vector.shape_cast %56 : vector<1x32x120xbf16> to vector<32x120xbf16>
    %58 = arith.index_cast %c2_i32 : i32 to index
    %c0_34 = arith.constant 0 : index
    %c0_35 = arith.constant 0 : index
    %59 = vector.load %arg3[%58, %c0_34, %c0_35] : memref<4x120x256xbf16, #tpu.memory_space<vmem>>, vector<1x120x256xbf16>
    %60 = vector.shape_cast %59 : vector<1x120x256xbf16> to vector<120x256xbf16>
    %61 = arith.index_cast %c2_i32 : i32 to index
    %c0_36 = arith.constant 0 : index
    %c0_37 = arith.constant 0 : index
    %62 = vector.load %arg4[%61, %c0_36, %c0_37] : memref<4x120x256xbf16, #tpu.memory_space<vmem>>, vector<1x120x256xbf16>
    %63 = vector.shape_cast %62 : vector<1x120x256xbf16> to vector<120x256xbf16>
    %cst_38 = arith.constant dense<0.000000e+00> : vector<32x256xf32>
    %64 = tpu.matmul %54, %60, %cst_38 {dimension_numbers = #tpu.dot_dimension_numbers<[1], [0], [0], [1], [0, 0, 1, 1], [], []>} : vector<32x120xbf16>, vector<120x256xbf16>, vector<32x256xf32> -> vector<32x256xf32>
    %cst_39 = arith.constant dense<0.000000e+00> : vector<32x256xf32>
    %65 = tpu.matmul %57, %63, %cst_39 {dimension_numbers = #tpu.dot_dimension_numbers<[1], [0], [0], [1], [0, 0, 1, 1], [], []>} : vector<32x120xbf16>, vector<120x256xbf16>, vector<32x256xf32> -> vector<32x256xf32>
    %66 = arith.subf %64, %65 : vector<32x256xf32>
    %67 = arith.index_cast %c2_i32 : i32 to index
    %c0_40 = arith.constant 0 : index
    %c0_41 = arith.constant 0 : index
    %68 = vector.load %arg5[%67, %c0_40, %c0_41] : memref<4x32x256xf32, #tpu.memory_space<vmem>>, vector<1x32x256xf32>
    %69 = vector.shape_cast %68 : vector<1x32x256xf32> to vector<32x256xf32>
    %70 = vector.shape_cast %66 : vector<32x256xf32> to vector<1x32x256xf32>
    tpu.vector_store %arg5[%67, %c0_40, %c0_41], %70 {strides = array<i32>} : memref<4x32x256xf32, #tpu.memory_space<vmem>>, vector<1x32x256xf32>,
    %cst_42 = arith.constant dense<0.000000e+00> : vector<32x256xf32>
    %71 = tpu.matmul %54, %63, %cst_42 {dimension_numbers = #tpu.dot_dimension_numbers<[1], [0], [0], [1], [0, 0, 1, 1], [], []>} : vector<32x120xbf16>, vector<120x256xbf16>, vector<32x256xf32> -> vector<32x256xf32>
    %cst_43 = arith.constant dense<0.000000e+00> : vector<32x256xf32>
    %72 = tpu.matmul %57, %60, %cst_43 {dimension_numbers = #tpu.dot_dimension_numbers<[1], [0], [0], [1], [0, 0, 1, 1], [], []>} : vector<32x120xbf16>, vector<120x256xbf16>, vector<32x256xf32> -> vector<32x256xf32>
    %73 = arith.addf %71, %72 : vector<32x256xf32>
    %74 = arith.index_cast %c2_i32 : i32 to index
    %c0_44 = arith.constant 0 : index
    %c0_45 = arith.constant 0 : index
    %75 = vector.load %arg6[%74, %c0_44, %c0_45] : memref<4x32x256xf32, #tpu.memory_space<vmem>>, vector<1x32x256xf32>
    %76 = vector.shape_cast %75 : vector<1x32x256xf32> to vector<32x256xf32>
    %77 = vector.shape_cast %73 : vector<32x256xf32> to vector<1x32x256xf32>
    tpu.vector_store %arg6[%74, %c0_44, %c0_45], %77 {strides = array<i32>} : memref<4x32x256xf32, #tpu.memory_space<vmem>>, vector<1x32x256xf32>,
    %c3_i32 = arith.constant 3 : i32
    %78 = arith.index_cast %c3_i32 : i32 to index
    %c0_46 = arith.constant 0 : index
    %c0_47 = arith.constant 0 : index
    %79 = vector.load %arg1[%78, %c0_46, %c0_47] : memref<4x32x120xbf16, #tpu.memory_space<vmem>>, vector<1x32x120xbf16>
    %80 = vector.shape_cast %79 : vector<1x32x120xbf16> to vector<32x120xbf16>
    %81 = arith.index_cast %c3_i32 : i32 to index
    %c0_48 = arith.constant 0 : index
    %c0_49 = arith.constant 0 : index
    %82 = vector.load %arg2[%81, %c0_48, %c0_49] : memref<4x32x120xbf16, #tpu.memory_space<vmem>>, vector<1x32x120xbf16>
    %83 = vector.shape_cast %82 : vector<1x32x120xbf16> to vector<32x120xbf16>
    %84 = arith.index_cast %c3_i32 : i32 to index
    %c0_50 = arith.constant 0 : index
    %c0_51 = arith.constant 0 : index
    %85 = vector.load %arg3[%84, %c0_50, %c0_51] : memref<4x120x256xbf16, #tpu.memory_space<vmem>>, vector<1x120x256xbf16>
    %86 = vector.shape_cast %85 : vector<1x120x256xbf16> to vector<120x256xbf16>
    %87 = arith.index_cast %c3_i32 : i32 to index
    %c0_52 = arith.constant 0 : index
    %c0_53 = arith.constant 0 : index
    %88 = vector.load %arg4[%87, %c0_52, %c0_53] : memref<4x120x256xbf16, #tpu.memory_space<vmem>>, vector<1x120x256xbf16>
    %89 = vector.shape_cast %88 : vector<1x120x256xbf16> to vector<120x256xbf16>
    %cst_54 = arith.constant dense<0.000000e+00> : vector<32x256xf32>
    %90 = tpu.matmul %80, %86, %cst_54 {dimension_numbers = #tpu.dot_dimension_numbers<[1], [0], [0], [1], [0, 0, 1, 1], [], []>} : vector<32x120xbf16>, vector<120x256xbf16>, vector<32x256xf32> -> vector<32x256xf32>
    %cst_55 = arith.constant dense<0.000000e+00> : vector<32x256xf32>
    %91 = tpu.matmul %83, %89, %cst_55 {dimension_numbers = #tpu.dot_dimension_numbers<[1], [0], [0], [1], [0, 0, 1, 1], [], []>} : vector<32x120xbf16>, vector<120x256xbf16>, vector<32x256xf32> -> vector<32x256xf32>
    %92 = arith.subf %90, %91 : vector<32x256xf32>
    %93 = arith.index_cast %c3_i32 : i32 to index
    %c0_56 = arith.constant 0 : index
    %c0_57 = arith.constant 0 : index
    %94 = vector.load %arg5[%93, %c0_56, %c0_57] : memref<4x32x256xf32, #tpu.memory_space<vmem>>, vector<1x32x256xf32>
    %95 = vector.shape_cast %94 : vector<1x32x256xf32> to vector<32x256xf32>
    %96 = vector.shape_cast %92 : vector<32x256xf32> to vector<1x32x256xf32>
    tpu.vector_store %arg5[%93, %c0_56, %c0_57], %96 {strides = array<i32>} : memref<4x32x256xf32, #tpu.memory_space<vmem>>, vector<1x32x256xf32>,
    %cst_58 = arith.constant dense<0.000000e+00> : vector<32x256xf32>
    %97 = tpu.matmul %80, %89, %cst_58 {dimension_numbers = #tpu.dot_dimension_numbers<[1], [0], [0], [1], [0, 0, 1, 1], [], []>} : vector<32x120xbf16>, vector<120x256xbf16>, vector<32x256xf32> -> vector<32x256xf32>
    %cst_59 = arith.constant dense<0.000000e+00> : vector<32x256xf32>
    %98 = tpu.matmul %83, %86, %cst_59 {dimension_numbers = #tpu.dot_dimension_numbers<[1], [0], [0], [1], [0, 0, 1, 1], [], []>} : vector<32x120xbf16>, vector<120x256xbf16>, vector<32x256xf32> -> vector<32x256xf32>
    %99 = arith.addf %97, %98 : vector<32x256xf32>
    %100 = arith.index_cast %c3_i32 : i32 to index
    %c0_60 = arith.constant 0 : index
    %c0_61 = arith.constant 0 : index
    %101 = vector.load %arg6[%100, %c0_60, %c0_61] : memref<4x32x256xf32, #tpu.memory_space<vmem>>, vector<1x32x256xf32>
    %102 = vector.shape_cast %101 : vector<1x32x256xf32> to vector<32x256xf32>
    %103 = vector.shape_cast %99 : vector<32x256xf32> to vector<1x32x256xf32>
    tpu.vector_store %arg6[%100, %c0_60, %c0_61], %103 {strides = array<i32>} : memref<4x32x256xf32, #tpu.memory_space<vmem>>, vector<1x32x256xf32>,
    %c4_i32 = arith.constant 4 : i32
    return
  }
  func.func @transform_0(%arg0: i32) -> (i32, i32, i32) {
    %c0_i32 = arith.constant 0 : i32
    %c0_i32_0 = arith.constant 0 : i32
    %c0_i32_1 = arith.constant 0 : i32
    return %arg0, %c0_i32, %c0_i32_0 : i32, i32, i32
  }
  func.func @transform_1(%arg0: i32) -> (i32, i32, i32) {
    %c0_i32 = arith.constant 0 : i32
    %c0_i32_0 = arith.constant 0 : i32
    %c0_i32_1 = arith.constant 0 : i32
    return %arg0, %c0_i32, %c0_i32_0 : i32, i32, i32
  }
  func.func @transform_2(%arg0: i32) -> (i32, i32, i32) {
    %c0_i32 = arith.constant 0 : i32
    %c0_i32_0 = arith.constant 0 : i32
    %c0_i32_1 = arith.constant 0 : i32
    return %arg0, %c0_i32, %c0_i32_0 : i32, i32, i32
  }
  func.func @transform_3(%arg0: i32) -> (i32, i32, i32) {
    %c0_i32 = arith.constant 0 : i32
    %c0_i32_0 = arith.constant 0 : i32
    %c0_i32_1 = arith.constant 0 : i32
    return %arg0, %c0_i32, %c0_i32_0 : i32, i32, i32
  }
  func.func @transform_4(%arg0: i32) -> (i32, i32, i32) {
    %c0_i32 = arith.constant 0 : i32
    %c0_i32_0 = arith.constant 0 : i32
    %c0_i32_1 = arith.constant 0 : i32
    return %arg0, %c0_i32, %c0_i32_0 : i32, i32, i32
  }
  func.func @transform_5(%arg0: i32) -> (i32, i32, i32) {
    %c0_i32 = arith.constant 0 : i32
    %c0_i32_0 = arith.constant 0 : i32
    %c0_i32_1 = arith.constant 0 : i32
    return %arg0, %c0_i32, %c0_i32_0 : i32, i32, i32
  }
}

module attributes {stable_mosaic.version = 11 : i64} {
  func.func @kernel(%arg0: i32, %arg1: memref<4x32x240xbf16, #tpu.memory_space<vmem>>, %arg2: memref<4x32x240xbf16, #tpu.memory_space<vmem>>, %arg3: memref<4x240x256xbf16, #tpu.memory_space<vmem>>, %arg4: memref<4x240x256xbf16, #tpu.memory_space<vmem>>, %arg5: memref<4x32x256xf32, #tpu.memory_space<vmem>>, %arg6: memref<4x32x256xf32, #tpu.memory_space<vmem>>) attributes {dimension_semantics = [#tpu.dimension_semantics<parallel>], iteration_bounds = array<i64: 2>, scalar_prefetch = 0 : i64, scratch_operands = 0 : i64, tpu.core_type = #tpu.core_type<tc>, window_params = [{transform_indices = @transform_0, window_bounds = array<i64: 4, 32, 240>}, {transform_indices = @transform_1, window_bounds = array<i64: 4, 32, 240>}, {transform_indices = @transform_2, window_bounds = array<i64: 4, 240, 256>}, {transform_indices = @transform_3, window_bounds = array<i64: 4, 240, 256>}, {transform_indices = @transform_4, window_bounds = array<i64: 4, 32, 256>}, {transform_indices = @transform_5, window_bounds = array<i64: 4, 32, 256>}]} {
    %c0_i32 = arith.constant 0 : i32
    %0 = arith.index_cast %c0_i32 : i32 to index
    %c0 = arith.constant 0 : index
    %c0_0 = arith.constant 0 : index
    %1 = vector.load %arg1[%0, %c0, %c0_0] : memref<4x32x240xbf16, #tpu.memory_space<vmem>>, vector<1x32x240xbf16>
    %2 = vector.shape_cast %1 : vector<1x32x240xbf16> to vector<32x240xbf16>
    %3 = arith.index_cast %c0_i32 : i32 to index
    %c0_1 = arith.constant 0 : index
    %c0_2 = arith.constant 0 : index
    %4 = vector.load %arg2[%3, %c0_1, %c0_2] : memref<4x32x240xbf16, #tpu.memory_space<vmem>>, vector<1x32x240xbf16>
    %5 = vector.shape_cast %4 : vector<1x32x240xbf16> to vector<32x240xbf16>
    %6 = arith.index_cast %c0_i32 : i32 to index
    %c0_3 = arith.constant 0 : index
    %c0_4 = arith.constant 0 : index
    %7 = vector.load %arg3[%6, %c0_3, %c0_4] : memref<4x240x256xbf16, #tpu.memory_space<vmem>>, vector<1x240x256xbf16>
    %8 = vector.shape_cast %7 : vector<1x240x256xbf16> to vector<240x256xbf16>
    %9 = arith.index_cast %c0_i32 : i32 to index
    %c0_5 = arith.constant 0 : index
    %c0_6 = arith.constant 0 : index
    %10 = vector.load %arg4[%9, %c0_5, %c0_6] : memref<4x240x256xbf16, #tpu.memory_space<vmem>>, vector<1x240x256xbf16>
    %11 = vector.shape_cast %10 : vector<1x240x256xbf16> to vector<240x256xbf16>
    %cst = arith.constant dense<0.000000e+00> : vector<32x256xf32>
    %12 = tpu.matmul %2, %8, %cst {dimension_numbers = #tpu.dot_dimension_numbers<[1], [0], [0], [1], [0, 0, 1, 1], [], []>} : vector<32x240xbf16>, vector<240x256xbf16>, vector<32x256xf32> -> vector<32x256xf32>
    %cst_7 = arith.constant dense<0.000000e+00> : vector<32x256xf32>
    %13 = tpu.matmul %5, %11, %cst_7 {dimension_numbers = #tpu.dot_dimension_numbers<[1], [0], [0], [1], [0, 0, 1, 1], [], []>} : vector<32x240xbf16>, vector<240x256xbf16>, vector<32x256xf32> -> vector<32x256xf32>
    %14 = arith.subf %12, %13 : vector<32x256xf32>
    %15 = arith.index_cast %c0_i32 : i32 to index
    %c0_8 = arith.constant 0 : index
    %c0_9 = arith.constant 0 : index
    %16 = vector.load %arg5[%15, %c0_8, %c0_9] : memref<4x32x256xf32, #tpu.memory_space<vmem>>, vector<1x32x256xf32>
    %17 = vector.shape_cast %16 : vector<1x32x256xf32> to vector<32x256xf32>
    %18 = vector.shape_cast %14 : vector<32x256xf32> to vector<1x32x256xf32>
    tpu.vector_store %arg5[%15, %c0_8, %c0_9], %18 {strides = array<i32>} : memref<4x32x256xf32, #tpu.memory_space<vmem>>, vector<1x32x256xf32>,
    %cst_10 = arith.constant dense<0.000000e+00> : vector<32x256xf32>
    %19 = tpu.matmul %2, %11, %cst_10 {dimension_numbers = #tpu.dot_dimension_numbers<[1], [0], [0], [1], [0, 0, 1, 1], [], []>} : vector<32x240xbf16>, vector<240x256xbf16>, vector<32x256xf32> -> vector<32x256xf32>
    %cst_11 = arith.constant dense<0.000000e+00> : vector<32x256xf32>
    %20 = tpu.matmul %5, %8, %cst_11 {dimension_numbers = #tpu.dot_dimension_numbers<[1], [0], [0], [1], [0, 0, 1, 1], [], []>} : vector<32x240xbf16>, vector<240x256xbf16>, vector<32x256xf32> -> vector<32x256xf32>
    %21 = arith.addf %19, %20 : vector<32x256xf32>
    %22 = arith.index_cast %c0_i32 : i32 to index
    %c0_12 = arith.constant 0 : index
    %c0_13 = arith.constant 0 : index
    %23 = vector.load %arg6[%22, %c0_12, %c0_13] : memref<4x32x256xf32, #tpu.memory_space<vmem>>, vector<1x32x256xf32>
    %24 = vector.shape_cast %23 : vector<1x32x256xf32> to vector<32x256xf32>
    %25 = vector.shape_cast %21 : vector<32x256xf32> to vector<1x32x256xf32>
    tpu.vector_store %arg6[%22, %c0_12, %c0_13], %25 {strides = array<i32>} : memref<4x32x256xf32, #tpu.memory_space<vmem>>, vector<1x32x256xf32>,
    %c1_i32 = arith.constant 1 : i32
    %26 = arith.index_cast %c1_i32 : i32 to index
    %c0_14 = arith.constant 0 : index
    %c0_15 = arith.constant 0 : index
    %27 = vector.load %arg1[%26, %c0_14, %c0_15] : memref<4x32x240xbf16, #tpu.memory_space<vmem>>, vector<1x32x240xbf16>
    %28 = vector.shape_cast %27 : vector<1x32x240xbf16> to vector<32x240xbf16>
    %29 = arith.index_cast %c1_i32 : i32 to index
    %c0_16 = arith.constant 0 : index
    %c0_17 = arith.constant 0 : index
    %30 = vector.load %arg2[%29, %c0_16, %c0_17] : memref<4x32x240xbf16, #tpu.memory_space<vmem>>, vector<1x32x240xbf16>
    %31 = vector.shape_cast %30 : vector<1x32x240xbf16> to vector<32x240xbf16>
    %32 = arith.index_cast %c1_i32 : i32 to index
    %c0_18 = arith.constant 0 : index
    %c0_19 = arith.constant 0 : index
    %33 = vector.load %arg3[%32, %c0_18, %c0_19] : memref<4x240x256xbf16, #tpu.memory_space<vmem>>, vector<1x240x256xbf16>
    %34 = vector.shape_cast %33 : vector<1x240x256xbf16> to vector<240x256xbf16>
    %35 = arith.index_cast %c1_i32 : i32 to index
    %c0_20 = arith.constant 0 : index
    %c0_21 = arith.constant 0 : index
    %36 = vector.load %arg4[%35, %c0_20, %c0_21] : memref<4x240x256xbf16, #tpu.memory_space<vmem>>, vector<1x240x256xbf16>
    %37 = vector.shape_cast %36 : vector<1x240x256xbf16> to vector<240x256xbf16>
    %cst_22 = arith.constant dense<0.000000e+00> : vector<32x256xf32>
    %38 = tpu.matmul %28, %34, %cst_22 {dimension_numbers = #tpu.dot_dimension_numbers<[1], [0], [0], [1], [0, 0, 1, 1], [], []>} : vector<32x240xbf16>, vector<240x256xbf16>, vector<32x256xf32> -> vector<32x256xf32>
    %cst_23 = arith.constant dense<0.000000e+00> : vector<32x256xf32>
    %39 = tpu.matmul %31, %37, %cst_23 {dimension_numbers = #tpu.dot_dimension_numbers<[1], [0], [0], [1], [0, 0, 1, 1], [], []>} : vector<32x240xbf16>, vector<240x256xbf16>, vector<32x256xf32> -> vector<32x256xf32>
    %40 = arith.subf %38, %39 : vector<32x256xf32>
    %41 = arith.index_cast %c1_i32 : i32 to index
    %c0_24 = arith.constant 0 : index
    %c0_25 = arith.constant 0 : index
    %42 = vector.load %arg5[%41, %c0_24, %c0_25] : memref<4x32x256xf32, #tpu.memory_space<vmem>>, vector<1x32x256xf32>
    %43 = vector.shape_cast %42 : vector<1x32x256xf32> to vector<32x256xf32>
    %44 = vector.shape_cast %40 : vector<32x256xf32> to vector<1x32x256xf32>
    tpu.vector_store %arg5[%41, %c0_24, %c0_25], %44 {strides = array<i32>} : memref<4x32x256xf32, #tpu.memory_space<vmem>>, vector<1x32x256xf32>,
    %cst_26 = arith.constant dense<0.000000e+00> : vector<32x256xf32>
    %45 = tpu.matmul %28, %37, %cst_26 {dimension_numbers = #tpu.dot_dimension_numbers<[1], [0], [0], [1], [0, 0, 1, 1], [], []>} : vector<32x240xbf16>, vector<240x256xbf16>, vector<32x256xf32> -> vector<32x256xf32>
    %cst_27 = arith.constant dense<0.000000e+00> : vector<32x256xf32>
    %46 = tpu.matmul %31, %34, %cst_27 {dimension_numbers = #tpu.dot_dimension_numbers<[1], [0], [0], [1], [0, 0, 1, 1], [], []>} : vector<32x240xbf16>, vector<240x256xbf16>, vector<32x256xf32> -> vector<32x256xf32>
    %47 = arith.addf %45, %46 : vector<32x256xf32>
    %48 = arith.index_cast %c1_i32 : i32 to index
    %c0_28 = arith.constant 0 : index
    %c0_29 = arith.constant 0 : index
    %49 = vector.load %arg6[%48, %c0_28, %c0_29] : memref<4x32x256xf32, #tpu.memory_space<vmem>>, vector<1x32x256xf32>
    %50 = vector.shape_cast %49 : vector<1x32x256xf32> to vector<32x256xf32>
    %51 = vector.shape_cast %47 : vector<32x256xf32> to vector<1x32x256xf32>
    tpu.vector_store %arg6[%48, %c0_28, %c0_29], %51 {strides = array<i32>} : memref<4x32x256xf32, #tpu.memory_space<vmem>>, vector<1x32x256xf32>,
    %c2_i32 = arith.constant 2 : i32
    %52 = arith.index_cast %c2_i32 : i32 to index
    %c0_30 = arith.constant 0 : index
    %c0_31 = arith.constant 0 : index
    %53 = vector.load %arg1[%52, %c0_30, %c0_31] : memref<4x32x240xbf16, #tpu.memory_space<vmem>>, vector<1x32x240xbf16>
    %54 = vector.shape_cast %53 : vector<1x32x240xbf16> to vector<32x240xbf16>
    %55 = arith.index_cast %c2_i32 : i32 to index
    %c0_32 = arith.constant 0 : index
    %c0_33 = arith.constant 0 : index
    %56 = vector.load %arg2[%55, %c0_32, %c0_33] : memref<4x32x240xbf16, #tpu.memory_space<vmem>>, vector<1x32x240xbf16>
    %57 = vector.shape_cast %56 : vector<1x32x240xbf16> to vector<32x240xbf16>
    %58 = arith.index_cast %c2_i32 : i32 to index
    %c0_34 = arith.constant 0 : index
    %c0_35 = arith.constant 0 : index
    %59 = vector.load %arg3[%58, %c0_34, %c0_35] : memref<4x240x256xbf16, #tpu.memory_space<vmem>>, vector<1x240x256xbf16>
    %60 = vector.shape_cast %59 : vector<1x240x256xbf16> to vector<240x256xbf16>
    %61 = arith.index_cast %c2_i32 : i32 to index
    %c0_36 = arith.constant 0 : index
    %c0_37 = arith.constant 0 : index
    %62 = vector.load %arg4[%61, %c0_36, %c0_37] : memref<4x240x256xbf16, #tpu.memory_space<vmem>>, vector<1x240x256xbf16>
    %63 = vector.shape_cast %62 : vector<1x240x256xbf16> to vector<240x256xbf16>
    %cst_38 = arith.constant dense<0.000000e+00> : vector<32x256xf32>
    %64 = tpu.matmul %54, %60, %cst_38 {dimension_numbers = #tpu.dot_dimension_numbers<[1], [0], [0], [1], [0, 0, 1, 1], [], []>} : vector<32x240xbf16>, vector<240x256xbf16>, vector<32x256xf32> -> vector<32x256xf32>
    %cst_39 = arith.constant dense<0.000000e+00> : vector<32x256xf32>
    %65 = tpu.matmul %57, %63, %cst_39 {dimension_numbers = #tpu.dot_dimension_numbers<[1], [0], [0], [1], [0, 0, 1, 1], [], []>} : vector<32x240xbf16>, vector<240x256xbf16>, vector<32x256xf32> -> vector<32x256xf32>
    %66 = arith.subf %64, %65 : vector<32x256xf32>
    %67 = arith.index_cast %c2_i32 : i32 to index
    %c0_40 = arith.constant 0 : index
    %c0_41 = arith.constant 0 : index
    %68 = vector.load %arg5[%67, %c0_40, %c0_41] : memref<4x32x256xf32, #tpu.memory_space<vmem>>, vector<1x32x256xf32>
    %69 = vector.shape_cast %68 : vector<1x32x256xf32> to vector<32x256xf32>
    %70 = vector.shape_cast %66 : vector<32x256xf32> to vector<1x32x256xf32>
    tpu.vector_store %arg5[%67, %c0_40, %c0_41], %70 {strides = array<i32>} : memref<4x32x256xf32, #tpu.memory_space<vmem>>, vector<1x32x256xf32>,
    %cst_42 = arith.constant dense<0.000000e+00> : vector<32x256xf32>
    %71 = tpu.matmul %54, %63, %cst_42 {dimension_numbers = #tpu.dot_dimension_numbers<[1], [0], [0], [1], [0, 0, 1, 1], [], []>} : vector<32x240xbf16>, vector<240x256xbf16>, vector<32x256xf32> -> vector<32x256xf32>
    %cst_43 = arith.constant dense<0.000000e+00> : vector<32x256xf32>
    %72 = tpu.matmul %57, %60, %cst_43 {dimension_numbers = #tpu.dot_dimension_numbers<[1], [0], [0], [1], [0, 0, 1, 1], [], []>} : vector<32x240xbf16>, vector<240x256xbf16>, vector<32x256xf32> -> vector<32x256xf32>
    %73 = arith.addf %71, %72 : vector<32x256xf32>
    %74 = arith.index_cast %c2_i32 : i32 to index
    %c0_44 = arith.constant 0 : index
    %c0_45 = arith.constant 0 : index
    %75 = vector.load %arg6[%74, %c0_44, %c0_45] : memref<4x32x256xf32, #tpu.memory_space<vmem>>, vector<1x32x256xf32>
    %76 = vector.shape_cast %75 : vector<1x32x256xf32> to vector<32x256xf32>
    %77 = vector.shape_cast %73 : vector<32x256xf32> to vector<1x32x256xf32>
    tpu.vector_store %arg6[%74, %c0_44, %c0_45], %77 {strides = array<i32>} : memref<4x32x256xf32, #tpu.memory_space<vmem>>, vector<1x32x256xf32>,
    %c3_i32 = arith.constant 3 : i32
    %78 = arith.index_cast %c3_i32 : i32 to index
    %c0_46 = arith.constant 0 : index
    %c0_47 = arith.constant 0 : index
    %79 = vector.load %arg1[%78, %c0_46, %c0_47] : memref<4x32x240xbf16, #tpu.memory_space<vmem>>, vector<1x32x240xbf16>
    %80 = vector.shape_cast %79 : vector<1x32x240xbf16> to vector<32x240xbf16>
    %81 = arith.index_cast %c3_i32 : i32 to index
    %c0_48 = arith.constant 0 : index
    %c0_49 = arith.constant 0 : index
    %82 = vector.load %arg2[%81, %c0_48, %c0_49] : memref<4x32x240xbf16, #tpu.memory_space<vmem>>, vector<1x32x240xbf16>
    %83 = vector.shape_cast %82 : vector<1x32x240xbf16> to vector<32x240xbf16>
    %84 = arith.index_cast %c3_i32 : i32 to index
    %c0_50 = arith.constant 0 : index
    %c0_51 = arith.constant 0 : index
    %85 = vector.load %arg3[%84, %c0_50, %c0_51] : memref<4x240x256xbf16, #tpu.memory_space<vmem>>, vector<1x240x256xbf16>
    %86 = vector.shape_cast %85 : vector<1x240x256xbf16> to vector<240x256xbf16>
    %87 = arith.index_cast %c3_i32 : i32 to index
    %c0_52 = arith.constant 0 : index
    %c0_53 = arith.constant 0 : index
    %88 = vector.load %arg4[%87, %c0_52, %c0_53] : memref<4x240x256xbf16, #tpu.memory_space<vmem>>, vector<1x240x256xbf16>
    %89 = vector.shape_cast %88 : vector<1x240x256xbf16> to vector<240x256xbf16>
    %cst_54 = arith.constant dense<0.000000e+00> : vector<32x256xf32>
    %90 = tpu.matmul %80, %86, %cst_54 {dimension_numbers = #tpu.dot_dimension_numbers<[1], [0], [0], [1], [0, 0, 1, 1], [], []>} : vector<32x240xbf16>, vector<240x256xbf16>, vector<32x256xf32> -> vector<32x256xf32>
    %cst_55 = arith.constant dense<0.000000e+00> : vector<32x256xf32>
    %91 = tpu.matmul %83, %89, %cst_55 {dimension_numbers = #tpu.dot_dimension_numbers<[1], [0], [0], [1], [0, 0, 1, 1], [], []>} : vector<32x240xbf16>, vector<240x256xbf16>, vector<32x256xf32> -> vector<32x256xf32>
    %92 = arith.subf %90, %91 : vector<32x256xf32>
    %93 = arith.index_cast %c3_i32 : i32 to index
    %c0_56 = arith.constant 0 : index
    %c0_57 = arith.constant 0 : index
    %94 = vector.load %arg5[%93, %c0_56, %c0_57] : memref<4x32x256xf32, #tpu.memory_space<vmem>>, vector<1x32x256xf32>
    %95 = vector.shape_cast %94 : vector<1x32x256xf32> to vector<32x256xf32>
    %96 = vector.shape_cast %92 : vector<32x256xf32> to vector<1x32x256xf32>
    tpu.vector_store %arg5[%93, %c0_56, %c0_57], %96 {strides = array<i32>} : memref<4x32x256xf32, #tpu.memory_space<vmem>>, vector<1x32x256xf32>,
    %cst_58 = arith.constant dense<0.000000e+00> : vector<32x256xf32>
    %97 = tpu.matmul %80, %89, %cst_58 {dimension_numbers = #tpu.dot_dimension_numbers<[1], [0], [0], [1], [0, 0, 1, 1], [], []>} : vector<32x240xbf16>, vector<240x256xbf16>, vector<32x256xf32> -> vector<32x256xf32>
    %cst_59 = arith.constant dense<0.000000e+00> : vector<32x256xf32>
    %98 = tpu.matmul %83, %86, %cst_59 {dimension_numbers = #tpu.dot_dimension_numbers<[1], [0], [0], [1], [0, 0, 1, 1], [], []>} : vector<32x240xbf16>, vector<240x256xbf16>, vector<32x256xf32> -> vector<32x256xf32>
    %99 = arith.addf %97, %98 : vector<32x256xf32>
    %100 = arith.index_cast %c3_i32 : i32 to index
    %c0_60 = arith.constant 0 : index
    %c0_61 = arith.constant 0 : index
    %101 = vector.load %arg6[%100, %c0_60, %c0_61] : memref<4x32x256xf32, #tpu.memory_space<vmem>>, vector<1x32x256xf32>
    %102 = vector.shape_cast %101 : vector<1x32x256xf32> to vector<32x256xf32>
    %103 = vector.shape_cast %99 : vector<32x256xf32> to vector<1x32x256xf32>
    tpu.vector_store %arg6[%100, %c0_60, %c0_61], %103 {strides = array<i32>} : memref<4x32x256xf32, #tpu.memory_space<vmem>>, vector<1x32x256xf32>,
    %c4_i32 = arith.constant 4 : i32
    return
  }
  func.func @transform_0(%arg0: i32) -> (i32, i32, i32) {
    %c0_i32 = arith.constant 0 : i32
    %c0_i32_0 = arith.constant 0 : i32
    %c0_i32_1 = arith.constant 0 : i32
    return %arg0, %c0_i32, %c0_i32_0 : i32, i32, i32
  }
  func.func @transform_1(%arg0: i32) -> (i32, i32, i32) {
    %c0_i32 = arith.constant 0 : i32
    %c0_i32_0 = arith.constant 0 : i32
    %c0_i32_1 = arith.constant 0 : i32
    return %arg0, %c0_i32, %c0_i32_0 : i32, i32, i32
  }
  func.func @transform_2(%arg0: i32) -> (i32, i32, i32) {
    %c0_i32 = arith.constant 0 : i32
    %c0_i32_0 = arith.constant 0 : i32
    %c0_i32_1 = arith.constant 0 : i32
    return %arg0, %c0_i32, %c0_i32_0 : i32, i32, i32
  }
  func.func @transform_3(%arg0: i32) -> (i32, i32, i32) {
    %c0_i32 = arith.constant 0 : i32
    %c0_i32_0 = arith.constant 0 : i32
    %c0_i32_1 = arith.constant 0 : i32
    return %arg0, %c0_i32, %c0_i32_0 : i32, i32, i32
  }
  func.func @transform_4(%arg0: i32) -> (i32, i32, i32) {
    %c0_i32 = arith.constant 0 : i32
    %c0_i32_0 = arith.constant 0 : i32
    %c0_i32_1 = arith.constant 0 : i32
    return %arg0, %c0_i32, %c0_i32_0 : i32, i32, i32
  }
  func.func @transform_5(%arg0: i32) -> (i32, i32, i32) {
    %c0_i32 = arith.constant 0 : i32
    %c0_i32_0 = arith.constant 0 : i32
    %c0_i32_1 = arith.constant 0 : i32
    return %arg0, %c0_i32, %c0_i32_0 : i32, i32, i32
  }
}

module attributes {stable_mosaic.version = 11 : i64} {
  func.func @kernel(%arg0: i32, %arg1: memref<2x16x112xbf16, #tpu.memory_space<vmem>>, %arg2: memref<2x16x112xbf16, #tpu.memory_space<vmem>>, %arg3: memref<2x112x256xbf16, #tpu.memory_space<vmem>>, %arg4: memref<2x112x256xbf16, #tpu.memory_space<vmem>>, %arg5: memref<2x16x256xf32, #tpu.memory_space<vmem>>, %arg6: memref<2x16x256xf32, #tpu.memory_space<vmem>>) attributes {dimension_semantics = [#tpu.dimension_semantics<parallel>], iteration_bounds = array<i64: 2>, scalar_prefetch = 0 : i64, scratch_operands = 0 : i64, tpu.core_type = #tpu.core_type<tc>, window_params = [{transform_indices = @transform_0, window_bounds = array<i64: 2, 16, 112>}, {transform_indices = @transform_1, window_bounds = array<i64: 2, 16, 112>}, {transform_indices = @transform_2, window_bounds = array<i64: 2, 112, 256>}, {transform_indices = @transform_3, window_bounds = array<i64: 2, 112, 256>}, {transform_indices = @transform_4, window_bounds = array<i64: 2, 16, 256>}, {transform_indices = @transform_5, window_bounds = array<i64: 2, 16, 256>}]} {
    %c0_i32 = arith.constant 0 : i32
    %0 = arith.index_cast %c0_i32 : i32 to index
    %c0 = arith.constant 0 : index
    %c0_0 = arith.constant 0 : index
    %1 = vector.load %arg1[%0, %c0, %c0_0] : memref<2x16x112xbf16, #tpu.memory_space<vmem>>, vector<1x16x112xbf16>
    %2 = vector.shape_cast %1 : vector<1x16x112xbf16> to vector<16x112xbf16>
    %3 = arith.index_cast %c0_i32 : i32 to index
    %c0_1 = arith.constant 0 : index
    %c0_2 = arith.constant 0 : index
    %4 = vector.load %arg2[%3, %c0_1, %c0_2] : memref<2x16x112xbf16, #tpu.memory_space<vmem>>, vector<1x16x112xbf16>
    %5 = vector.shape_cast %4 : vector<1x16x112xbf16> to vector<16x112xbf16>
    %6 = arith.index_cast %c0_i32 : i32 to index
    %c0_3 = arith.constant 0 : index
    %c0_4 = arith.constant 0 : index
    %7 = vector.load %arg3[%6, %c0_3, %c0_4] : memref<2x112x256xbf16, #tpu.memory_space<vmem>>, vector<1x112x256xbf16>
    %8 = vector.shape_cast %7 : vector<1x112x256xbf16> to vector<112x256xbf16>
    %9 = arith.index_cast %c0_i32 : i32 to index
    %c0_5 = arith.constant 0 : index
    %c0_6 = arith.constant 0 : index
    %10 = vector.load %arg4[%9, %c0_5, %c0_6] : memref<2x112x256xbf16, #tpu.memory_space<vmem>>, vector<1x112x256xbf16>
    %11 = vector.shape_cast %10 : vector<1x112x256xbf16> to vector<112x256xbf16>
    %cst = arith.constant dense<0.000000e+00> : vector<16x256xf32>
    %12 = tpu.matmul %2, %8, %cst {dimension_numbers = #tpu.dot_dimension_numbers<[1], [0], [0], [1], [0, 0, 1, 1], [], []>} : vector<16x112xbf16>, vector<112x256xbf16>, vector<16x256xf32> -> vector<16x256xf32>
    %cst_7 = arith.constant dense<0.000000e+00> : vector<16x256xf32>
    %13 = tpu.matmul %5, %11, %cst_7 {dimension_numbers = #tpu.dot_dimension_numbers<[1], [0], [0], [1], [0, 0, 1, 1], [], []>} : vector<16x112xbf16>, vector<112x256xbf16>, vector<16x256xf32> -> vector<16x256xf32>
    %14 = arith.subf %12, %13 : vector<16x256xf32>
    %15 = arith.index_cast %c0_i32 : i32 to index
    %c0_8 = arith.constant 0 : index
    %c0_9 = arith.constant 0 : index
    %16 = vector.load %arg5[%15, %c0_8, %c0_9] : memref<2x16x256xf32, #tpu.memory_space<vmem>>, vector<1x16x256xf32>
    %17 = vector.shape_cast %16 : vector<1x16x256xf32> to vector<16x256xf32>
    %18 = vector.shape_cast %14 : vector<16x256xf32> to vector<1x16x256xf32>
    tpu.vector_store %arg5[%15, %c0_8, %c0_9], %18 {strides = array<i32>} : memref<2x16x256xf32, #tpu.memory_space<vmem>>, vector<1x16x256xf32>,
    %cst_10 = arith.constant dense<0.000000e+00> : vector<16x256xf32>
    %19 = tpu.matmul %2, %11, %cst_10 {dimension_numbers = #tpu.dot_dimension_numbers<[1], [0], [0], [1], [0, 0, 1, 1], [], []>} : vector<16x112xbf16>, vector<112x256xbf16>, vector<16x256xf32> -> vector<16x256xf32>
    %cst_11 = arith.constant dense<0.000000e+00> : vector<16x256xf32>
    %20 = tpu.matmul %5, %8, %cst_11 {dimension_numbers = #tpu.dot_dimension_numbers<[1], [0], [0], [1], [0, 0, 1, 1], [], []>} : vector<16x112xbf16>, vector<112x256xbf16>, vector<16x256xf32> -> vector<16x256xf32>
    %21 = arith.addf %19, %20 : vector<16x256xf32>
    %22 = arith.index_cast %c0_i32 : i32 to index
    %c0_12 = arith.constant 0 : index
    %c0_13 = arith.constant 0 : index
    %23 = vector.load %arg6[%22, %c0_12, %c0_13] : memref<2x16x256xf32, #tpu.memory_space<vmem>>, vector<1x16x256xf32>
    %24 = vector.shape_cast %23 : vector<1x16x256xf32> to vector<16x256xf32>
    %25 = vector.shape_cast %21 : vector<16x256xf32> to vector<1x16x256xf32>
    tpu.vector_store %arg6[%22, %c0_12, %c0_13], %25 {strides = array<i32>} : memref<2x16x256xf32, #tpu.memory_space<vmem>>, vector<1x16x256xf32>,
    %c1_i32 = arith.constant 1 : i32
    %26 = arith.index_cast %c1_i32 : i32 to index
    %c0_14 = arith.constant 0 : index
    %c0_15 = arith.constant 0 : index
    %27 = vector.load %arg1[%26, %c0_14, %c0_15] : memref<2x16x112xbf16, #tpu.memory_space<vmem>>, vector<1x16x112xbf16>
    %28 = vector.shape_cast %27 : vector<1x16x112xbf16> to vector<16x112xbf16>
    %29 = arith.index_cast %c1_i32 : i32 to index
    %c0_16 = arith.constant 0 : index
    %c0_17 = arith.constant 0 : index
    %30 = vector.load %arg2[%29, %c0_16, %c0_17] : memref<2x16x112xbf16, #tpu.memory_space<vmem>>, vector<1x16x112xbf16>
    %31 = vector.shape_cast %30 : vector<1x16x112xbf16> to vector<16x112xbf16>
    %32 = arith.index_cast %c1_i32 : i32 to index
    %c0_18 = arith.constant 0 : index
    %c0_19 = arith.constant 0 : index
    %33 = vector.load %arg3[%32, %c0_18, %c0_19] : memref<2x112x256xbf16, #tpu.memory_space<vmem>>, vector<1x112x256xbf16>
    %34 = vector.shape_cast %33 : vector<1x112x256xbf16> to vector<112x256xbf16>
    %35 = arith.index_cast %c1_i32 : i32 to index
    %c0_20 = arith.constant 0 : index
    %c0_21 = arith.constant 0 : index
    %36 = vector.load %arg4[%35, %c0_20, %c0_21] : memref<2x112x256xbf16, #tpu.memory_space<vmem>>, vector<1x112x256xbf16>
    %37 = vector.shape_cast %36 : vector<1x112x256xbf16> to vector<112x256xbf16>
    %cst_22 = arith.constant dense<0.000000e+00> : vector<16x256xf32>
    %38 = tpu.matmul %28, %34, %cst_22 {dimension_numbers = #tpu.dot_dimension_numbers<[1], [0], [0], [1], [0, 0, 1, 1], [], []>} : vector<16x112xbf16>, vector<112x256xbf16>, vector<16x256xf32> -> vector<16x256xf32>
    %cst_23 = arith.constant dense<0.000000e+00> : vector<16x256xf32>
    %39 = tpu.matmul %31, %37, %cst_23 {dimension_numbers = #tpu.dot_dimension_numbers<[1], [0], [0], [1], [0, 0, 1, 1], [], []>} : vector<16x112xbf16>, vector<112x256xbf16>, vector<16x256xf32> -> vector<16x256xf32>
    %40 = arith.subf %38, %39 : vector<16x256xf32>
    %41 = arith.index_cast %c1_i32 : i32 to index
    %c0_24 = arith.constant 0 : index
    %c0_25 = arith.constant 0 : index
    %42 = vector.load %arg5[%41, %c0_24, %c0_25] : memref<2x16x256xf32, #tpu.memory_space<vmem>>, vector<1x16x256xf32>
    %43 = vector.shape_cast %42 : vector<1x16x256xf32> to vector<16x256xf32>
    %44 = vector.shape_cast %40 : vector<16x256xf32> to vector<1x16x256xf32>
    tpu.vector_store %arg5[%41, %c0_24, %c0_25], %44 {strides = array<i32>} : memref<2x16x256xf32, #tpu.memory_space<vmem>>, vector<1x16x256xf32>,
    %cst_26 = arith.constant dense<0.000000e+00> : vector<16x256xf32>
    %45 = tpu.matmul %28, %37, %cst_26 {dimension_numbers = #tpu.dot_dimension_numbers<[1], [0], [0], [1], [0, 0, 1, 1], [], []>} : vector<16x112xbf16>, vector<112x256xbf16>, vector<16x256xf32> -> vector<16x256xf32>
    %cst_27 = arith.constant dense<0.000000e+00> : vector<16x256xf32>
    %46 = tpu.matmul %31, %34, %cst_27 {dimension_numbers = #tpu.dot_dimension_numbers<[1], [0], [0], [1], [0, 0, 1, 1], [], []>} : vector<16x112xbf16>, vector<112x256xbf16>, vector<16x256xf32> -> vector<16x256xf32>
    %47 = arith.addf %45, %46 : vector<16x256xf32>
    %48 = arith.index_cast %c1_i32 : i32 to index
    %c0_28 = arith.constant 0 : index
    %c0_29 = arith.constant 0 : index
    %49 = vector.load %arg6[%48, %c0_28, %c0_29] : memref<2x16x256xf32, #tpu.memory_space<vmem>>, vector<1x16x256xf32>
    %50 = vector.shape_cast %49 : vector<1x16x256xf32> to vector<16x256xf32>
    %51 = vector.shape_cast %47 : vector<16x256xf32> to vector<1x16x256xf32>
    tpu.vector_store %arg6[%48, %c0_28, %c0_29], %51 {strides = array<i32>} : memref<2x16x256xf32, #tpu.memory_space<vmem>>, vector<1x16x256xf32>,
    %c2_i32 = arith.constant 2 : i32
    return
  }
  func.func @transform_0(%arg0: i32) -> (i32, i32, i32) {
    %c0_i32 = arith.constant 0 : i32
    %c0_i32_0 = arith.constant 0 : i32
    %c0_i32_1 = arith.constant 0 : i32
    return %arg0, %c0_i32, %c0_i32_0 : i32, i32, i32
  }
  func.func @transform_1(%arg0: i32) -> (i32, i32, i32) {
    %c0_i32 = arith.constant 0 : i32
    %c0_i32_0 = arith.constant 0 : i32
    %c0_i32_1 = arith.constant 0 : i32
    return %arg0, %c0_i32, %c0_i32_0 : i32, i32, i32
  }
  func.func @transform_2(%arg0: i32) -> (i32, i32, i32) {
    %c0_i32 = arith.constant 0 : i32
    %c0_i32_0 = arith.constant 0 : i32
    %c0_i32_1 = arith.constant 0 : i32
    return %arg0, %c0_i32, %c0_i32_0 : i32, i32, i32
  }
  func.func @transform_3(%arg0: i32) -> (i32, i32, i32) {
    %c0_i32 = arith.constant 0 : i32
    %c0_i32_0 = arith.constant 0 : i32
    %c0_i32_1 = arith.constant 0 : i32
    return %arg0, %c0_i32, %c0_i32_0 : i32, i32, i32
  }
  func.func @transform_4(%arg0: i32) -> (i32, i32, i32) {
    %c0_i32 = arith.constant 0 : i32
    %c0_i32_0 = arith.constant 0 : i32
    %c0_i32_1 = arith.constant 0 : i32
    return %arg0, %c0_i32, %c0_i32_0 : i32, i32, i32
  }
  func.func @transform_5(%arg0: i32) -> (i32, i32, i32) {
    %c0_i32 = arith.constant 0 : i32
    %c0_i32_0 = arith.constant 0 : i32
    %c0_i32_1 = arith.constant 0 : i32
    return %arg0, %c0_i32, %c0_i32_0 : i32, i32, i32
  }
}

module attributes {stable_mosaic.version = 11 : i64} {
  func.func @kernel(%arg0: i32, %arg1: memref<2x16x168xbf16, #tpu.memory_space<vmem>>, %arg2: memref<2x16x168xbf16, #tpu.memory_space<vmem>>, %arg3: memref<2x168x256xbf16, #tpu.memory_space<vmem>>, %arg4: memref<2x168x256xbf16, #tpu.memory_space<vmem>>, %arg5: memref<2x16x256xf32, #tpu.memory_space<vmem>>, %arg6: memref<2x16x256xf32, #tpu.memory_space<vmem>>) attributes {dimension_semantics = [#tpu.dimension_semantics<parallel>], iteration_bounds = array<i64: 2>, scalar_prefetch = 0 : i64, scratch_operands = 0 : i64, tpu.core_type = #tpu.core_type<tc>, window_params = [{transform_indices = @transform_0, window_bounds = array<i64: 2, 16, 168>}, {transform_indices = @transform_1, window_bounds = array<i64: 2, 16, 168>}, {transform_indices = @transform_2, window_bounds = array<i64: 2, 168, 256>}, {transform_indices = @transform_3, window_bounds = array<i64: 2, 168, 256>}, {transform_indices = @transform_4, window_bounds = array<i64: 2, 16, 256>}, {transform_indices = @transform_5, window_bounds = array<i64: 2, 16, 256>}]} {
    %c0_i32 = arith.constant 0 : i32
    %0 = arith.index_cast %c0_i32 : i32 to index
    %c0 = arith.constant 0 : index
    %c0_0 = arith.constant 0 : index
    %1 = vector.load %arg1[%0, %c0, %c0_0] : memref<2x16x168xbf16, #tpu.memory_space<vmem>>, vector<1x16x168xbf16>
    %2 = vector.shape_cast %1 : vector<1x16x168xbf16> to vector<16x168xbf16>
    %3 = arith.index_cast %c0_i32 : i32 to index
    %c0_1 = arith.constant 0 : index
    %c0_2 = arith.constant 0 : index
    %4 = vector.load %arg2[%3, %c0_1, %c0_2] : memref<2x16x168xbf16, #tpu.memory_space<vmem>>, vector<1x16x168xbf16>
    %5 = vector.shape_cast %4 : vector<1x16x168xbf16> to vector<16x168xbf16>
    %6 = arith.index_cast %c0_i32 : i32 to index
    %c0_3 = arith.constant 0 : index
    %c0_4 = arith.constant 0 : index
    %7 = vector.load %arg3[%6, %c0_3, %c0_4] : memref<2x168x256xbf16, #tpu.memory_space<vmem>>, vector<1x168x256xbf16>
    %8 = vector.shape_cast %7 : vector<1x168x256xbf16> to vector<168x256xbf16>
    %9 = arith.index_cast %c0_i32 : i32 to index
    %c0_5 = arith.constant 0 : index
    %c0_6 = arith.constant 0 : index
    %10 = vector.load %arg4[%9, %c0_5, %c0_6] : memref<2x168x256xbf16, #tpu.memory_space<vmem>>, vector<1x168x256xbf16>
    %11 = vector.shape_cast %10 : vector<1x168x256xbf16> to vector<168x256xbf16>
    %cst = arith.constant dense<0.000000e+00> : vector<16x256xf32>
    %12 = tpu.matmul %2, %8, %cst {dimension_numbers = #tpu.dot_dimension_numbers<[1], [0], [0], [1], [0, 0, 1, 1], [], []>} : vector<16x168xbf16>, vector<168x256xbf16>, vector<16x256xf32> -> vector<16x256xf32>
    %cst_7 = arith.constant dense<0.000000e+00> : vector<16x256xf32>
    %13 = tpu.matmul %5, %11, %cst_7 {dimension_numbers = #tpu.dot_dimension_numbers<[1], [0], [0], [1], [0, 0, 1, 1], [], []>} : vector<16x168xbf16>, vector<168x256xbf16>, vector<16x256xf32> -> vector<16x256xf32>
    %14 = arith.subf %12, %13 : vector<16x256xf32>
    %15 = arith.index_cast %c0_i32 : i32 to index
    %c0_8 = arith.constant 0 : index
    %c0_9 = arith.constant 0 : index
    %16 = vector.load %arg5[%15, %c0_8, %c0_9] : memref<2x16x256xf32, #tpu.memory_space<vmem>>, vector<1x16x256xf32>
    %17 = vector.shape_cast %16 : vector<1x16x256xf32> to vector<16x256xf32>
    %18 = vector.shape_cast %14 : vector<16x256xf32> to vector<1x16x256xf32>
    tpu.vector_store %arg5[%15, %c0_8, %c0_9], %18 {strides = array<i32>} : memref<2x16x256xf32, #tpu.memory_space<vmem>>, vector<1x16x256xf32>,
    %cst_10 = arith.constant dense<0.000000e+00> : vector<16x256xf32>
    %19 = tpu.matmul %2, %11, %cst_10 {dimension_numbers = #tpu.dot_dimension_numbers<[1], [0], [0], [1], [0, 0, 1, 1], [], []>} : vector<16x168xbf16>, vector<168x256xbf16>, vector<16x256xf32> -> vector<16x256xf32>
    %cst_11 = arith.constant dense<0.000000e+00> : vector<16x256xf32>
    %20 = tpu.matmul %5, %8, %cst_11 {dimension_numbers = #tpu.dot_dimension_numbers<[1], [0], [0], [1], [0, 0, 1, 1], [], []>} : vector<16x168xbf16>, vector<168x256xbf16>, vector<16x256xf32> -> vector<16x256xf32>
    %21 = arith.addf %19, %20 : vector<16x256xf32>
    %22 = arith.index_cast %c0_i32 : i32 to index
    %c0_12 = arith.constant 0 : index
    %c0_13 = arith.constant 0 : index
    %23 = vector.load %arg6[%22, %c0_12, %c0_13] : memref<2x16x256xf32, #tpu.memory_space<vmem>>, vector<1x16x256xf32>
    %24 = vector.shape_cast %23 : vector<1x16x256xf32> to vector<16x256xf32>
    %25 = vector.shape_cast %21 : vector<16x256xf32> to vector<1x16x256xf32>
    tpu.vector_store %arg6[%22, %c0_12, %c0_13], %25 {strides = array<i32>} : memref<2x16x256xf32, #tpu.memory_space<vmem>>, vector<1x16x256xf32>,
    %c1_i32 = arith.constant 1 : i32
    %26 = arith.index_cast %c1_i32 : i32 to index
    %c0_14 = arith.constant 0 : index
    %c0_15 = arith.constant 0 : index
    %27 = vector.load %arg1[%26, %c0_14, %c0_15] : memref<2x16x168xbf16, #tpu.memory_space<vmem>>, vector<1x16x168xbf16>
    %28 = vector.shape_cast %27 : vector<1x16x168xbf16> to vector<16x168xbf16>
    %29 = arith.index_cast %c1_i32 : i32 to index
    %c0_16 = arith.constant 0 : index
    %c0_17 = arith.constant 0 : index
    %30 = vector.load %arg2[%29, %c0_16, %c0_17] : memref<2x16x168xbf16, #tpu.memory_space<vmem>>, vector<1x16x168xbf16>
    %31 = vector.shape_cast %30 : vector<1x16x168xbf16> to vector<16x168xbf16>
    %32 = arith.index_cast %c1_i32 : i32 to index
    %c0_18 = arith.constant 0 : index
    %c0_19 = arith.constant 0 : index
    %33 = vector.load %arg3[%32, %c0_18, %c0_19] : memref<2x168x256xbf16, #tpu.memory_space<vmem>>, vector<1x168x256xbf16>
    %34 = vector.shape_cast %33 : vector<1x168x256xbf16> to vector<168x256xbf16>
    %35 = arith.index_cast %c1_i32 : i32 to index
    %c0_20 = arith.constant 0 : index
    %c0_21 = arith.constant 0 : index
    %36 = vector.load %arg4[%35, %c0_20, %c0_21] : memref<2x168x256xbf16, #tpu.memory_space<vmem>>, vector<1x168x256xbf16>
    %37 = vector.shape_cast %36 : vector<1x168x256xbf16> to vector<168x256xbf16>
    %cst_22 = arith.constant dense<0.000000e+00> : vector<16x256xf32>
    %38 = tpu.matmul %28, %34, %cst_22 {dimension_numbers = #tpu.dot_dimension_numbers<[1], [0], [0], [1], [0, 0, 1, 1], [], []>} : vector<16x168xbf16>, vector<168x256xbf16>, vector<16x256xf32> -> vector<16x256xf32>
    %cst_23 = arith.constant dense<0.000000e+00> : vector<16x256xf32>
    %39 = tpu.matmul %31, %37, %cst_23 {dimension_numbers = #tpu.dot_dimension_numbers<[1], [0], [0], [1], [0, 0, 1, 1], [], []>} : vector<16x168xbf16>, vector<168x256xbf16>, vector<16x256xf32> -> vector<16x256xf32>
    %40 = arith.subf %38, %39 : vector<16x256xf32>
    %41 = arith.index_cast %c1_i32 : i32 to index
    %c0_24 = arith.constant 0 : index
    %c0_25 = arith.constant 0 : index
    %42 = vector.load %arg5[%41, %c0_24, %c0_25] : memref<2x16x256xf32, #tpu.memory_space<vmem>>, vector<1x16x256xf32>
    %43 = vector.shape_cast %42 : vector<1x16x256xf32> to vector<16x256xf32>
    %44 = vector.shape_cast %40 : vector<16x256xf32> to vector<1x16x256xf32>
    tpu.vector_store %arg5[%41, %c0_24, %c0_25], %44 {strides = array<i32>} : memref<2x16x256xf32, #tpu.memory_space<vmem>>, vector<1x16x256xf32>,
    %cst_26 = arith.constant dense<0.000000e+00> : vector<16x256xf32>
    %45 = tpu.matmul %28, %37, %cst_26 {dimension_numbers = #tpu.dot_dimension_numbers<[1], [0], [0], [1], [0, 0, 1, 1], [], []>} : vector<16x168xbf16>, vector<168x256xbf16>, vector<16x256xf32> -> vector<16x256xf32>
    %cst_27 = arith.constant dense<0.000000e+00> : vector<16x256xf32>
    %46 = tpu.matmul %31, %34, %cst_27 {dimension_numbers = #tpu.dot_dimension_numbers<[1], [0], [0], [1], [0, 0, 1, 1], [], []>} : vector<16x168xbf16>, vector<168x256xbf16>, vector<16x256xf32> -> vector<16x256xf32>
    %47 = arith.addf %45, %46 : vector<16x256xf32>
    %48 = arith.index_cast %c1_i32 : i32 to index
    %c0_28 = arith.constant 0 : index
    %c0_29 = arith.constant 0 : index
    %49 = vector.load %arg6[%48, %c0_28, %c0_29] : memref<2x16x256xf32, #tpu.memory_space<vmem>>, vector<1x16x256xf32>
    %50 = vector.shape_cast %49 : vector<1x16x256xf32> to vector<16x256xf32>
    %51 = vector.shape_cast %47 : vector<16x256xf32> to vector<1x16x256xf32>
    tpu.vector_store %arg6[%48, %c0_28, %c0_29], %51 {strides = array<i32>} : memref<2x16x256xf32, #tpu.memory_space<vmem>>, vector<1x16x256xf32>,
    %c2_i32 = arith.constant 2 : i32
    return
  }
  func.func @transform_0(%arg0: i32) -> (i32, i32, i32) {
    %c0_i32 = arith.constant 0 : i32
    %c0_i32_0 = arith.constant 0 : i32
    %c0_i32_1 = arith.constant 0 : i32
    return %arg0, %c0_i32, %c0_i32_0 : i32, i32, i32
  }
  func.func @transform_1(%arg0: i32) -> (i32, i32, i32) {
    %c0_i32 = arith.constant 0 : i32
    %c0_i32_0 = arith.constant 0 : i32
    %c0_i32_1 = arith.constant 0 : i32
    return %arg0, %c0_i32, %c0_i32_0 : i32, i32, i32
  }
  func.func @transform_2(%arg0: i32) -> (i32, i32, i32) {
    %c0_i32 = arith.constant 0 : i32
    %c0_i32_0 = arith.constant 0 : i32
    %c0_i32_1 = arith.constant 0 : i32
    return %arg0, %c0_i32, %c0_i32_0 : i32, i32, i32
  }
  func.func @transform_3(%arg0: i32) -> (i32, i32, i32) {
    %c0_i32 = arith.constant 0 : i32
    %c0_i32_0 = arith.constant 0 : i32
    %c0_i32_1 = arith.constant 0 : i32
    return %arg0, %c0_i32, %c0_i32_0 : i32, i32, i32
  }
  func.func @transform_4(%arg0: i32) -> (i32, i32, i32) {
    %c0_i32 = arith.constant 0 : i32
    %c0_i32_0 = arith.constant 0 : i32
    %c0_i32_1 = arith.constant 0 : i32
    return %arg0, %c0_i32, %c0_i32_0 : i32, i32, i32
  }
  func.func @transform_5(%arg0: i32) -> (i32, i32, i32) {
    %c0_i32 = arith.constant 0 : i32
    %c0_i32_0 = arith.constant 0 : i32
    %c0_i32_1 = arith.constant 0 : i32
    return %arg0, %c0_i32, %c0_i32_0 : i32, i32, i32
  }
}

module attributes {stable_mosaic.version = 11 : i64} {
  func.func @kernel(%arg0: i32, %arg1: memref<1x8x72xbf16, #tpu.memory_space<vmem>>, %arg2: memref<1x8x72xbf16, #tpu.memory_space<vmem>>, %arg3: memref<1x72x128xbf16, #tpu.memory_space<vmem>>, %arg4: memref<1x72x128xbf16, #tpu.memory_space<vmem>>, %arg5: memref<1x8x128xf32, #tpu.memory_space<vmem>>, %arg6: memref<1x8x128xf32, #tpu.memory_space<vmem>>) attributes {dimension_semantics = [#tpu.dimension_semantics<parallel>], iteration_bounds = array<i64: 2>, scalar_prefetch = 0 : i64, scratch_operands = 0 : i64, tpu.core_type = #tpu.core_type<tc>, window_params = [{transform_indices = @transform_0, window_bounds = array<i64: 1, 8, 72>}, {transform_indices = @transform_1, window_bounds = array<i64: 1, 8, 72>}, {transform_indices = @transform_2, window_bounds = array<i64: 1, 72, 128>}, {transform_indices = @transform_3, window_bounds = array<i64: 1, 72, 128>}, {transform_indices = @transform_4, window_bounds = array<i64: 1, 8, 128>}, {transform_indices = @transform_5, window_bounds = array<i64: 1, 8, 128>}]} {
    %c0_i32 = arith.constant 0 : i32
    %0 = arith.index_cast %c0_i32 : i32 to index
    %c0 = arith.constant 0 : index
    %c0_0 = arith.constant 0 : index
    %1 = vector.load %arg1[%0, %c0, %c0_0] : memref<1x8x72xbf16, #tpu.memory_space<vmem>>, vector<1x8x72xbf16>
    %2 = vector.shape_cast %1 : vector<1x8x72xbf16> to vector<8x72xbf16>
    %3 = arith.index_cast %c0_i32 : i32 to index
    %c0_1 = arith.constant 0 : index
    %c0_2 = arith.constant 0 : index
    %4 = vector.load %arg2[%3, %c0_1, %c0_2] : memref<1x8x72xbf16, #tpu.memory_space<vmem>>, vector<1x8x72xbf16>
    %5 = vector.shape_cast %4 : vector<1x8x72xbf16> to vector<8x72xbf16>
    %6 = arith.index_cast %c0_i32 : i32 to index
    %c0_3 = arith.constant 0 : index
    %c0_4 = arith.constant 0 : index
    %7 = vector.load %arg3[%6, %c0_3, %c0_4] : memref<1x72x128xbf16, #tpu.memory_space<vmem>>, vector<1x72x128xbf16>
    %8 = vector.shape_cast %7 : vector<1x72x128xbf16> to vector<72x128xbf16>
    %9 = arith.index_cast %c0_i32 : i32 to index
    %c0_5 = arith.constant 0 : index
    %c0_6 = arith.constant 0 : index
    %10 = vector.load %arg4[%9, %c0_5, %c0_6] : memref<1x72x128xbf16, #tpu.memory_space<vmem>>, vector<1x72x128xbf16>
    %11 = vector.shape_cast %10 : vector<1x72x128xbf16> to vector<72x128xbf16>
    %cst = arith.constant dense<0.000000e+00> : vector<8x128xf32>
    %12 = tpu.matmul %2, %8, %cst {dimension_numbers = #tpu.dot_dimension_numbers<[1], [0], [0], [1], [0, 0, 1, 1], [], []>} : vector<8x72xbf16>, vector<72x128xbf16>, vector<8x128xf32> -> vector<8x128xf32>
    %cst_7 = arith.constant dense<0.000000e+00> : vector<8x128xf32>
    %13 = tpu.matmul %5, %11, %cst_7 {dimension_numbers = #tpu.dot_dimension_numbers<[1], [0], [0], [1], [0, 0, 1, 1], [], []>} : vector<8x72xbf16>, vector<72x128xbf16>, vector<8x128xf32> -> vector<8x128xf32>
    %14 = arith.subf %12, %13 : vector<8x128xf32>
    %15 = arith.index_cast %c0_i32 : i32 to index
    %c0_8 = arith.constant 0 : index
    %c0_9 = arith.constant 0 : index
    %16 = vector.load %arg5[%15, %c0_8, %c0_9] : memref<1x8x128xf32, #tpu.memory_space<vmem>>, vector<1x8x128xf32>
    %17 = vector.shape_cast %16 : vector<1x8x128xf32> to vector<8x128xf32>
    %18 = vector.shape_cast %14 : vector<8x128xf32> to vector<1x8x128xf32>
    tpu.vector_store %arg5[%15, %c0_8, %c0_9], %18 {strides = array<i32>} : memref<1x8x128xf32, #tpu.memory_space<vmem>>, vector<1x8x128xf32>,
    %cst_10 = arith.constant dense<0.000000e+00> : vector<8x128xf32>
    %19 = tpu.matmul %2, %11, %cst_10 {dimension_numbers = #tpu.dot_dimension_numbers<[1], [0], [0], [1], [0, 0, 1, 1], [], []>} : vector<8x72xbf16>, vector<72x128xbf16>, vector<8x128xf32> -> vector<8x128xf32>
    %cst_11 = arith.constant dense<0.000000e+00> : vector<8x128xf32>
    %20 = tpu.matmul %5, %8, %cst_11 {dimension_numbers = #tpu.dot_dimension_numbers<[1], [0], [0], [1], [0, 0, 1, 1], [], []>} : vector<8x72xbf16>, vector<72x128xbf16>, vector<8x128xf32> -> vector<8x128xf32>
    %21 = arith.addf %19, %20 : vector<8x128xf32>
    %22 = arith.index_cast %c0_i32 : i32 to index
    %c0_12 = arith.constant 0 : index
    %c0_13 = arith.constant 0 : index
    %23 = vector.load %arg6[%22, %c0_12, %c0_13] : memref<1x8x128xf32, #tpu.memory_space<vmem>>, vector<1x8x128xf32>
    %24 = vector.shape_cast %23 : vector<1x8x128xf32> to vector<8x128xf32>
    %25 = vector.shape_cast %21 : vector<8x128xf32> to vector<1x8x128xf32>
    tpu.vector_store %arg6[%22, %c0_12, %c0_13], %25 {strides = array<i32>} : memref<1x8x128xf32, #tpu.memory_space<vmem>>, vector<1x8x128xf32>,
    %c1_i32 = arith.constant 1 : i32
    return
  }
  func.func @transform_0(%arg0: i32) -> (i32, i32, i32) {
    %c0_i32 = arith.constant 0 : i32
    %c0_i32_0 = arith.constant 0 : i32
    %c0_i32_1 = arith.constant 0 : i32
    return %arg0, %c0_i32, %c0_i32_0 : i32, i32, i32
  }
  func.func @transform_1(%arg0: i32) -> (i32, i32, i32) {
    %c0_i32 = arith.constant 0 : i32
    %c0_i32_0 = arith.constant 0 : i32
    %c0_i32_1 = arith.constant 0 : i32
    return %arg0, %c0_i32, %c0_i32_0 : i32, i32, i32
  }
  func.func @transform_2(%arg0: i32) -> (i32, i32, i32) {
    %c0_i32 = arith.constant 0 : i32
    %c0_i32_0 = arith.constant 0 : i32
    %c0_i32_1 = arith.constant 0 : i32
    return %arg0, %c0_i32, %c0_i32_0 : i32, i32, i32
  }
  func.func @transform_3(%arg0: i32) -> (i32, i32, i32) {
    %c0_i32 = arith.constant 0 : i32
    %c0_i32_0 = arith.constant 0 : i32
    %c0_i32_1 = arith.constant 0 : i32
    return %arg0, %c0_i32, %c0_i32_0 : i32, i32, i32
  }
  func.func @transform_4(%arg0: i32) -> (i32, i32, i32) {
    %c0_i32 = arith.constant 0 : i32
    %c0_i32_0 = arith.constant 0 : i32
    %c0_i32_1 = arith.constant 0 : i32
    return %arg0, %c0_i32, %c0_i32_0 : i32, i32, i32
  }
  func.func @transform_5(%arg0: i32) -> (i32, i32, i32) {
    %c0_i32 = arith.constant 0 : i32
    %c0_i32_0 = arith.constant 0 : i32
    %c0_i32_1 = arith.constant 0 : i32
    return %arg0, %c0_i32, %c0_i32_0 : i32, i32, i32
  }
}

module attributes {stable_mosaic.version = 11 : i64} {
  func.func @kernel(%arg0: i32, %arg1: memref<1x8x96xbf16, #tpu.memory_space<vmem>>, %arg2: memref<1x8x96xbf16, #tpu.memory_space<vmem>>, %arg3: memref<1x96x256xbf16, #tpu.memory_space<vmem>>, %arg4: memref<1x96x256xbf16, #tpu.memory_space<vmem>>, %arg5: memref<1x8x256xf32, #tpu.memory_space<vmem>>, %arg6: memref<1x8x256xf32, #tpu.memory_space<vmem>>) attributes {dimension_semantics = [#tpu.dimension_semantics<parallel>], iteration_bounds = array<i64: 2>, scalar_prefetch = 0 : i64, scratch_operands = 0 : i64, tpu.core_type = #tpu.core_type<tc>, window_params = [{transform_indices = @transform_0, window_bounds = array<i64: 1, 8, 96>}, {transform_indices = @transform_1, window_bounds = array<i64: 1, 8, 96>}, {transform_indices = @transform_2, window_bounds = array<i64: 1, 96, 256>}, {transform_indices = @transform_3, window_bounds = array<i64: 1, 96, 256>}, {transform_indices = @transform_4, window_bounds = array<i64: 1, 8, 256>}, {transform_indices = @transform_5, window_bounds = array<i64: 1, 8, 256>}]} {
    %c0_i32 = arith.constant 0 : i32
    %0 = arith.index_cast %c0_i32 : i32 to index
    %c0 = arith.constant 0 : index
    %c0_0 = arith.constant 0 : index
    %1 = vector.load %arg1[%0, %c0, %c0_0] : memref<1x8x96xbf16, #tpu.memory_space<vmem>>, vector<1x8x96xbf16>
    %2 = vector.shape_cast %1 : vector<1x8x96xbf16> to vector<8x96xbf16>
    %3 = arith.index_cast %c0_i32 : i32 to index
    %c0_1 = arith.constant 0 : index
    %c0_2 = arith.constant 0 : index
    %4 = vector.load %arg2[%3, %c0_1, %c0_2] : memref<1x8x96xbf16, #tpu.memory_space<vmem>>, vector<1x8x96xbf16>
    %5 = vector.shape_cast %4 : vector<1x8x96xbf16> to vector<8x96xbf16>
    %6 = arith.index_cast %c0_i32 : i32 to index
    %c0_3 = arith.constant 0 : index
    %c0_4 = arith.constant 0 : index
    %7 = vector.load %arg3[%6, %c0_3, %c0_4] : memref<1x96x256xbf16, #tpu.memory_space<vmem>>, vector<1x96x256xbf16>
    %8 = vector.shape_cast %7 : vector<1x96x256xbf16> to vector<96x256xbf16>
    %9 = arith.index_cast %c0_i32 : i32 to index
    %c0_5 = arith.constant 0 : index
    %c0_6 = arith.constant 0 : index
    %10 = vector.load %arg4[%9, %c0_5, %c0_6] : memref<1x96x256xbf16, #tpu.memory_space<vmem>>, vector<1x96x256xbf16>
    %11 = vector.shape_cast %10 : vector<1x96x256xbf16> to vector<96x256xbf16>
    %cst = arith.constant dense<0.000000e+00> : vector<8x256xf32>
    %12 = tpu.matmul %2, %8, %cst {dimension_numbers = #tpu.dot_dimension_numbers<[1], [0], [0], [1], [0, 0, 1, 1], [], []>} : vector<8x96xbf16>, vector<96x256xbf16>, vector<8x256xf32> -> vector<8x256xf32>
    %cst_7 = arith.constant dense<0.000000e+00> : vector<8x256xf32>
    %13 = tpu.matmul %5, %11, %cst_7 {dimension_numbers = #tpu.dot_dimension_numbers<[1], [0], [0], [1], [0, 0, 1, 1], [], []>} : vector<8x96xbf16>, vector<96x256xbf16>, vector<8x256xf32> -> vector<8x256xf32>
    %14 = arith.subf %12, %13 : vector<8x256xf32>
    %15 = arith.index_cast %c0_i32 : i32 to index
    %c0_8 = arith.constant 0 : index
    %c0_9 = arith.constant 0 : index
    %16 = vector.load %arg5[%15, %c0_8, %c0_9] : memref<1x8x256xf32, #tpu.memory_space<vmem>>, vector<1x8x256xf32>
    %17 = vector.shape_cast %16 : vector<1x8x256xf32> to vector<8x256xf32>
    %18 = vector.shape_cast %14 : vector<8x256xf32> to vector<1x8x256xf32>
    tpu.vector_store %arg5[%15, %c0_8, %c0_9], %18 {strides = array<i32>} : memref<1x8x256xf32, #tpu.memory_space<vmem>>, vector<1x8x256xf32>,
    %cst_10 = arith.constant dense<0.000000e+00> : vector<8x256xf32>
    %19 = tpu.matmul %2, %11, %cst_10 {dimension_numbers = #tpu.dot_dimension_numbers<[1], [0], [0], [1], [0, 0, 1, 1], [], []>} : vector<8x96xbf16>, vector<96x256xbf16>, vector<8x256xf32> -> vector<8x256xf32>
    %cst_11 = arith.constant dense<0.000000e+00> : vector<8x256xf32>
    %20 = tpu.matmul %5, %8, %cst_11 {dimension_numbers = #tpu.dot_dimension_numbers<[1], [0], [0], [1], [0, 0, 1, 1], [], []>} : vector<8x96xbf16>, vector<96x256xbf16>, vector<8x256xf32> -> vector<8x256xf32>
    %21 = arith.addf %19, %20 : vector<8x256xf32>
    %22 = arith.index_cast %c0_i32 : i32 to index
    %c0_12 = arith.constant 0 : index
    %c0_13 = arith.constant 0 : index
    %23 = vector.load %arg6[%22, %c0_12, %c0_13] : memref<1x8x256xf32, #tpu.memory_space<vmem>>, vector<1x8x256xf32>
    %24 = vector.shape_cast %23 : vector<1x8x256xf32> to vector<8x256xf32>
    %25 = vector.shape_cast %21 : vector<8x256xf32> to vector<1x8x256xf32>
    tpu.vector_store %arg6[%22, %c0_12, %c0_13], %25 {strides = array<i32>} : memref<1x8x256xf32, #tpu.memory_space<vmem>>, vector<1x8x256xf32>,
    %c1_i32 = arith.constant 1 : i32
    return
  }
  func.func @transform_0(%arg0: i32) -> (i32, i32, i32) {
    %c0_i32 = arith.constant 0 : i32
    %c0_i32_0 = arith.constant 0 : i32
    %c0_i32_1 = arith.constant 0 : i32
    return %arg0, %c0_i32, %c0_i32_0 : i32, i32, i32
  }
  func.func @transform_1(%arg0: i32) -> (i32, i32, i32) {
    %c0_i32 = arith.constant 0 : i32
    %c0_i32_0 = arith.constant 0 : i32
    %c0_i32_1 = arith.constant 0 : i32
    return %arg0, %c0_i32, %c0_i32_0 : i32, i32, i32
  }
  func.func @transform_2(%arg0: i32) -> (i32, i32, i32) {
    %c0_i32 = arith.constant 0 : i32
    %c0_i32_0 = arith.constant 0 : i32
    %c0_i32_1 = arith.constant 0 : i32
    return %arg0, %c0_i32, %c0_i32_0 : i32, i32, i32
  }
  func.func @transform_3(%arg0: i32) -> (i32, i32, i32) {
    %c0_i32 = arith.constant 0 : i32
    %c0_i32_0 = arith.constant 0 : i32
    %c0_i32_1 = arith.constant 0 : i32
    return %arg0, %c0_i32, %c0_i32_0 : i32, i32, i32
  }
  func.func @transform_4(%arg0: i32) -> (i32, i32, i32) {
    %c0_i32 = arith.constant 0 : i32
    %c0_i32_0 = arith.constant 0 : i32
    %c0_i32_1 = arith.constant 0 : i32
    return %arg0, %c0_i32, %c0_i32_0 : i32, i32, i32
  }
  func.func @transform_5(%arg0: i32) -> (i32, i32, i32) {
    %c0_i32 = arith.constant 0 : i32
    %c0_i32_0 = arith.constant 0 : i32
    %c0_i32_1 = arith.constant 0 : i32
    return %arg0, %c0_i32, %c0_i32_0 : i32, i32, i32
  }
}

module attributes {stable_mosaic.version = 11 : i64} {
  func.func @_integrate_kernel(%arg0: i32, %arg1: memref<128x64xf32, #tpu.memory_space<vmem>>, %arg2: memref<128x1xf32, #tpu.memory_space<vmem>>, %arg3: memref<1x64xf32, #tpu.memory_space<vmem>>, %arg4: memref<128x1xf32, #tpu.memory_space<vmem>>) attributes {dimension_semantics = [#tpu.dimension_semantics<arbitrary>], iteration_bounds = array<i64: 1>, scalar_prefetch = 0 : i64, scratch_operands = 0 : i64, tpu.core_type = #tpu.core_type<tc>, window_params = [{transform_indices = @transform_0, window_bounds = array<i64: 128, 64>}, {pipeline_mode = #tpu.pipeline_mode<synchronous>, transform_indices = @transform_1, window_bounds = array<i64: 128, 1>}, {transform_indices = @transform_2, window_bounds = array<i64: 1, 64>}, {pipeline_mode = #tpu.pipeline_mode<synchronous>, transform_indices = @transform_3, window_bounds = array<i64: 128, 1>}]} {
    %c0_i32 = arith.constant 0 : i32
    %0 = arith.cmpi eq, %arg0, %c0_i32 : i32
    %1 = arith.extui %0 : i1 to i32
    %c0_i32_0 = arith.constant 0 : i32
    %2 = arith.cmpi ne, %1, %c0_i32_0 : i32
    scf.if %2 {
      %cst_11 = arith.constant 0.000000e+00 : f32
      %17 = vector.broadcast %cst_11 : f32 to vector<128x1xf32>
      %c0_12 = arith.constant 0 : index
      %c0_13 = arith.constant 0 : index
      %18 = vector.load %arg4[%c0_12, %c0_13] : memref<128x1xf32, #tpu.memory_space<vmem>>, vector<128x1xf32>
      tpu.vector_store %arg4[%c0_12, %c0_13], %17 {strides = array<i32>} : memref<128x1xf32, #tpu.memory_space<vmem>>, vector<128x1xf32>,
    } else {
    }
    %c0 = arith.constant 0 : index
    %c0_1 = arith.constant 0 : index
    %3 = vector.load %arg1[%c0, %c0_1] : memref<128x64xf32, #tpu.memory_space<vmem>>, vector<128x64xf32>
    %c0_2 = arith.constant 0 : index
    %c0_3 = arith.constant 0 : index
    %4 = vector.load %arg2[%c0_2, %c0_3] : memref<128x1xf32, #tpu.memory_space<vmem>>, vector<128x1xf32>
    %5 = vector.broadcast %4 : vector<128x1xf32> to vector<128x64xf32>
    %6 = arith.addf %3, %5 : vector<128x64xf32>
    %cst = arith.constant 0.000000e+00 : f32
    %7 = vector.broadcast %cst : f32 to vector<128x64xf32>
    %8 = arith.maximumf %6, %7 : vector<128x64xf32>
    %c0_4 = arith.constant 0 : index
    %c0_5 = arith.constant 0 : index
    %9 = vector.load %arg3[%c0_4, %c0_5] : memref<1x64xf32, #tpu.memory_space<vmem>>, vector<1x64xf32>
    %10 = vector.broadcast %9 : vector<1x64xf32> to vector<128x64xf32>
    %11 = arith.mulf %8, %10 : vector<128x64xf32>
    %c0_6 = arith.constant 0 : index
    %c0_7 = arith.constant 0 : index
    %12 = vector.load %arg4[%c0_6, %c0_7] : memref<128x1xf32, #tpu.memory_space<vmem>>, vector<128x1xf32>
    %cst_8 = arith.constant dense<0.000000e+00> : vector<128xf32>
    %13 = vector.multi_reduction <add>, %11, %cst_8 [1] : vector<128x64xf32> to vector<128xf32>
    %14 = vector.shape_cast %13 : vector<128xf32> to vector<128x1xf32>
    %15 = arith.addf %12, %14 : vector<128x1xf32>
    %c0_9 = arith.constant 0 : index
    %c0_10 = arith.constant 0 : index
    %16 = vector.load %arg4[%c0_9, %c0_10] : memref<128x1xf32, #tpu.memory_space<vmem>>, vector<128x1xf32>
    tpu.vector_store %arg4[%c0_9, %c0_10], %15 {strides = array<i32>} : memref<128x1xf32, #tpu.memory_space<vmem>>, vector<128x1xf32>,
    return
  }
  func.func @transform_0(%arg0: i32) -> (i32, i32) {
    %c0_i32 = arith.constant 0 : i32
    %c0_i32_0 = arith.constant 0 : i32
    return %c0_i32, %arg0 : i32, i32
  }
  func.func @transform_1(%arg0: i32) -> (i32, i32) {
    %c0_i32 = arith.constant 0 : i32
    %c0_i32_0 = arith.constant 0 : i32
    %c0_i32_1 = arith.constant 0 : i32
    return %c0_i32, %c0_i32_0 : i32, i32
  }
  func.func @transform_2(%arg0: i32) -> (i32, i32) {
    %c0_i32 = arith.constant 0 : i32
    %c0_i32_0 = arith.constant 0 : i32
    return %c0_i32, %arg0 : i32, i32
  }
  func.func @transform_3(%arg0: i32) -> (i32, i32) {
    %c0_i32 = arith.constant 0 : i32
    %c0_i32_0 = arith.constant 0 : i32
    %c0_i32_1 = arith.constant 0 : i32
    return %c0_i32, %c0_i32_0 : i32, i32
  }
}

module attributes {stable_mosaic.version = 11 : i64} {
  func.func @_linear_kernel(%arg0: memref<2x64xf32, #tpu.memory_space<vmem>>, %arg1: memref<64x128xf32, #tpu.memory_space<vmem>>, %arg2: memref<1x128xf32, #tpu.memory_space<vmem>>, %arg3: memref<2x128xf32, #tpu.memory_space<vmem>>) attributes {dimension_semantics = [], scalar_prefetch = 0 : i64, scratch_operands = 0 : i64, tpu.core_type = #tpu.core_type<tc>} {
    %c0 = arith.constant 0 : index
    %c0_0 = arith.constant 0 : index
    %0 = vector.load %arg0[%c0, %c0_0] : memref<2x64xf32, #tpu.memory_space<vmem>>, vector<2x64xf32>
    %c0_1 = arith.constant 0 : index
    %c0_2 = arith.constant 0 : index
    %1 = vector.load %arg1[%c0_1, %c0_2] : memref<64x128xf32, #tpu.memory_space<vmem>>, vector<64x128xf32>
    %cst = arith.constant dense<0.000000e+00> : vector<2x128xf32>
    %2 = tpu.matmul %0, %1, %cst {dimension_numbers = #tpu.dot_dimension_numbers<[1], [0], [0], [1], [0, 0, 1, 1], [], []>} : vector<2x64xf32>, vector<64x128xf32>, vector<2x128xf32> -> vector<2x128xf32>
    %c0_3 = arith.constant 0 : index
    %c0_4 = arith.constant 0 : index
    %3 = vector.load %arg2[%c0_3, %c0_4] : memref<1x128xf32, #tpu.memory_space<vmem>>, vector<1x128xf32>
    %4 = vector.broadcast %3 : vector<1x128xf32> to vector<2x128xf32>
    %5 = arith.addf %2, %4 : vector<2x128xf32>
    %c0_5 = arith.constant 0 : index
    %c0_6 = arith.constant 0 : index
    %6 = vector.load %arg3[%c0_5, %c0_6] : memref<2x128xf32, #tpu.memory_space<vmem>>, vector<2x128xf32>
    tpu.vector_store %arg3[%c0_5, %c0_6], %5 {strides = array<i32>} : memref<2x128xf32, #tpu.memory_space<vmem>>, vector<2x128xf32>,
    return
  }
}

</mosaic_0001>

<bundles_post_ra>
// kernel: _lambda_.9
= control target key start
LH: loop header
LB: loop body
LE: loop exit
PB: predicated region body
PF: predicated region fallthrough
CT: control target
= control target key end

     0   :  { %11 = vsyncpa [#allocation3], 0  ;;  %s6320_s0 = inlined_call_operand.vmem [shape: bf16[16,64,8], index: 0, kind: input, shape index: {}]   ;;  %s6321_s1 = inlined_call_operand.vmem [shape: bf16[16,64,8], index: 1, kind: input, shape index: {}]   ;;  %s6322_s2 = inlined_call_operand.hbm [shape: bf16[16,8,256], index: 2, kind: input, shape index: {}]   ;;  %s6323_s3 = inlined_call_operand.hbm [shape: bf16[16,8,256], index: 3, kind: input, shape index: {}]   ;;  %s6324_s4 = inlined_call_operand.vmem [shape: f32[16,64,256], index: 4, kind: output, shape index: {0}]   ;;  %s6325_s5 = inlined_call_operand.vmem [shape: f32[16,64,256], index: 5, kind: output, shape index: {1}]  }
   0x1   :  { %13 = vsyncpa [#allocation3 + $0x1], 0 }
   0x2   :  { %14 = vsyncpa [#allocation5], 0 }
   0x3   :  { %16 = vsyncpa [#allocation5 + $0x1], 0  ;;  %s5156_s18 = smov 0   ;;  %s5158_s19 = smov 0  }
   0x4   :  { %s5160_s20 = smov 0   ;;  %s5162_s21 = smov 0  }
   0x5 LB: > { %s4107_s22 = sadd.s32 4294967295, %s5119_s21   ;;  %s5176_s23 = sadd.s32 1, %s5119_s21   ;;  %s5119_s21 = sphi %s5162_s21, %s6335_s21   ;;  %s5115_s20 = sphi %s5160_s20, %s6334_s20   ;;  %s5111_s19 = sphi %s5158_s19, %s6333_s19   ;;  %s5107_s18 = sphi %s5156_s18, %s6332_s18  }
   0x6   : > { %s78_s24 = ssub.s32 %s5119_s21, %s5176_s23  ;;  %s81_s25 = sadd.s32 1, %s5115_s20 }
   0x7   : > { %p79_p0 = scmp.eq.s32.totalorder %s78_s24, 0  ;;  %p88_p1 = scmp.ne.s32.totalorder %s5115_s20, %s5111_s19 }
   0x8   : > { %p89_p2 = scmp.eq.s32.totalorder %s5119_s21, 0  ;;  %p94_p3 = scmp.ne.s32.totalorder %s5111_s19, %s5107_s18 }
   0x9   : > { %s5186_s26 = scalar_select %p79_p0, %s5115_s20, %s81_s25  }
   0xa   : > { %p90_p4 = por %p89_p2, %p88_p1  ;;  %p95_p5 = scmp.eq.s32.totalorder %s4107_s22, 0 }
   0xb   : > { %p4889_p6 = scmp.lt.s32.totalorder %s5119_s21, 2  ;;  %s5196_s28 = sand.u32 1, %s5115_s20  }
   0xc   : > { %p5191_p7 = por %p95_p5, %p94_p3  ;;  %s4111_s29 = sshll.u32 %s5196_s28, 6 }
   0xd   : > { %s4743_s30 = sshll.u32 %s5119_s21, 10  ;;  %s220_s9 = scalar_lea.vmem [#allocation2], %s4111_s29 }
   0xe   : > { %s6327_s27 = scalar_select %p5191_p7, 1, 0 }
   0xf   : > { %s5205_s8 = scalar_lea.hbm %s6322_s2, %s4743_s30  ;;  %s228_s10 = sshll.u32 %s220_s9, 4  ;;  %s5209_s10 = int_to_ptr.vmem [resolvable:$true] %s228_s10 }
  0x10   : > { %p5211_p8 = pnand %p4889_p6, %p90_p4  ;;  %s217_s12 = scalar_lea.sflag [#allocation3], %s5196_s28 }
  0x11   : > { %s5021_s13 = scalar_lea.hbm %s5205_s8, 1024  ;;  %s5026_s16 = scalar_lea.hbm %s6322_s2, 2048 }
  0x12   : > { %p5022_p10 = scmp.ne.s32.totalorder %s5205_s8, %s5021_s13  ;;  %p5023_p11 = pneg %p5211_p8 }
  0x13   : > { %p5027_p0 = scmp.lt.u32.totalorder %s5205_s8, %s6322_s2  ;;  %p5028_p1 = scmp.lt.u32.totalorder %s5026_s16, %s5021_s13 }
  0x14   : > { %p5024_p12 = pnand %p5023_p11, %p5022_p10  ;;  %p5030_p3 = scmp.lt.u32.totalorder %s5021_s13, %s5205_s8 }
  0x15   : > { %p5029_p2 = por %p5028_p1, %p5027_p0 }
  0x16   : > { %p5025_p13 = pneg %p5024_p12 }
  0x17   : > { %p5031_p4 = por %p5030_p3, %p5029_p2 }
  0x19   : > { %p5032_p5 = pnand %p5031_p4, %p5025_p13 }
  0x1b   : > { %5035 = shalt.err (!%p5032_p5)
}
  0x1c   : > { %s5036_s24 = scalar_lea.vmem %s5209_s10, 1024  ;;  %s5121_s25 = smov [#allocation2]  }
  0x1d   : > { %p5037_p6 = scmp.ne.s32.totalorder %s5209_s10, %s5036_s24  ;;  %s5041_s6 = sshll.u32 %s5121_s25, 4  ;;  %s5042_s6 = int_to_ptr.vmem [resolvable:$false] %s5041_s6 }
  0x1e   : > { %s5043_s7 = scalar_lea.vmem %s5042_s6, 2048  ;;  %p5044_p9 = scmp.lt.s32.totalorder %s5209_s10, %s5042_s6 }
  0x1f   : > { %p5039_p10 = pnand %p5037_p6, %p5023_p11  ;;  %p5045_p0 = scmp.lt.s32.totalorder %s5043_s7, %s5036_s24 }
  0x21   : > { %p5040_p12 = pneg %p5039_p10  ;;  %p5046_p1 = por %p5045_p0, %p5044_p9 }
  0x23   : > { %p5047_p2 = pnand %p5046_p1, %p5040_p12 }
  0x25   : > { %5050 = shalt.err (!%p5047_p2)
}
  0x26   : > { %s5122_s9 = smov 128   ;;  %s5123_s13 = smov 8  }
  0x27   : > { %4885 = dma.hbm_to_vmem [thread:$0]  (!%p5211_p8), %s5205_s8, 1024, %s5209_s10, %s217_s12, %s5122_s9, %s5122_s9, %s5123_s13  }
  0x28   : > { %p258_p9 = scmp.lt.s32.totalorder %s5119_s21, 3  ;;  %s5253_s16 = scalar_lea.hbm %s6323_s3, %s4743_s30 }
  0x29   : > { %p6329_p13 = scmp.ge.s32.totalorder %s5119_s21, 1  ;;  %s242_s18 = scalar_lea.vmem [#allocation4], %s4111_s29 }
  0x2a   : > { %s250_s24 = sshll.u32 %s242_s18, 4  ;;  %s239_s8 = scalar_lea.sflag [#allocation5], %s5196_s28  ;;  %s5263_s24 = int_to_ptr.vmem [resolvable:$true] %s250_s24 }
  0x2b   : > { %p5257_p3 = pnand %p6329_p13, %p258_p9  ;;  %s5051_s10 = scalar_lea.hbm %s5253_s16, 1024 }
  0x2c   : > { %p5052_p4 = scmp.ne.s32.totalorder %s5253_s16, %s5051_s10  ;;  %s5056_s25 = scalar_lea.hbm %s6323_s3, 2048 }
  0x2d   : > { %p5057_p10 = scmp.lt.u32.totalorder %s5253_s16, %s6323_s3  ;;  %p5058_p12 = scmp.lt.u32.totalorder %s5056_s25, %s5051_s10 }
  0x2e   : > { %p5054_p5 = pnand %p5052_p4, %p5023_p11  ;;  %p5060_p1 = scmp.lt.u32.totalorder %s5051_s10, %s5253_s16 }
  0x2f   : > { %p5059_p0 = por %p5058_p12, %p5057_p10 }
  0x30   : > { %p5055_p6 = pneg %p5054_p5 }
  0x31   : > { %p5061_p2 = por %p5060_p1, %p5059_p0 }
  0x33   : > { %p5062_p9 = pnand %p5061_p2, %p5055_p6 }
  0x35   : > { %5065 = shalt.err (!%p5062_p9)
}
  0x36   : > { %s5066_s29 = scalar_lea.vmem %s5263_s24, 1024  ;;  %s5124_s14 = smov [#allocation4]  }
  0x37   : > { %p5067_p13 = scmp.ne.s32.totalorder %s5263_s24, %s5066_s29  ;;  %s5071_s15 = sshll.u32 %s5124_s14, 4  ;;  %s5072_s15 = int_to_ptr.vmem [resolvable:$false] %s5071_s15 }
  0x38   : > { %s5073_s18 = scalar_lea.vmem %s5072_s15, 2048  ;;  %p5074_p7 = scmp.lt.s32.totalorder %s5263_s24, %s5072_s15 }
  0x39   : > { %p5069_p4 = pnand %p5067_p13, %p5023_p11  ;;  %p5075_p10 = scmp.lt.s32.totalorder %s5073_s18, %s5066_s29 }
  0x3b   : > { %p5070_p5 = pneg %p5069_p4  ;;  %p5076_p12 = por %p5075_p10, %p5074_p7 }
  0x3d   : > { %p5077_p0 = pnand %p5076_p12, %p5070_p5 }
  0x3f   : > { %5080 = shalt.err (!%p5077_p0)
}
  0x40   : > { %4888 = dma.hbm_to_vmem [thread:$0]  (!%p5211_p8), %s5253_s16, 1024, %s5263_s24, %s239_s8, %s5122_s9, %s5122_s9, %s5123_s13  }
  0x41   : > { %262 = sbr.rel (%p5257_p3) target bundleno = 804 (0x324), region = 36  ;;  %s264_s10 = sand.u32 (!%p5257_p3), 1, %s5111_s19  }
  0x42   : > { %s4120_s30 = sshll.u32 (!%p5257_p3), %s264_s10, 6  ;;  %s265_s12 = scalar_lea.sflag (!%p5257_p3), [#allocation3], %s264_s10 }
  0x43   : > { %s5297_s25 = scalar_lea.vmem (!%p5257_p3), [#allocation2], %s4120_s30  ;;  %p6331_p7 = scmp.ne.s32.totalorder (!%p5257_p3), %s6327_s27, 0 }
  0x48   : > { %5098 = dma.done.wait (%p6331_p7), %s265_s12, 1024  }
  0x49   : > { %5100 = vsyncadd (%p6331_p7), %s265_s12, 4294966272  ;;  %s274_s28 = scalar_lea.sflag [#allocation5], %s264_s10  ;;  %s5303_s11 = scalar_lea.vmem [#allocation4], %s4120_s30 }
  0x4a   : > { %5102 = dma.done.wait (%p6331_p7), %s274_s28, 1024  }
  0x4b   : > { %5104 = vsyncadd (%p6331_p7), %s274_s28, 4294966272  ;;  %s4122_s9 = sshll.u32 %s4107_s22, 3  ;;  %v5125_v0 = vmov 0   ;;  %v375_v1 = vld [vmem:[%s5297_s25] sm:$0xff]  ;;  %vm415_vm0 = vcmask 1043456   ;;  %vm402_vm1 = vcmask 64512  }
  0x4c   : > { %454 = vmatprep.mubr.bf16.mxu1 %v5125_v0  ;;  %675 = vmatprep.mubr.bf16.mxu0 %v5125_v0  ;;  %p329_p8 = scmp.lt.s32.totalorder %s4122_s9, 15  ;;  %v4139_v2 = vcombine.high %v375_v1, %v375_v1  ;;  %v4138_v3 = vcombine.low %v375_v1, %v375_v1  ;;  %v376_v4 = vld [vmem:[%s5303_s11] sm:$0xff]  ;;  %v4182_v11 = vld [vmem:[%s5297_s25 + $0x8] sm:$0xff]  ;;  %v4264_v26 = vld [vmem:[%s5297_s25 + $0x10] sm:$0xff] }
  0x4d   : > { %v4150_v6 = vcombine.high %v376_v4, %v376_v4  ;;  %v4149_v7 = vcombine.low %v376_v4, %v376_v4  ;;  %v4189_v12 = vcombine.high %v4182_v11, %v4182_v11  ;;  %v4188_v19 = vcombine.low %v4182_v11, %v4182_v11  ;;  %v4183_v21 = vld [vmem:[%s5303_s11 + $0x8] sm:$0xff]  ;;  %v4265_v36 = vld [vmem:[%s5303_s11 + $0x10] sm:$0xff]  ;;  %v4346_v42 = vld [vmem:[%s5297_s25 + $0x18] sm:$0xff] }
  0x4e   : > { %s6337_s9 = smov (!%p329_p8, %s4122_s9), 15  ;;  %4140 = vmatprep.subr.msk.bf16.mxu1 %vm415_vm0, %v4139_v2  ;;  %4156 = vmatprep.subr.msk.bf16.mxu0 %vm415_vm0, %v4139_v2  ;;  %v417_v8 = vsel %vm415_vm0, %v4138_v3, 0  ;;  %v4200_v22 = vcombine.high %v4183_v21, %v4183_v21  ;;  %v4199_v23 = vcombine.low %v4183_v21, %v4183_v21  ;;  %v4271_v28 = vcombine.high %v4264_v26, %v4264_v26  ;;  %v4347_v52 = vld [vmem:[%s5303_s11 + $0x18] sm:$0xff]  ;;  %v4428_v58 = vld [vmem:[%s5297_s25 + $0x20] sm:$0xff] }
  0x4f   : > { %s4746_s13 = sshll.u32 %s6337_s9, 5  ;;  %423 = vmatpush1.bf16.msra.mxu1 %v417_v8  ;;  %644 = vmatpush1.bf16.msra.mxu0 %v417_v8  ;;  %v533_v10 = vsel %vm415_vm0, %v4149_v7, 0  ;;  %v865_v20 = vsel %vm415_vm0, %v4188_v19, 0  ;;  %v4270_v35 = vcombine.low %v4264_v26, %v4264_v26  ;;  %v4282_v38 = vcombine.high %v4265_v36, %v4265_v36  ;;  %v5513_v11 = vld [vmem:[%s5303_s11 + $0x20] sm:$0xff]  ;;  %s4748_s8 = sshll.u32 %s6337_s9, 7 }
  0x50   : > { %s5319_s27 = scalar_lea.vmem %s6320_s0, %s4746_s13  ;;  %s5325_s24 = scalar_lea.vmem %s6321_s1, %s4746_s13  ;;  %4151 = vmatprep.subr.msk.bf16.mxu1 %vm415_vm0, %v4150_v6  ;;  %4161 = vmatprep.subr.msk.bf16.mxu0 %vm415_vm0, %v4150_v6  ;;  %v981_v27 = vsel %vm415_vm0, %v4199_v23, 0  ;;  %v4281_v39 = vcombine.low %v4265_v36, %v4265_v36  ;;  %v4353_v44 = vcombine.high %v4346_v42, %v4346_v42  ;;  %v4352_v51 = vcombine.low %v4346_v42, %v4346_v42 }
  0x51   : > { %v4927_v5 = vld [vmem:[%s5319_s27] sm:$0xff]   ;;  %v4931_v13 = vld [vmem:[%s5319_s27 + $0x8] sm:$0xff]   ;;  %v4933_v15 = vld [vmem:[%s5319_s27 + $0x10] sm:$0xff]   ;;  %v1315_v37 = vsel %vm415_vm0, %v4270_v35, 0  ;;  %v4364_v54 = vcombine.high %v4347_v52, %v4347_v52  ;;  %v4363_v55 = vcombine.low %v4347_v52, %v4347_v52  ;;  %v4435_v60 = vcombine.high %v4428_v58, %v4428_v58  ;;  %s5554_s29 = scalar_lea.vmem %s6325_s5, %s4748_s8  ;;  %s5561_s18 = scalar_lea.vmem %s6324_s4, %s4748_s8 }
  0x52   : > { %v4929_v9 = vld [vmem:[%s5325_s24] sm:$0xff]   ;;  %4141 = vmatmul.mubr.msk.bf16.vlgmr.msra.gmra.mrb[0].mxu1 %vm402_vm1, %v4927_v5  ;;  %v4932_v14 = vld [vmem:[%s5325_s24 + $0x8] sm:$0xff]   ;;  %v4934_v16 = vld [vmem:[%s5325_s24 + $0x10] sm:$0xff]   ;;  %v1431_v43 = vsel %vm415_vm0, %v4281_v39, 0  ;;  %v1765_v53 = vsel %vm415_vm0, %v4352_v51, 0  ;;  %v4434_v8 = vcombine.low %v4428_v58, %v4428_v58  ;;  %v4445_v36 = vcombine.low %v5513_v11, %v5513_v11 }
  0x53   : > { %4157 = vmatmul.mubr.msk.bf16.vlgmr.msra.gmra.mrb[0].mxu0 %vm402_vm1, %v4929_v9  ;;  %539 = vmatpush1.bf16.msra.mxu1 %v533_v10  ;;  %v4935_v17 = vld [vmem:[%s5319_s27 + $0x18] sm:$0xff]   ;;  %v4939_v24 = vld [vmem:[%s5319_s27 + $0x20] sm:$0xff]   ;;  %v4943_v29 = vld [vmem:[%s5319_s27 + $0x28] sm:$0xff]   ;;  %v1881_v59 = vsel %vm415_vm0, %v4363_v55, 0 }
  0x54   : > { %717 = vmatpush1.bf16.msra.mxu0 %v533_v10  ;;  %464 = vmatprep.mubr.bf16.mxu1 %v5125_v0  ;;  %v4936_v18 = vld [vmem:[%s5325_s24 + $0x18] sm:$0xff]   ;;  %v4941_v25 = vld [vmem:[%s5325_s24 + $0x20] sm:$0xff]   ;;  %v4944_v30 = vld [vmem:[%s5325_s24 + $0x28] sm:$0xff]   ;;  %v2331_v51 = vsel %vm415_vm0, %v4445_v36, 0 }
  0x55   : > { %685 = vmatprep.mubr.bf16.mxu0 %v5125_v0  ;;  %4190 = vmatprep.subr.msk.bf16.mxu1 %vm415_vm0, %v4189_v12  ;;  %v4945_v31 = vld [vmem:[%s5319_s27 + $0x30] sm:$0xff]   ;;  %v4947_v33 = vld [vmem:[%s5319_s27 + $0x38] sm:$0xff]   ;;  %v4951_v40 = vld [vmem:[%s5319_s27 + $0x40] sm:$0xff]  }
  0x56   : > { %4222 = vmatprep.subr.msk.bf16.mxu0 %vm415_vm0, %v4189_v12  ;;  %v4946_v32 = vld [vmem:[%s5325_s24 + $0x30] sm:$0xff]   ;;  %v4948_v34 = vld [vmem:[%s5325_s24 + $0x38] sm:$0xff]   ;;  %v4953_v41 = vld [vmem:[%s5325_s24 + $0x40] sm:$0xff]  }
  0x57   : > { %v4955_v45 = vld [vmem:[%s5319_s27 + $0x48] sm:$0xff]   ;;  %v4957_v47 = vld [vmem:[%s5319_s27 + $0x50] sm:$0xff]   ;;  %v4959_v49 = vld [vmem:[%s5319_s27 + $0x58] sm:$0xff]  }
  0x58   : > { %v4956_v46 = vld [vmem:[%s5325_s24 + $0x48] sm:$0xff]   ;;  %v4958_v48 = vld [vmem:[%s5325_s24 + $0x50] sm:$0xff]   ;;  %v4960_v50 = vld [vmem:[%s5325_s24 + $0x58] sm:$0xff]  }
  0x59   : > { %v4963_v56 = vld [vmem:[%s5319_s27 + $0x60] sm:$0xff]   ;;  %v4967_v61 = vld [vmem:[%s5319_s27 + $0x68] sm:$0xff]   ;;  %v4969_v63 = vld [vmem:[%s5319_s27 + $0x70] sm:$0xff]  }
  0x5a   : > { %4142 = vmatmul.mubr.msk.bf16.gmra.mrb[4].mxu1 %vm402_vm1, %v4931_v13  ;;  %v4965_v57 = vld [vmem:[%s5325_s24 + $0x60] sm:$0xff]   ;;  %v4968_v62 = vld [vmem:[%s5325_s24 + $0x68] sm:$0xff]   ;;  %v4970_v1 = vld [vmem:[%s5325_s24 + $0x70] sm:$0xff]  }
  0x5b   : > { %4158 = vmatmul.mubr.msk.bf16.gmra.mrb[4].mxu0 %vm402_vm1, %v4932_v14  ;;  %474 = vmatprep.mubr.bf16.mxu1 %v5125_v0  ;;  %v5500_v4 = vld [vmem:[%s5319_s27 + $0x78] sm:$0xff]   ;;  %v5581_v42 = vld [vmem:[%s5319_s27 + $0x80] sm:$0xff]  }
  0x5c   : > { %695 = vmatprep.mubr.bf16.mxu0 %v5125_v0 }
  0x62   : > { %4143 = vmatmul.mubr.msk.bf16.gmra.mrb[8].mxu1 %vm402_vm1, %v4933_v15 }
  0x63   : > { %4159 = vmatmul.mubr.msk.bf16.gmra.mrb[8].mxu0 %vm402_vm1, %v4934_v16  ;;  %484 = vmatprep.mubr.bf16.mxu1 %v5125_v0 }
  0x64   : > { %705 = vmatprep.mubr.bf16.mxu0 %v5125_v0 }
  0x6a   : > { %4144 = vmatmul.mubr.msk.bf16.gmra.mrb[12].mxu1 %vm402_vm1, %v4935_v17 }
  0x6b   : > { %4160 = vmatmul.mubr.msk.bf16.gmra.mrb[12].mxu0 %vm402_vm1, %v4936_v18  ;;  %570 = vmatprep.mubr.bf16.mxu1 %v5125_v0 }
  0x6c   : > { %748 = vmatprep.mubr.bf16.mxu0 %v5125_v0 }
  0x72   : > { %4152 = vmatmul.mubr.msk.bf16.vlgmr.msra.gmra.mrb[16].mxu1 %vm402_vm1, %v4929_v9 }
  0x73   : > { %4162 = vmatmul.mubr.msk.bf16.vlgmr.msra.gmra.mrb[0].mxu0 %vm402_vm1, %v4927_v5  ;;  %871 = vmatpush1.bf16.msra.mxu1 %v865_v20  ;;  %v4972_v5 = vld [vmem:[%s5325_s24 + $0x78] sm:$0xff]  }
  0x74   : > { %1093 = vmatpush1.bf16.msra.mxu0 %v865_v20  ;;  %580 = vmatprep.mubr.bf16.mxu1 %v5125_v0 }
  0x75   : > { %758 = vmatprep.mubr.bf16.mxu0 %v5125_v0  ;;  %4201 = vmatprep.subr.msk.bf16.mxu1 %vm415_vm0, %v4200_v22 }
  0x76   : > { %4227 = vmatprep.subr.msk.bf16.mxu0 %vm415_vm0, %v4200_v22 }
  0x7a   : > { %4153 = vmatmul.mubr.msk.bf16.gmra.mrb[20].mxu1 %vm402_vm1, %v4932_v14  ;;  %v2215_v14 = vsel %vm415_vm0, %v4434_v8, 0 }
  0x7b   : > { %4163 = vmatmul.mubr.msk.bf16.gmra.mrb[4].mxu0 %vm402_vm1, %v4931_v13  ;;  %590 = vmatprep.mubr.bf16.mxu1 %v5125_v0 }
  0x7c   : > { %768 = vmatprep.mubr.bf16.mxu0 %v5125_v0 }
  0x82   : > { %4154 = vmatmul.mubr.msk.bf16.gmra.mrb[24].mxu1 %vm402_vm1, %v4934_v16 }
  0x83   : > { %4164 = vmatmul.mubr.msk.bf16.gmra.mrb[8].mxu0 %vm402_vm1, %v4933_v15  ;;  %600 = vmatprep.mubr.bf16.mxu1 %v5125_v0  ;;  %v4446_v15 = vcombine.high %v5513_v11, %v5513_v11  ;;  %v4982_v11 = vld [vmem:[%s5325_s24 + $0x90] sm:$0xff]  }
  0x84   : > { %778 = vmatprep.mubr.bf16.mxu0 %v5125_v0 }
  0x8a   : > { %4155 = vmatmul.mubr.msk.bf16.gmra.mrb[28].mxu1 %vm402_vm1, %v4936_v18 }
  0x8b   : > { %4165 = vmatmul.mubr.msk.bf16.gmra.mrb[12].mxu0 %vm402_vm1, %v4935_v17  ;;  %902 = vmatprep.mubr.bf16.mxu1 %v5125_v0 }
  0x8c   : > { %1124 = vmatprep.mubr.bf16.mxu0 %v5125_v0 }
  0x92   : > { %4191 = vmatmul.mubr.msk.bf16.vlgmr.msra.gmra.mrb[32].mxu1 %vm402_vm1, %v4939_v24 }
  0x93   : > { %4223 = vmatmul.mubr.msk.bf16.vlgmr.msra.gmra.mrb[16].mxu0 %vm402_vm1, %v4941_v25  ;;  %987 = vmatpush1.bf16.msra.mxu1 %v981_v27 }
  0x94   : > { %1166 = vmatpush1.bf16.msra.mxu0 %v981_v27  ;;  %912 = vmatprep.mubr.bf16.mxu1 %v5125_v0 }
  0x95   : > { %1134 = vmatprep.mubr.bf16.mxu0 %v5125_v0  ;;  %4272 = vmatprep.subr.msk.bf16.mxu1 %vm415_vm0, %v4271_v28 }
  0x96   : > { %4304 = vmatprep.subr.msk.bf16.mxu0 %vm415_vm0, %v4271_v28 }
  0x9a   : > { %4192 = vmatmul.mubr.msk.bf16.gmra.mrb[36].mxu1 %vm402_vm1, %v4943_v29 }
  0x9b   : > { %4224 = vmatmul.mubr.msk.bf16.gmra.mrb[20].mxu0 %vm402_vm1, %v4944_v30  ;;  %922 = vmatprep.mubr.bf16.mxu1 %v5125_v0 }
  0x9c   : > { %1144 = vmatprep.mubr.bf16.mxu0 %v5125_v0 }
  0xa2   : > { %4193 = vmatmul.mubr.msk.bf16.gmra.mrb[40].mxu1 %vm402_vm1, %v4945_v31 }
  0xa3   : > { %4225 = vmatmul.mubr.msk.bf16.gmra.mrb[24].mxu0 %vm402_vm1, %v4946_v32  ;;  %932 = vmatprep.mubr.bf16.mxu1 %v5125_v0 }
  0xa4   : > { %1154 = vmatprep.mubr.bf16.mxu0 %v5125_v0 }
  0xaa   : > { %4194 = vmatmul.mubr.msk.bf16.gmra.mrb[44].mxu1 %vm402_vm1, %v4947_v33 }
  0xab   : > { %4226 = vmatmul.mubr.msk.bf16.gmra.mrb[28].mxu0 %vm402_vm1, %v4948_v34  ;;  %1018 = vmatprep.mubr.bf16.mxu1 %v5125_v0 }
  0xac   : > { %1197 = vmatprep.mubr.bf16.mxu0 %v5125_v0 }
  0xb2   : > { %4202 = vmatmul.mubr.msk.bf16.vlgmr.msra.gmra.mrb[48].mxu1 %vm402_vm1, %v4941_v25 }
  0xb3   : > { %4228 = vmatmul.mubr.msk.bf16.vlgmr.msra.gmra.mrb[16].mxu0 %vm402_vm1, %v4939_v24  ;;  %1321 = vmatpush1.bf16.msra.mxu1 %v1315_v37 }
  0xb4   : > { %1543 = vmatpush1.bf16.msra.mxu0 %v1315_v37  ;;  %1028 = vmatprep.mubr.bf16.mxu1 %v5125_v0 }
  0xb5   : > { %1207 = vmatprep.mubr.bf16.mxu0 %v5125_v0  ;;  %4283 = vmatprep.subr.msk.bf16.mxu1 %vm415_vm0, %v4282_v38 }
  0xb6   : > { %4309 = vmatprep.subr.msk.bf16.mxu0 %vm415_vm0, %v4282_v38 }
  0xba   : > { %4203 = vmatmul.mubr.msk.bf16.gmra.mrb[52].mxu1 %vm402_vm1, %v4944_v30 }
  0xbb   : > { %4229 = vmatmul.mubr.msk.bf16.gmra.mrb[20].mxu0 %vm402_vm1, %v4943_v29  ;;  %1038 = vmatprep.mubr.bf16.mxu1 %v5125_v0 }
  0xbc   : > { %1217 = vmatprep.mubr.bf16.mxu0 %v5125_v0 }
  0xc2   : > { %4204 = vmatmul.mubr.msk.bf16.gmra.mrb[56].mxu1 %vm402_vm1, %v4946_v32 }
  0xc3   : > { %4230 = vmatmul.mubr.msk.bf16.gmra.mrb[24].mxu0 %vm402_vm1, %v4945_v31  ;;  %1048 = vmatprep.mubr.bf16.mxu1 %v5125_v0 }
  0xc4   : > { %1227 = vmatprep.mubr.bf16.mxu0 %v5125_v0 }
  0xca   : > { %4205 = vmatmul.mubr.msk.bf16.gmra.mrb[60].mxu1 %vm402_vm1, %v4948_v34 }
  0xcb   : > { %4231 = vmatmul.mubr.msk.bf16.gmra.mrb[28].mxu0 %vm402_vm1, %v4947_v33  ;;  %1352 = vmatprep.mubr.bf16.mxu1 %v5125_v0 }
  0xcc   : > { %1574 = vmatprep.mubr.bf16.mxu0 %v5125_v0 }
  0xd2   : > { %4273 = vmatmul.mubr.msk.bf16.vlgmr.msra.gmra.mrb[64].mxu1 %vm402_vm1, %v4951_v40 }
  0xd3   : > { %4305 = vmatmul.mubr.msk.bf16.vlgmr.msra.gmra.mrb[32].mxu0 %vm402_vm1, %v4953_v41  ;;  %1437 = vmatpush1.bf16.msra.mxu1 %v1431_v43 }
  0xd4   : > { %1616 = vmatpush1.bf16.msra.mxu0 %v1431_v43  ;;  %1362 = vmatprep.mubr.bf16.mxu1 %v5125_v0  ;;  %v5584_v43 = vld [vmem:[%s5325_s24 + $0x80] sm:$0xff]  }
  0xd5   : > { %1584 = vmatprep.mubr.bf16.mxu0 %v5125_v0  ;;  %4354 = vmatprep.subr.msk.bf16.mxu1 %vm415_vm0, %v4353_v44 }
  0xd6   : > { %4386 = vmatprep.subr.msk.bf16.mxu0 %vm415_vm0, %v4353_v44  ;;  %v5587_v44 = vld [vmem:[%s5297_s25 + $0x28] sm:$0xff] }
  0xda   : > { %4274 = vmatmul.mubr.msk.bf16.gmra.mrb[68].mxu1 %vm402_vm1, %v4955_v45 }
  0xdb   : > { %4306 = vmatmul.mubr.msk.bf16.gmra.mrb[36].mxu0 %vm402_vm1, %v4956_v46  ;;  %1372 = vmatprep.mubr.bf16.mxu1 %v5125_v0 }
  0xdc   : > { %1594 = vmatprep.mubr.bf16.mxu0 %v5125_v0 }
  0xe2   : > { %4275 = vmatmul.mubr.msk.bf16.gmra.mrb[72].mxu1 %vm402_vm1, %v4957_v47 }
  0xe3   : > { %4307 = vmatmul.mubr.msk.bf16.gmra.mrb[40].mxu0 %vm402_vm1, %v4958_v48  ;;  %1382 = vmatprep.mubr.bf16.mxu1 %v5125_v0 }
  0xe4   : > { %1604 = vmatprep.mubr.bf16.mxu0 %v5125_v0 }
  0xea   : > { %4276 = vmatmul.mubr.msk.bf16.gmra.mrb[76].mxu1 %vm402_vm1, %v4959_v49 }
  0xeb   : > { %4308 = vmatmul.mubr.msk.bf16.gmra.mrb[44].mxu0 %vm402_vm1, %v4960_v50  ;;  %1468 = vmatprep.mubr.bf16.mxu1 %v5125_v0 }
  0xec   : > { %1647 = vmatprep.mubr.bf16.mxu0 %v5125_v0 }
  0xf2   : > { %4284 = vmatmul.mubr.msk.bf16.vlgmr.msra.gmra.mrb[80].mxu1 %vm402_vm1, %v4953_v41 }
  0xf3   : > { %4310 = vmatmul.mubr.msk.bf16.vlgmr.msra.gmra.mrb[32].mxu0 %vm402_vm1, %v4951_v40  ;;  %1771 = vmatpush1.bf16.msra.mxu1 %v1765_v53 }
  0xf4   : > { %1993 = vmatpush1.bf16.msra.mxu0 %v1765_v53  ;;  %1478 = vmatprep.mubr.bf16.mxu1 %v5125_v0  ;;  %v4517_v53 = vcombine.high %v5587_v44, %v5587_v44 }
  0xf5   : > { %1657 = vmatprep.mubr.bf16.mxu0 %v5125_v0  ;;  %4365 = vmatprep.subr.msk.bf16.mxu1 %vm415_vm0, %v4364_v54 }
  0xf6   : > { %4391 = vmatprep.subr.msk.bf16.mxu0 %vm415_vm0, %v4364_v54 }
  0xfa   : > { %4285 = vmatmul.mubr.msk.bf16.gmra.mrb[84].mxu1 %vm402_vm1, %v4956_v46 }
  0xfb   : > { %4311 = vmatmul.mubr.msk.bf16.gmra.mrb[36].mxu0 %vm402_vm1, %v4955_v45  ;;  %1488 = vmatprep.mubr.bf16.mxu1 %v5125_v0 }
  0xfc   : > { %1667 = vmatprep.mubr.bf16.mxu0 %v5125_v0 }
 0x102   : > { %4286 = vmatmul.mubr.msk.bf16.gmra.mrb[88].mxu1 %vm402_vm1, %v4958_v48 }
 0x103   : > { %4312 = vmatmul.mubr.msk.bf16.gmra.mrb[40].mxu0 %vm402_vm1, %v4957_v47  ;;  %1498 = vmatprep.mubr.bf16.mxu1 %v5125_v0 }
 0x104   : > { %1677 = vmatprep.mubr.bf16.mxu0 %v5125_v0 }
 0x10a   : > { %4287 = vmatmul.mubr.msk.bf16.gmra.mrb[92].mxu1 %vm402_vm1, %v4960_v50 }
 0x10b   : > { %4313 = vmatmul.mubr.msk.bf16.gmra.mrb[44].mxu0 %vm402_vm1, %v4959_v49  ;;  %1802 = vmatprep.mubr.bf16.mxu1 %v5125_v0 }
 0x10c   : > { %2024 = vmatprep.mubr.bf16.mxu0 %v5125_v0 }
 0x112   : > { %4355 = vmatmul.mubr.msk.bf16.vlgmr.msra.gmra.mrb[96].mxu1 %vm402_vm1, %v4963_v56 }
 0x113   : > { %4387 = vmatmul.mubr.msk.bf16.vlgmr.msra.gmra.mrb[48].mxu0 %vm402_vm1, %v4965_v57  ;;  %1887 = vmatpush1.bf16.msra.mxu1 %v1881_v59 }
 0x114   : > { %2066 = vmatpush1.bf16.msra.mxu0 %v1881_v59  ;;  %1812 = vmatprep.mubr.bf16.mxu1 %v5125_v0  ;;  %v5613_v59 = vld [vmem:[%s5319_s27 + $0x88] sm:$0xff]  }
 0x115   : > { %2034 = vmatprep.mubr.bf16.mxu0 %v5125_v0  ;;  %4436 = vmatprep.subr.msk.bf16.mxu1 %vm415_vm0, %v4435_v60 }
 0x116   : > { %4468 = vmatprep.subr.msk.bf16.mxu0 %vm415_vm0, %v4435_v60  ;;  %v5616_v60 = vld [vmem:[%s5325_s24 + $0x88] sm:$0xff]  }
 0x11a   : > { %4356 = vmatmul.mubr.msk.bf16.gmra.mrb[100].mxu1 %vm402_vm1, %v4967_v61 }
 0x11b   : > { %4388 = vmatmul.mubr.msk.bf16.gmra.mrb[52].mxu0 %vm402_vm1, %v4968_v62  ;;  %1822 = vmatprep.mubr.bf16.mxu1 %v5125_v0 }
 0x11c   : > { %2044 = vmatprep.mubr.bf16.mxu0 %v5125_v0 }
 0x122   : > { %4357 = vmatmul.mubr.msk.bf16.gmra.mrb[104].mxu1 %vm402_vm1, %v4969_v63 }
 0x123   : > { %4389 = vmatmul.mubr.msk.bf16.gmra.mrb[56].mxu0 %vm402_vm1, %v4970_v1  ;;  %1832 = vmatprep.mubr.bf16.mxu1 %v5125_v0 }
 0x124   : > { %2054 = vmatprep.mubr.bf16.mxu0 %v5125_v0 }
 0x125   : > { %v456_v2 = vpop.f32.mrb[0].mxu1 }
 0x126   : > { %v458_v3 = vpop.f32.mrb[1].mxu1 }
 0x127   : > { %v460_v6 = vpop.f32.mrb[2].mxu1 }
 0x128   : > { %v462_v7 = vpop.f32.mrb[3].mxu1 }
 0x12a   : > { %4358 = vmatmul.mubr.msk.bf16.gmra.mrb[108].mxu1 %vm402_vm1, %v5500_v4 }
 0x12b   : > { %4390 = vmatmul.mubr.msk.bf16.gmra.mrb[60].mxu0 %vm402_vm1, %v4972_v5  ;;  %1918 = vmatprep.mubr.bf16.mxu1 %v5125_v0 }
 0x12c   : > { %2097 = vmatprep.mubr.bf16.mxu0 %v5125_v0 }
 0x12d   : > { %v5508_v9 = vpop.f32.mrb[4].mxu1 }
 0x12e   : > { %v5510_v10 = vpop.f32.mrb[5].mxu1 }
 0x12f   : > { %v5515_v12 = vpop.f32.mrb[6].mxu1 }
 0x130   : > { %v5517_v13 = vpop.f32.mrb[7].mxu1 }
 0x132   : > { %4366 = vmatmul.mubr.msk.bf16.vlgmr.msra.gmra.mrb[112].mxu1 %vm402_vm1, %v4965_v57 }
 0x133   : > { %4392 = vmatmul.mubr.msk.bf16.vlgmr.msra.gmra.mrb[48].mxu0 %vm402_vm1, %v4963_v56  ;;  %2221 = vmatpush1.bf16.msra.mxu1 %v2215_v14 }
 0x134   : > { %2443 = vmatpush1.bf16.msra.mxu0 %v2215_v14  ;;  %1928 = vmatprep.mubr.bf16.mxu1 %v5125_v0 }
 0x135   : > { %2107 = vmatprep.mubr.bf16.mxu0 %v5125_v0  ;;  %v5526_v16 = vpop.f32.mrb[8].mxu1  ;;  %4447 = vmatprep.subr.msk.bf16.mxu1 %vm415_vm0, %v4446_v15 }
 0x136   : > { %4473 = vmatprep.subr.msk.bf16.mxu0 %vm415_vm0, %v4446_v15  ;;  %v5530_v17 = vpop.f32.mrb[9].mxu1 }
 0x137   : > { %v5532_v18 = vpop.f32.mrb[10].mxu1 }
 0x138   : > { %v5534_v19 = vpop.f32.mrb[11].mxu1 }
 0x13a   : > { %4367 = vmatmul.mubr.msk.bf16.gmra.mrb[116].mxu1 %vm402_vm1, %v4968_v62 }
 0x13b   : > { %4393 = vmatmul.mubr.msk.bf16.gmra.mrb[52].mxu0 %vm402_vm1, %v4967_v61  ;;  %1938 = vmatprep.mubr.bf16.mxu1 %v5125_v0 }
 0x13c   : > { %2117 = vmatprep.mubr.bf16.mxu0 %v5125_v0 }
 0x13d   : > { %v5540_v20 = vpop.f32.mrb[12].mxu1 }
 0x13e   : > { %v5542_v21 = vpop.f32.mrb[13].mxu1 }
 0x13f   : > { %v5544_v22 = vpop.f32.mrb[14].mxu1 }
 0x140   : > { %v5546_v23 = vpop.f32.mrb[15].mxu1 }
 0x142   : > { %4368 = vmatmul.mubr.msk.bf16.gmra.mrb[120].mxu1 %vm402_vm1, %v4970_v1 }
 0x143   : > { %4394 = vmatmul.mubr.msk.bf16.gmra.mrb[56].mxu0 %vm402_vm1, %v4969_v63  ;;  %1948 = vmatprep.mubr.bf16.mxu1 %v5125_v0 }
 0x144   : > { %2127 = vmatprep.mubr.bf16.mxu0 %v5125_v0 }
 0x145   : > { %v572_v24 = vpop.f32.mrb[16].mxu1 }
 0x146   : > { %v750_v25 = vpop.f32.mrb[0].mxu0  ;;  %v611_v26 = vsub.f32 %v456_v2, %v572_v24  ;;  %v574_v27 = vpop.f32.mrb[17].mxu1 }
 0x147   : > { %789 = vst [vmem:[%s5554_s29] sm:$0xff] %v750_v25  ;;  %v752_v28 = vpop.f32.mrb[1].mxu0  ;;  %v612_v29 = vsub.f32 %v458_v3, %v574_v27  ;;  %v576_v30 = vpop.f32.mrb[18].mxu1 }
 0x148   : > { %790 = vst [vmem:[%s5554_s29 + $0x8] sm:$0xff] %v752_v28  ;;  %v754_v31 = vpop.f32.mrb[2].mxu0  ;;  %627 = vst [vmem:[%s5561_s18] sm:$0xff] %v611_v26  ;;  %v613_v32 = vsub.f32 %v460_v6, %v576_v30  ;;  %v578_v33 = vpop.f32.mrb[19].mxu1  ;;  %v5665_v28 = vld [vmem:[%s5303_s11 + $0x28] sm:$0xff] }
 0x149   : > { %791 = vst [vmem:[%s5554_s29 + $0x10] sm:$0xff] %v754_v31  ;;  %v756_v34 = vpop.f32.mrb[3].mxu0  ;;  %628 = vst [vmem:[%s5561_s18 + $0x8] sm:$0xff] %v612_v29  ;;  %v614_v35 = vsub.f32 %v462_v7, %v578_v33 }
 0x14a   : > { %792 = vst [vmem:[%s5554_s29 + $0x18] sm:$0xff] %v756_v34  ;;  %629 = vst [vmem:[%s5561_s18 + $0x10] sm:$0xff] %v613_v32  ;;  %4369 = vmatmul.mubr.msk.bf16.gmra.mrb[124].mxu1 %vm402_vm1, %v4972_v5  ;;  %v4528_v32 = vcombine.high %v5665_v28, %v5665_v28 }
 0x14b   : > { %4395 = vmatmul.mubr.msk.bf16.gmra.mrb[60].mxu0 %vm402_vm1, %v5500_v4  ;;  %630 = vst [vmem:[%s5561_s18 + $0x18] sm:$0xff] %v614_v35  ;;  %2252 = vmatprep.mubr.bf16.mxu1 %v5125_v0 }
 0x14c   : > { %2474 = vmatprep.mubr.bf16.mxu0 %v5125_v0 }
 0x14d   : > { %v582_v37 = vpop.f32.mrb[20].mxu1 }
 0x14e   : > { %v760_v38 = vpop.f32.mrb[4].mxu0  ;;  %v615_v39 = vsub.f32 %v5508_v9, %v582_v37  ;;  %v584_v40 = vpop.f32.mrb[21].mxu1 }
 0x14f   : > { %793 = vst [vmem:[%s5554_s29 + $0x20] sm:$0xff] %v760_v38  ;;  %v762_v41 = vpop.f32.mrb[5].mxu0  ;;  %v616_v45 = vsub.f32 %v5510_v10, %v584_v40  ;;  %v586_v46 = vpop.f32.mrb[22].mxu1  ;;  %v4981_v10 = vld [vmem:[%s5319_s27 + $0x90] sm:$0xff]  }
 0x150   : > { %794 = vst [vmem:[%s5554_s29 + $0x28] sm:$0xff] %v762_v41  ;;  %v764_v47 = vpop.f32.mrb[6].mxu0  ;;  %631 = vst [vmem:[%s5561_s18 + $0x20] sm:$0xff] %v615_v39  ;;  %v617_v48 = vsub.f32 %v5515_v12, %v586_v46  ;;  %v588_v49 = vpop.f32.mrb[23].mxu1 }
 0x151   : > { %795 = vst [vmem:[%s5554_s29 + $0x30] sm:$0xff] %v764_v47  ;;  %v766_v50 = vpop.f32.mrb[7].mxu0  ;;  %632 = vst [vmem:[%s5561_s18 + $0x28] sm:$0xff] %v616_v45  ;;  %v618_v52 = vsub.f32 %v5517_v13, %v588_v49 }
 0x152   : > { %796 = vst [vmem:[%s5554_s29 + $0x38] sm:$0xff] %v766_v50  ;;  %633 = vst [vmem:[%s5561_s18 + $0x30] sm:$0xff] %v617_v48  ;;  %4437 = vmatmul.mubr.msk.bf16.vlgmr.msra.gmra.mrb[128].mxu1 %vm402_vm1, %v5581_v42 }
 0x153   : > { %4469 = vmatmul.mubr.msk.bf16.vlgmr.msra.gmra.mrb[64].mxu0 %vm402_vm1, %v5584_v43  ;;  %634 = vst [vmem:[%s5561_s18 + $0x38] sm:$0xff] %v618_v52  ;;  %2337 = vmatpush1.bf16.msra.mxu1 %v2331_v51 }
 0x154   : > { %2516 = vmatpush1.bf16.msra.mxu0 %v2331_v51  ;;  %2262 = vmatprep.mubr.bf16.mxu1 %v5125_v0 }
 0x155   : > { %2484 = vmatprep.mubr.bf16.mxu0 %v5125_v0  ;;  %v592_v54 = vpop.f32.mrb[24].mxu1  ;;  %4518 = vmatprep.subr.msk.bf16.mxu1 %vm415_vm0, %v4517_v53 }
 0x156   : > { %v770_v55 = vpop.f32.mrb[8].mxu0  ;;  %4550 = vmatprep.subr.msk.bf16.mxu0 %vm415_vm0, %v4517_v53  ;;  %v619_v56 = vsub.f32 %v5526_v16, %v592_v54  ;;  %v594_v57 = vpop.f32.mrb[25].mxu1  ;;  %v4527_v53 = vcombine.low %v5665_v28, %v5665_v28  ;;  %v4994_v28 = vld [vmem:[%s5325_s24 + $0xb0] sm:$0xff]  }
 0x157   : > { %797 = vst [vmem:[%s5554_s29 + $0x40] sm:$0xff] %v770_v55  ;;  %v772_v58 = vpop.f32.mrb[9].mxu0  ;;  %v620_v61 = vsub.f32 %v5530_v17, %v594_v57  ;;  %v596_v62 = vpop.f32.mrb[26].mxu1 }
 0x158   : > { %798 = vst [vmem:[%s5554_s29 + $0x48] sm:$0xff] %v772_v58  ;;  %v774_v63 = vpop.f32.mrb[10].mxu0  ;;  %635 = vst [vmem:[%s5561_s18 + $0x40] sm:$0xff] %v619_v56  ;;  %v621_v1 = vsub.f32 %v5532_v18, %v596_v62  ;;  %v598_v2 = vpop.f32.mrb[27].mxu1 }
 0x159   : > { %799 = vst [vmem:[%s5554_s29 + $0x50] sm:$0xff] %v774_v63  ;;  %v776_v3 = vpop.f32.mrb[11].mxu0  ;;  %636 = vst [vmem:[%s5561_s18 + $0x48] sm:$0xff] %v620_v61  ;;  %v622_v4 = vsub.f32 %v5534_v19, %v598_v2  ;;  %v5731_v61 = vld [vmem:[%s5297_s25 + $0x30] sm:$0xff] }
 0x15a   : > { %800 = vst [vmem:[%s5554_s29 + $0x58] sm:$0xff] %v776_v3  ;;  %637 = vst [vmem:[%s5561_s18 + $0x50] sm:$0xff] %v621_v1  ;;  %4438 = vmatmul.mubr.msk.bf16.gmra.mrb[132].mxu1 %vm402_vm1, %v5613_v59 }
 0x15b   : > { %4470 = vmatmul.mubr.msk.bf16.gmra.mrb[68].mxu0 %vm402_vm1, %v5616_v60  ;;  %638 = vst [vmem:[%s5561_s18 + $0x58] sm:$0xff] %v622_v4  ;;  %2272 = vmatprep.mubr.bf16.mxu1 %v5125_v0 }
 0x15c   : > { %2494 = vmatprep.mubr.bf16.mxu0 %v5125_v0 }
 0x15d   : > { %v602_v5 = vpop.f32.mrb[28].mxu1 }
 0x15e   : > { %v780_v6 = vpop.f32.mrb[12].mxu0  ;;  %v623_v7 = vsub.f32 %v5540_v20, %v602_v5  ;;  %v604_v8 = vpop.f32.mrb[29].mxu1  ;;  %v2781_v5 = vsel %vm415_vm0, %v4527_v53, 0 }
 0x15f   : > { %801 = vst [vmem:[%s5554_s29 + $0x60] sm:$0xff] %v780_v6  ;;  %v782_v9 = vpop.f32.mrb[13].mxu0  ;;  %v624_v12 = vsub.f32 %v5542_v21, %v604_v8  ;;  %v606_v13 = vpop.f32.mrb[30].mxu1  ;;  %v4983_v21 = vld [vmem:[%s5319_s27 + $0x98] sm:$0xff]  }
 0x160   : > { %802 = vst [vmem:[%s5554_s29 + $0x68] sm:$0xff] %v782_v9  ;;  %v784_v14 = vpop.f32.mrb[14].mxu0  ;;  %639 = vst [vmem:[%s5561_s18 + $0x60] sm:$0xff] %v623_v7  ;;  %v625_v15 = vsub.f32 %v5544_v22, %v606_v13  ;;  %v608_v16 = vpop.f32.mrb[31].mxu1  ;;  %v4984_v22 = vld [vmem:[%s5325_s24 + $0x98] sm:$0xff]   ;;  %v4599_v7 = vcombine.high %v5731_v61, %v5731_v61  ;;  %v5757_v13 = vld [vmem:[%s5319_s27 + $0xa8] sm:$0xff]  }
 0x161   : > { %803 = vst [vmem:[%s5554_s29 + $0x70] sm:$0xff] %v784_v14  ;;  %v786_v17 = vpop.f32.mrb[15].mxu0  ;;  %640 = vst [vmem:[%s5561_s18 + $0x68] sm:$0xff] %v624_v12  ;;  %v626_v18 = vsub.f32 %v5546_v23, %v608_v16  ;;  %v4516_v23 = vcombine.low %v5587_v44, %v5587_v44  ;;  %v5760_v14 = vld [vmem:[%s5325_s24 + $0xa8] sm:$0xff]  }
 0x162   : > { %804 = vst [vmem:[%s5554_s29 + $0x78] sm:$0xff] %v786_v17  ;;  %641 = vst [vmem:[%s5561_s18 + $0x70] sm:$0xff] %v625_v15  ;;  %4439 = vmatmul.mubr.msk.bf16.gmra.mrb[136].mxu1 %vm402_vm1, %v4981_v10 }
 0x163   : > { %4471 = vmatmul.mubr.msk.bf16.gmra.mrb[72].mxu0 %vm402_vm1, %v4982_v11  ;;  %642 = vst [vmem:[%s5561_s18 + $0x78] sm:$0xff] %v626_v18  ;;  %2282 = vmatprep.mubr.bf16.mxu1 %v5125_v0  ;;  %v2665_v31 = vsel %vm415_vm0, %v4516_v23, 0 }
 0x164   : > { %2504 = vmatprep.mubr.bf16.mxu0 %v5125_v0 }
 0x165   : > { %v904_v19 = vpop.f32.mrb[32].mxu1 }
 0x166   : > { %v906_v20 = vpop.f32.mrb[33].mxu1 }
 0x167   : > { %v908_v24 = vpop.f32.mrb[34].mxu1 }
 0x168   : > { %v910_v25 = vpop.f32.mrb[35].mxu1 }
 0x16a   : > { %4440 = vmatmul.mubr.msk.bf16.gmra.mrb[140].mxu1 %vm402_vm1, %v4983_v21 }
 0x16b   : > { %4472 = vmatmul.mubr.msk.bf16.gmra.mrb[76].mxu0 %vm402_vm1, %v4984_v22  ;;  %2368 = vmatprep.mubr.bf16.mxu1 %v5125_v0 }
 0x16c   : > { %2547 = vmatprep.mubr.bf16.mxu0 %v5125_v0 }
 0x16d   : > { %v5660_v26 = vpop.f32.mrb[36].mxu1 }
 0x16e   : > { %v5662_v27 = vpop.f32.mrb[37].mxu1 }
 0x16f   : > { %v5667_v29 = vpop.f32.mrb[38].mxu1 }
 0x170   : > { %v5669_v30 = vpop.f32.mrb[39].mxu1 }
 0x172   : > { %4448 = vmatmul.mubr.msk.bf16.vlgmr.msra.gmra.mrb[144].mxu1 %vm402_vm1, %v5584_v43 }
 0x173   : > { %4474 = vmatmul.mubr.msk.bf16.vlgmr.msra.gmra.mrb[64].mxu0 %vm402_vm1, %v5581_v42  ;;  %2671 = vmatpush1.bf16.msra.mxu1 %v2665_v31 }
 0x174   : > { %2893 = vmatpush1.bf16.msra.mxu0 %v2665_v31  ;;  %2378 = vmatprep.mubr.bf16.mxu1 %v5125_v0 }
 0x175   : > { %2557 = vmatprep.mubr.bf16.mxu0 %v5125_v0  ;;  %v5680_v33 = vpop.f32.mrb[40].mxu1  ;;  %4529 = vmatprep.subr.msk.bf16.mxu1 %vm415_vm0, %v4528_v32 }
 0x176   : > { %4555 = vmatprep.subr.msk.bf16.mxu0 %vm415_vm0, %v4528_v32  ;;  %v5684_v34 = vpop.f32.mrb[41].mxu1 }
 0x177   : > { %v5686_v35 = vpop.f32.mrb[42].mxu1 }
 0x178   : > { %v5688_v36 = vpop.f32.mrb[43].mxu1 }
 0x17a   : > { %4449 = vmatmul.mubr.msk.bf16.gmra.mrb[148].mxu1 %vm402_vm1, %v5616_v60  ;;  %v5728_v60 = vld [vmem:[%s5325_s24 + $0xa0] sm:$0xff]  }
 0x17b   : > { %4475 = vmatmul.mubr.msk.bf16.gmra.mrb[68].mxu0 %vm402_vm1, %v5613_v59  ;;  %2388 = vmatprep.mubr.bf16.mxu1 %v5125_v0  ;;  %v5725_v59 = vld [vmem:[%s5319_s27 + $0xa0] sm:$0xff]  }
 0x17c   : > { %2567 = vmatprep.mubr.bf16.mxu0 %v5125_v0 }
 0x17d   : > { %v5696_v37 = vpop.f32.mrb[44].mxu1 }
 0x17e   : > { %v5698_v38 = vpop.f32.mrb[45].mxu1 }
 0x17f   : > { %v5700_v39 = vpop.f32.mrb[46].mxu1 }
 0x180   : > { %v5702_v40 = vpop.f32.mrb[47].mxu1 }
 0x182   : > { %4450 = vmatmul.mubr.msk.bf16.gmra.mrb[152].mxu1 %vm402_vm1, %v4982_v11 }
 0x183   : > { %4476 = vmatmul.mubr.msk.bf16.gmra.mrb[72].mxu0 %vm402_vm1, %v4981_v10  ;;  %2398 = vmatprep.mubr.bf16.mxu1 %v5125_v0 }
 0x184   : > { %2577 = vmatprep.mubr.bf16.mxu0 %v5125_v0 }
 0x185   : > { %v1020_v41 = vpop.f32.mrb[48].mxu1 }
 0x186   : > { %v1199_v42 = vpop.f32.mrb[16].mxu0  ;;  %v1059_v43 = vsub.f32 %v904_v19, %v1020_v41  ;;  %v1022_v44 = vpop.f32.mrb[49].mxu1 }
 0x187   : > { %4232 = vst [vmem:[%s5554_s29 + $0x80] sm:$0xff] %v1199_v42  ;;  %v1201_v45 = vpop.f32.mrb[17].mxu0  ;;  %v1060_v46 = vsub.f32 %v906_v20, %v1022_v44  ;;  %v1024_v47 = vpop.f32.mrb[50].mxu1 }
 0x188   : > { %4233 = vst [vmem:[%s5554_s29 + $0x88] sm:$0xff] %v1201_v45  ;;  %v1203_v48 = vpop.f32.mrb[18].mxu0  ;;  %4206 = vst [vmem:[%s5561_s18 + $0x80] sm:$0xff] %v1059_v43  ;;  %v1061_v49 = vsub.f32 %v908_v24, %v1024_v47  ;;  %v1026_v50 = vpop.f32.mrb[51].mxu1  ;;  %v5809_v45 = vld [vmem:[%s5303_s11 + $0x30] sm:$0xff] }
 0x189   : > { %4234 = vst [vmem:[%s5554_s29 + $0x90] sm:$0xff] %v1203_v48  ;;  %v1205_v51 = vpop.f32.mrb[19].mxu0  ;;  %4207 = vst [vmem:[%s5561_s18 + $0x88] sm:$0xff] %v1060_v46  ;;  %v1062_v52 = vsub.f32 %v910_v25, %v1026_v50 }
 0x18a   : > { %4235 = vst [vmem:[%s5554_s29 + $0x98] sm:$0xff] %v1205_v51  ;;  %4208 = vst [vmem:[%s5561_s18 + $0x90] sm:$0xff] %v1061_v49  ;;  %4451 = vmatmul.mubr.msk.bf16.gmra.mrb[156].mxu1 %vm402_vm1, %v4984_v22  ;;  %v4610_v49 = vcombine.high %v5809_v45, %v5809_v45 }
 0x18b   : > { %4477 = vmatmul.mubr.msk.bf16.gmra.mrb[76].mxu0 %vm402_vm1, %v4983_v21  ;;  %4209 = vst [vmem:[%s5561_s18 + $0x98] sm:$0xff] %v1062_v52  ;;  %2702 = vmatprep.mubr.bf16.mxu1 %v5125_v0 }
 0x18c   : > { %2924 = vmatprep.mubr.bf16.mxu0 %v5125_v0 }
 0x18d   : > { %v1030_v54 = vpop.f32.mrb[52].mxu1 }
 0x18e   : > { %v1209_v55 = vpop.f32.mrb[20].mxu0  ;;  %v1063_v56 = vsub.f32 %v5660_v26, %v1030_v54  ;;  %v1032_v57 = vpop.f32.mrb[53].mxu1 }
 0x18f   : > { %4236 = vst [vmem:[%s5554_s29 + $0xa0] sm:$0xff] %v1209_v55  ;;  %v1211_v58 = vpop.f32.mrb[21].mxu0  ;;  %v1064_v62 = vsub.f32 %v5662_v27, %v1032_v57  ;;  %v1034_v63 = vpop.f32.mrb[54].mxu1  ;;  %v4993_v27 = vld [vmem:[%s5319_s27 + $0xb0] sm:$0xff]  }
 0x190   : > { %4237 = vst [vmem:[%s5554_s29 + $0xa8] sm:$0xff] %v1211_v58  ;;  %v1213_v1 = vpop.f32.mrb[22].mxu0  ;;  %4210 = vst [vmem:[%s5561_s18 + $0xa0] sm:$0xff] %v1063_v56  ;;  %v1065_v2 = vsub.f32 %v5667_v29, %v1034_v63  ;;  %v1036_v3 = vpop.f32.mrb[55].mxu1 }
 0x191   : > { %4238 = vst [vmem:[%s5554_s29 + $0xb0] sm:$0xff] %v1213_v1  ;;  %v1215_v4 = vpop.f32.mrb[23].mxu0  ;;  %4211 = vst [vmem:[%s5561_s18 + $0xa8] sm:$0xff] %v1064_v62  ;;  %v1066_v6 = vsub.f32 %v5669_v30, %v1036_v3 }
 0x192   : > { %4239 = vst [vmem:[%s5554_s29 + $0xb8] sm:$0xff] %v1215_v4  ;;  %4212 = vst [vmem:[%s5561_s18 + $0xb0] sm:$0xff] %v1065_v2  ;;  %4519 = vmatmul.mubr.msk.bf16.vlgmr.msra.gmra.mrb[160].mxu1 %vm402_vm1, %v5725_v59 }
 0x193   : > { %4551 = vmatmul.mubr.msk.bf16.vlgmr.msra.gmra.mrb[80].mxu0 %vm402_vm1, %v5728_v60  ;;  %4213 = vst [vmem:[%s5561_s18 + $0xb8] sm:$0xff] %v1066_v6  ;;  %2787 = vmatpush1.bf16.msra.mxu1 %v2781_v5 }
 0x194   : > { %2966 = vmatpush1.bf16.msra.mxu0 %v2781_v5  ;;  %2712 = vmatprep.mubr.bf16.mxu1 %v5125_v0 }
 0x195   : > { %2934 = vmatprep.mubr.bf16.mxu0 %v5125_v0  ;;  %v1040_v8 = vpop.f32.mrb[56].mxu1  ;;  %4600 = vmatprep.subr.msk.bf16.mxu1 %vm415_vm0, %v4599_v7 }
 0x196   : > { %v1219_v9 = vpop.f32.mrb[24].mxu0  ;;  %4632 = vmatprep.subr.msk.bf16.mxu0 %vm415_vm0, %v4599_v7  ;;  %v1067_v10 = vsub.f32 %v5680_v33, %v1040_v8  ;;  %v1042_v11 = vpop.f32.mrb[57].mxu1  ;;  %v4609_v7 = vcombine.low %v5809_v45, %v5809_v45  ;;  %v5006_v45 = vld [vmem:[%s5325_s24 + $0xd0] sm:$0xff]  }
 0x197   : > { %4240 = vst [vmem:[%s5554_s29 + $0xc0] sm:$0xff] %v1219_v9  ;;  %v1221_v12 = vpop.f32.mrb[25].mxu0  ;;  %v1068_v15 = vsub.f32 %v5684_v34, %v1042_v11  ;;  %v1044_v16 = vpop.f32.mrb[58].mxu1 }
 0x198   : > { %4241 = vst [vmem:[%s5554_s29 + $0xc8] sm:$0xff] %v1221_v12  ;;  %v1223_v17 = vpop.f32.mrb[26].mxu0  ;;  %4214 = vst [vmem:[%s5561_s18 + $0xc0] sm:$0xff] %v1067_v10  ;;  %v1069_v18 = vsub.f32 %v5686_v35, %v1044_v16  ;;  %v1046_v19 = vpop.f32.mrb[59].mxu1 }
 0x199   : > { %4242 = vst [vmem:[%s5554_s29 + $0xd0] sm:$0xff] %v1223_v17  ;;  %v1225_v20 = vpop.f32.mrb[27].mxu0  ;;  %4215 = vst [vmem:[%s5561_s18 + $0xc8] sm:$0xff] %v1068_v15  ;;  %v1070_v21 = vsub.f32 %v5688_v36, %v1046_v19  ;;  %v5875_v15 = vld [vmem:[%s5297_s25 + $0x38] sm:$0xff] }
 0x19a   : > { %4243 = vst [vmem:[%s5554_s29 + $0xd8] sm:$0xff] %v1225_v20  ;;  %4216 = vst [vmem:[%s5561_s18 + $0xd0] sm:$0xff] %v1069_v18  ;;  %4520 = vmatmul.mubr.msk.bf16.gmra.mrb[164].mxu1 %vm402_vm1, %v5757_v13 }
 0x19b   : > { %4552 = vmatmul.mubr.msk.bf16.gmra.mrb[84].mxu0 %vm402_vm1, %v5760_v14  ;;  %4217 = vst [vmem:[%s5561_s18 + $0xd8] sm:$0xff] %v1070_v21  ;;  %2722 = vmatprep.mubr.bf16.mxu1 %v5125_v0 }
 0x19c   : > { %2944 = vmatprep.mubr.bf16.mxu0 %v5125_v0 }
 0x19d   : > { %v1050_v22 = vpop.f32.mrb[60].mxu1 }
 0x19e   : > { %v1229_v24 = vpop.f32.mrb[28].mxu0  ;;  %v1071_v25 = vsub.f32 %v5696_v37, %v1050_v22  ;;  %v1052_v23 = vpop.f32.mrb[61].mxu1  ;;  %v3231_v22 = vsel %vm415_vm0, %v4609_v7, 0 }
 0x19f   : > { %4244 = vst [vmem:[%s5554_s29 + $0xe0] sm:$0xff] %v1229_v24  ;;  %v1231_v26 = vpop.f32.mrb[29].mxu0  ;;  %v1072_v29 = vsub.f32 %v5698_v38, %v1052_v23  ;;  %v1054_v30 = vpop.f32.mrb[62].mxu1  ;;  %v4995_v38 = vld [vmem:[%s5319_s27 + $0xb8] sm:$0xff]  }
 0x1a0   : > { %4245 = vst [vmem:[%s5554_s29 + $0xe8] sm:$0xff] %v1231_v26  ;;  %v1233_v31 = vpop.f32.mrb[30].mxu0  ;;  %4218 = vst [vmem:[%s5561_s18 + $0xe0] sm:$0xff] %v1071_v25  ;;  %v1073_v32 = vsub.f32 %v5700_v39, %v1054_v30  ;;  %v1056_v33 = vpop.f32.mrb[63].mxu1  ;;  %v4996_v39 = vld [vmem:[%s5325_s24 + $0xb8] sm:$0xff]   ;;  %v4681_v25 = vcombine.high %v5875_v15, %v5875_v15  ;;  %v5901_v30 = vld [vmem:[%s5319_s27 + $0xc8] sm:$0xff]  }
 0x1a1   : > { %4246 = vst [vmem:[%s5554_s29 + $0xf0] sm:$0xff] %v1233_v31  ;;  %v1235_v34 = vpop.f32.mrb[31].mxu0  ;;  %4219 = vst [vmem:[%s5561_s18 + $0xe8] sm:$0xff] %v1072_v29  ;;  %v1074_v35 = vsub.f32 %v5702_v40, %v1056_v33  ;;  %v4598_v40 = vcombine.low %v5731_v61, %v5731_v61  ;;  %v5904_v31 = vld [vmem:[%s5325_s24 + $0xc8] sm:$0xff]  }
 0x1a2   : > { %4247 = vst [vmem:[%s5554_s29 + $0xf8] sm:$0xff] %v1235_v34  ;;  %4220 = vst [vmem:[%s5561_s18 + $0xf0] sm:$0xff] %v1073_v32  ;;  %4521 = vmatmul.mubr.msk.bf16.gmra.mrb[168].mxu1 %vm402_vm1, %v4993_v27 }
 0x1a3   : > { %4553 = vmatmul.mubr.msk.bf16.gmra.mrb[88].mxu0 %vm402_vm1, %v4994_v28  ;;  %4221 = vst [vmem:[%s5561_s18 + $0xf8] sm:$0xff] %v1074_v35  ;;  %2732 = vmatprep.mubr.bf16.mxu1 %v5125_v0  ;;  %v3115_v48 = vsel %vm415_vm0, %v4598_v40, 0 }
 0x1a4   : > { %2954 = vmatprep.mubr.bf16.mxu0 %v5125_v0 }
 0x1a5   : > { %v1354_v36 = vpop.f32.mrb[64].mxu1 }
 0x1a6   : > { %v1356_v37 = vpop.f32.mrb[65].mxu1 }
 0x1a7   : > { %v1358_v41 = vpop.f32.mrb[66].mxu1 }
 0x1a8   : > { %v1360_v42 = vpop.f32.mrb[67].mxu1 }
 0x1aa   : > { %4522 = vmatmul.mubr.msk.bf16.gmra.mrb[172].mxu1 %vm402_vm1, %v4995_v38 }
 0x1ab   : > { %4554 = vmatmul.mubr.msk.bf16.gmra.mrb[92].mxu0 %vm402_vm1, %v4996_v39  ;;  %2818 = vmatprep.mubr.bf16.mxu1 %v5125_v0 }
 0x1ac   : > { %2997 = vmatprep.mubr.bf16.mxu0 %v5125_v0 }
 0x1ad   : > { %v5804_v43 = vpop.f32.mrb[68].mxu1 }
 0x1ae   : > { %v5806_v44 = vpop.f32.mrb[69].mxu1 }
 0x1af   : > { %v5811_v46 = vpop.f32.mrb[70].mxu1 }
 0x1b0   : > { %v5813_v47 = vpop.f32.mrb[71].mxu1 }
 0x1b2   : > { %4530 = vmatmul.mubr.msk.bf16.vlgmr.msra.gmra.mrb[176].mxu1 %vm402_vm1, %v5728_v60 }
 0x1b3   : > { %4556 = vmatmul.mubr.msk.bf16.vlgmr.msra.gmra.mrb[80].mxu0 %vm402_vm1, %v5725_v59  ;;  %3121 = vmatpush1.bf16.msra.mxu1 %v3115_v48 }
 0x1b4   : > { %3343 = vmatpush1.bf16.msra.mxu0 %v3115_v48  ;;  %2828 = vmatprep.mubr.bf16.mxu1 %v5125_v0 }
 0x1b5   : > { %3007 = vmatprep.mubr.bf16.mxu0 %v5125_v0  ;;  %v5824_v50 = vpop.f32.mrb[72].mxu1  ;;  %4611 = vmatprep.subr.msk.bf16.mxu1 %vm415_vm0, %v4610_v49 }
 0x1b6   : > { %4637 = vmatprep.subr.msk.bf16.mxu0 %vm415_vm0, %v4610_v49  ;;  %v5828_v51 = vpop.f32.mrb[73].mxu1 }
 0x1b7   : > { %v5830_v52 = vpop.f32.mrb[74].mxu1 }
 0x1b8   : > { %v5832_v53 = vpop.f32.mrb[75].mxu1 }
 0x1ba   : > { %4531 = vmatmul.mubr.msk.bf16.gmra.mrb[180].mxu1 %vm402_vm1, %v5760_v14  ;;  %v5872_v14 = vld [vmem:[%s5325_s24 + $0xc0] sm:$0xff]  }
 0x1bb   : > { %4557 = vmatmul.mubr.msk.bf16.gmra.mrb[84].mxu0 %vm402_vm1, %v5757_v13  ;;  %2838 = vmatprep.mubr.bf16.mxu1 %v5125_v0  ;;  %v5869_v13 = vld [vmem:[%s5319_s27 + $0xc0] sm:$0xff]  }
 0x1bc   : > { %3017 = vmatprep.mubr.bf16.mxu0 %v5125_v0 }
 0x1bd   : > { %v5840_v54 = vpop.f32.mrb[76].mxu1 }
 0x1be   : > { %v5842_v55 = vpop.f32.mrb[77].mxu1 }
 0x1bf   : > { %v5844_v56 = vpop.f32.mrb[78].mxu1 }
 0x1c0   : > { %v5846_v57 = vpop.f32.mrb[79].mxu1 }
 0x1c2   : > { %4532 = vmatmul.mubr.msk.bf16.gmra.mrb[184].mxu1 %vm402_vm1, %v4994_v28 }
 0x1c3   : > { %4558 = vmatmul.mubr.msk.bf16.gmra.mrb[88].mxu0 %vm402_vm1, %v4993_v27  ;;  %2848 = vmatprep.mubr.bf16.mxu1 %v5125_v0 }
 0x1c4   : > { %3027 = vmatprep.mubr.bf16.mxu0 %v5125_v0 }
 0x1c5   : > { %v1470_v58 = vpop.f32.mrb[80].mxu1 }
 0x1c6   : > { %v1649_v59 = vpop.f32.mrb[32].mxu0  ;;  %v1509_v60 = vsub.f32 %v1354_v36, %v1470_v58  ;;  %v1472_v61 = vpop.f32.mrb[81].mxu1 }
 0x1c7   : > { %4314 = vst [vmem:[%s5554_s29 + $0x100] sm:$0xff] %v1649_v59  ;;  %v1651_v62 = vpop.f32.mrb[33].mxu0  ;;  %v1510_v63 = vsub.f32 %v1356_v37, %v1472_v61  ;;  %v1474_v1 = vpop.f32.mrb[82].mxu1 }
 0x1c8   : > { %4315 = vst [vmem:[%s5554_s29 + $0x108] sm:$0xff] %v1651_v62  ;;  %v1653_v2 = vpop.f32.mrb[34].mxu0  ;;  %4288 = vst [vmem:[%s5561_s18 + $0x100] sm:$0xff] %v1509_v60  ;;  %v1511_v3 = vsub.f32 %v1358_v41, %v1474_v1  ;;  %v1476_v4 = vpop.f32.mrb[83].mxu1  ;;  %v5953_v62 = vld [vmem:[%s5303_s11 + $0x38] sm:$0xff] }
 0x1c9   : > { %4316 = vst [vmem:[%s5554_s29 + $0x110] sm:$0xff] %v1653_v2  ;;  %v1655_v5 = vpop.f32.mrb[35].mxu0  ;;  %4289 = vst [vmem:[%s5561_s18 + $0x108] sm:$0xff] %v1510_v63  ;;  %v1512_v6 = vsub.f32 %v1360_v42, %v1476_v4 }
 0x1ca   : > { %4317 = vst [vmem:[%s5554_s29 + $0x118] sm:$0xff] %v1655_v5  ;;  %4290 = vst [vmem:[%s5561_s18 + $0x110] sm:$0xff] %v1511_v3  ;;  %4533 = vmatmul.mubr.msk.bf16.gmra.mrb[188].mxu1 %vm402_vm1, %v4996_v39  ;;  %v4692_v3 = vcombine.high %v5953_v62, %v5953_v62 }
 0x1cb   : > { %4559 = vmatmul.mubr.msk.bf16.gmra.mrb[92].mxu0 %vm402_vm1, %v4995_v38  ;;  %4291 = vst [vmem:[%s5561_s18 + $0x118] sm:$0xff] %v1512_v6  ;;  %3152 = vmatprep.mubr.bf16.mxu1 %v5125_v0 }
 0x1cc   : > { %3374 = vmatprep.mubr.bf16.mxu0 %v5125_v0 }
 0x1cd   : > { %v1480_v8 = vpop.f32.mrb[84].mxu1 }
 0x1ce   : > { %v1659_v9 = vpop.f32.mrb[36].mxu0  ;;  %v1513_v10 = vsub.f32 %v5804_v43, %v1480_v8  ;;  %v1482_v11 = vpop.f32.mrb[85].mxu1 }
 0x1cf   : > { %4318 = vst [vmem:[%s5554_s29 + $0x120] sm:$0xff] %v1659_v9  ;;  %v1661_v12 = vpop.f32.mrb[37].mxu0  ;;  %v1514_v16 = vsub.f32 %v5806_v44, %v1482_v11  ;;  %v1484_v17 = vpop.f32.mrb[86].mxu1  ;;  %v5005_v44 = vld [vmem:[%s5319_s27 + $0xd0] sm:$0xff]  }
 0x1d0   : > { %4319 = vst [vmem:[%s5554_s29 + $0x128] sm:$0xff] %v1661_v12  ;;  %v1663_v18 = vpop.f32.mrb[38].mxu0  ;;  %4292 = vst [vmem:[%s5561_s18 + $0x120] sm:$0xff] %v1513_v10  ;;  %v1515_v19 = vsub.f32 %v5811_v46, %v1484_v17  ;;  %v1486_v20 = vpop.f32.mrb[87].mxu1 }
 0x1d1   : > { %4320 = vst [vmem:[%s5554_s29 + $0x130] sm:$0xff] %v1663_v18  ;;  %v1665_v21 = vpop.f32.mrb[39].mxu0  ;;  %4293 = vst [vmem:[%s5561_s18 + $0x128] sm:$0xff] %v1514_v16  ;;  %v1516_v24 = vsub.f32 %v5813_v47, %v1486_v20 }
 0x1d2   : > { %4321 = vst [vmem:[%s5554_s29 + $0x138] sm:$0xff] %v1665_v21  ;;  %4294 = vst [vmem:[%s5561_s18 + $0x130] sm:$0xff] %v1515_v19  ;;  %4601 = vmatmul.mubr.msk.bf16.vlgmr.msra.gmra.mrb[192].mxu1 %vm402_vm1, %v5869_v13 }
 0x1d3   : > { %4633 = vmatmul.mubr.msk.bf16.vlgmr.msra.gmra.mrb[96].mxu0 %vm402_vm1, %v5872_v14  ;;  %4295 = vst [vmem:[%s5561_s18 + $0x138] sm:$0xff] %v1516_v24  ;;  %3237 = vmatpush1.bf16.msra.mxu1 %v3231_v22 }
 0x1d4   : > { %3416 = vmatpush1.bf16.msra.mxu0 %v3231_v22  ;;  %3162 = vmatprep.mubr.bf16.mxu1 %v5125_v0 }
 0x1d5   : > { %3384 = vmatprep.mubr.bf16.mxu0 %v5125_v0  ;;  %v1490_v23 = vpop.f32.mrb[88].mxu1  ;;  %4682 = vmatprep.subr.msk.bf16.mxu1 %vm415_vm0, %v4681_v25 }
 0x1d6   : > { %v1669_v26 = vpop.f32.mrb[40].mxu0  ;;  %4714 = vmatprep.subr.msk.bf16.mxu0 %vm415_vm0, %v4681_v25  ;;  %v1517_v27 = vsub.f32 %v5824_v50, %v1490_v23  ;;  %v1492_v28 = vpop.f32.mrb[89].mxu1  ;;  %v4691_v25 = vcombine.low %v5953_v62, %v5953_v62 }
 0x1d7   : > { %4322 = vst [vmem:[%s5554_s29 + $0x140] sm:$0xff] %v1669_v26  ;;  %v1671_v29 = vpop.f32.mrb[41].mxu0  ;;  %v1518_v32 = vsub.f32 %v5828_v51, %v1492_v28  ;;  %v1494_v33 = vpop.f32.mrb[90].mxu1 }
 0x1d8   : > { %4323 = vst [vmem:[%s5554_s29 + $0x148] sm:$0xff] %v1671_v29  ;;  %v1673_v34 = vpop.f32.mrb[42].mxu0  ;;  %4296 = vst [vmem:[%s5561_s18 + $0x140] sm:$0xff] %v1517_v27  ;;  %v1519_v35 = vsub.f32 %v5830_v52, %v1494_v33  ;;  %v1496_v36 = vpop.f32.mrb[91].mxu1 }
 0x1d9   : > { %4324 = vst [vmem:[%s5554_s29 + $0x150] sm:$0xff] %v1673_v34  ;;  %v1675_v37 = vpop.f32.mrb[43].mxu0  ;;  %4297 = vst [vmem:[%s5561_s18 + $0x148] sm:$0xff] %v1518_v32  ;;  %v1520_v38 = vsub.f32 %v5832_v53, %v1496_v36 }
 0x1da   : > { %4325 = vst [vmem:[%s5554_s29 + $0x158] sm:$0xff] %v1675_v37  ;;  %4298 = vst [vmem:[%s5561_s18 + $0x150] sm:$0xff] %v1519_v35  ;;  %4602 = vmatmul.mubr.msk.bf16.gmra.mrb[196].mxu1 %vm402_vm1, %v5901_v30 }
 0x1db   : > { %4634 = vmatmul.mubr.msk.bf16.gmra.mrb[100].mxu0 %vm402_vm1, %v5904_v31  ;;  %4299 = vst [vmem:[%s5561_s18 + $0x158] sm:$0xff] %v1520_v38  ;;  %3172 = vmatprep.mubr.bf16.mxu1 %v5125_v0  ;;  %v3681_v38 = vsel %vm415_vm0, %v4691_v25, 0 }
 0x1dc   : > { %3394 = vmatprep.mubr.bf16.mxu0 %v5125_v0 }
 0x1dd   : > { %v1500_v39 = vpop.f32.mrb[92].mxu1 }
 0x1de   : > { %v1679_v41 = vpop.f32.mrb[44].mxu0  ;;  %v1521_v42 = vsub.f32 %v5840_v54, %v1500_v39  ;;  %v1502_v40 = vpop.f32.mrb[93].mxu1 }
 0x1df   : > { %4326 = vst [vmem:[%s5554_s29 + $0x160] sm:$0xff] %v1679_v41  ;;  %v1681_v43 = vpop.f32.mrb[45].mxu0  ;;  %v1522_v46 = vsub.f32 %v5842_v55, %v1502_v40  ;;  %v1504_v47 = vpop.f32.mrb[94].mxu1  ;;  %v5007_v55 = vld [vmem:[%s5319_s27 + $0xd8] sm:$0xff]  }
 0x1e0   : > { %4327 = vst [vmem:[%s5554_s29 + $0x168] sm:$0xff] %v1681_v43  ;;  %v1683_v48 = vpop.f32.mrb[46].mxu0  ;;  %4300 = vst [vmem:[%s5561_s18 + $0x160] sm:$0xff] %v1521_v42  ;;  %v1523_v49 = vsub.f32 %v5844_v56, %v1504_v47  ;;  %v1506_v50 = vpop.f32.mrb[95].mxu1  ;;  %v5008_v56 = vld [vmem:[%s5325_s24 + $0xd8] sm:$0xff]  }
 0x1e1   : > { %4328 = vst [vmem:[%s5554_s29 + $0x170] sm:$0xff] %v1683_v48  ;;  %v1685_v51 = vpop.f32.mrb[47].mxu0  ;;  %4301 = vst [vmem:[%s5561_s18 + $0x168] sm:$0xff] %v1522_v46  ;;  %v1524_v52 = vsub.f32 %v5846_v57, %v1506_v50  ;;  %v4680_v57 = vcombine.low %v5875_v15, %v5875_v15  ;;  %v6041_v46 = vld [vmem:[%s5325_s24 + $0xe8] sm:$0xff]  }
 0x1e2   : > { %4329 = vst [vmem:[%s5554_s29 + $0x178] sm:$0xff] %v1685_v51  ;;  %4302 = vst [vmem:[%s5561_s18 + $0x170] sm:$0xff] %v1523_v49  ;;  %4603 = vmatmul.mubr.msk.bf16.gmra.mrb[200].mxu1 %vm402_vm1, %v5005_v44 }
 0x1e3   : > { %4635 = vmatmul.mubr.msk.bf16.gmra.mrb[104].mxu0 %vm402_vm1, %v5006_v45  ;;  %4303 = vst [vmem:[%s5561_s18 + $0x178] sm:$0xff] %v1524_v52  ;;  %3182 = vmatprep.mubr.bf16.mxu1 %v5125_v0  ;;  %v3565_v2 = vsel %vm415_vm0, %v4680_v57, 0  ;;  %v5017_v57 = vld [vmem:[%s5319_s27 + $0xf0] sm:$0xff]  }
 0x1e4   : > { %3404 = vmatprep.mubr.bf16.mxu0 %v5125_v0 }
 0x1e5   : > { %v1804_v53 = vpop.f32.mrb[96].mxu1 }
 0x1e6   : > { %v1806_v54 = vpop.f32.mrb[97].mxu1 }
 0x1e7   : > { %v1808_v58 = vpop.f32.mrb[98].mxu1 }
 0x1e8   : > { %v1810_v59 = vpop.f32.mrb[99].mxu1 }
 0x1ea   : > { %4604 = vmatmul.mubr.msk.bf16.gmra.mrb[204].mxu1 %vm402_vm1, %v5007_v55 }
 0x1eb   : > { %4636 = vmatmul.mubr.msk.bf16.gmra.mrb[108].mxu0 %vm402_vm1, %v5008_v56  ;;  %3268 = vmatprep.mubr.bf16.mxu1 %v5125_v0 }
 0x1ec   : > { %3447 = vmatprep.mubr.bf16.mxu0 %v5125_v0 }
 0x1ed   : > { %v5948_v60 = vpop.f32.mrb[100].mxu1 }
 0x1ee   : > { %v5950_v61 = vpop.f32.mrb[101].mxu1 }
 0x1ef   : > { %v5955_v63 = vpop.f32.mrb[102].mxu1 }
 0x1f0   : > { %v5957_v1 = vpop.f32.mrb[103].mxu1 }
 0x1f2   : > { %4612 = vmatmul.mubr.msk.bf16.vlgmr.msra.gmra.mrb[208].mxu1 %vm402_vm1, %v5872_v14 }
 0x1f3   : > { %4638 = vmatmul.mubr.msk.bf16.vlgmr.msra.gmra.mrb[96].mxu0 %vm402_vm1, %v5869_v13  ;;  %3571 = vmatpush1.bf16.msra.mxu1 %v3565_v2 }
 0x1f4   : > { %3793 = vmatpush1.bf16.msra.mxu0 %v3565_v2  ;;  %3278 = vmatprep.mubr.bf16.mxu1 %v5125_v0 }
 0x1f5   : > { %3457 = vmatprep.mubr.bf16.mxu0 %v5125_v0  ;;  %v5968_v4 = vpop.f32.mrb[104].mxu1  ;;  %4693 = vmatprep.subr.msk.bf16.mxu1 %vm415_vm0, %v4692_v3 }
 0x1f6   : > { %4719 = vmatprep.subr.msk.bf16.mxu0 %vm415_vm0, %v4692_v3  ;;  %v5972_v5 = vpop.f32.mrb[105].mxu1 }
 0x1f7   : > { %v5974_v6 = vpop.f32.mrb[106].mxu1 }
 0x1f8   : > { %v5976_v7 = vpop.f32.mrb[107].mxu1 }
 0x1fa   : > { %4613 = vmatmul.mubr.msk.bf16.gmra.mrb[212].mxu1 %vm402_vm1, %v5904_v31  ;;  %v6016_v31 = vld [vmem:[%s5325_s24 + $0xe0] sm:$0xff]  }
 0x1fb   : > { %4639 = vmatmul.mubr.msk.bf16.gmra.mrb[100].mxu0 %vm402_vm1, %v5901_v30  ;;  %3288 = vmatprep.mubr.bf16.mxu1 %v5125_v0  ;;  %v6013_v30 = vld [vmem:[%s5319_s27 + $0xe0] sm:$0xff]  }
 0x1fc   : > { %3467 = vmatprep.mubr.bf16.mxu0 %v5125_v0 }
 0x1fd   : > { %v5984_v8 = vpop.f32.mrb[108].mxu1 }
 0x1fe   : > { %v5986_v9 = vpop.f32.mrb[109].mxu1 }
 0x1ff   : > { %v5988_v10 = vpop.f32.mrb[110].mxu1 }
 0x200   : > { %v5990_v11 = vpop.f32.mrb[111].mxu1 }
 0x202   : > { %4614 = vmatmul.mubr.msk.bf16.gmra.mrb[216].mxu1 %vm402_vm1, %v5006_v45  ;;  %v6038_v45 = vld [vmem:[%s5319_s27 + $0xe8] sm:$0xff]  }
 0x203   : > { %4640 = vmatmul.mubr.msk.bf16.gmra.mrb[104].mxu0 %vm402_vm1, %v5005_v44  ;;  %3298 = vmatprep.mubr.bf16.mxu1 %v5125_v0 }
 0x204   : > { %3477 = vmatprep.mubr.bf16.mxu0 %v5125_v0 }
 0x205   : > { %v1920_v12 = vpop.f32.mrb[112].mxu1 }
 0x206   : > { %v2099_v13 = vpop.f32.mrb[48].mxu0  ;;  %v1959_v14 = vsub.f32 %v1804_v53, %v1920_v12  ;;  %v1922_v15 = vpop.f32.mrb[113].mxu1 }
 0x207   : > { %4396 = vst [vmem:[%s5554_s29 + $0x180] sm:$0xff] %v2099_v13  ;;  %v2101_v16 = vpop.f32.mrb[49].mxu0  ;;  %v1960_v17 = vsub.f32 %v1806_v54, %v1922_v15  ;;  %v1924_v18 = vpop.f32.mrb[114].mxu1 }
 0x208   : > { %4397 = vst [vmem:[%s5554_s29 + $0x188] sm:$0xff] %v2101_v16  ;;  %v2103_v19 = vpop.f32.mrb[50].mxu0  ;;  %4370 = vst [vmem:[%s5561_s18 + $0x180] sm:$0xff] %v1959_v14  ;;  %v1961_v20 = vsub.f32 %v1808_v58, %v1924_v18  ;;  %v1926_v21 = vpop.f32.mrb[115].mxu1 }
 0x209   : > { %4398 = vst [vmem:[%s5554_s29 + $0x190] sm:$0xff] %v2103_v19  ;;  %v2105_v22 = vpop.f32.mrb[51].mxu0  ;;  %4371 = vst [vmem:[%s5561_s18 + $0x188] sm:$0xff] %v1960_v17  ;;  %v1962_v24 = vsub.f32 %v1810_v59, %v1926_v21 }
 0x20a   : > { %4399 = vst [vmem:[%s5554_s29 + $0x198] sm:$0xff] %v2105_v22  ;;  %4372 = vst [vmem:[%s5561_s18 + $0x190] sm:$0xff] %v1961_v20  ;;  %4615 = vmatmul.mubr.msk.bf16.gmra.mrb[220].mxu1 %vm402_vm1, %v5008_v56 }
 0x20b   : > { %4641 = vmatmul.mubr.msk.bf16.gmra.mrb[108].mxu0 %vm402_vm1, %v5007_v55  ;;  %4373 = vst [vmem:[%s5561_s18 + $0x198] sm:$0xff] %v1962_v24  ;;  %3602 = vmatprep.mubr.bf16.mxu1 %v5125_v0 }
 0x20c   : > { %3824 = vmatprep.mubr.bf16.mxu0 %v5125_v0 }
 0x20d   : > { %v1930_v23 = vpop.f32.mrb[116].mxu1 }
 0x20e   : > { %v2109_v26 = vpop.f32.mrb[52].mxu0  ;;  %v1963_v27 = vsub.f32 %v5948_v60, %v1930_v23  ;;  %v1932_v28 = vpop.f32.mrb[117].mxu1  ;;  %v5018_v60 = vld [vmem:[%s5325_s24 + $0xf0] sm:$0xff]  }
 0x20f   : > { %4400 = vst [vmem:[%s5554_s29 + $0x1a0] sm:$0xff] %v2109_v26  ;;  %v2111_v29 = vpop.f32.mrb[53].mxu0  ;;  %v1964_v32 = vsub.f32 %v5950_v61, %v1932_v28  ;;  %v1934_v33 = vpop.f32.mrb[118].mxu1 }
 0x210   : > { %4401 = vst [vmem:[%s5554_s29 + $0x1a8] sm:$0xff] %v2111_v29  ;;  %v2113_v34 = vpop.f32.mrb[54].mxu0  ;;  %4374 = vst [vmem:[%s5561_s18 + $0x1a0] sm:$0xff] %v1963_v27  ;;  %v1965_v35 = vsub.f32 %v5955_v63, %v1934_v33  ;;  %v1936_v36 = vpop.f32.mrb[119].mxu1 }
 0x211   : > { %4402 = vst [vmem:[%s5554_s29 + $0x1b0] sm:$0xff] %v2113_v34  ;;  %v2115_v37 = vpop.f32.mrb[55].mxu0  ;;  %4375 = vst [vmem:[%s5561_s18 + $0x1a8] sm:$0xff] %v1964_v32  ;;  %v1966_v39 = vsub.f32 %v5957_v1, %v1936_v36 }
 0x212   : > { %4403 = vst [vmem:[%s5554_s29 + $0x1b8] sm:$0xff] %v2115_v37  ;;  %4376 = vst [vmem:[%s5561_s18 + $0x1b0] sm:$0xff] %v1965_v35  ;;  %4683 = vmatmul.mubr.msk.bf16.vlgmr.msra.gmra.mrb[224].mxu1 %vm402_vm1, %v6013_v30 }
 0x213   : > { %4715 = vmatmul.mubr.msk.bf16.vlgmr.msra.gmra.mrb[112].mxu0 %vm402_vm1, %v6016_v31  ;;  %4377 = vst [vmem:[%s5561_s18 + $0x1b8] sm:$0xff] %v1966_v39  ;;  %3687 = vmatpush1.bf16.msra.mxu1 %v3681_v38 }
 0x214   : > { %3866 = vmatpush1.bf16.msra.mxu0 %v3681_v38  ;;  %3612 = vmatprep.mubr.bf16.mxu1 %v5125_v0 }
 0x215   : > { %3834 = vmatprep.mubr.bf16.mxu0 %v5125_v0  ;;  %v1940_v41 = vpop.f32.mrb[120].mxu1 }
 0x216   : > { %v2119_v42 = vpop.f32.mrb[56].mxu0  ;;  %v1967_v40 = vsub.f32 %v5968_v4, %v1940_v41  ;;  %v1942_v43 = vpop.f32.mrb[121].mxu1 }
 0x217   : > { %4404 = vst [vmem:[%s5554_s29 + $0x1c0] sm:$0xff] %v2119_v42  ;;  %v2121_v44 = vpop.f32.mrb[57].mxu0  ;;  %v1968_v47 = vsub.f32 %v5972_v5, %v1942_v43  ;;  %v1944_v48 = vpop.f32.mrb[122].mxu1 }
 0x218   : > { %4405 = vst [vmem:[%s5554_s29 + $0x1c8] sm:$0xff] %v2121_v44  ;;  %v2123_v49 = vpop.f32.mrb[58].mxu0  ;;  %4378 = vst [vmem:[%s5561_s18 + $0x1c0] sm:$0xff] %v1967_v40  ;;  %v1969_v50 = vsub.f32 %v5974_v6, %v1944_v48  ;;  %v1946_v51 = vpop.f32.mrb[123].mxu1 }
 0x219   : > { %4406 = vst [vmem:[%s5554_s29 + $0x1d0] sm:$0xff] %v2123_v49  ;;  %v2125_v52 = vpop.f32.mrb[59].mxu0  ;;  %4379 = vst [vmem:[%s5561_s18 + $0x1c8] sm:$0xff] %v1968_v47  ;;  %v1970_v53 = vsub.f32 %v5976_v7, %v1946_v51  ;;  %v5019_v7 = vld [vmem:[%s5319_s27 + $0xf8] sm:$0xff]  }
 0x21a   : > { %4407 = vst [vmem:[%s5554_s29 + $0x1d8] sm:$0xff] %v2125_v52  ;;  %4380 = vst [vmem:[%s5561_s18 + $0x1d0] sm:$0xff] %v1969_v50  ;;  %4684 = vmatmul.mubr.msk.bf16.gmra.mrb[228].mxu1 %vm402_vm1, %v6038_v45 }
 0x21b   : > { %4716 = vmatmul.mubr.msk.bf16.gmra.mrb[116].mxu0 %vm402_vm1, %v6041_v46  ;;  %4381 = vst [vmem:[%s5561_s18 + $0x1d8] sm:$0xff] %v1970_v53  ;;  %3622 = vmatprep.mubr.bf16.mxu1 %v5125_v0 }
 0x21c   : > { %3844 = vmatprep.mubr.bf16.mxu0 %v5125_v0 }
 0x21d   : > { %v1950_v54 = vpop.f32.mrb[124].mxu1 }
 0x21e   : > { %v2129_v55 = vpop.f32.mrb[60].mxu0  ;;  %v1971_v56 = vsub.f32 %v5984_v8, %v1950_v54  ;;  %v1952_v58 = vpop.f32.mrb[125].mxu1  ;;  %v5020_v8 = vld [vmem:[%s5325_s24 + $0xf8] sm:$0xff]  }
 0x21f   : > { %4408 = vst [vmem:[%s5554_s29 + $0x1e0] sm:$0xff] %v2129_v55  ;;  %v2131_v59 = vpop.f32.mrb[61].mxu0  ;;  %v1972_v61 = vsub.f32 %v5986_v9, %v1952_v58  ;;  %v1954_v62 = vpop.f32.mrb[126].mxu1 }
 0x220   : > { %4409 = vst [vmem:[%s5554_s29 + $0x1e8] sm:$0xff] %v2131_v59  ;;  %v2133_v63 = vpop.f32.mrb[62].mxu0  ;;  %4382 = vst [vmem:[%s5561_s18 + $0x1e0] sm:$0xff] %v1971_v56  ;;  %v1973_v1 = vsub.f32 %v5988_v10, %v1954_v62  ;;  %v1956_v2 = vpop.f32.mrb[127].mxu1 }
 0x221   : > { %4410 = vst [vmem:[%s5554_s29 + $0x1f0] sm:$0xff] %v2133_v63  ;;  %v2135_v3 = vpop.f32.mrb[63].mxu0  ;;  %4383 = vst [vmem:[%s5561_s18 + $0x1e8] sm:$0xff] %v1972_v61  ;;  %v1974_v4 = vsub.f32 %v5990_v11, %v1956_v2 }
 0x222   : > { %4411 = vst [vmem:[%s5554_s29 + $0x1f8] sm:$0xff] %v2135_v3  ;;  %4384 = vst [vmem:[%s5561_s18 + $0x1f0] sm:$0xff] %v1973_v1  ;;  %4685 = vmatmul.mubr.msk.bf16.gmra.mrb[232].mxu1 %vm402_vm1, %v5017_v57 }
 0x223   : > { %4717 = vmatmul.mubr.msk.bf16.gmra.mrb[120].mxu0 %vm402_vm1, %v5018_v60  ;;  %4385 = vst [vmem:[%s5561_s18 + $0x1f8] sm:$0xff] %v1974_v4  ;;  %3632 = vmatprep.mubr.bf16.mxu1 %v5125_v0 }
 0x224   : > { %3854 = vmatprep.mubr.bf16.mxu0 %v5125_v0 }
 0x225   : > { %v2254_v5 = vpop.f32.mrb[128].mxu1 }
 0x226   : > { %v2256_v6 = vpop.f32.mrb[129].mxu1 }
 0x227   : > { %v2258_v9 = vpop.f32.mrb[130].mxu1 }
 0x228   : > { %v2260_v10 = vpop.f32.mrb[131].mxu1 }
 0x22a   : > { %4686 = vmatmul.mubr.msk.bf16.gmra.mrb[236].mxu1 %vm402_vm1, %v5019_v7 }
 0x22b   : > { %4718 = vmatmul.mubr.msk.bf16.gmra.mrb[124].mxu0 %vm402_vm1, %v5020_v8  ;;  %3718 = vmatprep.mubr.bf16.mxu1 %v5125_v0 }
 0x22c   : > { %3897 = vmatprep.mubr.bf16.mxu0 %v5125_v0 }
 0x22d   : > { %v2264_v11 = vpop.f32.mrb[132].mxu1 }
 0x22e   : > { %v2266_v12 = vpop.f32.mrb[133].mxu1 }
 0x22f   : > { %v2268_v13 = vpop.f32.mrb[134].mxu1 }
 0x230   : > { %v2270_v14 = vpop.f32.mrb[135].mxu1 }
 0x232   : > { %4694 = vmatmul.mubr.msk.bf16.vlgmr.msra.gmra.mrb[240].mxu1 %vm402_vm1, %v6016_v31 }
 0x233   : > { %4720 = vmatmul.mubr.msk.bf16.vlgmr.msra.gmra.mrb[112].mxu0 %vm402_vm1, %v6013_v30  ;;  %3728 = vmatprep.mubr.bf16.mxu1 %v5125_v0 }
 0x234   : > { %3907 = vmatprep.mubr.bf16.mxu0 %v5125_v0 }
 0x235   : > { %v6089_v15 = vpop.f32.mrb[136].mxu1 }
 0x236   : > { %v6091_v16 = vpop.f32.mrb[137].mxu1 }
 0x237   : > { %v6093_v17 = vpop.f32.mrb[138].mxu1 }
 0x238   : > { %v6095_v18 = vpop.f32.mrb[139].mxu1 }
 0x23a   : > { %4695 = vmatmul.mubr.msk.bf16.gmra.mrb[244].mxu1 %vm402_vm1, %v6041_v46 }
 0x23b   : > { %4721 = vmatmul.mubr.msk.bf16.gmra.mrb[116].mxu0 %vm402_vm1, %v6038_v45  ;;  %3738 = vmatprep.mubr.bf16.mxu1 %v5125_v0 }
 0x23c   : > { %3917 = vmatprep.mubr.bf16.mxu0 %v5125_v0 }
 0x23d   : > { %v6103_v19 = vpop.f32.mrb[140].mxu1 }
 0x23e   : > { %v6105_v20 = vpop.f32.mrb[141].mxu1 }
 0x23f   : > { %v6107_v21 = vpop.f32.mrb[142].mxu1 }
 0x240   : > { %v6109_v22 = vpop.f32.mrb[143].mxu1 }
 0x242   : > { %4696 = vmatmul.mubr.msk.bf16.gmra.mrb[248].mxu1 %vm402_vm1, %v5018_v60 }
 0x243   : > { %4722 = vmatmul.mubr.msk.bf16.gmra.mrb[120].mxu0 %vm402_vm1, %v5017_v57  ;;  %3748 = vmatprep.mubr.bf16.mxu1 %v5125_v0 }
 0x244   : > { %3927 = vmatprep.mubr.bf16.mxu0 %v5125_v0 }
 0x245   : > { %v2370_v24 = vpop.f32.mrb[144].mxu1 }
 0x246   : > { %v2549_v25 = vpop.f32.mrb[64].mxu0  ;;  %v2409_v23 = vsub.f32 %v2254_v5, %v2370_v24  ;;  %v2372_v26 = vpop.f32.mrb[145].mxu1 }
 0x247   : > { %4478 = vst [vmem:[%s5554_s29 + $0x200] sm:$0xff] %v2549_v25  ;;  %v2551_v27 = vpop.f32.mrb[65].mxu0  ;;  %v2410_v28 = vsub.f32 %v2256_v6, %v2372_v26  ;;  %v2374_v29 = vpop.f32.mrb[146].mxu1 }
 0x248   : > { %4479 = vst [vmem:[%s5554_s29 + $0x208] sm:$0xff] %v2551_v27  ;;  %v2553_v30 = vpop.f32.mrb[66].mxu0  ;;  %4452 = vst [vmem:[%s5561_s18 + $0x200] sm:$0xff] %v2409_v23  ;;  %v2411_v31 = vsub.f32 %v2258_v9, %v2374_v29  ;;  %v2376_v32 = vpop.f32.mrb[147].mxu1 }
 0x249   : > { %4480 = vst [vmem:[%s5554_s29 + $0x210] sm:$0xff] %v2553_v30  ;;  %v2555_v0 = vpop.f32.mrb[67].mxu0  ;;  %4453 = vst [vmem:[%s5561_s18 + $0x208] sm:$0xff] %v2410_v28  ;;  %v2412_v33 = vsub.f32 %v2260_v10, %v2376_v32 }
 0x24a   : > { %4481 = vst [vmem:[%s5554_s29 + $0x218] sm:$0xff] %v2555_v0  ;;  %4454 = vst [vmem:[%s5561_s18 + $0x210] sm:$0xff] %v2411_v31  ;;  %4697 = vmatmul.mubr.msk.bf16.gmra.mrb[252].mxu1 %vm402_vm1, %v5020_v8 }
 0x24b   : > { %4723 = vmatmul.mubr.msk.bf16.gmra.mrb[124].mxu0 %vm402_vm1, %v5019_v7  ;;  %4455 = vst [vmem:[%s5561_s18 + $0x218] sm:$0xff] %v2412_v33 }
 0x24d   : > { %v2380_v34 = vpop.f32.mrb[148].mxu1 }
 0x24e   : > { %v2559_v35 = vpop.f32.mrb[68].mxu0  ;;  %v2413_v36 = vsub.f32 %v2264_v11, %v2380_v34  ;;  %v2382_v37 = vpop.f32.mrb[149].mxu1 }
 0x24f   : > { %4482 = vst [vmem:[%s5554_s29 + $0x220] sm:$0xff] %v2559_v35  ;;  %v2561_v38 = vpop.f32.mrb[69].mxu0  ;;  %v2414_v39 = vsub.f32 %v2266_v12, %v2382_v37  ;;  %v2384_v41 = vpop.f32.mrb[150].mxu1 }
 0x250   : > { %4483 = vst [vmem:[%s5554_s29 + $0x228] sm:$0xff] %v2561_v38  ;;  %v2563_v42 = vpop.f32.mrb[70].mxu0  ;;  %4456 = vst [vmem:[%s5561_s18 + $0x220] sm:$0xff] %v2413_v36  ;;  %v2415_v40 = vsub.f32 %v2268_v13, %v2384_v41  ;;  %v2386_v43 = vpop.f32.mrb[151].mxu1 }
 0x251   : > { %4484 = vst [vmem:[%s5554_s29 + $0x230] sm:$0xff] %v2563_v42  ;;  %v2565_v44 = vpop.f32.mrb[71].mxu0  ;;  %4457 = vst [vmem:[%s5561_s18 + $0x228] sm:$0xff] %v2414_v39  ;;  %v2416_v45 = vsub.f32 %v2270_v14, %v2386_v43 }
 0x252   : > { %4485 = vst [vmem:[%s5554_s29 + $0x238] sm:$0xff] %v2565_v44  ;;  %4458 = vst [vmem:[%s5561_s18 + $0x230] sm:$0xff] %v2415_v40 }
 0x253   : > { %4459 = vst [vmem:[%s5561_s18 + $0x238] sm:$0xff] %v2416_v45 }
 0x255   : > { %v2390_v46 = vpop.f32.mrb[152].mxu1 }
 0x256   : > { %v2569_v47 = vpop.f32.mrb[72].mxu0  ;;  %v2417_v48 = vsub.f32 %v6089_v15, %v2390_v46  ;;  %v2392_v49 = vpop.f32.mrb[153].mxu1 }
 0x257   : > { %4486 = vst [vmem:[%s5554_s29 + $0x240] sm:$0xff] %v2569_v47  ;;  %v2571_v50 = vpop.f32.mrb[73].mxu0  ;;  %v2418_v51 = vsub.f32 %v6091_v16, %v2392_v49  ;;  %v2394_v52 = vpop.f32.mrb[154].mxu1 }
 0x258   : > { %4487 = vst [vmem:[%s5554_s29 + $0x248] sm:$0xff] %v2571_v50  ;;  %v2573_v53 = vpop.f32.mrb[74].mxu0  ;;  %4460 = vst [vmem:[%s5561_s18 + $0x240] sm:$0xff] %v2417_v48  ;;  %v2419_v54 = vsub.f32 %v6093_v17, %v2394_v52  ;;  %v2396_v55 = vpop.f32.mrb[155].mxu1 }
 0x259   : > { %4488 = vst [vmem:[%s5554_s29 + $0x250] sm:$0xff] %v2573_v53  ;;  %v2575_v56 = vpop.f32.mrb[75].mxu0  ;;  %4461 = vst [vmem:[%s5561_s18 + $0x248] sm:$0xff] %v2418_v51  ;;  %v2420_v58 = vsub.f32 %v6095_v18, %v2396_v55 }
 0x25a   : > { %4489 = vst [vmem:[%s5554_s29 + $0x258] sm:$0xff] %v2575_v56  ;;  %4462 = vst [vmem:[%s5561_s18 + $0x250] sm:$0xff] %v2419_v54 }
 0x25b   : > { %4463 = vst [vmem:[%s5561_s18 + $0x258] sm:$0xff] %v2420_v58 }
 0x25d   : > { %v2400_v59 = vpop.f32.mrb[156].mxu1 }
 0x25e   : > { %v2579_v57 = vpop.f32.mrb[76].mxu0  ;;  %v2421_v60 = vsub.f32 %v6103_v19, %v2400_v59  ;;  %v2402_v61 = vpop.f32.mrb[157].mxu1 }
 0x25f   : > { %4490 = vst [vmem:[%s5554_s29 + $0x260] sm:$0xff] %v2579_v57  ;;  %v2581_v62 = vpop.f32.mrb[77].mxu0  ;;  %v2422_v63 = vsub.f32 %v6105_v20, %v2402_v61  ;;  %v2404_v1 = vpop.f32.mrb[158].mxu1 }
 0x260   : > { %4491 = vst [vmem:[%s5554_s29 + $0x268] sm:$0xff] %v2581_v62  ;;  %v2583_v2 = vpop.f32.mrb[78].mxu0  ;;  %4464 = vst [vmem:[%s5561_s18 + $0x260] sm:$0xff] %v2421_v60  ;;  %v2423_v3 = vsub.f32 %v6107_v21, %v2404_v1  ;;  %v2406_v4 = vpop.f32.mrb[159].mxu1 }
 0x261   : > { %4492 = vst [vmem:[%s5554_s29 + $0x270] sm:$0xff] %v2583_v2  ;;  %v2585_v5 = vpop.f32.mrb[79].mxu0  ;;  %4465 = vst [vmem:[%s5561_s18 + $0x268] sm:$0xff] %v2422_v63  ;;  %v2424_v6 = vsub.f32 %v6109_v22, %v2406_v4 }
 0x262   : > { %4493 = vst [vmem:[%s5554_s29 + $0x278] sm:$0xff] %v2585_v5  ;;  %4466 = vst [vmem:[%s5561_s18 + $0x270] sm:$0xff] %v2423_v3 }
 0x263   : > { %4467 = vst [vmem:[%s5561_s18 + $0x278] sm:$0xff] %v2424_v6 }
 0x265   : > { %v2704_v7 = vpop.f32.mrb[160].mxu1 }
 0x266   : > { %v2706_v8 = vpop.f32.mrb[161].mxu1 }
 0x267   : > { %v2708_v9 = vpop.f32.mrb[162].mxu1 }
 0x268   : > { %v2710_v10 = vpop.f32.mrb[163].mxu1 }
 0x26d   : > { %v2714_v11 = vpop.f32.mrb[164].mxu1 }
 0x26e   : > { %v2716_v12 = vpop.f32.mrb[165].mxu1 }
 0x26f   : > { %v2718_v13 = vpop.f32.mrb[166].mxu1 }
 0x270   : > { %v2720_v14 = vpop.f32.mrb[167].mxu1 }
 0x275   : > { %v2724_v15 = vpop.f32.mrb[168].mxu1 }
 0x276   : > { %v2726_v16 = vpop.f32.mrb[169].mxu1 }
 0x277   : > { %v6157_v17 = vpop.f32.mrb[170].mxu1 }
 0x278   : > { %v6159_v18 = vpop.f32.mrb[171].mxu1 }
 0x27d   : > { %v6161_v19 = vpop.f32.mrb[172].mxu1 }
 0x27e   : > { %v6163_v20 = vpop.f32.mrb[173].mxu1 }
 0x27f   : > { %v6165_v21 = vpop.f32.mrb[174].mxu1 }
 0x280   : > { %v6167_v22 = vpop.f32.mrb[175].mxu1 }
 0x285   : > { %v2820_v24 = vpop.f32.mrb[176].mxu1 }
 0x286   : > { %v2999_v25 = vpop.f32.mrb[80].mxu0  ;;  %v2859_v23 = vsub.f32 %v2704_v7, %v2820_v24  ;;  %v2822_v26 = vpop.f32.mrb[177].mxu1 }
 0x287   : > { %4560 = vst [vmem:[%s5554_s29 + $0x280] sm:$0xff] %v2999_v25  ;;  %v3001_v27 = vpop.f32.mrb[81].mxu0  ;;  %v2860_v28 = vsub.f32 %v2706_v8, %v2822_v26  ;;  %v2824_v29 = vpop.f32.mrb[178].mxu1 }
 0x288   : > { %4561 = vst [vmem:[%s5554_s29 + $0x288] sm:$0xff] %v3001_v27  ;;  %v3003_v30 = vpop.f32.mrb[82].mxu0  ;;  %4534 = vst [vmem:[%s5561_s18 + $0x280] sm:$0xff] %v2859_v23  ;;  %v2861_v31 = vsub.f32 %v2708_v9, %v2824_v29  ;;  %v2826_v32 = vpop.f32.mrb[179].mxu1 }
 0x289   : > { %4562 = vst [vmem:[%s5554_s29 + $0x290] sm:$0xff] %v3003_v30  ;;  %v3005_v0 = vpop.f32.mrb[83].mxu0  ;;  %4535 = vst [vmem:[%s5561_s18 + $0x288] sm:$0xff] %v2860_v28  ;;  %v2862_v33 = vsub.f32 %v2710_v10, %v2826_v32 }
 0x28a   : > { %4563 = vst [vmem:[%s5554_s29 + $0x298] sm:$0xff] %v3005_v0  ;;  %4536 = vst [vmem:[%s5561_s18 + $0x290] sm:$0xff] %v2861_v31 }
 0x28b   : > { %4537 = vst [vmem:[%s5561_s18 + $0x298] sm:$0xff] %v2862_v33 }
 0x28d   : > { %v2830_v34 = vpop.f32.mrb[180].mxu1 }
 0x28e   : > { %v3009_v35 = vpop.f32.mrb[84].mxu0  ;;  %v2863_v36 = vsub.f32 %v2714_v11, %v2830_v34  ;;  %v2832_v37 = vpop.f32.mrb[181].mxu1 }
 0x28f   : > { %4564 = vst [vmem:[%s5554_s29 + $0x2a0] sm:$0xff] %v3009_v35  ;;  %v3011_v38 = vpop.f32.mrb[85].mxu0  ;;  %v2864_v39 = vsub.f32 %v2716_v12, %v2832_v37  ;;  %v2834_v41 = vpop.f32.mrb[182].mxu1 }
 0x290   : > { %4565 = vst [vmem:[%s5554_s29 + $0x2a8] sm:$0xff] %v3011_v38  ;;  %v3013_v42 = vpop.f32.mrb[86].mxu0  ;;  %4538 = vst [vmem:[%s5561_s18 + $0x2a0] sm:$0xff] %v2863_v36  ;;  %v2865_v40 = vsub.f32 %v2718_v13, %v2834_v41  ;;  %v2836_v43 = vpop.f32.mrb[183].mxu1 }
 0x291   : > { %4566 = vst [vmem:[%s5554_s29 + $0x2b0] sm:$0xff] %v3013_v42  ;;  %v3015_v44 = vpop.f32.mrb[87].mxu0  ;;  %4539 = vst [vmem:[%s5561_s18 + $0x2a8] sm:$0xff] %v2864_v39  ;;  %v2866_v45 = vsub.f32 %v2720_v14, %v2836_v43 }
 0x292   : > { %4567 = vst [vmem:[%s5554_s29 + $0x2b8] sm:$0xff] %v3015_v44  ;;  %4540 = vst [vmem:[%s5561_s18 + $0x2b0] sm:$0xff] %v2865_v40 }
 0x293   : > { %4541 = vst [vmem:[%s5561_s18 + $0x2b8] sm:$0xff] %v2866_v45 }
 0x295   : > { %v2840_v46 = vpop.f32.mrb[184].mxu1 }
 0x296   : > { %v3019_v47 = vpop.f32.mrb[88].mxu0  ;;  %v2867_v48 = vsub.f32 %v2724_v15, %v2840_v46  ;;  %v2842_v49 = vpop.f32.mrb[185].mxu1 }
 0x297   : > { %4568 = vst [vmem:[%s5554_s29 + $0x2c0] sm:$0xff] %v3019_v47  ;;  %v3021_v50 = vpop.f32.mrb[89].mxu0  ;;  %v2868_v51 = vsub.f32 %v2726_v16, %v2842_v49  ;;  %v2844_v52 = vpop.f32.mrb[186].mxu1 }
 0x298   : > { %4569 = vst [vmem:[%s5554_s29 + $0x2c8] sm:$0xff] %v3021_v50  ;;  %v3023_v53 = vpop.f32.mrb[90].mxu0  ;;  %4542 = vst [vmem:[%s5561_s18 + $0x2c0] sm:$0xff] %v2867_v48  ;;  %v2869_v54 = vsub.f32 %v6157_v17, %v2844_v52  ;;  %v2846_v55 = vpop.f32.mrb[187].mxu1 }
 0x299   : > { %4570 = vst [vmem:[%s5554_s29 + $0x2d0] sm:$0xff] %v3023_v53  ;;  %v3025_v56 = vpop.f32.mrb[91].mxu0  ;;  %4543 = vst [vmem:[%s5561_s18 + $0x2c8] sm:$0xff] %v2868_v51  ;;  %v2870_v58 = vsub.f32 %v6159_v18, %v2846_v55 }
 0x29a   : > { %4571 = vst [vmem:[%s5554_s29 + $0x2d8] sm:$0xff] %v3025_v56  ;;  %4544 = vst [vmem:[%s5561_s18 + $0x2d0] sm:$0xff] %v2869_v54 }
 0x29b   : > { %4545 = vst [vmem:[%s5561_s18 + $0x2d8] sm:$0xff] %v2870_v58 }
 0x29d   : > { %v2850_v59 = vpop.f32.mrb[188].mxu1 }
 0x29e   : > { %v3029_v57 = vpop.f32.mrb[92].mxu0  ;;  %v2871_v60 = vsub.f32 %v6161_v19, %v2850_v59  ;;  %v2852_v61 = vpop.f32.mrb[189].mxu1 }
 0x29f   : > { %4572 = vst [vmem:[%s5554_s29 + $0x2e0] sm:$0xff] %v3029_v57  ;;  %v3031_v62 = vpop.f32.mrb[93].mxu0  ;;  %v2872_v63 = vsub.f32 %v6163_v20, %v2852_v61  ;;  %v2854_v1 = vpop.f32.mrb[190].mxu1 }
 0x2a0   : > { %4573 = vst [vmem:[%s5554_s29 + $0x2e8] sm:$0xff] %v3031_v62  ;;  %v3033_v2 = vpop.f32.mrb[94].mxu0  ;;  %4546 = vst [vmem:[%s5561_s18 + $0x2e0] sm:$0xff] %v2871_v60  ;;  %v2873_v3 = vsub.f32 %v6165_v21, %v2854_v1  ;;  %v2856_v4 = vpop.f32.mrb[191].mxu1 }
 0x2a1   : > { %4574 = vst [vmem:[%s5554_s29 + $0x2f0] sm:$0xff] %v3033_v2  ;;  %v3035_v5 = vpop.f32.mrb[95].mxu0  ;;  %4547 = vst [vmem:[%s5561_s18 + $0x2e8] sm:$0xff] %v2872_v63  ;;  %v2874_v6 = vsub.f32 %v6167_v22, %v2856_v4 }
 0x2a2   : > { %4575 = vst [vmem:[%s5554_s29 + $0x2f8] sm:$0xff] %v3035_v5  ;;  %4548 = vst [vmem:[%s5561_s18 + $0x2f0] sm:$0xff] %v2873_v3 }
 0x2a3   : > { %4549 = vst [vmem:[%s5561_s18 + $0x2f8] sm:$0xff] %v2874_v6 }
 0x2a5   : > { %v3154_v7 = vpop.f32.mrb[192].mxu1 }
 0x2a6   : > { %v3156_v8 = vpop.f32.mrb[193].mxu1 }
 0x2a7   : > { %v3158_v9 = vpop.f32.mrb[194].mxu1 }
 0x2a8   : > { %v3160_v10 = vpop.f32.mrb[195].mxu1 }
 0x2ad   : > { %v3164_v11 = vpop.f32.mrb[196].mxu1 }
 0x2ae   : > { %v3166_v12 = vpop.f32.mrb[197].mxu1 }
 0x2af   : > { %v3168_v13 = vpop.f32.mrb[198].mxu1 }
 0x2b0   : > { %v3170_v14 = vpop.f32.mrb[199].mxu1 }
 0x2b5   : > { %v3174_v15 = vpop.f32.mrb[200].mxu1 }
 0x2b6   : > { %v3176_v16 = vpop.f32.mrb[201].mxu1 }
 0x2b7   : > { %v6207_v17 = vpop.f32.mrb[202].mxu1 }
 0x2b8   : > { %v6209_v18 = vpop.f32.mrb[203].mxu1 }
 0x2bd   : > { %v6211_v19 = vpop.f32.mrb[204].mxu1 }
 0x2be   : > { %v6213_v20 = vpop.f32.mrb[205].mxu1 }
 0x2bf   : > { %v6215_v21 = vpop.f32.mrb[206].mxu1 }
 0x2c0   : > { %v6217_v22 = vpop.f32.mrb[207].mxu1 }
 0x2c5   : > { %v3270_v24 = vpop.f32.mrb[208].mxu1 }
 0x2c6   : > { %v3449_v25 = vpop.f32.mrb[96].mxu0  ;;  %v3309_v23 = vsub.f32 %v3154_v7, %v3270_v24  ;;  %v3272_v26 = vpop.f32.mrb[209].mxu1 }
 0x2c7   : > { %4642 = vst [vmem:[%s5554_s29 + $0x300] sm:$0xff] %v3449_v25  ;;  %v3451_v27 = vpop.f32.mrb[97].mxu0  ;;  %v3310_v28 = vsub.f32 %v3156_v8, %v3272_v26  ;;  %v3274_v29 = vpop.f32.mrb[210].mxu1 }
 0x2c8   : > { %4643 = vst [vmem:[%s5554_s29 + $0x308] sm:$0xff] %v3451_v27  ;;  %v3453_v30 = vpop.f32.mrb[98].mxu0  ;;  %4616 = vst [vmem:[%s5561_s18 + $0x300] sm:$0xff] %v3309_v23  ;;  %v3311_v31 = vsub.f32 %v3158_v9, %v3274_v29  ;;  %v3276_v32 = vpop.f32.mrb[211].mxu1 }
 0x2c9   : > { %4644 = vst [vmem:[%s5554_s29 + $0x310] sm:$0xff] %v3453_v30  ;;  %v3455_v0 = vpop.f32.mrb[99].mxu0  ;;  %4617 = vst [vmem:[%s5561_s18 + $0x308] sm:$0xff] %v3310_v28  ;;  %v3312_v33 = vsub.f32 %v3160_v10, %v3276_v32 }
 0x2ca   : > { %4645 = vst [vmem:[%s5554_s29 + $0x318] sm:$0xff] %v3455_v0  ;;  %4618 = vst [vmem:[%s5561_s18 + $0x310] sm:$0xff] %v3311_v31 }
 0x2cb   : > { %4619 = vst [vmem:[%s5561_s18 + $0x318] sm:$0xff] %v3312_v33 }
 0x2cd   : > { %v3280_v34 = vpop.f32.mrb[212].mxu1 }
 0x2ce   : > { %v3459_v35 = vpop.f32.mrb[100].mxu0  ;;  %v3313_v36 = vsub.f32 %v3164_v11, %v3280_v34  ;;  %v3282_v37 = vpop.f32.mrb[213].mxu1 }
 0x2cf   : > { %4646 = vst [vmem:[%s5554_s29 + $0x320] sm:$0xff] %v3459_v35  ;;  %v3461_v38 = vpop.f32.mrb[101].mxu0  ;;  %v3314_v39 = vsub.f32 %v3166_v12, %v3282_v37  ;;  %v3284_v41 = vpop.f32.mrb[214].mxu1 }
 0x2d0   : > { %4647 = vst [vmem:[%s5554_s29 + $0x328] sm:$0xff] %v3461_v38  ;;  %v3463_v42 = vpop.f32.mrb[102].mxu0  ;;  %4620 = vst [vmem:[%s5561_s18 + $0x320] sm:$0xff] %v3313_v36  ;;  %v3315_v40 = vsub.f32 %v3168_v13, %v3284_v41  ;;  %v3286_v43 = vpop.f32.mrb[215].mxu1 }
 0x2d1   : > { %4648 = vst [vmem:[%s5554_s29 + $0x330] sm:$0xff] %v3463_v42  ;;  %v3465_v44 = vpop.f32.mrb[103].mxu0  ;;  %4621 = vst [vmem:[%s5561_s18 + $0x328] sm:$0xff] %v3314_v39  ;;  %v3316_v45 = vsub.f32 %v3170_v14, %v3286_v43 }
 0x2d2   : > { %4649 = vst [vmem:[%s5554_s29 + $0x338] sm:$0xff] %v3465_v44  ;;  %4622 = vst [vmem:[%s5561_s18 + $0x330] sm:$0xff] %v3315_v40 }
 0x2d3   : > { %4623 = vst [vmem:[%s5561_s18 + $0x338] sm:$0xff] %v3316_v45 }
 0x2d5   : > { %v3290_v46 = vpop.f32.mrb[216].mxu1 }
 0x2d6   : > { %v3469_v47 = vpop.f32.mrb[104].mxu0  ;;  %v3317_v48 = vsub.f32 %v3174_v15, %v3290_v46  ;;  %v3292_v49 = vpop.f32.mrb[217].mxu1 }
 0x2d7   : > { %4650 = vst [vmem:[%s5554_s29 + $0x340] sm:$0xff] %v3469_v47  ;;  %v3471_v50 = vpop.f32.mrb[105].mxu0  ;;  %v3318_v51 = vsub.f32 %v3176_v16, %v3292_v49  ;;  %v3294_v52 = vpop.f32.mrb[218].mxu1 }
 0x2d8   : > { %4651 = vst [vmem:[%s5554_s29 + $0x348] sm:$0xff] %v3471_v50  ;;  %v3473_v53 = vpop.f32.mrb[106].mxu0  ;;  %4624 = vst [vmem:[%s5561_s18 + $0x340] sm:$0xff] %v3317_v48  ;;  %v3319_v54 = vsub.f32 %v6207_v17, %v3294_v52  ;;  %v3296_v55 = vpop.f32.mrb[219].mxu1 }
 0x2d9   : > { %4652 = vst [vmem:[%s5554_s29 + $0x350] sm:$0xff] %v3473_v53  ;;  %v3475_v56 = vpop.f32.mrb[107].mxu0  ;;  %4625 = vst [vmem:[%s5561_s18 + $0x348] sm:$0xff] %v3318_v51  ;;  %v3320_v58 = vsub.f32 %v6209_v18, %v3296_v55 }
 0x2da   : > { %4653 = vst [vmem:[%s5554_s29 + $0x358] sm:$0xff] %v3475_v56  ;;  %4626 = vst [vmem:[%s5561_s18 + $0x350] sm:$0xff] %v3319_v54 }
 0x2db   : > { %4627 = vst [vmem:[%s5561_s18 + $0x358] sm:$0xff] %v3320_v58 }
 0x2dd   : > { %v3300_v59 = vpop.f32.mrb[220].mxu1 }
 0x2de   : > { %v3479_v57 = vpop.f32.mrb[108].mxu0  ;;  %v3321_v60 = vsub.f32 %v6211_v19, %v3300_v59  ;;  %v3302_v61 = vpop.f32.mrb[221].mxu1 }
 0x2df   : > { %4654 = vst [vmem:[%s5554_s29 + $0x360] sm:$0xff] %v3479_v57  ;;  %v3481_v62 = vpop.f32.mrb[109].mxu0  ;;  %v3322_v63 = vsub.f32 %v6213_v20, %v3302_v61  ;;  %v3304_v1 = vpop.f32.mrb[222].mxu1 }
 0x2e0   : > { %4655 = vst [vmem:[%s5554_s29 + $0x368] sm:$0xff] %v3481_v62  ;;  %v3483_v2 = vpop.f32.mrb[110].mxu0  ;;  %4628 = vst [vmem:[%s5561_s18 + $0x360] sm:$0xff] %v3321_v60  ;;  %v3323_v3 = vsub.f32 %v6215_v21, %v3304_v1  ;;  %v3306_v4 = vpop.f32.mrb[223].mxu1 }
 0x2e1   : > { %4656 = vst [vmem:[%s5554_s29 + $0x370] sm:$0xff] %v3483_v2  ;;  %v3485_v5 = vpop.f32.mrb[111].mxu0  ;;  %4629 = vst [vmem:[%s5561_s18 + $0x368] sm:$0xff] %v3322_v63  ;;  %v3324_v6 = vsub.f32 %v6217_v22, %v3306_v4 }
 0x2e2   : > { %4657 = vst [vmem:[%s5554_s29 + $0x378] sm:$0xff] %v3485_v5  ;;  %4630 = vst [vmem:[%s5561_s18 + $0x370] sm:$0xff] %v3323_v3 }
 0x2e3   : > { %4631 = vst [vmem:[%s5561_s18 + $0x378] sm:$0xff] %v3324_v6 }
 0x2e5   : > { %v3604_v7 = vpop.f32.mrb[224].mxu1 }
 0x2e6   : > { %v3606_v8 = vpop.f32.mrb[225].mxu1 }
 0x2e7   : > { %v3608_v9 = vpop.f32.mrb[226].mxu1 }
 0x2e8   : > { %v3610_v10 = vpop.f32.mrb[227].mxu1 }
 0x2ed   : > { %v3614_v11 = vpop.f32.mrb[228].mxu1 }
 0x2ee   : > { %v3616_v12 = vpop.f32.mrb[229].mxu1 }
 0x2ef   : > { %v3618_v13 = vpop.f32.mrb[230].mxu1 }
 0x2f0   : > { %v3620_v14 = vpop.f32.mrb[231].mxu1 }
 0x2f5   : > { %v3624_v15 = vpop.f32.mrb[232].mxu1 }
 0x2f6   : > { %v3626_v16 = vpop.f32.mrb[233].mxu1 }
 0x2f7   : > { %v6257_v17 = vpop.f32.mrb[234].mxu1 }
 0x2f8   : > { %v6259_v18 = vpop.f32.mrb[235].mxu1 }
 0x2fd   : > { %v6261_v19 = vpop.f32.mrb[236].mxu1 }
 0x2fe   : > { %v6263_v20 = vpop.f32.mrb[237].mxu1 }
 0x2ff   : > { %v6265_v21 = vpop.f32.mrb[238].mxu1 }
 0x300   : > { %v6267_v22 = vpop.f32.mrb[239].mxu1 }
 0x305   : > { %v3720_v24 = vpop.f32.mrb[240].mxu1 }
 0x306   : > { %v3899_v25 = vpop.f32.mrb[112].mxu0  ;;  %v3759_v23 = vsub.f32 %v3604_v7, %v3720_v24  ;;  %v3722_v26 = vpop.f32.mrb[241].mxu1 }
 0x307   : > { %4724 = vst [vmem:[%s5554_s29 + $0x380] sm:$0xff] %v3899_v25  ;;  %v3901_v27 = vpop.f32.mrb[113].mxu0  ;;  %v3760_v28 = vsub.f32 %v3606_v8, %v3722_v26  ;;  %v3724_v29 = vpop.f32.mrb[242].mxu1 }
 0x308   : > { %4725 = vst [vmem:[%s5554_s29 + $0x388] sm:$0xff] %v3901_v27  ;;  %v3903_v30 = vpop.f32.mrb[114].mxu0  ;;  %4698 = vst [vmem:[%s5561_s18 + $0x380] sm:$0xff] %v3759_v23  ;;  %v3761_v31 = vsub.f32 %v3608_v9, %v3724_v29  ;;  %v3726_v32 = vpop.f32.mrb[243].mxu1 }
 0x309   : > { %4726 = vst [vmem:[%s5554_s29 + $0x390] sm:$0xff] %v3903_v30  ;;  %v3905_v0 = vpop.f32.mrb[115].mxu0  ;;  %4699 = vst [vmem:[%s5561_s18 + $0x388] sm:$0xff] %v3760_v28  ;;  %v3762_v33 = vsub.f32 %v3610_v10, %v3726_v32 }
 0x30a   : > { %4727 = vst [vmem:[%s5554_s29 + $0x398] sm:$0xff] %v3905_v0  ;;  %4700 = vst [vmem:[%s5561_s18 + $0x390] sm:$0xff] %v3761_v31 }
 0x30b   : > { %4701 = vst [vmem:[%s5561_s18 + $0x398] sm:$0xff] %v3762_v33 }
 0x30d   : > { %v3730_v34 = vpop.f32.mrb[244].mxu1 }
 0x30e   : > { %v3909_v35 = vpop.f32.mrb[116].mxu0  ;;  %v3763_v36 = vsub.f32 %v3614_v11, %v3730_v34  ;;  %v3732_v37 = vpop.f32.mrb[245].mxu1 }
 0x30f   : > { %4728 = vst [vmem:[%s5554_s29 + $0x3a0] sm:$0xff] %v3909_v35  ;;  %v3911_v38 = vpop.f32.mrb[117].mxu0  ;;  %v3764_v39 = vsub.f32 %v3616_v12, %v3732_v37  ;;  %v3734_v41 = vpop.f32.mrb[246].mxu1 }
 0x310   : > { %4729 = vst [vmem:[%s5554_s29 + $0x3a8] sm:$0xff] %v3911_v38  ;;  %v3913_v42 = vpop.f32.mrb[118].mxu0  ;;  %4702 = vst [vmem:[%s5561_s18 + $0x3a0] sm:$0xff] %v3763_v36  ;;  %v3765_v40 = vsub.f32 %v3618_v13, %v3734_v41  ;;  %v3736_v43 = vpop.f32.mrb[247].mxu1 }
 0x311   : > { %4730 = vst [vmem:[%s5554_s29 + $0x3b0] sm:$0xff] %v3913_v42  ;;  %v3915_v44 = vpop.f32.mrb[119].mxu0  ;;  %4703 = vst [vmem:[%s5561_s18 + $0x3a8] sm:$0xff] %v3764_v39  ;;  %v3766_v45 = vsub.f32 %v3620_v14, %v3736_v43 }
 0x312   : > { %4731 = vst [vmem:[%s5554_s29 + $0x3b8] sm:$0xff] %v3915_v44  ;;  %4704 = vst [vmem:[%s5561_s18 + $0x3b0] sm:$0xff] %v3765_v40 }
 0x313   : > { %4705 = vst [vmem:[%s5561_s18 + $0x3b8] sm:$0xff] %v3766_v45 }
 0x315   : > { %v3740_v46 = vpop.f32.mrb[248].mxu1 }
 0x316   : > { %v3919_v47 = vpop.f32.mrb[120].mxu0  ;;  %v3767_v48 = vsub.f32 %v3624_v15, %v3740_v46  ;;  %v3742_v49 = vpop.f32.mrb[249].mxu1 }
 0x317   : > { %4732 = vst [vmem:[%s5554_s29 + $0x3c0] sm:$0xff] %v3919_v47  ;;  %v3921_v50 = vpop.f32.mrb[121].mxu0  ;;  %v3768_v51 = vsub.f32 %v3626_v16, %v3742_v49  ;;  %v3744_v52 = vpop.f32.mrb[250].mxu1 }
 0x318   : > { %4733 = vst [vmem:[%s5554_s29 + $0x3c8] sm:$0xff] %v3921_v50  ;;  %v3923_v53 = vpop.f32.mrb[122].mxu0  ;;  %4706 = vst [vmem:[%s5561_s18 + $0x3c0] sm:$0xff] %v3767_v48  ;;  %v3769_v54 = vsub.f32 %v6257_v17, %v3744_v52  ;;  %v3746_v55 = vpop.f32.mrb[251].mxu1 }
 0x319   : > { %4734 = vst [vmem:[%s5554_s29 + $0x3d0] sm:$0xff] %v3923_v53  ;;  %v3925_v56 = vpop.f32.mrb[123].mxu0  ;;  %4707 = vst [vmem:[%s5561_s18 + $0x3c8] sm:$0xff] %v3768_v51  ;;  %v3770_v58 = vsub.f32 %v6259_v18, %v3746_v55 }
 0x31a   : > { %4735 = vst [vmem:[%s5554_s29 + $0x3d8] sm:$0xff] %v3925_v56  ;;  %4708 = vst [vmem:[%s5561_s18 + $0x3d0] sm:$0xff] %v3769_v54 }
 0x31b   : > { %4709 = vst [vmem:[%s5561_s18 + $0x3d8] sm:$0xff] %v3770_v58 }
 0x31d   : > { %v3750_v59 = vpop.f32.mrb[252].mxu1 }
 0x31e   : > { %v3929_v57 = vpop.f32.mrb[124].mxu0  ;;  %v3771_v60 = vsub.f32 %v6261_v19, %v3750_v59  ;;  %v3752_v61 = vpop.f32.mrb[253].mxu1 }
 0x31f   : > { %4736 = vst [vmem:[%s5554_s29 + $0x3e0] sm:$0xff] %v3929_v57  ;;  %v3931_v62 = vpop.f32.mrb[125].mxu0  ;;  %v3772_v63 = vsub.f32 %v6263_v20, %v3752_v61  ;;  %v3754_v1 = vpop.f32.mrb[254].mxu1 }
 0x320   : > { %4737 = vst [vmem:[%s5554_s29 + $0x3e8] sm:$0xff] %v3931_v62  ;;  %v3933_v2 = vpop.f32.mrb[126].mxu0  ;;  %4710 = vst [vmem:[%s5561_s18 + $0x3e0] sm:$0xff] %v3771_v60  ;;  %v3773_v3 = vsub.f32 %v6265_v21, %v3754_v1  ;;  %v3756_v4 = vpop.f32.mrb[255].mxu1 }
 0x321   : > { %4738 = vst [vmem:[%s5554_s29 + $0x3f0] sm:$0xff] %v3933_v2  ;;  %v3935_v5 = vpop.f32.mrb[127].mxu0  ;;  %4711 = vst [vmem:[%s5561_s18 + $0x3e8] sm:$0xff] %v3772_v63  ;;  %v3774_v6 = vsub.f32 %v6267_v22, %v3756_v4 }
 0x322   : > { %4739 = vst [vmem:[%s5554_s29 + $0x3f8] sm:$0xff] %v3935_v5  ;;  %4712 = vst [vmem:[%s5561_s18 + $0x3f0] sm:$0xff] %v3773_v3 }
 0x323   : > { %4713 = vst [vmem:[%s5561_s18 + $0x3f8] sm:$0xff] %v3774_v6 }
 0x324 PF: > { %p19_p11 = scmp.ge.s32.totalorder %s5176_s23, 4   ;;  %s6332_s18 = smov %s5111_s19 }
 0x325   : > { %s6333_s19 = smov %s5115_s20  ;;  %s6334_s20 = smov %s5186_s26 }
 0x326   : > { %s6335_s21 = smov %s5176_s23  ;;  %21 = sbr.rel (!%p19_p11) target bundleno = 5 (0x5), region = 149 }
 0x32d   :  { %3998 = vsyncpa [#allocation3], 1 }
 0x32e   :  { %4000 = vsyncpa [#allocation3 + $0x1], 1 }
 0x32f   :  { %4001 = vsyncpa [#allocation5], 1 }
 0x330   :  { %4003 = vsyncpa [#allocation5 + $0x1], 1 }

// kernel: _lambda_.10
= control target key start
LH: loop header
LB: loop body
LE: loop exit
PB: predicated region body
PF: predicated region fallthrough
CT: control target
= control target key end

     0   :  { %s3009_s18 = smov 0   ;;  %s3399_s0 = inlined_call_operand.vmem [shape: bf16[8,32,120], index: 0, kind: input, shape index: {}]   ;;  %s3400_s1 = inlined_call_operand.vmem [shape: bf16[8,32,120], index: 1, kind: input, shape index: {}]   ;;  %s3401_s2 = inlined_call_operand.vmem [shape: bf16[8,120,256], index: 2, kind: input, shape index: {}]   ;;  %s3402_s3 = inlined_call_operand.vmem [shape: bf16[8,120,256], index: 3, kind: input, shape index: {}]   ;;  %s3403_s4 = inlined_call_operand.vmem [shape: f32[8,32,256], index: 4, kind: output, shape index: {0}]   ;;  %s3404_s5 = inlined_call_operand.vmem [shape: f32[8,32,256], index: 5, kind: output, shape index: {1}]  }
   0x1 LB: > { %s2347_s19 = sadd.s32 4294967295, %s2976_s18   ;;  %p2351_p0 = scmp.ge.s32.totalorder %s2976_s18, 1  ;;  %s2976_s18 = sphi %s3009_s18, %s16_s18  }
   0x2   : > { %p228_p1 = scmp.lt.s32.totalorder %s2976_s18, 3 }
   0x4   : > { %p229_p2 = pnand %p2351_p0, %p228_p1 }
   0x5   : > { %s2352_s20 = sshll.u32 (!%p229_p2), %s2347_s19, 2  ;;  %v2978_v0 = vmov (!%p229_p2), 0   ;;  %vm455_vm0 = vcmask (!%p229_p2), 1043456   ;;  %vm448_vm1 = vcmask (!%p229_p2), 982016  }
   0x6   : > { %232 = sbr.rel (%p229_p2) target bundleno = 500 (0x1f4), region = 36  ;;  %p283_p3 = scmp.lt.s32.totalorder (!%p229_p2), %s2352_s20, 7  ;;  %494 = vmatprep.mubr.bf16.mxu1 (!%p229_p2), %v2978_v0  ;;  %713 = vmatprep.mubr.bf16.mxu0 (!%p229_p2), %v2978_v0 }
   0xd   : > { %s3406_s20 = smov (!%p283_p3, %s2352_s20), 7 }
   0xe   : > { %s2760_s21 = smul.u32 120, %s3406_s20  ;;  %s2724_s22 = sshll.u32 %s3406_s20, 4 }
   0xf   : > { %s3026_s25 = scalar_lea.vmem %s3399_s0, %s2724_s22  ;;  %s3048_s9 = scalar_lea.vmem %s3400_s1, %s2724_s22 }
  0x10   : > { %s3031_s28 = scalar_lea.vmem %s3401_s2, %s2760_s21  ;;  %s3043_s6 = scalar_lea.vmem %s3402_s3, %s2760_s21  ;;  %v3063_v20 = vld [vmem:[%s3026_s25] sm:$0xff]   ;;  %v3078_v26 = vld [vmem:[%s3026_s25 + $0x8] sm:$0xff]   ;;  %v3135_v60 = vld [vmem:[%s3026_s25 + $0x10] sm:$0xff]  }
  0x11   : > { %v2770_v1 = vld [vmem:[%s3031_s28 + $0x4] ss:$8 sps:$4 sm:$0xff]   ;;  %v2772_v2 = vld [vmem:[%s3031_s28] ss:$8 sps:$4 sm:$0xff]   ;;  %v2773_v3 = vld [vmem:[%s3031_s28 + $0x14] ss:$8 sps:$4 sm:$0xff]  }
  0x12   : > { %462 = vmatprep.subr.bf16.mxu1 %v2770_v1  ;;  %681 = vmatprep.subr.bf16.mxu0 %v2770_v1  ;;  %v2775_v4 = vld [vmem:[%s3031_s28 + $0x10] ss:$8 sps:$4 sm:$0xff]   ;;  %v2776_v5 = vld [vmem:[%s3031_s28 + $0x24] ss:$8 sps:$4 sm:$0xff]   ;;  %v2778_v6 = vld [vmem:[%s3031_s28 + $0x20] ss:$8 sps:$4 sm:$0xff]  }
  0x13   : > { %463 = vmatpush1.bf16.msra.mxu1 %v2772_v2  ;;  %682 = vmatpush1.bf16.msra.mxu0 %v2772_v2  ;;  %v2779_v7 = vld [vmem:[%s3031_s28 + $0x34] ss:$8 sps:$4 sm:$0xff]   ;;  %v2781_v8 = vld [vmem:[%s3031_s28 + $0x30] ss:$8 sps:$4 sm:$0xff]   ;;  %v2782_v9 = vld [vmem:[%s3031_s28 + $0x44] ss:$8 sps:$4 sm:$0xff]  }
  0x14   : > { %464 = vmatprep.subr.bf16.mxu1 %v2773_v3  ;;  %683 = vmatprep.subr.bf16.mxu0 %v2773_v3  ;;  %v2784_v10 = vld [vmem:[%s3031_s28 + $0x40] ss:$8 sps:$4 sm:$0xff]   ;;  %v2785_v11 = vld [vmem:[%s3031_s28 + $0x54] ss:$8 sps:$4 sm:$0xff]   ;;  %v2787_v12 = vld [vmem:[%s3031_s28 + $0x50] ss:$8 sps:$4 sm:$0xff]  }
  0x15   : > { %v2788_v13 = vld [vmem:[%s3031_s28 + $0x64] ss:$8 sps:$4 sm:$0xff]   ;;  %v347_v14 = vld [vmem:[%s3031_s28 + $0x70] sm:$0xff]  ;;  %v2790_v15 = vld [vmem:[%s3031_s28 + $0x60] ss:$8 sps:$4 sm:$0xff]   ;;  %s2726_s10 = sshll.u32 %s3406_s20, 6 }
  0x16   : > { %v2385_v16 = vcombine.high %v347_v14, %v347_v14  ;;  %v2384_v17 = vcombine.low %v347_v14, %v347_v14  ;;  %v2796_v19 = vld [vmem:[%s3043_s6 + $0x4] ss:$8 sps:$4 sm:$0xff]   ;;  %v2794_v22 = vld [vmem:[%s3043_s6] ss:$8 sps:$4 sm:$0xff]   ;;  %v2800_v23 = vld [vmem:[%s3043_s6 + $0x14] ss:$8 sps:$4 sm:$0xff]   ;;  %s3325_s13 = scalar_lea.vmem %s3404_s5, %s2726_s10  ;;  %s3330_s16 = scalar_lea.vmem %s3403_s4, %s2726_s10 }
  0x17   : > { %465 = vmatpush1.bf16.msra.mxu1 %v2775_v4  ;;  %684 = vmatpush1.bf16.msra.mxu0 %v2775_v4  ;;  %v3066_v21 = vld [vmem:[%s3048_s9] sm:$0xff]   ;;  %v2798_v24 = vld [vmem:[%s3043_s6 + $0x10] ss:$8 sps:$4 sm:$0xff]   ;;  %v3082_v27 = vld [vmem:[%s3048_s9 + $0x8] sm:$0xff]  }
  0x18   : > { %466 = vmatprep.subr.bf16.mxu1 %v2776_v5  ;;  %685 = vmatprep.subr.bf16.mxu0 %v2776_v5  ;;  %v457_v18 = vsel %vm455_vm0, %v2384_v17, 0  ;;  %v2803_v25 = vld [vmem:[%s3043_s6 + $0x24] ss:$8 sps:$4 sm:$0xff]   ;;  %v2801_v28 = vld [vmem:[%s3043_s6 + $0x20] ss:$8 sps:$4 sm:$0xff]   ;;  %v362_v36 = vld [vmem:[%s3043_s6 + $0x70] sm:$0xff] }
  0x19   : > { %v2806_v29 = vld [vmem:[%s3043_s6 + $0x34] ss:$8 sps:$4 sm:$0xff]   ;;  %v2804_v30 = vld [vmem:[%s3043_s6 + $0x30] ss:$8 sps:$4 sm:$0xff]   ;;  %v2809_v31 = vld [vmem:[%s3043_s6 + $0x44] ss:$8 sps:$4 sm:$0xff]   ;;  %v2406_v38 = vcombine.high %v362_v36, %v362_v36  ;;  %v2405_v39 = vcombine.low %v362_v36, %v362_v36 }
  0x1a   : > { %v2807_v32 = vld [vmem:[%s3043_s6 + $0x40] ss:$8 sps:$4 sm:$0xff]   ;;  %v2812_v33 = vld [vmem:[%s3043_s6 + $0x54] ss:$8 sps:$4 sm:$0xff]   ;;  %v2810_v34 = vld [vmem:[%s3043_s6 + $0x50] ss:$8 sps:$4 sm:$0xff]  }
  0x1b   : > { %467 = vmatpush1.bf16.msra.mxu1 %v2778_v6  ;;  %686 = vmatpush1.bf16.msra.mxu0 %v2778_v6  ;;  %v2816_v35 = vld [vmem:[%s3043_s6 + $0x64] ss:$8 sps:$4 sm:$0xff]   ;;  %v2814_v37 = vld [vmem:[%s3043_s6 + $0x60] ss:$8 sps:$4 sm:$0xff]   ;;  %v607_v40 = vsel %vm455_vm0, %v2405_v39, 0  ;;  %v3138_v61 = vld [vmem:[%s3048_s9 + $0x10] sm:$0xff]  }
  0x1c   : > { %468 = vmatprep.subr.bf16.mxu1 %v2779_v7  ;;  %687 = vmatprep.subr.bf16.mxu0 %v2779_v7  ;;  %v2822_v41 = vld [vmem:[%s3031_s28 + $0x7c] ss:$8 sps:$4 sm:$0xff]   ;;  %v2820_v42 = vld [vmem:[%s3031_s28 + $0x78] ss:$8 sps:$4 sm:$0xff]   ;;  %v2825_v43 = vld [vmem:[%s3031_s28 + $0x8c] ss:$8 sps:$4 sm:$0xff]  }
  0x1d   : > { %v2823_v44 = vld [vmem:[%s3031_s28 + $0x88] ss:$8 sps:$4 sm:$0xff]   ;;  %v2828_v45 = vld [vmem:[%s3031_s28 + $0x9c] ss:$8 sps:$4 sm:$0xff]   ;;  %v2826_v46 = vld [vmem:[%s3031_s28 + $0x98] ss:$8 sps:$4 sm:$0xff]  }
  0x1e   : > { %v2831_v47 = vld [vmem:[%s3031_s28 + $0xac] ss:$8 sps:$4 sm:$0xff]   ;;  %v2829_v48 = vld [vmem:[%s3031_s28 + $0xa8] ss:$8 sps:$4 sm:$0xff]   ;;  %v2834_v49 = vld [vmem:[%s3031_s28 + $0xbc] ss:$8 sps:$4 sm:$0xff]  }
  0x1f   : > { %469 = vmatpush1.bf16.msra.mxu1 %v2781_v8  ;;  %688 = vmatpush1.bf16.msra.mxu0 %v2781_v8  ;;  %v2832_v50 = vld [vmem:[%s3031_s28 + $0xb8] ss:$8 sps:$4 sm:$0xff]   ;;  %v2837_v51 = vld [vmem:[%s3031_s28 + $0xcc] ss:$8 sps:$4 sm:$0xff]   ;;  %v2835_v52 = vld [vmem:[%s3031_s28 + $0xc8] ss:$8 sps:$4 sm:$0xff]  }
  0x20   : > { %470 = vmatprep.subr.bf16.mxu1 %v2782_v9  ;;  %689 = vmatprep.subr.bf16.mxu0 %v2782_v9  ;;  %v2840_v53 = vld [vmem:[%s3031_s28 + $0xdc] ss:$8 sps:$4 sm:$0xff]   ;;  %v2438_v54 = vld [vmem:[%s3031_s28 + $0xe8] sm:$0xff]  ;;  %v2838_v55 = vld [vmem:[%s3031_s28 + $0xd8] ss:$8 sps:$4 sm:$0xff]  }
  0x21   : > { %v2471_v56 = vcombine.high %v2438_v54, %v2438_v54  ;;  %v2470_v57 = vcombine.low %v2438_v54, %v2438_v54  ;;  %v2846_v59 = vld [vmem:[%s3043_s6 + $0x7c] ss:$8 sps:$4 sm:$0xff]   ;;  %v2844_v62 = vld [vmem:[%s3043_s6 + $0x78] ss:$8 sps:$4 sm:$0xff]   ;;  %v2850_v63 = vld [vmem:[%s3043_s6 + $0x8c] ss:$8 sps:$4 sm:$0xff]  }
  0x22   : > { %v2848_v1 = vld [vmem:[%s3043_s6 + $0x88] ss:$8 sps:$4 sm:$0xff]   ;;  %v2853_v2 = vld [vmem:[%s3043_s6 + $0x9c] ss:$8 sps:$4 sm:$0xff]   ;;  %v2851_v5 = vld [vmem:[%s3043_s6 + $0x98] ss:$8 sps:$4 sm:$0xff]  }
  0x23   : > { %471 = vmatpush1.bf16.msra.mxu1 %v2784_v10  ;;  %690 = vmatpush1.bf16.msra.mxu0 %v2784_v10  ;;  %v929_v58 = vsel %vm455_vm0, %v2470_v57, 0  ;;  %v3151_v3 = vld [vmem:[%s3026_s25 + $0x18] sm:$0xff]   ;;  %v2856_v6 = vld [vmem:[%s3043_s6 + $0xac] ss:$8 sps:$4 sm:$0xff]   ;;  %v2854_v7 = vld [vmem:[%s3043_s6 + $0xa8] ss:$8 sps:$4 sm:$0xff]  }
  0x24   : > { %472 = vmatprep.subr.bf16.mxu1 %v2785_v11  ;;  %691 = vmatprep.subr.bf16.mxu0 %v2785_v11  ;;  %v3154_v4 = vld [vmem:[%s3048_s9 + $0x18] sm:$0xff]   ;;  %v2862_v10 = vld [vmem:[%s3043_s6 + $0xcc] ss:$8 sps:$4 sm:$0xff]   ;;  %v2860_v11 = vld [vmem:[%s3043_s6 + $0xc8] ss:$8 sps:$4 sm:$0xff]  }
  0x25   : > { %v2859_v8 = vld [vmem:[%s3043_s6 + $0xbc] ss:$8 sps:$4 sm:$0xff]   ;;  %v2857_v9 = vld [vmem:[%s3043_s6 + $0xb8] ss:$8 sps:$4 sm:$0xff]  }
  0x26   : > { %v2864_v14 = vld [vmem:[%s3043_s6 + $0xd8] ss:$8 sps:$4 sm:$0xff]   ;;  %v2896_v36 = vld [vmem:[%s3043_s6 + $0xf4] ss:$8 sps:$4 sm:$0xff]  }
  0x27   : > { %473 = vmatpush1.bf16.msra.mxu1 %v2787_v12  ;;  %692 = vmatpush1.bf16.msra.mxu0 %v2787_v12  ;;  %v2866_v12 = vld [vmem:[%s3043_s6 + $0xdc] ss:$8 sps:$4 sm:$0xff]   ;;  %v2894_v39 = vld [vmem:[%s3043_s6 + $0xf0] ss:$8 sps:$4 sm:$0xff]  }
  0x28   : > { %474 = vmatprep.subr.bf16.mxu1 %v2788_v13  ;;  %693 = vmatprep.subr.bf16.mxu0 %v2788_v13  ;;  %v2453_v13 = vld [vmem:[%s3043_s6 + $0xe8] sm:$0xff]  ;;  %v2914_v54 = vld [vmem:[%s3043_s6 + $0x150] ss:$8 sps:$4 sm:$0xff]  }
  0x2b   : > { %475 = vmatpush1.bf16.msra.mxu1 %v2790_v15  ;;  %694 = vmatpush1.bf16.msra.mxu0 %v2790_v15  ;;  %v2492_v15 = vcombine.high %v2453_v13, %v2453_v13 }
  0x2c   : > { %2386 = vmatprep.subr.msk.bf16.mxu1 %vm455_vm0, %v2385_v16  ;;  %2410 = vmatprep.subr.msk.bf16.mxu0 %vm455_vm0, %v2385_v16  ;;  %v2491_v16 = vcombine.low %v2453_v13, %v2453_v13  ;;  %v2946_v13 = vld [vmem:[%s3043_s6 + $0x16c] ss:$8 sps:$4 sm:$0xff]  }
  0x2e   : > { %v1079_v17 = vsel %vm455_vm0, %v2491_v16, 0  ;;  %v2944_v16 = vld [vmem:[%s3043_s6 + $0x168] ss:$8 sps:$4 sm:$0xff]  }
  0x2f   : > { %477 = vmatpush1.bf16.msra.mxu1 %v457_v18  ;;  %696 = vmatpush1.bf16.msra.mxu0 %v457_v18  ;;  %v2872_v18 = vld [vmem:[%s3031_s28 + $0xf4] ss:$8 sps:$4 sm:$0xff]  }
  0x30   : > { %612 = vmatprep.subr.bf16.mxu1 %v2796_v19  ;;  %734 = vmatprep.subr.bf16.mxu0 %v2796_v19  ;;  %v2870_v19 = vld [vmem:[%s3031_s28 + $0xf0] ss:$8 sps:$4 sm:$0xff]  }
  0x32   : > { %2387 = vmatmul.mubr.msk.bf16.vlgmr.msra.gmra.mrb[0].mxu1 %vm448_vm1, %v3063_v20  ;;  %2411 = vmatmul.mubr.msk.bf16.vlgmr.msra.gmra.mrb[0].mxu0 %vm448_vm1, %v3066_v21 }
  0x33   : > { %613 = vmatpush1.bf16.msra.mxu1 %v2794_v22  ;;  %735 = vmatpush1.bf16.msra.mxu0 %v2794_v22  ;;  %v2878_v22 = vld [vmem:[%s3031_s28 + $0x114] ss:$8 sps:$4 sm:$0xff]  }
  0x34   : > { %614 = vmatprep.subr.bf16.mxu1 %v2800_v23  ;;  %736 = vmatprep.subr.bf16.mxu0 %v2800_v23  ;;  %v2876_v23 = vld [vmem:[%s3031_s28 + $0x110] ss:$8 sps:$4 sm:$0xff]  }
  0x35   : > { %504 = vmatprep.mubr.bf16.mxu1 %v2978_v0  ;;  %723 = vmatprep.mubr.bf16.mxu0 %v2978_v0 }
  0x37   : > { %615 = vmatpush1.bf16.msra.mxu1 %v2798_v24  ;;  %737 = vmatpush1.bf16.msra.mxu0 %v2798_v24  ;;  %v2881_v24 = vld [vmem:[%s3031_s28 + $0x124] ss:$8 sps:$4 sm:$0xff]  }
  0x38   : > { %616 = vmatprep.subr.bf16.mxu1 %v2803_v25  ;;  %738 = vmatprep.subr.bf16.mxu0 %v2803_v25  ;;  %v2879_v25 = vld [vmem:[%s3031_s28 + $0x120] ss:$8 sps:$4 sm:$0xff]  }
  0x3a   : > { %2388 = vmatmul.mubr.msk.bf16.gmra.mrb[4].mxu1 %vm448_vm1, %v3078_v26  ;;  %2412 = vmatmul.mubr.msk.bf16.gmra.mrb[4].mxu0 %vm448_vm1, %v3082_v27 }
  0x3b   : > { %617 = vmatpush1.bf16.msra.mxu1 %v2801_v28  ;;  %739 = vmatpush1.bf16.msra.mxu0 %v2801_v28  ;;  %v2887_v28 = vld [vmem:[%s3031_s28 + $0x144] ss:$8 sps:$4 sm:$0xff]  }
  0x3c   : > { %618 = vmatprep.subr.bf16.mxu1 %v2806_v29  ;;  %740 = vmatprep.subr.bf16.mxu0 %v2806_v29  ;;  %v2885_v29 = vld [vmem:[%s3031_s28 + $0x140] ss:$8 sps:$4 sm:$0xff]  }
  0x3d   : > { %644 = vmatprep.mubr.bf16.mxu1 %v2978_v0  ;;  %766 = vmatprep.mubr.bf16.mxu0 %v2978_v0 }
  0x3f   : > { %619 = vmatpush1.bf16.msra.mxu1 %v2804_v30  ;;  %741 = vmatpush1.bf16.msra.mxu0 %v2804_v30  ;;  %v2890_v30 = vld [vmem:[%s3031_s28 + $0x154] ss:$8 sps:$4 sm:$0xff]  }
  0x40   : > { %620 = vmatprep.subr.bf16.mxu1 %v2809_v31  ;;  %742 = vmatprep.subr.bf16.mxu0 %v2809_v31  ;;  %v2540_v31 = vld [vmem:[%s3031_s28 + $0x160] sm:$0xff] }
  0x43   : > { %621 = vmatpush1.bf16.msra.mxu1 %v2807_v32  ;;  %743 = vmatpush1.bf16.msra.mxu0 %v2807_v32  ;;  %v2888_v32 = vld [vmem:[%s3031_s28 + $0x150] ss:$8 sps:$4 sm:$0xff]  }
  0x44   : > { %622 = vmatprep.subr.bf16.mxu1 %v2812_v33  ;;  %744 = vmatprep.subr.bf16.mxu0 %v2812_v33  ;;  %v2573_v33 = vcombine.high %v2540_v31, %v2540_v31 }
  0x47   : > { %623 = vmatpush1.bf16.msra.mxu1 %v2810_v34  ;;  %745 = vmatpush1.bf16.msra.mxu0 %v2810_v34  ;;  %v2572_v34 = vcombine.low %v2540_v31, %v2540_v31  ;;  %v2657_v31 = vld [vmem:[%s3043_s6 + $0x1d8] sm:$0xff] }
  0x48   : > { %624 = vmatprep.subr.bf16.mxu1 %v2816_v35  ;;  %746 = vmatprep.subr.bf16.mxu0 %v2816_v35 }
  0x49   : > { %v1403_v35 = vsel %vm455_vm0, %v2572_v34, 0  ;;  %v2964_v34 = vld [vmem:[%s3043_s6 + $0x1c8] ss:$8 sps:$4 sm:$0xff]  }
  0x4b   : > { %625 = vmatpush1.bf16.msra.mxu1 %v2814_v37  ;;  %747 = vmatpush1.bf16.msra.mxu0 %v2814_v37  ;;  %v3207_v37 = vld [vmem:[%s3026_s25 + $0x20] sm:$0xff]  }
  0x4c   : > { %2407 = vmatprep.subr.msk.bf16.mxu1 %vm455_vm0, %v2406_v38  ;;  %2413 = vmatprep.subr.msk.bf16.mxu0 %vm455_vm0, %v2406_v38  ;;  %v3210_v38 = vld [vmem:[%s3048_s9 + $0x20] sm:$0xff]  }
  0x4f   : > { %627 = vmatpush1.bf16.msra.mxu1 %v607_v40  ;;  %749 = vmatpush1.bf16.msra.mxu0 %v607_v40  ;;  %v2900_v40 = vld [vmem:[%s3043_s6 + $0x104] ss:$8 sps:$4 sm:$0xff]  }
  0x50   : > { %934 = vmatprep.subr.bf16.mxu1 %v2822_v41  ;;  %1154 = vmatprep.subr.bf16.mxu0 %v2822_v41  ;;  %v2898_v41 = vld [vmem:[%s3043_s6 + $0x100] ss:$8 sps:$4 sm:$0xff]  }
  0x52   : > { %2408 = vmatmul.mubr.msk.bf16.vlgmr.msra.gmra.mrb[8].mxu1 %vm448_vm1, %v3066_v21  ;;  %2414 = vmatmul.mubr.msk.bf16.vlgmr.msra.gmra.mrb[0].mxu0 %vm448_vm1, %v3063_v20  ;;  %v2875_v20 = vld [vmem:[%s3031_s28 + $0x104] ss:$8 sps:$4 sm:$0xff]   ;;  %v2873_v21 = vld [vmem:[%s3031_s28 + $0x100] ss:$8 sps:$4 sm:$0xff]  }
  0x53   : > { %935 = vmatpush1.bf16.msra.mxu1 %v2820_v42  ;;  %1155 = vmatpush1.bf16.msra.mxu0 %v2820_v42  ;;  %v2903_v42 = vld [vmem:[%s3043_s6 + $0x114] ss:$8 sps:$4 sm:$0xff]  }
  0x54   : > { %936 = vmatprep.subr.bf16.mxu1 %v2825_v43  ;;  %1156 = vmatprep.subr.bf16.mxu0 %v2825_v43  ;;  %v3223_v43 = vld [vmem:[%s3026_s25 + $0x28] sm:$0xff]  }
  0x55   : > { %654 = vmatprep.mubr.bf16.mxu1 %v2978_v0  ;;  %776 = vmatprep.mubr.bf16.mxu0 %v2978_v0 }
  0x57   : > { %937 = vmatpush1.bf16.msra.mxu1 %v2823_v44  ;;  %1157 = vmatpush1.bf16.msra.mxu0 %v2823_v44  ;;  %v3226_v44 = vld [vmem:[%s3048_s9 + $0x28] sm:$0xff]  }
  0x58   : > { %938 = vmatprep.subr.bf16.mxu1 %v2828_v45  ;;  %1158 = vmatprep.subr.bf16.mxu0 %v2828_v45  ;;  %v2901_v45 = vld [vmem:[%s3043_s6 + $0x110] ss:$8 sps:$4 sm:$0xff]  }
  0x5a   : > { %2409 = vmatmul.mubr.msk.bf16.gmra.mrb[12].mxu1 %vm448_vm1, %v3082_v27  ;;  %2415 = vmatmul.mubr.msk.bf16.gmra.mrb[4].mxu0 %vm448_vm1, %v3078_v26  ;;  %v2884_v26 = vld [vmem:[%s3031_s28 + $0x134] ss:$8 sps:$4 sm:$0xff]   ;;  %v2882_v27 = vld [vmem:[%s3031_s28 + $0x130] ss:$8 sps:$4 sm:$0xff]  }
  0x5b   : > { %939 = vmatpush1.bf16.msra.mxu1 %v2826_v46  ;;  %1159 = vmatpush1.bf16.msra.mxu0 %v2826_v46  ;;  %v2906_v46 = vld [vmem:[%s3043_s6 + $0x124] ss:$8 sps:$4 sm:$0xff]  }
  0x5c   : > { %940 = vmatprep.subr.bf16.mxu1 %v2831_v47  ;;  %1160 = vmatprep.subr.bf16.mxu0 %v2831_v47  ;;  %v2904_v47 = vld [vmem:[%s3043_s6 + $0x120] ss:$8 sps:$4 sm:$0xff]  }
  0x5d   : > { %966 = vmatprep.mubr.bf16.mxu1 %v2978_v0  ;;  %1186 = vmatprep.mubr.bf16.mxu0 %v2978_v0 }
  0x5f   : > { %941 = vmatpush1.bf16.msra.mxu1 %v2829_v48  ;;  %1161 = vmatpush1.bf16.msra.mxu0 %v2829_v48  ;;  %v2909_v48 = vld [vmem:[%s3043_s6 + $0x134] ss:$8 sps:$4 sm:$0xff]  }
  0x60   : > { %942 = vmatprep.subr.bf16.mxu1 %v2834_v49  ;;  %1162 = vmatprep.subr.bf16.mxu0 %v2834_v49  ;;  %v2907_v49 = vld [vmem:[%s3043_s6 + $0x130] ss:$8 sps:$4 sm:$0xff]  }
  0x63   : > { %943 = vmatpush1.bf16.msra.mxu1 %v2832_v50  ;;  %1163 = vmatpush1.bf16.msra.mxu0 %v2832_v50  ;;  %v2912_v50 = vld [vmem:[%s3043_s6 + $0x144] ss:$8 sps:$4 sm:$0xff]  }
  0x64   : > { %944 = vmatprep.subr.bf16.mxu1 %v2837_v51  ;;  %1164 = vmatprep.subr.bf16.mxu0 %v2837_v51  ;;  %v2910_v51 = vld [vmem:[%s3043_s6 + $0x140] ss:$8 sps:$4 sm:$0xff]  }
  0x67   : > { %945 = vmatpush1.bf16.msra.mxu1 %v2835_v52  ;;  %1165 = vmatpush1.bf16.msra.mxu0 %v2835_v52  ;;  %v2916_v52 = vld [vmem:[%s3043_s6 + $0x154] ss:$8 sps:$4 sm:$0xff]  }
  0x68   : > { %946 = vmatprep.subr.bf16.mxu1 %v2840_v53  ;;  %1166 = vmatprep.subr.bf16.mxu0 %v2840_v53  ;;  %v2555_v53 = vld [vmem:[%s3043_s6 + $0x160] sm:$0xff] }
  0x6b   : > { %947 = vmatpush1.bf16.msra.mxu1 %v2838_v55  ;;  %1167 = vmatpush1.bf16.msra.mxu0 %v2838_v55  ;;  %v2594_v55 = vcombine.high %v2555_v53, %v2555_v53 }
  0x6c   : > { %2472 = vmatprep.subr.msk.bf16.mxu1 %vm455_vm0, %v2471_v56  ;;  %2504 = vmatprep.subr.msk.bf16.mxu0 %vm455_vm0, %v2471_v56  ;;  %v2593_v56 = vcombine.low %v2555_v53, %v2555_v53 }
  0x6e   : > { %v1553_v57 = vsel %vm455_vm0, %v2593_v56, 0 }
  0x6f   : > { %949 = vmatpush1.bf16.msra.mxu1 %v929_v58  ;;  %1169 = vmatpush1.bf16.msra.mxu0 %v929_v58  ;;  %v2922_v58 = vld [vmem:[%s3031_s28 + $0x16c] ss:$8 sps:$4 sm:$0xff]  }
  0x70   : > { %1084 = vmatprep.subr.bf16.mxu1 %v2846_v59  ;;  %1207 = vmatprep.subr.bf16.mxu0 %v2846_v59  ;;  %v2920_v59 = vld [vmem:[%s3031_s28 + $0x168] ss:$8 sps:$4 sm:$0xff]  }
  0x72   : > { %2473 = vmatmul.mubr.msk.bf16.vlgmr.msra.gmra.mrb[16].mxu1 %vm448_vm1, %v3135_v60  ;;  %2505 = vmatmul.mubr.msk.bf16.vlgmr.msra.gmra.mrb[8].mxu0 %vm448_vm1, %v3138_v61 }
  0x73   : > { %1085 = vmatpush1.bf16.msra.mxu1 %v2844_v62  ;;  %1208 = vmatpush1.bf16.msra.mxu0 %v2844_v62  ;;  %v2928_v62 = vld [vmem:[%s3031_s28 + $0x18c] ss:$8 sps:$4 sm:$0xff]  }
  0x74   : > { %1086 = vmatprep.subr.bf16.mxu1 %v2850_v63  ;;  %1209 = vmatprep.subr.bf16.mxu0 %v2850_v63  ;;  %v2926_v63 = vld [vmem:[%s3031_s28 + $0x188] ss:$8 sps:$4 sm:$0xff]  }
  0x75   : > { %976 = vmatprep.mubr.bf16.mxu1 %v2978_v0  ;;  %1196 = vmatprep.mubr.bf16.mxu0 %v2978_v0 }
  0x77   : > { %1087 = vmatpush1.bf16.msra.mxu1 %v2848_v1  ;;  %1210 = vmatpush1.bf16.msra.mxu0 %v2848_v1  ;;  %v2931_v1 = vld [vmem:[%s3031_s28 + $0x19c] ss:$8 sps:$4 sm:$0xff]  }
  0x78   : > { %1088 = vmatprep.subr.bf16.mxu1 %v2853_v2  ;;  %1211 = vmatprep.subr.bf16.mxu0 %v2853_v2  ;;  %v2929_v2 = vld [vmem:[%s3031_s28 + $0x198] ss:$8 sps:$4 sm:$0xff]  }
  0x7a   : > { %2474 = vmatmul.mubr.msk.bf16.gmra.mrb[20].mxu1 %vm448_vm1, %v3151_v3  ;;  %2506 = vmatmul.mubr.msk.bf16.gmra.mrb[12].mxu0 %vm448_vm1, %v3154_v4 }
  0x7b   : > { %1089 = vmatpush1.bf16.msra.mxu1 %v2851_v5  ;;  %1212 = vmatpush1.bf16.msra.mxu0 %v2851_v5  ;;  %v2937_v5 = vld [vmem:[%s3031_s28 + $0x1bc] ss:$8 sps:$4 sm:$0xff]  }
  0x7c   : > { %1090 = vmatprep.subr.bf16.mxu1 %v2856_v6  ;;  %1213 = vmatprep.subr.bf16.mxu0 %v2856_v6  ;;  %v2935_v6 = vld [vmem:[%s3031_s28 + $0x1b8] ss:$8 sps:$4 sm:$0xff]  }
  0x7d   : > { %1116 = vmatprep.mubr.bf16.mxu1 %v2978_v0  ;;  %1239 = vmatprep.mubr.bf16.mxu0 %v2978_v0 }
  0x7f   : > { %1091 = vmatpush1.bf16.msra.mxu1 %v2854_v7  ;;  %1214 = vmatpush1.bf16.msra.mxu0 %v2854_v7  ;;  %v2940_v7 = vld [vmem:[%s3031_s28 + $0x1cc] ss:$8 sps:$4 sm:$0xff]  }
  0x80   : > { %1092 = vmatprep.subr.bf16.mxu1 %v2859_v8  ;;  %1215 = vmatprep.subr.bf16.mxu0 %v2859_v8  ;;  %v2642_v8 = vld [vmem:[%s3031_s28 + $0x1d8] sm:$0xff] }
  0x83   : > { %1093 = vmatpush1.bf16.msra.mxu1 %v2857_v9  ;;  %1216 = vmatpush1.bf16.msra.mxu0 %v2857_v9  ;;  %v2938_v9 = vld [vmem:[%s3031_s28 + $0x1c8] ss:$8 sps:$4 sm:$0xff]  }
  0x84   : > { %1094 = vmatprep.subr.bf16.mxu1 %v2862_v10  ;;  %1217 = vmatprep.subr.bf16.mxu0 %v2862_v10  ;;  %v2675_v10 = vcombine.high %v2642_v8, %v2642_v8 }
  0x87   : > { %1095 = vmatpush1.bf16.msra.mxu1 %v2860_v11  ;;  %1218 = vmatpush1.bf16.msra.mxu0 %v2860_v11  ;;  %v2674_v11 = vcombine.low %v2642_v8, %v2642_v8 }
  0x88   : > { %1096 = vmatprep.subr.bf16.mxu1 %v2866_v12  ;;  %1219 = vmatprep.subr.bf16.mxu0 %v2866_v12 }
  0x89   : > { %v1877_v12 = vsel %vm455_vm0, %v2674_v11, 0 }
  0x8b   : > { %1097 = vmatpush1.bf16.msra.mxu1 %v2864_v14  ;;  %1220 = vmatpush1.bf16.msra.mxu0 %v2864_v14  ;;  %v3279_v14 = vld [vmem:[%s3026_s25 + $0x30] sm:$0xff]  }
  0x8c   : > { %2493 = vmatprep.subr.msk.bf16.mxu1 %vm455_vm0, %v2492_v15  ;;  %2507 = vmatprep.subr.msk.bf16.mxu0 %vm455_vm0, %v2492_v15  ;;  %v3282_v15 = vld [vmem:[%s3048_s9 + $0x30] sm:$0xff]  }
  0x8f   : > { %1099 = vmatpush1.bf16.msra.mxu1 %v1079_v17  ;;  %1222 = vmatpush1.bf16.msra.mxu0 %v1079_v17  ;;  %v2950_v17 = vld [vmem:[%s3043_s6 + $0x17c] ss:$8 sps:$4 sm:$0xff]  }
  0x90   : > { %1408 = vmatprep.subr.bf16.mxu1 %v2872_v18  ;;  %1628 = vmatprep.subr.bf16.mxu0 %v2872_v18  ;;  %v2948_v18 = vld [vmem:[%s3043_s6 + $0x178] ss:$8 sps:$4 sm:$0xff]  }
  0x92   : > { %2494 = vmatmul.mubr.msk.bf16.vlgmr.msra.gmra.mrb[24].mxu1 %vm448_vm1, %v3138_v61  ;;  %2508 = vmatmul.mubr.msk.bf16.vlgmr.msra.gmra.mrb[8].mxu0 %vm448_vm1, %v3135_v60  ;;  %v2925_v60 = vld [vmem:[%s3031_s28 + $0x17c] ss:$8 sps:$4 sm:$0xff]   ;;  %v2923_v61 = vld [vmem:[%s3031_s28 + $0x178] ss:$8 sps:$4 sm:$0xff]  }
  0x93   : > { %1409 = vmatpush1.bf16.msra.mxu1 %v2870_v19  ;;  %1629 = vmatpush1.bf16.msra.mxu0 %v2870_v19  ;;  %v2953_v19 = vld [vmem:[%s3043_s6 + $0x18c] ss:$8 sps:$4 sm:$0xff]  }
  0x94   : > { %1410 = vmatprep.subr.bf16.mxu1 %v2875_v20  ;;  %1630 = vmatprep.subr.bf16.mxu0 %v2875_v20  ;;  %v2963_v20 = vld [vmem:[%s3026_s25 + $0x38] sm:$0xff]  }
  0x95   : > { %1126 = vmatprep.mubr.bf16.mxu1 %v2978_v0  ;;  %1249 = vmatprep.mubr.bf16.mxu0 %v2978_v0 }
  0x97   : > { %1411 = vmatpush1.bf16.msra.mxu1 %v2873_v21  ;;  %1631 = vmatpush1.bf16.msra.mxu0 %v2873_v21  ;;  %v2967_v21 = vld [vmem:[%s3048_s9 + $0x38] sm:$0xff]  }
  0x98   : > { %1412 = vmatprep.subr.bf16.mxu1 %v2878_v22  ;;  %1632 = vmatprep.subr.bf16.mxu0 %v2878_v22  ;;  %v2951_v22 = vld [vmem:[%s3043_s6 + $0x188] ss:$8 sps:$4 sm:$0xff]  }
  0x9a   : > { %2495 = vmatmul.mubr.msk.bf16.gmra.mrb[28].mxu1 %vm448_vm1, %v3154_v4  ;;  %2509 = vmatmul.mubr.msk.bf16.gmra.mrb[12].mxu0 %vm448_vm1, %v3151_v3  ;;  %v2934_v3 = vld [vmem:[%s3031_s28 + $0x1ac] ss:$8 sps:$4 sm:$0xff]   ;;  %v2932_v4 = vld [vmem:[%s3031_s28 + $0x1a8] ss:$8 sps:$4 sm:$0xff]  }
  0x9b   : > { %1413 = vmatpush1.bf16.msra.mxu1 %v2876_v23  ;;  %1633 = vmatpush1.bf16.msra.mxu0 %v2876_v23  ;;  %v2956_v23 = vld [vmem:[%s3043_s6 + $0x19c] ss:$8 sps:$4 sm:$0xff]  }
  0x9c   : > { %1414 = vmatprep.subr.bf16.mxu1 %v2881_v24  ;;  %1634 = vmatprep.subr.bf16.mxu0 %v2881_v24  ;;  %v2954_v24 = vld [vmem:[%s3043_s6 + $0x198] ss:$8 sps:$4 sm:$0xff]  }
  0x9d   : > { %1440 = vmatprep.mubr.bf16.mxu1 %v2978_v0  ;;  %1660 = vmatprep.mubr.bf16.mxu0 %v2978_v0 }
  0x9f   : > { %1415 = vmatpush1.bf16.msra.mxu1 %v2879_v25  ;;  %1635 = vmatpush1.bf16.msra.mxu0 %v2879_v25  ;;  %v2959_v25 = vld [vmem:[%s3043_s6 + $0x1ac] ss:$8 sps:$4 sm:$0xff]  }
  0xa0   : > { %1416 = vmatprep.subr.bf16.mxu1 %v2884_v26  ;;  %1636 = vmatprep.subr.bf16.mxu0 %v2884_v26  ;;  %v2957_v26 = vld [vmem:[%s3043_s6 + $0x1a8] ss:$8 sps:$4 sm:$0xff]  }
  0xa3   : > { %1417 = vmatpush1.bf16.msra.mxu1 %v2882_v27  ;;  %1637 = vmatpush1.bf16.msra.mxu0 %v2882_v27  ;;  %v2962_v27 = vld [vmem:[%s3043_s6 + $0x1bc] ss:$8 sps:$4 sm:$0xff]  }
  0xa4   : > { %1418 = vmatprep.subr.bf16.mxu1 %v2887_v28  ;;  %1638 = vmatprep.subr.bf16.mxu0 %v2887_v28  ;;  %v2960_v28 = vld [vmem:[%s3043_s6 + $0x1b8] ss:$8 sps:$4 sm:$0xff]  }
  0xa7   : > { %1419 = vmatpush1.bf16.msra.mxu1 %v2885_v29  ;;  %1639 = vmatpush1.bf16.msra.mxu0 %v2885_v29  ;;  %v2966_v29 = vld [vmem:[%s3043_s6 + $0x1cc] ss:$8 sps:$4 sm:$0xff]  }
  0xa8   : > { %1420 = vmatprep.subr.bf16.mxu1 %v2890_v30  ;;  %1640 = vmatprep.subr.bf16.mxu0 %v2890_v30 }
  0xab   : > { %1421 = vmatpush1.bf16.msra.mxu1 %v2888_v32  ;;  %1641 = vmatpush1.bf16.msra.mxu0 %v2888_v32 }
  0xac   : > { %2574 = vmatprep.subr.msk.bf16.mxu1 %vm455_vm0, %v2573_v33  ;;  %2606 = vmatprep.subr.msk.bf16.mxu0 %vm455_vm0, %v2573_v33 }
  0xaf   : > { %1423 = vmatpush1.bf16.msra.mxu1 %v1403_v35  ;;  %1643 = vmatpush1.bf16.msra.mxu0 %v1403_v35 }
  0xb0   : > { %1558 = vmatprep.subr.bf16.mxu1 %v2896_v36  ;;  %1681 = vmatprep.subr.bf16.mxu0 %v2896_v36  ;;  %v2696_v36 = vcombine.high %v2657_v31, %v2657_v31 }
  0xb2   : > { %2575 = vmatmul.mubr.msk.bf16.vlgmr.msra.gmra.mrb[32].mxu1 %vm448_vm1, %v3207_v37  ;;  %2607 = vmatmul.mubr.msk.bf16.vlgmr.msra.gmra.mrb[16].mxu0 %vm448_vm1, %v3210_v38 }
  0xb3   : > { %1559 = vmatpush1.bf16.msra.mxu1 %v2894_v39  ;;  %1682 = vmatpush1.bf16.msra.mxu0 %v2894_v39 }
  0xb4   : > { %1560 = vmatprep.subr.bf16.mxu1 %v2900_v40  ;;  %1683 = vmatprep.subr.bf16.mxu0 %v2900_v40 }
  0xb5   : > { %1450 = vmatprep.mubr.bf16.mxu1 %v2978_v0  ;;  %1670 = vmatprep.mubr.bf16.mxu0 %v2978_v0 }
  0xb7   : > { %1561 = vmatpush1.bf16.msra.mxu1 %v2898_v41  ;;  %1684 = vmatpush1.bf16.msra.mxu0 %v2898_v41 }
  0xb8   : > { %1562 = vmatprep.subr.bf16.mxu1 %v2903_v42  ;;  %1685 = vmatprep.subr.bf16.mxu0 %v2903_v42 }
  0xba   : > { %2576 = vmatmul.mubr.msk.bf16.gmra.mrb[36].mxu1 %vm448_vm1, %v3223_v43  ;;  %2608 = vmatmul.mubr.msk.bf16.gmra.mrb[20].mxu0 %vm448_vm1, %v3226_v44 }
  0xbb   : > { %1563 = vmatpush1.bf16.msra.mxu1 %v2901_v45  ;;  %1686 = vmatpush1.bf16.msra.mxu0 %v2901_v45 }
  0xbc   : > { %1564 = vmatprep.subr.bf16.mxu1 %v2906_v46  ;;  %1687 = vmatprep.subr.bf16.mxu0 %v2906_v46 }
  0xbd   : > { %1590 = vmatprep.mubr.bf16.mxu1 %v2978_v0  ;;  %1713 = vmatprep.mubr.bf16.mxu0 %v2978_v0 }
  0xbf   : > { %1565 = vmatpush1.bf16.msra.mxu1 %v2904_v47  ;;  %1688 = vmatpush1.bf16.msra.mxu0 %v2904_v47 }
  0xc0   : > { %1566 = vmatprep.subr.bf16.mxu1 %v2909_v48  ;;  %1689 = vmatprep.subr.bf16.mxu0 %v2909_v48 }
  0xc3   : > { %1567 = vmatpush1.bf16.msra.mxu1 %v2907_v49  ;;  %1690 = vmatpush1.bf16.msra.mxu0 %v2907_v49 }
  0xc4   : > { %1568 = vmatprep.subr.bf16.mxu1 %v2912_v50  ;;  %1691 = vmatprep.subr.bf16.mxu0 %v2912_v50 }
  0xc7   : > { %1569 = vmatpush1.bf16.msra.mxu1 %v2910_v51  ;;  %1692 = vmatpush1.bf16.msra.mxu0 %v2910_v51 }
  0xc8   : > { %1570 = vmatprep.subr.bf16.mxu1 %v2916_v52  ;;  %1693 = vmatprep.subr.bf16.mxu0 %v2916_v52 }
  0xcb   : > { %1571 = vmatpush1.bf16.msra.mxu1 %v2914_v54  ;;  %1694 = vmatpush1.bf16.msra.mxu0 %v2914_v54 }
  0xcc   : > { %2595 = vmatprep.subr.msk.bf16.mxu1 %vm455_vm0, %v2594_v55  ;;  %2609 = vmatprep.subr.msk.bf16.mxu0 %vm455_vm0, %v2594_v55 }
  0xcf   : > { %1573 = vmatpush1.bf16.msra.mxu1 %v1553_v57  ;;  %1696 = vmatpush1.bf16.msra.mxu0 %v1553_v57 }
  0xd0   : > { %1882 = vmatprep.subr.bf16.mxu1 %v2922_v58  ;;  %2102 = vmatprep.subr.bf16.mxu0 %v2922_v58 }
  0xd2   : > { %2596 = vmatmul.mubr.msk.bf16.vlgmr.msra.gmra.mrb[40].mxu1 %vm448_vm1, %v3210_v38  ;;  %2610 = vmatmul.mubr.msk.bf16.vlgmr.msra.gmra.mrb[16].mxu0 %vm448_vm1, %v3207_v37  ;;  %v2695_v37 = vcombine.low %v2657_v31, %v2657_v31 }
  0xd3   : > { %1883 = vmatpush1.bf16.msra.mxu1 %v2920_v59  ;;  %2103 = vmatpush1.bf16.msra.mxu0 %v2920_v59 }
  0xd4   : > { %1884 = vmatprep.subr.bf16.mxu1 %v2925_v60  ;;  %2104 = vmatprep.subr.bf16.mxu0 %v2925_v60  ;;  %v2027_v38 = vsel %vm455_vm0, %v2695_v37, 0 }
  0xd5   : > { %1600 = vmatprep.mubr.bf16.mxu1 %v2978_v0  ;;  %1723 = vmatprep.mubr.bf16.mxu0 %v2978_v0 }
  0xd7   : > { %1885 = vmatpush1.bf16.msra.mxu1 %v2923_v61  ;;  %2105 = vmatpush1.bf16.msra.mxu0 %v2923_v61 }
  0xd8   : > { %1886 = vmatprep.subr.bf16.mxu1 %v2928_v62  ;;  %2106 = vmatprep.subr.bf16.mxu0 %v2928_v62 }
  0xda   : > { %2597 = vmatmul.mubr.msk.bf16.gmra.mrb[44].mxu1 %vm448_vm1, %v3226_v44  ;;  %2611 = vmatmul.mubr.msk.bf16.gmra.mrb[20].mxu0 %vm448_vm1, %v3223_v43 }
  0xdb   : > { %1887 = vmatpush1.bf16.msra.mxu1 %v2926_v63  ;;  %2107 = vmatpush1.bf16.msra.mxu0 %v2926_v63 }
  0xdc   : > { %1888 = vmatprep.subr.bf16.mxu1 %v2931_v1  ;;  %2108 = vmatprep.subr.bf16.mxu0 %v2931_v1 }
  0xdd   : > { %1914 = vmatprep.mubr.bf16.mxu1 %v2978_v0  ;;  %2134 = vmatprep.mubr.bf16.mxu0 %v2978_v0 }
  0xdf   : > { %1889 = vmatpush1.bf16.msra.mxu1 %v2929_v2  ;;  %2109 = vmatpush1.bf16.msra.mxu0 %v2929_v2 }
  0xe0   : > { %1890 = vmatprep.subr.bf16.mxu1 %v2934_v3  ;;  %2110 = vmatprep.subr.bf16.mxu0 %v2934_v3 }
  0xe3   : > { %1891 = vmatpush1.bf16.msra.mxu1 %v2932_v4  ;;  %2111 = vmatpush1.bf16.msra.mxu0 %v2932_v4 }
  0xe4   : > { %1892 = vmatprep.subr.bf16.mxu1 %v2937_v5  ;;  %2112 = vmatprep.subr.bf16.mxu0 %v2937_v5 }
  0xe7   : > { %1893 = vmatpush1.bf16.msra.mxu1 %v2935_v6  ;;  %2113 = vmatpush1.bf16.msra.mxu0 %v2935_v6 }
  0xe8   : > { %1894 = vmatprep.subr.bf16.mxu1 %v2940_v7  ;;  %2114 = vmatprep.subr.bf16.mxu0 %v2940_v7 }
  0xeb   : > { %1895 = vmatpush1.bf16.msra.mxu1 %v2938_v9  ;;  %2115 = vmatpush1.bf16.msra.mxu0 %v2938_v9 }
  0xec   : > { %2676 = vmatprep.subr.msk.bf16.mxu1 %vm455_vm0, %v2675_v10  ;;  %2708 = vmatprep.subr.msk.bf16.mxu0 %vm455_vm0, %v2675_v10 }
  0xef   : > { %1897 = vmatpush1.bf16.msra.mxu1 %v1877_v12  ;;  %2117 = vmatpush1.bf16.msra.mxu0 %v1877_v12 }
  0xf0   : > { %2032 = vmatprep.subr.bf16.mxu1 %v2946_v13  ;;  %2155 = vmatprep.subr.bf16.mxu0 %v2946_v13 }
  0xf2   : > { %2677 = vmatmul.mubr.msk.bf16.vlgmr.msra.gmra.mrb[48].mxu1 %vm448_vm1, %v3279_v14  ;;  %2709 = vmatmul.mubr.msk.bf16.vlgmr.msra.gmra.mrb[24].mxu0 %vm448_vm1, %v3282_v15 }
  0xf3   : > { %2033 = vmatpush1.bf16.msra.mxu1 %v2944_v16  ;;  %2156 = vmatpush1.bf16.msra.mxu0 %v2944_v16 }
  0xf4   : > { %2034 = vmatprep.subr.bf16.mxu1 %v2950_v17  ;;  %2157 = vmatprep.subr.bf16.mxu0 %v2950_v17 }
  0xf5   : > { %1924 = vmatprep.mubr.bf16.mxu1 %v2978_v0  ;;  %2144 = vmatprep.mubr.bf16.mxu0 %v2978_v0 }
  0xf7   : > { %2035 = vmatpush1.bf16.msra.mxu1 %v2948_v18  ;;  %2158 = vmatpush1.bf16.msra.mxu0 %v2948_v18 }
  0xf8   : > { %2036 = vmatprep.subr.bf16.mxu1 %v2953_v19  ;;  %2159 = vmatprep.subr.bf16.mxu0 %v2953_v19 }
  0xfa   : > { %2678 = vmatmul.mubr.msk.bf16.gmra.mrb[52].mxu1 %vm448_vm1, %v2963_v20  ;;  %2710 = vmatmul.mubr.msk.bf16.gmra.mrb[28].mxu0 %vm448_vm1, %v2967_v21 }
  0xfb   : > { %2037 = vmatpush1.bf16.msra.mxu1 %v2951_v22  ;;  %2160 = vmatpush1.bf16.msra.mxu0 %v2951_v22 }
  0xfc   : > { %2038 = vmatprep.subr.bf16.mxu1 %v2956_v23  ;;  %2161 = vmatprep.subr.bf16.mxu0 %v2956_v23 }
  0xfd   : > { %2064 = vmatprep.mubr.bf16.mxu1 %v2978_v0  ;;  %2187 = vmatprep.mubr.bf16.mxu0 %v2978_v0 }
  0xff   : > { %2039 = vmatpush1.bf16.msra.mxu1 %v2954_v24  ;;  %2162 = vmatpush1.bf16.msra.mxu0 %v2954_v24 }
 0x100   : > { %2040 = vmatprep.subr.bf16.mxu1 %v2959_v25  ;;  %2163 = vmatprep.subr.bf16.mxu0 %v2959_v25 }
 0x103   : > { %2041 = vmatpush1.bf16.msra.mxu1 %v2957_v26  ;;  %2164 = vmatpush1.bf16.msra.mxu0 %v2957_v26 }
 0x104   : > { %2042 = vmatprep.subr.bf16.mxu1 %v2962_v27  ;;  %2165 = vmatprep.subr.bf16.mxu0 %v2962_v27 }
 0x105   : > { %v496_v30 = vpop.f32.mrb[0].mxu1 }
 0x106   : > { %v498_v32 = vpop.f32.mrb[1].mxu1 }
 0x107   : > { %v500_v33 = vpop.f32.mrb[2].mxu1  ;;  %2043 = vmatpush1.bf16.msra.mxu1 %v2960_v28  ;;  %2166 = vmatpush1.bf16.msra.mxu0 %v2960_v28 }
 0x108   : > { %v502_v35 = vpop.f32.mrb[3].mxu1  ;;  %2044 = vmatprep.subr.bf16.mxu1 %v2966_v29  ;;  %2167 = vmatprep.subr.bf16.mxu0 %v2966_v29 }
 0x10b   : > { %2045 = vmatpush1.bf16.msra.mxu1 %v2964_v34  ;;  %2168 = vmatpush1.bf16.msra.mxu0 %v2964_v34 }
 0x10c   : > { %2697 = vmatprep.subr.msk.bf16.mxu1 %vm455_vm0, %v2696_v36  ;;  %2711 = vmatprep.subr.msk.bf16.mxu0 %vm455_vm0, %v2696_v36 }
 0x10d   : > { %v506_v39 = vpop.f32.mrb[4].mxu1 }
 0x10e   : > { %v508_v40 = vpop.f32.mrb[5].mxu1 }
 0x10f   : > { %2047 = vmatpush1.bf16.msra.mxu1 %v2027_v38  ;;  %2170 = vmatpush1.bf16.msra.mxu0 %v2027_v38  ;;  %v510_v41 = vpop.f32.mrb[6].mxu1 }
 0x110   : > { %v512_v42 = vpop.f32.mrb[7].mxu1 }
 0x112   : > { %2698 = vmatmul.mubr.msk.bf16.vlgmr.msra.gmra.mrb[56].mxu1 %vm448_vm1, %v3282_v15  ;;  %2712 = vmatmul.mubr.msk.bf16.vlgmr.msra.gmra.mrb[24].mxu0 %vm448_vm1, %v3279_v14 }
 0x113   : > { %2074 = vmatprep.mubr.bf16.mxu1 %v2978_v0  ;;  %2197 = vmatprep.mubr.bf16.mxu0 %v2978_v0 }
 0x11a   : > { %2699 = vmatmul.mubr.msk.bf16.gmra.mrb[60].mxu1 %vm448_vm1, %v2967_v21  ;;  %2713 = vmatmul.mubr.msk.bf16.gmra.mrb[28].mxu0 %vm448_vm1, %v2963_v20 }
 0x125   : > { %v646_v0 = vpop.f32.mrb[8].mxu1  ;;  %v768_v43 = vpop.f32.mrb[0].mxu0 }
 0x126   : > { %v665_v44 = vsub.f32 %v496_v30, %v646_v0  ;;  %787 = vst [vmem:[%s3325_s13] sm:$0xff] %v768_v43  ;;  %v648_v45 = vpop.f32.mrb[9].mxu1  ;;  %v770_v46 = vpop.f32.mrb[1].mxu0 }
 0x127   : > { %v666_v47 = vsub.f32 %v498_v32, %v648_v45  ;;  %788 = vst [vmem:[%s3325_s13 + $0x8] sm:$0xff] %v770_v46  ;;  %v650_v48 = vpop.f32.mrb[10].mxu1  ;;  %v772_v49 = vpop.f32.mrb[2].mxu0 }
 0x128   : > { %673 = vst [vmem:[%s3330_s16] sm:$0xff] %v665_v44  ;;  %v667_v50 = vsub.f32 %v500_v33, %v650_v48  ;;  %789 = vst [vmem:[%s3325_s13 + $0x10] sm:$0xff] %v772_v49  ;;  %v652_v51 = vpop.f32.mrb[11].mxu1  ;;  %v774_v52 = vpop.f32.mrb[3].mxu0 }
 0x129   : > { %674 = vst [vmem:[%s3330_s16 + $0x8] sm:$0xff] %v666_v47  ;;  %v668_v53 = vsub.f32 %v502_v35, %v652_v51  ;;  %790 = vst [vmem:[%s3325_s13 + $0x18] sm:$0xff] %v774_v52 }
 0x12a   : > { %675 = vst [vmem:[%s3330_s16 + $0x10] sm:$0xff] %v667_v50 }
 0x12b   : > { %676 = vst [vmem:[%s3330_s16 + $0x18] sm:$0xff] %v668_v53 }
 0x12d   : > { %v656_v54 = vpop.f32.mrb[12].mxu1  ;;  %v778_v55 = vpop.f32.mrb[4].mxu0 }
 0x12e   : > { %v669_v56 = vsub.f32 %v506_v39, %v656_v54  ;;  %791 = vst [vmem:[%s3325_s13 + $0x20] sm:$0xff] %v778_v55  ;;  %v658_v57 = vpop.f32.mrb[13].mxu1  ;;  %v780_v58 = vpop.f32.mrb[5].mxu0 }
 0x12f   : > { %v670_v59 = vsub.f32 %v508_v40, %v658_v57  ;;  %792 = vst [vmem:[%s3325_s13 + $0x28] sm:$0xff] %v780_v58  ;;  %v660_v60 = vpop.f32.mrb[14].mxu1  ;;  %v782_v61 = vpop.f32.mrb[6].mxu0 }
 0x130   : > { %677 = vst [vmem:[%s3330_s16 + $0x20] sm:$0xff] %v669_v56  ;;  %v671_v62 = vsub.f32 %v510_v41, %v660_v60  ;;  %793 = vst [vmem:[%s3325_s13 + $0x30] sm:$0xff] %v782_v61  ;;  %v662_v63 = vpop.f32.mrb[15].mxu1  ;;  %v784_v1 = vpop.f32.mrb[7].mxu0 }
 0x131   : > { %678 = vst [vmem:[%s3330_s16 + $0x28] sm:$0xff] %v670_v59  ;;  %v672_v2 = vsub.f32 %v512_v42, %v662_v63  ;;  %794 = vst [vmem:[%s3325_s13 + $0x38] sm:$0xff] %v784_v1 }
 0x132   : > { %679 = vst [vmem:[%s3330_s16 + $0x30] sm:$0xff] %v671_v62 }
 0x133   : > { %680 = vst [vmem:[%s3330_s16 + $0x38] sm:$0xff] %v672_v2 }
 0x145   : > { %v968_v3 = vpop.f32.mrb[16].mxu1 }
 0x146   : > { %v970_v4 = vpop.f32.mrb[17].mxu1 }
 0x147   : > { %v972_v5 = vpop.f32.mrb[18].mxu1 }
 0x148   : > { %v974_v6 = vpop.f32.mrb[19].mxu1 }
 0x14d   : > { %v978_v7 = vpop.f32.mrb[20].mxu1 }
 0x14e   : > { %v980_v8 = vpop.f32.mrb[21].mxu1 }
 0x14f   : > { %v982_v9 = vpop.f32.mrb[22].mxu1 }
 0x150   : > { %v984_v10 = vpop.f32.mrb[23].mxu1 }
 0x165   : > { %v1118_v11 = vpop.f32.mrb[24].mxu1  ;;  %v1241_v12 = vpop.f32.mrb[8].mxu0 }
 0x166   : > { %v1137_v13 = vsub.f32 %v968_v3, %v1118_v11  ;;  %2510 = vst [vmem:[%s3325_s13 + $0x40] sm:$0xff] %v1241_v12  ;;  %v1120_v14 = vpop.f32.mrb[25].mxu1  ;;  %v1243_v15 = vpop.f32.mrb[9].mxu0 }
 0x167   : > { %v1138_v16 = vsub.f32 %v970_v4, %v1120_v14  ;;  %2511 = vst [vmem:[%s3325_s13 + $0x48] sm:$0xff] %v1243_v15  ;;  %v1122_v17 = vpop.f32.mrb[26].mxu1  ;;  %v1245_v18 = vpop.f32.mrb[10].mxu0 }
 0x168   : > { %2496 = vst [vmem:[%s3330_s16 + $0x40] sm:$0xff] %v1137_v13  ;;  %v1139_v19 = vsub.f32 %v972_v5, %v1122_v17  ;;  %2512 = vst [vmem:[%s3325_s13 + $0x50] sm:$0xff] %v1245_v18  ;;  %v1124_v20 = vpop.f32.mrb[27].mxu1  ;;  %v1247_v21 = vpop.f32.mrb[11].mxu0 }
 0x169   : > { %2497 = vst [vmem:[%s3330_s16 + $0x48] sm:$0xff] %v1138_v16  ;;  %v1140_v22 = vsub.f32 %v974_v6, %v1124_v20  ;;  %2513 = vst [vmem:[%s3325_s13 + $0x58] sm:$0xff] %v1247_v21 }
 0x16a   : > { %2498 = vst [vmem:[%s3330_s16 + $0x50] sm:$0xff] %v1139_v19 }
 0x16b   : > { %2499 = vst [vmem:[%s3330_s16 + $0x58] sm:$0xff] %v1140_v22 }
 0x16d   : > { %v1128_v23 = vpop.f32.mrb[28].mxu1  ;;  %v1251_v24 = vpop.f32.mrb[12].mxu0 }
 0x16e   : > { %v1141_v25 = vsub.f32 %v978_v7, %v1128_v23  ;;  %2514 = vst [vmem:[%s3325_s13 + $0x60] sm:$0xff] %v1251_v24  ;;  %v1130_v26 = vpop.f32.mrb[29].mxu1  ;;  %v1253_v27 = vpop.f32.mrb[13].mxu0 }
 0x16f   : > { %v1142_v28 = vsub.f32 %v980_v8, %v1130_v26  ;;  %2515 = vst [vmem:[%s3325_s13 + $0x68] sm:$0xff] %v1253_v27  ;;  %v1132_v29 = vpop.f32.mrb[30].mxu1  ;;  %v1255_v30 = vpop.f32.mrb[14].mxu0 }
 0x170   : > { %2500 = vst [vmem:[%s3330_s16 + $0x60] sm:$0xff] %v1141_v25  ;;  %v1143_v31 = vsub.f32 %v982_v9, %v1132_v29  ;;  %2516 = vst [vmem:[%s3325_s13 + $0x70] sm:$0xff] %v1255_v30  ;;  %v1134_v32 = vpop.f32.mrb[31].mxu1  ;;  %v1257_v33 = vpop.f32.mrb[15].mxu0 }
 0x171   : > { %2501 = vst [vmem:[%s3330_s16 + $0x68] sm:$0xff] %v1142_v28  ;;  %v1144_v34 = vsub.f32 %v984_v10, %v1134_v32  ;;  %2517 = vst [vmem:[%s3325_s13 + $0x78] sm:$0xff] %v1257_v33 }
 0x172   : > { %2502 = vst [vmem:[%s3330_s16 + $0x70] sm:$0xff] %v1143_v31 }
 0x173   : > { %2503 = vst [vmem:[%s3330_s16 + $0x78] sm:$0xff] %v1144_v34 }
 0x185   : > { %v1442_v35 = vpop.f32.mrb[32].mxu1 }
 0x186   : > { %v1444_v36 = vpop.f32.mrb[33].mxu1 }
 0x187   : > { %v1446_v37 = vpop.f32.mrb[34].mxu1 }
 0x188   : > { %v1448_v38 = vpop.f32.mrb[35].mxu1 }
 0x18d   : > { %v1452_v39 = vpop.f32.mrb[36].mxu1 }
 0x18e   : > { %v1454_v40 = vpop.f32.mrb[37].mxu1 }
 0x18f   : > { %v1456_v41 = vpop.f32.mrb[38].mxu1 }
 0x190   : > { %v1458_v42 = vpop.f32.mrb[39].mxu1 }
 0x1a5   : > { %v1592_v0 = vpop.f32.mrb[40].mxu1  ;;  %v1715_v43 = vpop.f32.mrb[16].mxu0 }
 0x1a6   : > { %v1611_v44 = vsub.f32 %v1442_v35, %v1592_v0  ;;  %2612 = vst [vmem:[%s3325_s13 + $0x80] sm:$0xff] %v1715_v43  ;;  %v1594_v45 = vpop.f32.mrb[41].mxu1  ;;  %v1717_v46 = vpop.f32.mrb[17].mxu0 }
 0x1a7   : > { %v1612_v47 = vsub.f32 %v1444_v36, %v1594_v45  ;;  %2613 = vst [vmem:[%s3325_s13 + $0x88] sm:$0xff] %v1717_v46  ;;  %v1596_v48 = vpop.f32.mrb[42].mxu1  ;;  %v1719_v49 = vpop.f32.mrb[18].mxu0 }
 0x1a8   : > { %2598 = vst [vmem:[%s3330_s16 + $0x80] sm:$0xff] %v1611_v44  ;;  %v1613_v50 = vsub.f32 %v1446_v37, %v1596_v48  ;;  %2614 = vst [vmem:[%s3325_s13 + $0x90] sm:$0xff] %v1719_v49  ;;  %v1598_v51 = vpop.f32.mrb[43].mxu1  ;;  %v1721_v52 = vpop.f32.mrb[19].mxu0 }
 0x1a9   : > { %2599 = vst [vmem:[%s3330_s16 + $0x88] sm:$0xff] %v1612_v47  ;;  %v1614_v53 = vsub.f32 %v1448_v38, %v1598_v51  ;;  %2615 = vst [vmem:[%s3325_s13 + $0x98] sm:$0xff] %v1721_v52 }
 0x1aa   : > { %2600 = vst [vmem:[%s3330_s16 + $0x90] sm:$0xff] %v1613_v50 }
 0x1ab   : > { %2601 = vst [vmem:[%s3330_s16 + $0x98] sm:$0xff] %v1614_v53 }
 0x1ad   : > { %v1602_v54 = vpop.f32.mrb[44].mxu1  ;;  %v1725_v55 = vpop.f32.mrb[20].mxu0 }
 0x1ae   : > { %v1615_v56 = vsub.f32 %v1452_v39, %v1602_v54  ;;  %2616 = vst [vmem:[%s3325_s13 + $0xa0] sm:$0xff] %v1725_v55  ;;  %v1604_v57 = vpop.f32.mrb[45].mxu1  ;;  %v1727_v58 = vpop.f32.mrb[21].mxu0 }
 0x1af   : > { %v1616_v59 = vsub.f32 %v1454_v40, %v1604_v57  ;;  %2617 = vst [vmem:[%s3325_s13 + $0xa8] sm:$0xff] %v1727_v58  ;;  %v1606_v60 = vpop.f32.mrb[46].mxu1  ;;  %v1729_v61 = vpop.f32.mrb[22].mxu0 }
 0x1b0   : > { %2602 = vst [vmem:[%s3330_s16 + $0xa0] sm:$0xff] %v1615_v56  ;;  %v1617_v62 = vsub.f32 %v1456_v41, %v1606_v60  ;;  %2618 = vst [vmem:[%s3325_s13 + $0xb0] sm:$0xff] %v1729_v61  ;;  %v1608_v63 = vpop.f32.mrb[47].mxu1  ;;  %v1731_v1 = vpop.f32.mrb[23].mxu0 }
 0x1b1   : > { %2603 = vst [vmem:[%s3330_s16 + $0xa8] sm:$0xff] %v1616_v59  ;;  %v1618_v2 = vsub.f32 %v1458_v42, %v1608_v63  ;;  %2619 = vst [vmem:[%s3325_s13 + $0xb8] sm:$0xff] %v1731_v1 }
 0x1b2   : > { %2604 = vst [vmem:[%s3330_s16 + $0xb0] sm:$0xff] %v1617_v62 }
 0x1b3   : > { %2605 = vst [vmem:[%s3330_s16 + $0xb8] sm:$0xff] %v1618_v2 }
 0x1c5   : > { %v1916_v3 = vpop.f32.mrb[48].mxu1 }
 0x1c6   : > { %v1918_v4 = vpop.f32.mrb[49].mxu1 }
 0x1c7   : > { %v1920_v5 = vpop.f32.mrb[50].mxu1 }
 0x1c8   : > { %v1922_v6 = vpop.f32.mrb[51].mxu1 }
 0x1cd   : > { %v1926_v7 = vpop.f32.mrb[52].mxu1 }
 0x1ce   : > { %v1928_v8 = vpop.f32.mrb[53].mxu1 }
 0x1cf   : > { %v1930_v9 = vpop.f32.mrb[54].mxu1 }
 0x1d0   : > { %v1932_v10 = vpop.f32.mrb[55].mxu1 }
 0x1e5   : > { %v2066_v11 = vpop.f32.mrb[56].mxu1  ;;  %v2189_v12 = vpop.f32.mrb[24].mxu0 }
 0x1e6   : > { %v2085_v13 = vsub.f32 %v1916_v3, %v2066_v11  ;;  %2714 = vst [vmem:[%s3325_s13 + $0xc0] sm:$0xff] %v2189_v12  ;;  %v2068_v14 = vpop.f32.mrb[57].mxu1  ;;  %v2191_v15 = vpop.f32.mrb[25].mxu0 }
 0x1e7   : > { %v2086_v16 = vsub.f32 %v1918_v4, %v2068_v14  ;;  %2715 = vst [vmem:[%s3325_s13 + $0xc8] sm:$0xff] %v2191_v15  ;;  %v2070_v17 = vpop.f32.mrb[58].mxu1  ;;  %v2193_v18 = vpop.f32.mrb[26].mxu0 }
 0x1e8   : > { %2700 = vst [vmem:[%s3330_s16 + $0xc0] sm:$0xff] %v2085_v13  ;;  %v2087_v19 = vsub.f32 %v1920_v5, %v2070_v17  ;;  %2716 = vst [vmem:[%s3325_s13 + $0xd0] sm:$0xff] %v2193_v18  ;;  %v2072_v20 = vpop.f32.mrb[59].mxu1  ;;  %v2195_v21 = vpop.f32.mrb[27].mxu0 }
 0x1e9   : > { %2701 = vst [vmem:[%s3330_s16 + $0xc8] sm:$0xff] %v2086_v16  ;;  %v2088_v22 = vsub.f32 %v1922_v6, %v2072_v20  ;;  %2717 = vst [vmem:[%s3325_s13 + $0xd8] sm:$0xff] %v2195_v21 }
 0x1ea   : > { %2702 = vst [vmem:[%s3330_s16 + $0xd0] sm:$0xff] %v2087_v19 }
 0x1eb   : > { %2703 = vst [vmem:[%s3330_s16 + $0xd8] sm:$0xff] %v2088_v22 }
 0x1ed   : > { %v2076_v23 = vpop.f32.mrb[60].mxu1  ;;  %v2199_v24 = vpop.f32.mrb[28].mxu0 }
 0x1ee   : > { %v2089_v25 = vsub.f32 %v1926_v7, %v2076_v23  ;;  %2718 = vst [vmem:[%s3325_s13 + $0xe0] sm:$0xff] %v2199_v24  ;;  %v2078_v26 = vpop.f32.mrb[61].mxu1  ;;  %v2201_v27 = vpop.f32.mrb[29].mxu0 }
 0x1ef   : > { %v2090_v28 = vsub.f32 %v1928_v8, %v2078_v26  ;;  %2719 = vst [vmem:[%s3325_s13 + $0xe8] sm:$0xff] %v2201_v27  ;;  %v2080_v29 = vpop.f32.mrb[62].mxu1  ;;  %v2203_v30 = vpop.f32.mrb[30].mxu0 }
 0x1f0   : > { %2704 = vst [vmem:[%s3330_s16 + $0xe0] sm:$0xff] %v2089_v25  ;;  %v2091_v31 = vsub.f32 %v1930_v9, %v2080_v29  ;;  %2720 = vst [vmem:[%s3325_s13 + $0xf0] sm:$0xff] %v2203_v30  ;;  %v2082_v32 = vpop.f32.mrb[63].mxu1  ;;  %v2205_v33 = vpop.f32.mrb[31].mxu0 }
 0x1f1   : > { %2705 = vst [vmem:[%s3330_s16 + $0xe8] sm:$0xff] %v2090_v28  ;;  %v2092_v34 = vsub.f32 %v1932_v10, %v2082_v32  ;;  %2721 = vst [vmem:[%s3325_s13 + $0xf8] sm:$0xff] %v2205_v33 }
 0x1f2   : > { %2706 = vst [vmem:[%s3330_s16 + $0xf0] sm:$0xff] %v2091_v31 }
 0x1f3   : > { %2707 = vst [vmem:[%s3330_s16 + $0xf8] sm:$0xff] %v2092_v34 }
 0x1f4 PF: > { %s16_s18 = sadd.s32 1, %s2976_s18  }
 0x1f5   : > { %p13_p4 = scmp.ge.s32.totalorder %s16_s18, 4  }
 0x1f7   :  { %15 = sbr.rel (!%p13_p4) target bundleno = 1 (0x1), region = 105 }

// kernel: _lambda_.11
= control target key start
LH: loop header
LB: loop body
LE: loop exit
PB: predicated region body
PF: predicated region fallthrough
CT: control target
= control target key end

     0   :  { %s4152_s18 = smov 0   ;;  %s4750_s0 = inlined_call_operand.vmem [shape: bf16[8,32,240], index: 0, kind: input, shape index: {}]   ;;  %s4751_s1 = inlined_call_operand.vmem [shape: bf16[8,32,240], index: 1, kind: input, shape index: {}]   ;;  %s4752_s2 = inlined_call_operand.vmem [shape: bf16[8,240,256], index: 2, kind: input, shape index: {}]   ;;  %s4753_s3 = inlined_call_operand.vmem [shape: bf16[8,240,256], index: 3, kind: input, shape index: {}]   ;;  %s4754_s4 = inlined_call_operand.vmem [shape: f32[8,32,256], index: 4, kind: output, shape index: {0}]   ;;  %s4755_s5 = inlined_call_operand.vmem [shape: f32[8,32,256], index: 5, kind: output, shape index: {1}]  }
   0x1 LB: > { %s3082_s19 = sadd.s32 4294967295, %s4120_s18   ;;  %p3086_p0 = scmp.ge.s32.totalorder %s4120_s18, 1  ;;  %s4120_s18 = sphi %s4152_s18, %s16_s18  }
   0x2   : > { %p228_p1 = scmp.lt.s32.totalorder %s4120_s18, 3 }
   0x4   : > { %p229_p2 = pnand %p3086_p0, %p228_p1 }
   0x5   : > { %s3087_s20 = sshll.u32 (!%p229_p2), %s3082_s19, 2  ;;  %vm561_vm0 = vcmask (!%p229_p2), 916480  }
   0x6   : > { %232 = sbr.rel (%p229_p2) target bundleno = 724 (0x2d4), region = 36  ;;  %p283_p3 = scmp.lt.s32.totalorder (!%p229_p2), %s3087_s20, 7 }
   0xd   : > { %s4757_s20 = smov (!%p283_p3, %s3087_s20), 7 }
   0xe   : > { %s3697_s21 = smul.u32 240, %s4757_s20  ;;  %s3661_s22 = sshll.u32 %s4757_s20, 5 }
   0xf   : > { %s4169_s25 = scalar_lea.vmem %s4750_s0, %s3661_s22  ;;  %s4203_s9 = scalar_lea.vmem %s4751_s1, %s3661_s22 }
  0x10   : > { %s4176_s28 = scalar_lea.vmem %s4752_s2, %s3697_s21  ;;  %s4196_s6 = scalar_lea.vmem %s4753_s3, %s3697_s21  ;;  %v4206_v13 = vld [vmem:[%s4169_s25 + $0x4] ss:$8 sps:$4 sm:$0xff]   ;;  %v4234_v33 = vld [vmem:[%s4169_s25] ss:$8 sps:$4 sm:$0xff]   ;;  %v4242_v37 = vld [vmem:[%s4169_s25 + $0x14] ss:$8 sps:$4 sm:$0xff]  }
  0x11   : > { %v3706_v0 = vld [vmem:[%s4176_s28 + $0x4] ss:$8 sps:$4 sm:$0xff]   ;;  %v3708_v1 = vld [vmem:[%s4176_s28] ss:$8 sps:$4 sm:$0xff]   ;;  %v3709_v2 = vld [vmem:[%s4176_s28 + $0x14] ss:$8 sps:$4 sm:$0xff]   ;;  %3137 = vmatprep.mubr.msk.bf16.mxu1 %vm561_vm0, %v4206_v13 }
  0x12   : > { %568 = vmatprep.subr.bf16.mxu1 %v3706_v0  ;;  %864 = vmatprep.subr.bf16.mxu0 %v3706_v0  ;;  %v3711_v3 = vld [vmem:[%s4176_s28 + $0x10] ss:$8 sps:$4 sm:$0xff]   ;;  %v3712_v4 = vld [vmem:[%s4176_s28 + $0x24] ss:$8 sps:$4 sm:$0xff]   ;;  %v3714_v5 = vld [vmem:[%s4176_s28 + $0x20] ss:$8 sps:$4 sm:$0xff]  }
  0x13   : > { %569 = vmatpush1.bf16.msra.mxu1 %v3708_v1  ;;  %865 = vmatpush1.bf16.msra.mxu0 %v3708_v1  ;;  %v3715_v6 = vld [vmem:[%s4176_s28 + $0x34] ss:$8 sps:$4 sm:$0xff]   ;;  %v3717_v7 = vld [vmem:[%s4176_s28 + $0x30] ss:$8 sps:$4 sm:$0xff]   ;;  %v3718_v8 = vld [vmem:[%s4176_s28 + $0x44] ss:$8 sps:$4 sm:$0xff]  }
  0x14   : > { %570 = vmatprep.subr.bf16.mxu1 %v3709_v2  ;;  %866 = vmatprep.subr.bf16.mxu0 %v3709_v2  ;;  %v3720_v9 = vld [vmem:[%s4176_s28 + $0x40] ss:$8 sps:$4 sm:$0xff]   ;;  %v3721_v10 = vld [vmem:[%s4176_s28 + $0x54] ss:$8 sps:$4 sm:$0xff]   ;;  %v3723_v11 = vld [vmem:[%s4176_s28 + $0x50] ss:$8 sps:$4 sm:$0xff]  }
  0x15   : > { %v3724_v12 = vld [vmem:[%s4176_s28 + $0x64] ss:$8 sps:$4 sm:$0xff]   ;;  %v3726_v15 = vld [vmem:[%s4176_s28 + $0x60] ss:$8 sps:$4 sm:$0xff]   ;;  %v3727_v16 = vld [vmem:[%s4176_s28 + $0x74] ss:$8 sps:$4 sm:$0xff]  }
  0x16   : > { %v4211_v14 = vld [vmem:[%s4203_s9 + $0x4] ss:$8 sps:$4 sm:$0xff]   ;;  %v3729_v17 = vld [vmem:[%s4176_s28 + $0x70] ss:$8 sps:$4 sm:$0xff]   ;;  %v3732_v19 = vld [vmem:[%s4176_s28 + $0x80] ss:$8 sps:$4 sm:$0xff]  }
  0x17   : > { %571 = vmatpush1.bf16.msra.mxu1 %v3711_v3  ;;  %867 = vmatpush1.bf16.msra.mxu0 %v3711_v3  ;;  %v3730_v18 = vld [vmem:[%s4176_s28 + $0x84] ss:$8 sps:$4 sm:$0xff]   ;;  %v3733_v20 = vld [vmem:[%s4176_s28 + $0x94] ss:$8 sps:$4 sm:$0xff]   ;;  %v3735_v21 = vld [vmem:[%s4176_s28 + $0x90] ss:$8 sps:$4 sm:$0xff]  }
  0x18   : > { %572 = vmatprep.subr.bf16.mxu1 %v3712_v4  ;;  %868 = vmatprep.subr.bf16.mxu0 %v3712_v4  ;;  %v3736_v22 = vld [vmem:[%s4176_s28 + $0xa4] ss:$8 sps:$4 sm:$0xff]   ;;  %v3738_v23 = vld [vmem:[%s4176_s28 + $0xa0] ss:$8 sps:$4 sm:$0xff]   ;;  %v3739_v24 = vld [vmem:[%s4176_s28 + $0xb4] ss:$8 sps:$4 sm:$0xff]  }
  0x19   : > { %3175 = vmatprep.mubr.msk.bf16.mxu0 %vm561_vm0, %v4211_v14  ;;  %v3741_v25 = vld [vmem:[%s4176_s28 + $0xb0] ss:$8 sps:$4 sm:$0xff]   ;;  %v3742_v26 = vld [vmem:[%s4176_s28 + $0xc4] ss:$8 sps:$4 sm:$0xff]   ;;  %v3744_v27 = vld [vmem:[%s4176_s28 + $0xc0] ss:$8 sps:$4 sm:$0xff]  }
  0x1a   : > { %v3745_v28 = vld [vmem:[%s4176_s28 + $0xd4] ss:$8 sps:$4 sm:$0xff]   ;;  %v3747_v29 = vld [vmem:[%s4176_s28 + $0xd0] ss:$8 sps:$4 sm:$0xff]   ;;  %v3748_v30 = vld [vmem:[%s4176_s28 + $0xe4] ss:$8 sps:$4 sm:$0xff]  }
  0x1b   : > { %573 = vmatpush1.bf16.msra.mxu1 %v3714_v5  ;;  %869 = vmatpush1.bf16.msra.mxu0 %v3714_v5  ;;  %v3750_v31 = vld [vmem:[%s4176_s28 + $0xe0] ss:$8 sps:$4 sm:$0xff]   ;;  %v3756_v32 = vld [vmem:[%s4196_s6 + $0x4] ss:$8 sps:$4 sm:$0xff]   ;;  %v3762_v36 = vld [vmem:[%s4196_s6 + $0x14] ss:$8 sps:$4 sm:$0xff]  }
  0x1c   : > { %574 = vmatprep.subr.bf16.mxu1 %v3715_v6  ;;  %870 = vmatprep.subr.bf16.mxu0 %v3715_v6  ;;  %v4237_v34 = vld [vmem:[%s4203_s9] ss:$8 sps:$4 sm:$0xff]   ;;  %v4245_v38 = vld [vmem:[%s4203_s9 + $0x14] ss:$8 sps:$4 sm:$0xff]   ;;  %v3760_v39 = vld [vmem:[%s4196_s6 + $0x10] ss:$8 sps:$4 sm:$0xff]  }
  0x1d   : > { %v3754_v35 = vld [vmem:[%s4196_s6] ss:$8 sps:$4 sm:$0xff]   ;;  %v3765_v40 = vld [vmem:[%s4196_s6 + $0x24] ss:$8 sps:$4 sm:$0xff]   ;;  %v4256_v41 = vld [vmem:[%s4169_s25 + $0x10] ss:$8 sps:$4 sm:$0xff]  }
  0x1e   : > { %v4259_v42 = vld [vmem:[%s4203_s9 + $0x10] ss:$8 sps:$4 sm:$0xff]   ;;  %v3763_v43 = vld [vmem:[%s4196_s6 + $0x20] ss:$8 sps:$4 sm:$0xff]   ;;  %v3768_v44 = vld [vmem:[%s4196_s6 + $0x34] ss:$8 sps:$4 sm:$0xff]  }
  0x1f   : > { %575 = vmatpush1.bf16.msra.mxu1 %v3717_v7  ;;  %871 = vmatpush1.bf16.msra.mxu0 %v3717_v7  ;;  %v3766_v45 = vld [vmem:[%s4196_s6 + $0x30] ss:$8 sps:$4 sm:$0xff]   ;;  %v3771_v46 = vld [vmem:[%s4196_s6 + $0x44] ss:$8 sps:$4 sm:$0xff]   ;;  %v3769_v47 = vld [vmem:[%s4196_s6 + $0x40] ss:$8 sps:$4 sm:$0xff]  }
  0x20   : > { %576 = vmatprep.subr.bf16.mxu1 %v3718_v8  ;;  %872 = vmatprep.subr.bf16.mxu0 %v3718_v8  ;;  %v3774_v48 = vld [vmem:[%s4196_s6 + $0x54] ss:$8 sps:$4 sm:$0xff]   ;;  %v3772_v49 = vld [vmem:[%s4196_s6 + $0x50] ss:$8 sps:$4 sm:$0xff]   ;;  %v3777_v50 = vld [vmem:[%s4196_s6 + $0x64] ss:$8 sps:$4 sm:$0xff]  }
  0x21   : > { %v3775_v51 = vld [vmem:[%s4196_s6 + $0x60] ss:$8 sps:$4 sm:$0xff]   ;;  %v3780_v52 = vld [vmem:[%s4196_s6 + $0x74] ss:$8 sps:$4 sm:$0xff]   ;;  %v3778_v53 = vld [vmem:[%s4196_s6 + $0x70] ss:$8 sps:$4 sm:$0xff]  }
  0x22   : > { %v3783_v54 = vld [vmem:[%s4196_s6 + $0x84] ss:$8 sps:$4 sm:$0xff]   ;;  %v3781_v55 = vld [vmem:[%s4196_s6 + $0x80] ss:$8 sps:$4 sm:$0xff]   ;;  %v3786_v56 = vld [vmem:[%s4196_s6 + $0x94] ss:$8 sps:$4 sm:$0xff]  }
  0x23   : > { %577 = vmatpush1.bf16.msra.mxu1 %v3720_v9  ;;  %873 = vmatpush1.bf16.msra.mxu0 %v3720_v9  ;;  %v3784_v57 = vld [vmem:[%s4196_s6 + $0x90] ss:$8 sps:$4 sm:$0xff]   ;;  %v3789_v58 = vld [vmem:[%s4196_s6 + $0xa4] ss:$8 sps:$4 sm:$0xff]   ;;  %v3787_v59 = vld [vmem:[%s4196_s6 + $0xa0] ss:$8 sps:$4 sm:$0xff]  }
  0x24   : > { %578 = vmatprep.subr.bf16.mxu1 %v3721_v10  ;;  %874 = vmatprep.subr.bf16.mxu0 %v3721_v10  ;;  %v3792_v60 = vld [vmem:[%s4196_s6 + $0xb4] ss:$8 sps:$4 sm:$0xff]   ;;  %v3790_v61 = vld [vmem:[%s4196_s6 + $0xb0] ss:$8 sps:$4 sm:$0xff]   ;;  %v3795_v62 = vld [vmem:[%s4196_s6 + $0xc4] ss:$8 sps:$4 sm:$0xff]  }
  0x25   : > { %v3793_v63 = vld [vmem:[%s4196_s6 + $0xc0] ss:$8 sps:$4 sm:$0xff]   ;;  %v3803_v0 = vld [vmem:[%s4196_s6 + $0xd4] ss:$8 sps:$4 sm:$0xff]   ;;  %v3801_v1 = vld [vmem:[%s4196_s6 + $0xd0] ss:$8 sps:$4 sm:$0xff]  }
  0x26   : > { %v3807_v2 = vld [vmem:[%s4196_s6 + $0xe4] ss:$8 sps:$4 sm:$0xff]   ;;  %v3805_v3 = vld [vmem:[%s4196_s6 + $0xe0] ss:$8 sps:$4 sm:$0xff]   ;;  %v3810_v4 = vld [vmem:[%s4176_s28 + $0xf4] ss:$8 sps:$4 sm:$0xff]  }
  0x27   : > { %579 = vmatpush1.bf16.msra.mxu1 %v3723_v11  ;;  %875 = vmatpush1.bf16.msra.mxu0 %v3723_v11  ;;  %v3808_v5 = vld [vmem:[%s4176_s28 + $0xf0] ss:$8 sps:$4 sm:$0xff]   ;;  %v3813_v6 = vld [vmem:[%s4176_s28 + $0x104] ss:$8 sps:$4 sm:$0xff]   ;;  %v3811_v7 = vld [vmem:[%s4176_s28 + $0x100] ss:$8 sps:$4 sm:$0xff]  }
  0x28   : > { %580 = vmatprep.subr.bf16.mxu1 %v3724_v12  ;;  %876 = vmatprep.subr.bf16.mxu0 %v3724_v12  ;;  %v3816_v8 = vld [vmem:[%s4176_s28 + $0x114] ss:$8 sps:$4 sm:$0xff]   ;;  %v3814_v9 = vld [vmem:[%s4176_s28 + $0x110] ss:$8 sps:$4 sm:$0xff]   ;;  %v3819_v10 = vld [vmem:[%s4176_s28 + $0x124] ss:$8 sps:$4 sm:$0xff]  }
  0x29   : > { %v4306_v11 = vld [vmem:[%s4169_s25 + $0x24] ss:$8 sps:$4 sm:$0xff]   ;;  %s3663_s10 = sshll.u32 %s4757_s20, 6 }
  0x2a   : > { %v4309_v12 = vld [vmem:[%s4203_s9 + $0x24] ss:$8 sps:$4 sm:$0xff]   ;;  %s4515_s13 = scalar_lea.vmem %s4755_s5, %s3663_s10  ;;  %s4522_s16 = scalar_lea.vmem %s4754_s4, %s3663_s10 }
  0x2b   : > { %581 = vmatpush1.bf16.msra.mxu1 %v3726_v15  ;;  %877 = vmatpush1.bf16.msra.mxu0 %v3726_v15  ;;  %v3820_v15 = vld [vmem:[%s4176_s28 + $0x130] ss:$8 sps:$4 sm:$0xff]  }
  0x2c   : > { %582 = vmatprep.subr.bf16.mxu1 %v3727_v16  ;;  %878 = vmatprep.subr.bf16.mxu0 %v3727_v16  ;;  %v3825_v16 = vld [vmem:[%s4176_s28 + $0x144] ss:$8 sps:$4 sm:$0xff]  }
  0x2f   : > { %583 = vmatpush1.bf16.msra.mxu1 %v3729_v17  ;;  %879 = vmatpush1.bf16.msra.mxu0 %v3729_v17  ;;  %v3823_v17 = vld [vmem:[%s4176_s28 + $0x140] ss:$8 sps:$4 sm:$0xff]  }
  0x30   : > { %584 = vmatprep.subr.bf16.mxu1 %v3730_v18  ;;  %880 = vmatprep.subr.bf16.mxu0 %v3730_v18  ;;  %v3828_v18 = vld [vmem:[%s4176_s28 + $0x154] ss:$8 sps:$4 sm:$0xff]  }
  0x33   : > { %585 = vmatpush1.bf16.msra.mxu1 %v3732_v19  ;;  %881 = vmatpush1.bf16.msra.mxu0 %v3732_v19  ;;  %v3826_v19 = vld [vmem:[%s4176_s28 + $0x150] ss:$8 sps:$4 sm:$0xff]  }
  0x34   : > { %586 = vmatprep.subr.bf16.mxu1 %v3733_v20  ;;  %882 = vmatprep.subr.bf16.mxu0 %v3733_v20  ;;  %v3831_v20 = vld [vmem:[%s4176_s28 + $0x164] ss:$8 sps:$4 sm:$0xff]  }
  0x37   : > { %587 = vmatpush1.bf16.msra.mxu1 %v3735_v21  ;;  %883 = vmatpush1.bf16.msra.mxu0 %v3735_v21  ;;  %v3829_v21 = vld [vmem:[%s4176_s28 + $0x160] ss:$8 sps:$4 sm:$0xff]  }
  0x38   : > { %588 = vmatprep.subr.bf16.mxu1 %v3736_v22  ;;  %884 = vmatprep.subr.bf16.mxu0 %v3736_v22  ;;  %v3834_v22 = vld [vmem:[%s4176_s28 + $0x174] ss:$8 sps:$4 sm:$0xff]  }
  0x3b   : > { %589 = vmatpush1.bf16.msra.mxu1 %v3738_v23  ;;  %885 = vmatpush1.bf16.msra.mxu0 %v3738_v23  ;;  %v3832_v23 = vld [vmem:[%s4176_s28 + $0x170] ss:$8 sps:$4 sm:$0xff]  }
  0x3c   : > { %590 = vmatprep.subr.bf16.mxu1 %v3739_v24  ;;  %886 = vmatprep.subr.bf16.mxu0 %v3739_v24  ;;  %v3837_v24 = vld [vmem:[%s4176_s28 + $0x184] ss:$8 sps:$4 sm:$0xff]  }
  0x3f   : > { %591 = vmatpush1.bf16.msra.mxu1 %v3741_v25  ;;  %887 = vmatpush1.bf16.msra.mxu0 %v3741_v25  ;;  %v3835_v25 = vld [vmem:[%s4176_s28 + $0x180] ss:$8 sps:$4 sm:$0xff]  }
  0x40   : > { %592 = vmatprep.subr.bf16.mxu1 %v3742_v26  ;;  %888 = vmatprep.subr.bf16.mxu0 %v3742_v26  ;;  %v3840_v26 = vld [vmem:[%s4176_s28 + $0x194] ss:$8 sps:$4 sm:$0xff]  }
  0x43   : > { %593 = vmatpush1.bf16.msra.mxu1 %v3744_v27  ;;  %889 = vmatpush1.bf16.msra.mxu0 %v3744_v27  ;;  %v3838_v27 = vld [vmem:[%s4176_s28 + $0x190] ss:$8 sps:$4 sm:$0xff]  }
  0x44   : > { %594 = vmatprep.subr.bf16.mxu1 %v3745_v28  ;;  %890 = vmatprep.subr.bf16.mxu0 %v3745_v28  ;;  %v3843_v28 = vld [vmem:[%s4176_s28 + $0x1a4] ss:$8 sps:$4 sm:$0xff]  }
  0x47   : > { %595 = vmatpush1.bf16.msra.mxu1 %v3747_v29  ;;  %891 = vmatpush1.bf16.msra.mxu0 %v3747_v29  ;;  %v3841_v29 = vld [vmem:[%s4176_s28 + $0x1a0] ss:$8 sps:$4 sm:$0xff]  }
  0x48   : > { %596 = vmatprep.subr.bf16.mxu1 %v3748_v30  ;;  %892 = vmatprep.subr.bf16.mxu0 %v3748_v30  ;;  %v3846_v30 = vld [vmem:[%s4176_s28 + $0x1b4] ss:$8 sps:$4 sm:$0xff]  }
  0x4b   : > { %597 = vmatpush1.bf16.msra.mxu1 %v3750_v31  ;;  %893 = vmatpush1.bf16.msra.mxu0 %v3750_v31  ;;  %v3844_v31 = vld [vmem:[%s4176_s28 + $0x1b0] ss:$8 sps:$4 sm:$0xff]  }
  0x4c   : > { %795 = vmatprep.subr.bf16.mxu1 %v3756_v32  ;;  %917 = vmatprep.subr.bf16.mxu0 %v3756_v32  ;;  %v3849_v32 = vld [vmem:[%s4176_s28 + $0x1c4] ss:$8 sps:$4 sm:$0xff]  }
  0x4e   : > { %601 = vmatmul.mubr.bf16.vlgmr.msra.gmra.mrb[0].mxu1 %v4234_v33  ;;  %897 = vmatmul.mubr.bf16.vlgmr.msra.gmra.mrb[0].mxu0 %v4237_v34 }
  0x4f   : > { %796 = vmatpush1.bf16.msra.mxu1 %v3754_v35  ;;  %918 = vmatpush1.bf16.msra.mxu0 %v3754_v35  ;;  %v3850_v35 = vld [vmem:[%s4176_s28 + $0x1d0] ss:$8 sps:$4 sm:$0xff]  }
  0x50   : > { %797 = vmatprep.subr.bf16.mxu1 %v3762_v36  ;;  %919 = vmatprep.subr.bf16.mxu0 %v3762_v36  ;;  %v3858_v36 = vld [vmem:[%s4196_s6 + $0xf4] ss:$8 sps:$4 sm:$0xff]  }
  0x51   : > { %3138 = vmatprep.mubr.msk.bf16.mxu1 %vm561_vm0, %v4242_v37  ;;  %3176 = vmatprep.mubr.msk.bf16.mxu0 %vm561_vm0, %v4245_v38 }
  0x53   : > { %798 = vmatpush1.bf16.msra.mxu1 %v3760_v39  ;;  %920 = vmatpush1.bf16.msra.mxu0 %v3760_v39  ;;  %v3856_v39 = vld [vmem:[%s4196_s6 + $0xf0] ss:$8 sps:$4 sm:$0xff]  }
  0x54   : > { %799 = vmatprep.subr.bf16.mxu1 %v3765_v40  ;;  %921 = vmatprep.subr.bf16.mxu0 %v3765_v40  ;;  %v3864_v40 = vld [vmem:[%s4196_s6 + $0x104] ss:$8 sps:$4 sm:$0xff]  }
  0x56   : > { %611 = vmatmul.mubr.bf16.gmra.mrb[4].mxu1 %v4256_v41  ;;  %907 = vmatmul.mubr.bf16.gmra.mrb[4].mxu0 %v4259_v42 }
  0x57   : > { %800 = vmatpush1.bf16.msra.mxu1 %v3763_v43  ;;  %922 = vmatpush1.bf16.msra.mxu0 %v3763_v43  ;;  %v3862_v43 = vld [vmem:[%s4196_s6 + $0x100] ss:$8 sps:$4 sm:$0xff]  }
  0x58   : > { %801 = vmatprep.subr.bf16.mxu1 %v3768_v44  ;;  %923 = vmatprep.subr.bf16.mxu0 %v3768_v44  ;;  %v3867_v44 = vld [vmem:[%s4196_s6 + $0x114] ss:$8 sps:$4 sm:$0xff]  }
  0x59   : > { %3173 = vmatprep.mubr.msk.bf16.mxu1 %vm561_vm0, %v4211_v14  ;;  %3177 = vmatprep.mubr.msk.bf16.mxu0 %vm561_vm0, %v4206_v13  ;;  %v3817_v13 = vld [vmem:[%s4176_s28 + $0x120] ss:$8 sps:$4 sm:$0xff]   ;;  %v3822_v14 = vld [vmem:[%s4176_s28 + $0x134] ss:$8 sps:$4 sm:$0xff]  }
  0x5b   : > { %802 = vmatpush1.bf16.msra.mxu1 %v3766_v45  ;;  %924 = vmatpush1.bf16.msra.mxu0 %v3766_v45  ;;  %v4364_v45 = vld [vmem:[%s4169_s25 + $0x30] ss:$8 sps:$4 sm:$0xff]  }
  0x5c   : > { %803 = vmatprep.subr.bf16.mxu1 %v3771_v46  ;;  %925 = vmatprep.subr.bf16.mxu0 %v3771_v46  ;;  %v4367_v46 = vld [vmem:[%s4203_s9 + $0x30] ss:$8 sps:$4 sm:$0xff]  }
  0x5f   : > { %804 = vmatpush1.bf16.msra.mxu1 %v3769_v47  ;;  %926 = vmatpush1.bf16.msra.mxu0 %v3769_v47  ;;  %v3865_v47 = vld [vmem:[%s4196_s6 + $0x110] ss:$8 sps:$4 sm:$0xff]  }
  0x60   : > { %805 = vmatprep.subr.bf16.mxu1 %v3774_v48  ;;  %927 = vmatprep.subr.bf16.mxu0 %v3774_v48  ;;  %v3870_v48 = vld [vmem:[%s4196_s6 + $0x124] ss:$8 sps:$4 sm:$0xff]  }
  0x63   : > { %806 = vmatpush1.bf16.msra.mxu1 %v3772_v49  ;;  %928 = vmatpush1.bf16.msra.mxu0 %v3772_v49  ;;  %v3868_v49 = vld [vmem:[%s4196_s6 + $0x120] ss:$8 sps:$4 sm:$0xff]  }
  0x64   : > { %807 = vmatprep.subr.bf16.mxu1 %v3777_v50  ;;  %929 = vmatprep.subr.bf16.mxu0 %v3777_v50  ;;  %v3873_v50 = vld [vmem:[%s4196_s6 + $0x134] ss:$8 sps:$4 sm:$0xff]  }
  0x67   : > { %808 = vmatpush1.bf16.msra.mxu1 %v3775_v51  ;;  %930 = vmatpush1.bf16.msra.mxu0 %v3775_v51  ;;  %v3871_v51 = vld [vmem:[%s4196_s6 + $0x130] ss:$8 sps:$4 sm:$0xff]  }
  0x68   : > { %809 = vmatprep.subr.bf16.mxu1 %v3780_v52  ;;  %931 = vmatprep.subr.bf16.mxu0 %v3780_v52  ;;  %v3876_v52 = vld [vmem:[%s4196_s6 + $0x144] ss:$8 sps:$4 sm:$0xff]  }
  0x6b   : > { %810 = vmatpush1.bf16.msra.mxu1 %v3778_v53  ;;  %932 = vmatpush1.bf16.msra.mxu0 %v3778_v53  ;;  %v3874_v53 = vld [vmem:[%s4196_s6 + $0x140] ss:$8 sps:$4 sm:$0xff]  }
  0x6c   : > { %811 = vmatprep.subr.bf16.mxu1 %v3783_v54  ;;  %933 = vmatprep.subr.bf16.mxu0 %v3783_v54  ;;  %v3879_v54 = vld [vmem:[%s4196_s6 + $0x154] ss:$8 sps:$4 sm:$0xff]  }
  0x6f   : > { %812 = vmatpush1.bf16.msra.mxu1 %v3781_v55  ;;  %934 = vmatpush1.bf16.msra.mxu0 %v3781_v55  ;;  %v3877_v55 = vld [vmem:[%s4196_s6 + $0x150] ss:$8 sps:$4 sm:$0xff]  }
  0x70   : > { %813 = vmatprep.subr.bf16.mxu1 %v3786_v56  ;;  %935 = vmatprep.subr.bf16.mxu0 %v3786_v56  ;;  %v3882_v56 = vld [vmem:[%s4196_s6 + $0x164] ss:$8 sps:$4 sm:$0xff]  }
  0x73   : > { %814 = vmatpush1.bf16.msra.mxu1 %v3784_v57  ;;  %936 = vmatpush1.bf16.msra.mxu0 %v3784_v57  ;;  %v3880_v57 = vld [vmem:[%s4196_s6 + $0x160] ss:$8 sps:$4 sm:$0xff]  }
  0x74   : > { %815 = vmatprep.subr.bf16.mxu1 %v3789_v58  ;;  %937 = vmatprep.subr.bf16.mxu0 %v3789_v58  ;;  %v3885_v58 = vld [vmem:[%s4196_s6 + $0x174] ss:$8 sps:$4 sm:$0xff]  }
  0x77   : > { %816 = vmatpush1.bf16.msra.mxu1 %v3787_v59  ;;  %938 = vmatpush1.bf16.msra.mxu0 %v3787_v59  ;;  %v3883_v59 = vld [vmem:[%s4196_s6 + $0x170] ss:$8 sps:$4 sm:$0xff]  }
  0x78   : > { %817 = vmatprep.subr.bf16.mxu1 %v3792_v60  ;;  %939 = vmatprep.subr.bf16.mxu0 %v3792_v60  ;;  %v3888_v60 = vld [vmem:[%s4196_s6 + $0x184] ss:$8 sps:$4 sm:$0xff]  }
  0x7b   : > { %818 = vmatpush1.bf16.msra.mxu1 %v3790_v61  ;;  %940 = vmatpush1.bf16.msra.mxu0 %v3790_v61  ;;  %v3886_v61 = vld [vmem:[%s4196_s6 + $0x180] ss:$8 sps:$4 sm:$0xff]  }
  0x7c   : > { %819 = vmatprep.subr.bf16.mxu1 %v3795_v62  ;;  %941 = vmatprep.subr.bf16.mxu0 %v3795_v62  ;;  %v3891_v62 = vld [vmem:[%s4196_s6 + $0x194] ss:$8 sps:$4 sm:$0xff]  }
  0x7f   : > { %820 = vmatpush1.bf16.msra.mxu1 %v3793_v63  ;;  %942 = vmatpush1.bf16.msra.mxu0 %v3793_v63  ;;  %v3889_v63 = vld [vmem:[%s4196_s6 + $0x190] ss:$8 sps:$4 sm:$0xff]  }
  0x80   : > { %821 = vmatprep.subr.bf16.mxu1 %v3803_v0  ;;  %943 = vmatprep.subr.bf16.mxu0 %v3803_v0  ;;  %v3894_v0 = vld [vmem:[%s4196_s6 + $0x1a4] ss:$8 sps:$4 sm:$0xff]  }
  0x83   : > { %822 = vmatpush1.bf16.msra.mxu1 %v3801_v1  ;;  %944 = vmatpush1.bf16.msra.mxu0 %v3801_v1  ;;  %v3892_v1 = vld [vmem:[%s4196_s6 + $0x1a0] ss:$8 sps:$4 sm:$0xff]  }
  0x84   : > { %823 = vmatprep.subr.bf16.mxu1 %v3807_v2  ;;  %945 = vmatprep.subr.bf16.mxu0 %v3807_v2  ;;  %v3897_v2 = vld [vmem:[%s4196_s6 + $0x1b4] ss:$8 sps:$4 sm:$0xff]  }
  0x87   : > { %824 = vmatpush1.bf16.msra.mxu1 %v3805_v3  ;;  %946 = vmatpush1.bf16.msra.mxu0 %v3805_v3  ;;  %v3895_v3 = vld [vmem:[%s4196_s6 + $0x1b0] ss:$8 sps:$4 sm:$0xff]  }
  0x88   : > { %1224 = vmatprep.subr.bf16.mxu1 %v3810_v4  ;;  %1521 = vmatprep.subr.bf16.mxu0 %v3810_v4  ;;  %v3905_v4 = vld [vmem:[%s4196_s6 + $0x1c4] ss:$8 sps:$4 sm:$0xff]  }
  0x8a   : > { %828 = vmatmul.mubr.bf16.vlgmr.msra.gmra.mrb[8].mxu1 %v4237_v34  ;;  %950 = vmatmul.mubr.bf16.vlgmr.msra.gmra.mrb[0].mxu0 %v4234_v33  ;;  %v3847_v33 = vld [vmem:[%s4176_s28 + $0x1c0] ss:$8 sps:$4 sm:$0xff]   ;;  %v3852_v34 = vld [vmem:[%s4176_s28 + $0x1d4] ss:$8 sps:$4 sm:$0xff]  }
  0x8b   : > { %1225 = vmatpush1.bf16.msra.mxu1 %v3808_v5  ;;  %1522 = vmatpush1.bf16.msra.mxu0 %v3808_v5  ;;  %v3903_v5 = vld [vmem:[%s4196_s6 + $0x1c0] ss:$8 sps:$4 sm:$0xff]  }
  0x8c   : > { %1226 = vmatprep.subr.bf16.mxu1 %v3813_v6  ;;  %1523 = vmatprep.subr.bf16.mxu0 %v3813_v6  ;;  %v3909_v6 = vld [vmem:[%s4196_s6 + $0x1d4] ss:$8 sps:$4 sm:$0xff]  }
  0x8d   : > { %3174 = vmatprep.mubr.msk.bf16.mxu1 %vm561_vm0, %v4245_v38  ;;  %3178 = vmatprep.mubr.msk.bf16.mxu0 %vm561_vm0, %v4242_v37  ;;  %v4342_v37 = vld [vmem:[%s4169_s25 + $0x20] ss:$8 sps:$4 sm:$0xff]  }
  0x8e   : > { %v4345_v38 = vld [vmem:[%s4203_s9 + $0x20] ss:$8 sps:$4 sm:$0xff]  }
  0x8f   : > { %1227 = vmatpush1.bf16.msra.mxu1 %v3811_v7  ;;  %1524 = vmatpush1.bf16.msra.mxu0 %v3811_v7  ;;  %v3907_v7 = vld [vmem:[%s4196_s6 + $0x1d0] ss:$8 sps:$4 sm:$0xff]  }
  0x90   : > { %1228 = vmatprep.subr.bf16.mxu1 %v3816_v8  ;;  %1525 = vmatprep.subr.bf16.mxu0 %v3816_v8  ;;  %v3912_v8 = vld [vmem:[%s4176_s28 + $0x1e4] ss:$8 sps:$4 sm:$0xff]  }
  0x92   : > { %838 = vmatmul.mubr.bf16.gmra.mrb[12].mxu1 %v4259_v42  ;;  %960 = vmatmul.mubr.bf16.gmra.mrb[4].mxu0 %v4256_v41  ;;  %v4350_v41 = vld [vmem:[%s4169_s25 + $0x34] ss:$8 sps:$4 sm:$0xff]  }
  0x93   : > { %1229 = vmatpush1.bf16.msra.mxu1 %v3814_v9  ;;  %1526 = vmatpush1.bf16.msra.mxu0 %v3814_v9  ;;  %v4353_v42 = vld [vmem:[%s4203_s9 + $0x34] ss:$8 sps:$4 sm:$0xff]   ;;  %v3910_v9 = vld [vmem:[%s4176_s28 + $0x1e0] ss:$8 sps:$4 sm:$0xff]  }
  0x94   : > { %1230 = vmatprep.subr.bf16.mxu1 %v3819_v10  ;;  %1527 = vmatprep.subr.bf16.mxu0 %v3819_v10  ;;  %v3915_v10 = vld [vmem:[%s4176_s28 + $0x1f4] ss:$8 sps:$4 sm:$0xff]  }
  0x95   : > { %3281 = vmatprep.mubr.msk.bf16.mxu1 %vm561_vm0, %v4306_v11  ;;  %3327 = vmatprep.mubr.msk.bf16.mxu0 %vm561_vm0, %v4309_v12 }
  0x97   : > { %1231 = vmatpush1.bf16.msra.mxu1 %v3817_v13  ;;  %1528 = vmatpush1.bf16.msra.mxu0 %v3817_v13  ;;  %v3916_v13 = vld [vmem:[%s4176_s28 + $0x200] ss:$8 sps:$4 sm:$0xff]  }
  0x98   : > { %1232 = vmatprep.subr.bf16.mxu1 %v3822_v14  ;;  %1529 = vmatprep.subr.bf16.mxu0 %v3822_v14  ;;  %v3921_v14 = vld [vmem:[%s4176_s28 + $0x214] ss:$8 sps:$4 sm:$0xff]  }
  0x9b   : > { %1233 = vmatpush1.bf16.msra.mxu1 %v3820_v15  ;;  %1530 = vmatpush1.bf16.msra.mxu0 %v3820_v15  ;;  %v4414_v15 = vld [vmem:[%s4169_s25 + $0x44] ss:$8 sps:$4 sm:$0xff]  }
  0x9c   : > { %1234 = vmatprep.subr.bf16.mxu1 %v3825_v16  ;;  %1531 = vmatprep.subr.bf16.mxu0 %v3825_v16  ;;  %v4417_v16 = vld [vmem:[%s4203_s9 + $0x44] ss:$8 sps:$4 sm:$0xff]  }
  0x9f   : > { %1235 = vmatpush1.bf16.msra.mxu1 %v3823_v17  ;;  %1532 = vmatpush1.bf16.msra.mxu0 %v3823_v17  ;;  %v3919_v17 = vld [vmem:[%s4176_s28 + $0x210] ss:$8 sps:$4 sm:$0xff]  }
  0xa0   : > { %1236 = vmatprep.subr.bf16.mxu1 %v3828_v18  ;;  %1533 = vmatprep.subr.bf16.mxu0 %v3828_v18  ;;  %v3924_v18 = vld [vmem:[%s4176_s28 + $0x224] ss:$8 sps:$4 sm:$0xff]  }
  0xa3   : > { %1237 = vmatpush1.bf16.msra.mxu1 %v3826_v19  ;;  %1534 = vmatpush1.bf16.msra.mxu0 %v3826_v19  ;;  %v3922_v19 = vld [vmem:[%s4176_s28 + $0x220] ss:$8 sps:$4 sm:$0xff]  }
  0xa4   : > { %1238 = vmatprep.subr.bf16.mxu1 %v3831_v20  ;;  %1535 = vmatprep.subr.bf16.mxu0 %v3831_v20  ;;  %v3927_v20 = vld [vmem:[%s4176_s28 + $0x234] ss:$8 sps:$4 sm:$0xff]  }
  0xa7   : > { %1239 = vmatpush1.bf16.msra.mxu1 %v3829_v21  ;;  %1536 = vmatpush1.bf16.msra.mxu0 %v3829_v21  ;;  %v3925_v21 = vld [vmem:[%s4176_s28 + $0x230] ss:$8 sps:$4 sm:$0xff]  }
  0xa8   : > { %1240 = vmatprep.subr.bf16.mxu1 %v3834_v22  ;;  %1537 = vmatprep.subr.bf16.mxu0 %v3834_v22  ;;  %v3930_v22 = vld [vmem:[%s4176_s28 + $0x244] ss:$8 sps:$4 sm:$0xff]  }
  0xab   : > { %1241 = vmatpush1.bf16.msra.mxu1 %v3832_v23  ;;  %1538 = vmatpush1.bf16.msra.mxu0 %v3832_v23  ;;  %v3928_v23 = vld [vmem:[%s4176_s28 + $0x240] ss:$8 sps:$4 sm:$0xff]  }
  0xac   : > { %1242 = vmatprep.subr.bf16.mxu1 %v3837_v24  ;;  %1539 = vmatprep.subr.bf16.mxu0 %v3837_v24  ;;  %v3933_v24 = vld [vmem:[%s4176_s28 + $0x254] ss:$8 sps:$4 sm:$0xff]  }
  0xaf   : > { %1243 = vmatpush1.bf16.msra.mxu1 %v3835_v25  ;;  %1540 = vmatpush1.bf16.msra.mxu0 %v3835_v25  ;;  %v3931_v25 = vld [vmem:[%s4176_s28 + $0x250] ss:$8 sps:$4 sm:$0xff]  }
  0xb0   : > { %1244 = vmatprep.subr.bf16.mxu1 %v3840_v26  ;;  %1541 = vmatprep.subr.bf16.mxu0 %v3840_v26  ;;  %v3936_v26 = vld [vmem:[%s4176_s28 + $0x264] ss:$8 sps:$4 sm:$0xff]  }
  0xb3   : > { %1245 = vmatpush1.bf16.msra.mxu1 %v3838_v27  ;;  %1542 = vmatpush1.bf16.msra.mxu0 %v3838_v27  ;;  %v3934_v27 = vld [vmem:[%s4176_s28 + $0x260] ss:$8 sps:$4 sm:$0xff]  }
  0xb4   : > { %1246 = vmatprep.subr.bf16.mxu1 %v3843_v28  ;;  %1543 = vmatprep.subr.bf16.mxu0 %v3843_v28  ;;  %v3939_v28 = vld [vmem:[%s4176_s28 + $0x274] ss:$8 sps:$4 sm:$0xff]  }
  0xb7   : > { %1247 = vmatpush1.bf16.msra.mxu1 %v3841_v29  ;;  %1544 = vmatpush1.bf16.msra.mxu0 %v3841_v29 }
  0xb8   : > { %1248 = vmatprep.subr.bf16.mxu1 %v3846_v30  ;;  %1545 = vmatprep.subr.bf16.mxu0 %v3846_v30 }
  0xbb   : > { %1249 = vmatpush1.bf16.msra.mxu1 %v3844_v31  ;;  %1546 = vmatpush1.bf16.msra.mxu0 %v3844_v31 }
  0xbc   : > { %1250 = vmatprep.subr.bf16.mxu1 %v3849_v32  ;;  %1547 = vmatprep.subr.bf16.mxu0 %v3849_v32  ;;  %v3937_v32 = vld [vmem:[%s4176_s28 + $0x270] ss:$8 sps:$4 sm:$0xff]  }
  0xbf   : > { %1251 = vmatpush1.bf16.msra.mxu1 %v3847_v33  ;;  %1548 = vmatpush1.bf16.msra.mxu0 %v3847_v33 }
  0xc0   : > { %1252 = vmatprep.subr.bf16.mxu1 %v3852_v34  ;;  %1549 = vmatprep.subr.bf16.mxu0 %v3852_v34  ;;  %v3942_v34 = vld [vmem:[%s4176_s28 + $0x284] ss:$8 sps:$4 sm:$0xff]  }
  0xc3   : > { %1253 = vmatpush1.bf16.msra.mxu1 %v3850_v35  ;;  %1550 = vmatpush1.bf16.msra.mxu0 %v3850_v35  ;;  %v3940_v35 = vld [vmem:[%s4176_s28 + $0x280] ss:$8 sps:$4 sm:$0xff]  }
  0xc4   : > { %1451 = vmatprep.subr.bf16.mxu1 %v3858_v36  ;;  %1574 = vmatprep.subr.bf16.mxu0 %v3858_v36  ;;  %v3945_v36 = vld [vmem:[%s4176_s28 + $0x294] ss:$8 sps:$4 sm:$0xff]  }
  0xc6   : > { %1257 = vmatmul.mubr.bf16.vlgmr.msra.gmra.mrb[16].mxu1 %v4342_v37  ;;  %1554 = vmatmul.mubr.bf16.vlgmr.msra.gmra.mrb[8].mxu0 %v4345_v38 }
  0xc7   : > { %1452 = vmatpush1.bf16.msra.mxu1 %v3856_v39  ;;  %1575 = vmatpush1.bf16.msra.mxu0 %v3856_v39  ;;  %v3943_v39 = vld [vmem:[%s4176_s28 + $0x290] ss:$8 sps:$4 sm:$0xff]  }
  0xc8   : > { %1453 = vmatprep.subr.bf16.mxu1 %v3864_v40  ;;  %1576 = vmatprep.subr.bf16.mxu0 %v3864_v40 }
  0xc9   : > { %3282 = vmatprep.mubr.msk.bf16.mxu1 %vm561_vm0, %v4350_v41  ;;  %3328 = vmatprep.mubr.msk.bf16.mxu0 %vm561_vm0, %v4353_v42 }
  0xcb   : > { %1454 = vmatpush1.bf16.msra.mxu1 %v3862_v43  ;;  %1577 = vmatpush1.bf16.msra.mxu0 %v3862_v43  ;;  %v3946_v43 = vld [vmem:[%s4176_s28 + $0x2a0] ss:$8 sps:$4 sm:$0xff]  }
  0xcc   : > { %1455 = vmatprep.subr.bf16.mxu1 %v3867_v44  ;;  %1578 = vmatprep.subr.bf16.mxu0 %v3867_v44  ;;  %v3951_v44 = vld [vmem:[%s4176_s28 + $0x2b4] ss:$8 sps:$4 sm:$0xff]  }
  0xce   : > { %1267 = vmatmul.mubr.bf16.gmra.mrb[20].mxu1 %v4364_v45  ;;  %1564 = vmatmul.mubr.bf16.gmra.mrb[12].mxu0 %v4367_v46 }
  0xcf   : > { %1456 = vmatpush1.bf16.msra.mxu1 %v3865_v47  ;;  %1579 = vmatpush1.bf16.msra.mxu0 %v3865_v47  ;;  %v3952_v47 = vld [vmem:[%s4176_s28 + $0x2c0] ss:$8 sps:$4 sm:$0xff]  }
  0xd0   : > { %1457 = vmatprep.subr.bf16.mxu1 %v3870_v48  ;;  %1580 = vmatprep.subr.bf16.mxu0 %v3870_v48  ;;  %v3960_v48 = vld [vmem:[%s4196_s6 + $0x1e4] ss:$8 sps:$4 sm:$0xff]  }
  0xd1   : > { %3317 = vmatprep.mubr.msk.bf16.mxu1 %vm561_vm0, %v4309_v12  ;;  %3329 = vmatprep.mubr.msk.bf16.mxu0 %vm561_vm0, %v4306_v11  ;;  %v3913_v11 = vld [vmem:[%s4176_s28 + $0x1f0] ss:$8 sps:$4 sm:$0xff]   ;;  %v3918_v12 = vld [vmem:[%s4176_s28 + $0x204] ss:$8 sps:$4 sm:$0xff]  }
  0xd3   : > { %1458 = vmatpush1.bf16.msra.mxu1 %v3868_v49  ;;  %1581 = vmatpush1.bf16.msra.mxu0 %v3868_v49  ;;  %v4466_v49 = vld [vmem:[%s4169_s25 + $0x40] ss:$8 sps:$4 sm:$0xff]  }
  0xd4   : > { %1459 = vmatprep.subr.bf16.mxu1 %v3873_v50  ;;  %1582 = vmatprep.subr.bf16.mxu0 %v3873_v50  ;;  %v4469_v50 = vld [vmem:[%s4203_s9 + $0x40] ss:$8 sps:$4 sm:$0xff]  }
  0xd7   : > { %1460 = vmatpush1.bf16.msra.mxu1 %v3871_v51  ;;  %1583 = vmatpush1.bf16.msra.mxu0 %v3871_v51  ;;  %v3958_v51 = vld [vmem:[%s4196_s6 + $0x1e0] ss:$8 sps:$4 sm:$0xff]  }
  0xd8   : > { %1461 = vmatprep.subr.bf16.mxu1 %v3876_v52  ;;  %1584 = vmatprep.subr.bf16.mxu0 %v3876_v52  ;;  %v3966_v52 = vld [vmem:[%s4196_s6 + $0x1f4] ss:$8 sps:$4 sm:$0xff]  }
  0xdb   : > { %1462 = vmatpush1.bf16.msra.mxu1 %v3874_v53  ;;  %1585 = vmatpush1.bf16.msra.mxu0 %v3874_v53  ;;  %v4474_v53 = vld [vmem:[%s4169_s25 + $0x54] ss:$8 sps:$4 sm:$0xff]  }
  0xdc   : > { %1463 = vmatprep.subr.bf16.mxu1 %v3879_v54  ;;  %1586 = vmatprep.subr.bf16.mxu0 %v3879_v54  ;;  %v4477_v54 = vld [vmem:[%s4203_s9 + $0x54] ss:$8 sps:$4 sm:$0xff]  }
  0xdf   : > { %1464 = vmatpush1.bf16.msra.mxu1 %v3877_v55  ;;  %1587 = vmatpush1.bf16.msra.mxu0 %v3877_v55  ;;  %v3964_v55 = vld [vmem:[%s4196_s6 + $0x1f0] ss:$8 sps:$4 sm:$0xff]  }
  0xe0   : > { %1465 = vmatprep.subr.bf16.mxu1 %v3882_v56  ;;  %1588 = vmatprep.subr.bf16.mxu0 %v3882_v56  ;;  %v3969_v56 = vld [vmem:[%s4196_s6 + $0x204] ss:$8 sps:$4 sm:$0xff]  }
  0xe3   : > { %1466 = vmatpush1.bf16.msra.mxu1 %v3880_v57  ;;  %1589 = vmatpush1.bf16.msra.mxu0 %v3880_v57  ;;  %v4488_v57 = vld [vmem:[%s4169_s25 + $0x50] ss:$8 sps:$4 sm:$0xff]  }
  0xe4   : > { %1467 = vmatprep.subr.bf16.mxu1 %v3885_v58  ;;  %1590 = vmatprep.subr.bf16.mxu0 %v3885_v58  ;;  %v4491_v58 = vld [vmem:[%s4203_s9 + $0x50] ss:$8 sps:$4 sm:$0xff]  }
  0xe7   : > { %1468 = vmatpush1.bf16.msra.mxu1 %v3883_v59  ;;  %1591 = vmatpush1.bf16.msra.mxu0 %v3883_v59  ;;  %v3967_v59 = vld [vmem:[%s4196_s6 + $0x200] ss:$8 sps:$4 sm:$0xff]  }
  0xe8   : > { %1469 = vmatprep.subr.bf16.mxu1 %v3888_v60  ;;  %1592 = vmatprep.subr.bf16.mxu0 %v3888_v60  ;;  %v3972_v60 = vld [vmem:[%s4196_s6 + $0x214] ss:$8 sps:$4 sm:$0xff]  }
  0xeb   : > { %1470 = vmatpush1.bf16.msra.mxu1 %v3886_v61  ;;  %1593 = vmatpush1.bf16.msra.mxu0 %v3886_v61  ;;  %v3970_v61 = vld [vmem:[%s4196_s6 + $0x210] ss:$8 sps:$4 sm:$0xff]  }
  0xec   : > { %1471 = vmatprep.subr.bf16.mxu1 %v3891_v62  ;;  %1594 = vmatprep.subr.bf16.mxu0 %v3891_v62  ;;  %v3975_v62 = vld [vmem:[%s4196_s6 + $0x224] ss:$8 sps:$4 sm:$0xff]  }
  0xef   : > { %1472 = vmatpush1.bf16.msra.mxu1 %v3889_v63  ;;  %1595 = vmatpush1.bf16.msra.mxu0 %v3889_v63  ;;  %v3973_v63 = vld [vmem:[%s4196_s6 + $0x220] ss:$8 sps:$4 sm:$0xff]  }
  0xf0   : > { %1473 = vmatprep.subr.bf16.mxu1 %v3894_v0  ;;  %1596 = vmatprep.subr.bf16.mxu0 %v3894_v0  ;;  %v3978_v0 = vld [vmem:[%s4196_s6 + $0x234] ss:$8 sps:$4 sm:$0xff]  }
  0xf3   : > { %1474 = vmatpush1.bf16.msra.mxu1 %v3892_v1  ;;  %1597 = vmatpush1.bf16.msra.mxu0 %v3892_v1  ;;  %v3976_v1 = vld [vmem:[%s4196_s6 + $0x230] ss:$8 sps:$4 sm:$0xff]  }
  0xf4   : > { %1475 = vmatprep.subr.bf16.mxu1 %v3897_v2  ;;  %1598 = vmatprep.subr.bf16.mxu0 %v3897_v2  ;;  %v3981_v2 = vld [vmem:[%s4196_s6 + $0x244] ss:$8 sps:$4 sm:$0xff]  }
  0xf7   : > { %1476 = vmatpush1.bf16.msra.mxu1 %v3895_v3  ;;  %1599 = vmatpush1.bf16.msra.mxu0 %v3895_v3  ;;  %v3979_v3 = vld [vmem:[%s4196_s6 + $0x240] ss:$8 sps:$4 sm:$0xff]  }
  0xf8   : > { %1477 = vmatprep.subr.bf16.mxu1 %v3905_v4  ;;  %1600 = vmatprep.subr.bf16.mxu0 %v3905_v4  ;;  %v3984_v4 = vld [vmem:[%s4196_s6 + $0x254] ss:$8 sps:$4 sm:$0xff]  }
  0xfb   : > { %1478 = vmatpush1.bf16.msra.mxu1 %v3903_v5  ;;  %1601 = vmatpush1.bf16.msra.mxu0 %v3903_v5  ;;  %v3982_v5 = vld [vmem:[%s4196_s6 + $0x250] ss:$8 sps:$4 sm:$0xff]  }
  0xfc   : > { %1479 = vmatprep.subr.bf16.mxu1 %v3909_v6  ;;  %1602 = vmatprep.subr.bf16.mxu0 %v3909_v6  ;;  %v3987_v6 = vld [vmem:[%s4196_s6 + $0x264] ss:$8 sps:$4 sm:$0xff]  }
  0xff   : > { %1480 = vmatpush1.bf16.msra.mxu1 %v3907_v7  ;;  %1603 = vmatpush1.bf16.msra.mxu0 %v3907_v7  ;;  %v3985_v7 = vld [vmem:[%s4196_s6 + $0x260] ss:$8 sps:$4 sm:$0xff]  }
 0x100   : > { %1882 = vmatprep.subr.bf16.mxu1 %v3912_v8  ;;  %2179 = vmatprep.subr.bf16.mxu0 %v3912_v8  ;;  %v3990_v8 = vld [vmem:[%s4196_s6 + $0x274] ss:$8 sps:$4 sm:$0xff]  }
 0x102   : > { %1484 = vmatmul.mubr.bf16.vlgmr.msra.gmra.mrb[24].mxu1 %v4345_v38  ;;  %1607 = vmatmul.mubr.bf16.vlgmr.msra.gmra.mrb[8].mxu0 %v4342_v37 }
 0x103   : > { %1883 = vmatpush1.bf16.msra.mxu1 %v3910_v9  ;;  %2180 = vmatpush1.bf16.msra.mxu0 %v3910_v9 }
 0x104   : > { %1884 = vmatprep.subr.bf16.mxu1 %v3915_v10  ;;  %2181 = vmatprep.subr.bf16.mxu0 %v3915_v10 }
 0x105   : > { %3318 = vmatprep.mubr.msk.bf16.mxu1 %vm561_vm0, %v4353_v42  ;;  %3330 = vmatprep.mubr.msk.bf16.mxu0 %vm561_vm0, %v4350_v41  ;;  %v3948_v41 = vld [vmem:[%s4176_s28 + $0x2a4] ss:$8 sps:$4 sm:$0xff]  }
 0x107   : > { %1885 = vmatpush1.bf16.msra.mxu1 %v3913_v11  ;;  %2182 = vmatpush1.bf16.msra.mxu0 %v3913_v11 }
 0x108   : > { %1886 = vmatprep.subr.bf16.mxu1 %v3918_v12  ;;  %2183 = vmatprep.subr.bf16.mxu0 %v3918_v12 }
 0x10a   : > { %1494 = vmatmul.mubr.bf16.gmra.mrb[28].mxu1 %v4367_v46  ;;  %1617 = vmatmul.mubr.bf16.gmra.mrb[12].mxu0 %v4364_v45  ;;  %v3949_v45 = vld [vmem:[%s4176_s28 + $0x2b0] ss:$8 sps:$4 sm:$0xff]   ;;  %v3954_v46 = vld [vmem:[%s4176_s28 + $0x2c4] ss:$8 sps:$4 sm:$0xff]  }
 0x10b   : > { %1887 = vmatpush1.bf16.msra.mxu1 %v3916_v13  ;;  %2184 = vmatpush1.bf16.msra.mxu0 %v3916_v13 }
 0x10c   : > { %1888 = vmatprep.subr.bf16.mxu1 %v3921_v14  ;;  %2185 = vmatprep.subr.bf16.mxu0 %v3921_v14 }
 0x10d   : > { %3441 = vmatprep.mubr.msk.bf16.mxu1 %vm561_vm0, %v4414_v15  ;;  %3487 = vmatprep.mubr.msk.bf16.mxu0 %vm561_vm0, %v4417_v16 }
 0x10f   : > { %1889 = vmatpush1.bf16.msra.mxu1 %v3919_v17  ;;  %2186 = vmatpush1.bf16.msra.mxu0 %v3919_v17  ;;  %v3988_v17 = vld [vmem:[%s4196_s6 + $0x270] ss:$8 sps:$4 sm:$0xff]  }
 0x110   : > { %1890 = vmatprep.subr.bf16.mxu1 %v3924_v18  ;;  %2187 = vmatprep.subr.bf16.mxu0 %v3924_v18 }
 0x113   : > { %1891 = vmatpush1.bf16.msra.mxu1 %v3922_v19  ;;  %2188 = vmatpush1.bf16.msra.mxu0 %v3922_v19 }
 0x114   : > { %1892 = vmatprep.subr.bf16.mxu1 %v3927_v20  ;;  %2189 = vmatprep.subr.bf16.mxu0 %v3927_v20 }
 0x117   : > { %1893 = vmatpush1.bf16.msra.mxu1 %v3925_v21  ;;  %2190 = vmatpush1.bf16.msra.mxu0 %v3925_v21  ;;  %v3993_v21 = vld [vmem:[%s4196_s6 + $0x284] ss:$8 sps:$4 sm:$0xff]  }
 0x118   : > { %1894 = vmatprep.subr.bf16.mxu1 %v3930_v22  ;;  %2191 = vmatprep.subr.bf16.mxu0 %v3930_v22 }
 0x11b   : > { %1895 = vmatpush1.bf16.msra.mxu1 %v3928_v23  ;;  %2192 = vmatpush1.bf16.msra.mxu0 %v3928_v23  ;;  %v3991_v23 = vld [vmem:[%s4196_s6 + $0x280] ss:$8 sps:$4 sm:$0xff]  }
 0x11c   : > { %1896 = vmatprep.subr.bf16.mxu1 %v3933_v24  ;;  %2193 = vmatprep.subr.bf16.mxu0 %v3933_v24  ;;  %v3996_v24 = vld [vmem:[%s4196_s6 + $0x294] ss:$8 sps:$4 sm:$0xff]  }
 0x11f   : > { %1897 = vmatpush1.bf16.msra.mxu1 %v3931_v25  ;;  %2194 = vmatpush1.bf16.msra.mxu0 %v3931_v25 }
 0x120   : > { %1898 = vmatprep.subr.bf16.mxu1 %v3936_v26  ;;  %2195 = vmatprep.subr.bf16.mxu0 %v3936_v26 }
 0x121   : > { %v4437_v29 = vpop.f32.mrb[0].mxu1 }
 0x122   : > { %v4439_v30 = vpop.f32.mrb[1].mxu1 }
 0x123   : > { %v4441_v31 = vpop.f32.mrb[2].mxu1  ;;  %1899 = vmatpush1.bf16.msra.mxu1 %v3934_v27  ;;  %2196 = vmatpush1.bf16.msra.mxu0 %v3934_v27 }
 0x124   : > { %v4444_v33 = vpop.f32.mrb[3].mxu1  ;;  %1900 = vmatprep.subr.bf16.mxu1 %v3939_v28  ;;  %2197 = vmatprep.subr.bf16.mxu0 %v3939_v28 }
 0x127   : > { %1901 = vmatpush1.bf16.msra.mxu1 %v3937_v32  ;;  %2198 = vmatpush1.bf16.msra.mxu0 %v3937_v32 }
 0x128   : > { %1902 = vmatprep.subr.bf16.mxu1 %v3942_v34  ;;  %2199 = vmatprep.subr.bf16.mxu0 %v3942_v34 }
 0x129   : > { %v4449_v37 = vpop.f32.mrb[4].mxu1 }
 0x12a   : > { %v4451_v38 = vpop.f32.mrb[5].mxu1 }
 0x12b   : > { %1903 = vmatpush1.bf16.msra.mxu1 %v3940_v35  ;;  %2200 = vmatpush1.bf16.msra.mxu0 %v3940_v35  ;;  %v4454_v40 = vpop.f32.mrb[6].mxu1 }
 0x12c   : > { %1904 = vmatprep.subr.bf16.mxu1 %v3945_v36  ;;  %2201 = vmatprep.subr.bf16.mxu0 %v3945_v36  ;;  %v4457_v42 = vpop.f32.mrb[7].mxu1 }
 0x12f   : > { %1905 = vmatpush1.bf16.msra.mxu1 %v3943_v39  ;;  %2202 = vmatpush1.bf16.msra.mxu0 %v3943_v39  ;;  %v3997_v39 = vld [vmem:[%s4196_s6 + $0x2a0] ss:$8 sps:$4 sm:$0xff]  }
 0x130   : > { %1906 = vmatprep.subr.bf16.mxu1 %v3948_v41  ;;  %2203 = vmatprep.subr.bf16.mxu0 %v3948_v41  ;;  %v4005_v41 = vld [vmem:[%s4196_s6 + $0x2b0] ss:$8 sps:$4 sm:$0xff]  }
 0x133   : > { %1907 = vmatpush1.bf16.msra.mxu1 %v3946_v43  ;;  %2204 = vmatpush1.bf16.msra.mxu0 %v3946_v43  ;;  %v4011_v43 = vld [vmem:[%s4196_s6 + $0x2c4] ss:$8 sps:$4 sm:$0xff]  }
 0x134   : > { %1908 = vmatprep.subr.bf16.mxu1 %v3951_v44  ;;  %2205 = vmatprep.subr.bf16.mxu0 %v3951_v44  ;;  %v4014_v44 = vld [vmem:[%s4176_s28 + $0x2d4] ss:$8 sps:$4 sm:$0xff]  }
 0x137   : > { %1909 = vmatpush1.bf16.msra.mxu1 %v3949_v45  ;;  %2206 = vmatpush1.bf16.msra.mxu0 %v3949_v45  ;;  %v4012_v45 = vld [vmem:[%s4176_s28 + $0x2d0] ss:$8 sps:$4 sm:$0xff]  }
 0x138   : > { %1910 = vmatprep.subr.bf16.mxu1 %v3954_v46  ;;  %2207 = vmatprep.subr.bf16.mxu0 %v3954_v46  ;;  %v4017_v46 = vld [vmem:[%s4176_s28 + $0x2e4] ss:$8 sps:$4 sm:$0xff]  }
 0x13b   : > { %1911 = vmatpush1.bf16.msra.mxu1 %v3952_v47  ;;  %2208 = vmatpush1.bf16.msra.mxu0 %v3952_v47  ;;  %v4015_v47 = vld [vmem:[%s4176_s28 + $0x2e0] ss:$8 sps:$4 sm:$0xff]  }
 0x13c   : > { %2109 = vmatprep.subr.bf16.mxu1 %v3960_v48  ;;  %2232 = vmatprep.subr.bf16.mxu0 %v3960_v48  ;;  %v4020_v48 = vld [vmem:[%s4176_s28 + $0x2f4] ss:$8 sps:$4 sm:$0xff]  }
 0x13e   : > { %1915 = vmatmul.mubr.bf16.vlgmr.msra.gmra.mrb[32].mxu1 %v4466_v49  ;;  %2212 = vmatmul.mubr.bf16.vlgmr.msra.gmra.mrb[16].mxu0 %v4469_v50 }
 0x13f   : > { %2110 = vmatpush1.bf16.msra.mxu1 %v3958_v51  ;;  %2233 = vmatpush1.bf16.msra.mxu0 %v3958_v51  ;;  %v4573_v51 = vld [vmem:[%s4169_s25 + $0x64] ss:$8 sps:$4 sm:$0xff]  }
 0x140   : > { %2111 = vmatprep.subr.bf16.mxu1 %v3966_v52  ;;  %2234 = vmatprep.subr.bf16.mxu0 %v3966_v52  ;;  %v4576_v52 = vld [vmem:[%s4203_s9 + $0x64] ss:$8 sps:$4 sm:$0xff]  }
 0x141   : > { %3442 = vmatprep.mubr.msk.bf16.mxu1 %vm561_vm0, %v4474_v53  ;;  %3488 = vmatprep.mubr.msk.bf16.mxu0 %vm561_vm0, %v4477_v54 }
 0x143   : > { %2112 = vmatpush1.bf16.msra.mxu1 %v3964_v55  ;;  %2235 = vmatpush1.bf16.msra.mxu0 %v3964_v55  ;;  %v4024_v55 = vld [vmem:[%s4176_s28 + $0x310] ss:$8 sps:$4 sm:$0xff]  }
 0x144   : > { %2113 = vmatprep.subr.bf16.mxu1 %v3969_v56  ;;  %2236 = vmatprep.subr.bf16.mxu0 %v3969_v56  ;;  %v4029_v56 = vld [vmem:[%s4176_s28 + $0x324] ss:$8 sps:$4 sm:$0xff]  }
 0x146   : > { %1925 = vmatmul.mubr.bf16.gmra.mrb[36].mxu1 %v4488_v57  ;;  %2222 = vmatmul.mubr.bf16.gmra.mrb[20].mxu0 %v4491_v58 }
 0x147   : > { %2114 = vmatpush1.bf16.msra.mxu1 %v3967_v59  ;;  %2237 = vmatpush1.bf16.msra.mxu0 %v3967_v59  ;;  %v4030_v59 = vld [vmem:[%s4176_s28 + $0x330] ss:$8 sps:$4 sm:$0xff]  }
 0x148   : > { %2115 = vmatprep.subr.bf16.mxu1 %v3972_v60  ;;  %2238 = vmatprep.subr.bf16.mxu0 %v3972_v60  ;;  %v4035_v60 = vld [vmem:[%s4176_s28 + $0x344] ss:$8 sps:$4 sm:$0xff]  }
 0x149   : > { %3477 = vmatprep.mubr.msk.bf16.mxu1 %vm561_vm0, %v4417_v16  ;;  %3489 = vmatprep.mubr.msk.bf16.mxu0 %vm561_vm0, %v4414_v15 }
 0x14b   : > { %2116 = vmatpush1.bf16.msra.mxu1 %v3970_v61  ;;  %2239 = vmatpush1.bf16.msra.mxu0 %v3970_v61  ;;  %v4033_v61 = vld [vmem:[%s4176_s28 + $0x340] ss:$8 sps:$4 sm:$0xff]  }
 0x14c   : > { %2117 = vmatprep.subr.bf16.mxu1 %v3975_v62  ;;  %2240 = vmatprep.subr.bf16.mxu0 %v3975_v62  ;;  %v4038_v62 = vld [vmem:[%s4176_s28 + $0x354] ss:$8 sps:$4 sm:$0xff]  }
 0x14f   : > { %2118 = vmatpush1.bf16.msra.mxu1 %v3973_v63  ;;  %2241 = vmatpush1.bf16.msra.mxu0 %v3973_v63  ;;  %v4036_v63 = vld [vmem:[%s4176_s28 + $0x350] ss:$8 sps:$4 sm:$0xff]  }
 0x150   : > { %2119 = vmatprep.subr.bf16.mxu1 %v3978_v0  ;;  %2242 = vmatprep.subr.bf16.mxu0 %v3978_v0  ;;  %v4041_v0 = vld [vmem:[%s4176_s28 + $0x364] ss:$8 sps:$4 sm:$0xff]  }
 0x153   : > { %2120 = vmatpush1.bf16.msra.mxu1 %v3976_v1  ;;  %2243 = vmatpush1.bf16.msra.mxu0 %v3976_v1 }
 0x154   : > { %2121 = vmatprep.subr.bf16.mxu1 %v3981_v2  ;;  %2244 = vmatprep.subr.bf16.mxu0 %v3981_v2 }
 0x157   : > { %2122 = vmatpush1.bf16.msra.mxu1 %v3979_v3  ;;  %2245 = vmatpush1.bf16.msra.mxu0 %v3979_v3 }
 0x158   : > { %2123 = vmatprep.subr.bf16.mxu1 %v3984_v4  ;;  %2246 = vmatprep.subr.bf16.mxu0 %v3984_v4  ;;  %v4039_v4 = vld [vmem:[%s4176_s28 + $0x360] ss:$8 sps:$4 sm:$0xff]  }
 0x15b   : > { %2124 = vmatpush1.bf16.msra.mxu1 %v3982_v5  ;;  %2247 = vmatpush1.bf16.msra.mxu0 %v3982_v5 }
 0x15c   : > { %2125 = vmatprep.subr.bf16.mxu1 %v3987_v6  ;;  %2248 = vmatprep.subr.bf16.mxu0 %v3987_v6  ;;  %v4044_v6 = vld [vmem:[%s4176_s28 + $0x374] ss:$8 sps:$4 sm:$0xff]  }
 0x15d   : > { %v829_v9 = vpop.f32.mrb[8].mxu1  ;;  %v951_v10 = vpop.f32.mrb[0].mxu0 }
 0x15e   : > { %v848_v11 = vsub.f32 %v4437_v29, %v829_v9  ;;  %970 = vst [vmem:[%s4515_s13] sm:$0xff] %v951_v10  ;;  %v831_v12 = vpop.f32.mrb[9].mxu1  ;;  %v953_v13 = vpop.f32.mrb[1].mxu0 }
 0x15f   : > { %v849_v14 = vsub.f32 %v4439_v30, %v831_v12  ;;  %971 = vst [vmem:[%s4515_s13 + $0x8] sm:$0xff] %v953_v13  ;;  %v833_v15 = vpop.f32.mrb[10].mxu1  ;;  %v955_v16 = vpop.f32.mrb[2].mxu0  ;;  %2126 = vmatpush1.bf16.msra.mxu1 %v3985_v7  ;;  %2249 = vmatpush1.bf16.msra.mxu0 %v3985_v7  ;;  %v4042_v7 = vld [vmem:[%s4176_s28 + $0x370] ss:$8 sps:$4 sm:$0xff]  }
 0x160   : > { %856 = vst [vmem:[%s4522_s16] sm:$0xff] %v848_v11  ;;  %v850_v18 = vsub.f32 %v4441_v31, %v833_v15  ;;  %972 = vst [vmem:[%s4515_s13 + $0x10] sm:$0xff] %v955_v16  ;;  %v835_v19 = vpop.f32.mrb[11].mxu1  ;;  %v957_v20 = vpop.f32.mrb[3].mxu0  ;;  %2127 = vmatprep.subr.bf16.mxu1 %v3990_v8  ;;  %2250 = vmatprep.subr.bf16.mxu0 %v3990_v8  ;;  %v4047_v8 = vld [vmem:[%s4176_s28 + $0x384] ss:$8 sps:$4 sm:$0xff]  }
 0x161   : > { %857 = vst [vmem:[%s4522_s16 + $0x8] sm:$0xff] %v849_v14  ;;  %v851_v22 = vsub.f32 %v4444_v33, %v835_v19  ;;  %973 = vst [vmem:[%s4515_s13 + $0x18] sm:$0xff] %v957_v20  ;;  %v3994_v33 = vld [vmem:[%s4196_s6 + $0x290] ss:$8 sps:$4 sm:$0xff]   ;;  %v4045_v11 = vld [vmem:[%s4176_s28 + $0x380] ss:$8 sps:$4 sm:$0xff]  }
 0x162   : > { %858 = vst [vmem:[%s4522_s16 + $0x10] sm:$0xff] %v850_v18  ;;  %v4050_v13 = vld [vmem:[%s4176_s28 + $0x394] ss:$8 sps:$4 sm:$0xff]   ;;  %v4048_v15 = vld [vmem:[%s4176_s28 + $0x390] ss:$8 sps:$4 sm:$0xff]  }
 0x163   : > { %859 = vst [vmem:[%s4522_s16 + $0x18] sm:$0xff] %v851_v22  ;;  %2128 = vmatpush1.bf16.msra.mxu1 %v3988_v17  ;;  %2251 = vmatpush1.bf16.msra.mxu0 %v3988_v17  ;;  %v4053_v16 = vld [vmem:[%s4176_s28 + $0x3a4] ss:$8 sps:$4 sm:$0xff]   ;;  %v4051_v17 = vld [vmem:[%s4176_s28 + $0x3a0] ss:$8 sps:$4 sm:$0xff]  }
 0x164   : > { %2129 = vmatprep.subr.bf16.mxu1 %v3993_v21  ;;  %2252 = vmatprep.subr.bf16.mxu0 %v3993_v21  ;;  %v4056_v18 = vld [vmem:[%s4176_s28 + $0x3b4] ss:$8 sps:$4 sm:$0xff]   ;;  %v4054_v19 = vld [vmem:[%s4176_s28 + $0x3b0] ss:$8 sps:$4 sm:$0xff]   ;;  %v4625_v21 = vld [vmem:[%s4169_s25 + $0x60] ss:$8 sps:$4 sm:$0xff]  }
 0x165   : > { %v839_v25 = vpop.f32.mrb[12].mxu1  ;;  %v961_v26 = vpop.f32.mrb[4].mxu0  ;;  %v4062_v20 = vld [vmem:[%s4196_s6 + $0x2d4] ss:$8 sps:$4 sm:$0xff]   ;;  %v4628_v22 = vld [vmem:[%s4203_s9 + $0x60] ss:$8 sps:$4 sm:$0xff]  }
 0x166   : > { %v852_v27 = vsub.f32 %v4449_v37, %v839_v25  ;;  %974 = vst [vmem:[%s4515_s13 + $0x20] sm:$0xff] %v961_v26  ;;  %v841_v28 = vpop.f32.mrb[13].mxu1  ;;  %v963_v29 = vpop.f32.mrb[5].mxu0  ;;  %v3999_v37 = vld [vmem:[%s4196_s6 + $0x2a4] ss:$8 sps:$4 sm:$0xff]  }
 0x167   : > { %v853_v30 = vsub.f32 %v4451_v38, %v841_v28  ;;  %975 = vst [vmem:[%s4515_s13 + $0x28] sm:$0xff] %v963_v29  ;;  %v843_v31 = vpop.f32.mrb[14].mxu1  ;;  %v965_v32 = vpop.f32.mrb[6].mxu0  ;;  %2130 = vmatpush1.bf16.msra.mxu1 %v3991_v23  ;;  %2253 = vmatpush1.bf16.msra.mxu0 %v3991_v23  ;;  %v4060_v23 = vld [vmem:[%s4196_s6 + $0x2d0] ss:$8 sps:$4 sm:$0xff]  }
 0x168   : > { %860 = vst [vmem:[%s4522_s16 + $0x20] sm:$0xff] %v852_v27  ;;  %v854_v34 = vsub.f32 %v4454_v40, %v843_v31  ;;  %976 = vst [vmem:[%s4515_s13 + $0x30] sm:$0xff] %v965_v32  ;;  %v845_v35 = vpop.f32.mrb[15].mxu1  ;;  %v967_v36 = vpop.f32.mrb[7].mxu0  ;;  %2131 = vmatprep.subr.bf16.mxu1 %v3996_v24  ;;  %2254 = vmatprep.subr.bf16.mxu0 %v3996_v24  ;;  %v4007_v40 = vld [vmem:[%s4196_s6 + $0x2b4] ss:$8 sps:$4 sm:$0xff]  }
 0x169   : > { %861 = vst [vmem:[%s4522_s16 + $0x28] sm:$0xff] %v853_v30  ;;  %v855_v38 = vsub.f32 %v4457_v42, %v845_v35  ;;  %977 = vst [vmem:[%s4515_s13 + $0x38] sm:$0xff] %v967_v36  ;;  %v4009_v42 = vld [vmem:[%s4196_s6 + $0x2c0] ss:$8 sps:$4 sm:$0xff]   ;;  %v4068_v24 = vld [vmem:[%s4196_s6 + $0x2e4] ss:$8 sps:$4 sm:$0xff]  }
 0x16a   : > { %862 = vst [vmem:[%s4522_s16 + $0x30] sm:$0xff] %v854_v34  ;;  %v4633_v25 = vld [vmem:[%s4169_s25 + $0x74] ss:$8 sps:$4 sm:$0xff]   ;;  %v4066_v27 = vld [vmem:[%s4196_s6 + $0x2e0] ss:$8 sps:$4 sm:$0xff]  }
 0x16b   : > { %863 = vst [vmem:[%s4522_s16 + $0x38] sm:$0xff] %v855_v38  ;;  %2132 = vmatpush1.bf16.msra.mxu1 %v3994_v33  ;;  %2255 = vmatpush1.bf16.msra.mxu0 %v3994_v33  ;;  %v4636_v26 = vld [vmem:[%s4203_s9 + $0x74] ss:$8 sps:$4 sm:$0xff]   ;;  %v4647_v29 = vld [vmem:[%s4169_s25 + $0x70] ss:$8 sps:$4 sm:$0xff]  }
 0x16c   : > { %2133 = vmatprep.subr.bf16.mxu1 %v3999_v37  ;;  %2256 = vmatprep.subr.bf16.mxu0 %v3999_v37  ;;  %v4071_v28 = vld [vmem:[%s4196_s6 + $0x2f4] ss:$8 sps:$4 sm:$0xff]   ;;  %v4650_v30 = vld [vmem:[%s4203_s9 + $0x70] ss:$8 sps:$4 sm:$0xff]   ;;  %v4074_v32 = vld [vmem:[%s4196_s6 + $0x304] ss:$8 sps:$4 sm:$0xff]  }
 0x16d   : > { %v4069_v31 = vld [vmem:[%s4196_s6 + $0x2f0] ss:$8 sps:$4 sm:$0xff]   ;;  %v4072_v33 = vld [vmem:[%s4196_s6 + $0x300] ss:$8 sps:$4 sm:$0xff]   ;;  %v4077_v34 = vld [vmem:[%s4196_s6 + $0x314] ss:$8 sps:$4 sm:$0xff]  }
 0x16e   : > { %v4075_v35 = vld [vmem:[%s4196_s6 + $0x310] ss:$8 sps:$4 sm:$0xff]   ;;  %v4080_v36 = vld [vmem:[%s4196_s6 + $0x324] ss:$8 sps:$4 sm:$0xff]   ;;  %v4078_v37 = vld [vmem:[%s4196_s6 + $0x320] ss:$8 sps:$4 sm:$0xff]  }
 0x16f   : > { %2134 = vmatpush1.bf16.msra.mxu1 %v3997_v39  ;;  %2257 = vmatpush1.bf16.msra.mxu0 %v3997_v39  ;;  %v4083_v38 = vld [vmem:[%s4196_s6 + $0x334] ss:$8 sps:$4 sm:$0xff]   ;;  %v4081_v39 = vld [vmem:[%s4196_s6 + $0x330] ss:$8 sps:$4 sm:$0xff]  }
 0x170   : > { %2135 = vmatprep.subr.bf16.mxu1 %v4007_v40  ;;  %2258 = vmatprep.subr.bf16.mxu0 %v4007_v40  ;;  %v4086_v40 = vld [vmem:[%s4196_s6 + $0x344] ss:$8 sps:$4 sm:$0xff]  }
 0x173   : > { %2136 = vmatpush1.bf16.msra.mxu1 %v4005_v41  ;;  %2259 = vmatpush1.bf16.msra.mxu0 %v4005_v41  ;;  %v4084_v41 = vld [vmem:[%s4196_s6 + $0x340] ss:$8 sps:$4 sm:$0xff]  }
 0x174   : > { %2137 = vmatprep.subr.bf16.mxu1 %v4011_v43  ;;  %2260 = vmatprep.subr.bf16.mxu0 %v4011_v43  ;;  %v4089_v43 = vld [vmem:[%s4196_s6 + $0x354] ss:$8 sps:$4 sm:$0xff]  }
 0x177   : > { %2138 = vmatpush1.bf16.msra.mxu1 %v4009_v42  ;;  %2261 = vmatpush1.bf16.msra.mxu0 %v4009_v42  ;;  %v4087_v42 = vld [vmem:[%s4196_s6 + $0x350] ss:$8 sps:$4 sm:$0xff]  }
 0x178   : > { %2540 = vmatprep.subr.bf16.mxu1 %v4014_v44  ;;  %2837 = vmatprep.subr.bf16.mxu0 %v4014_v44  ;;  %v4092_v44 = vld [vmem:[%s4196_s6 + $0x364] ss:$8 sps:$4 sm:$0xff]  }
 0x17a   : > { %2142 = vmatmul.mubr.bf16.vlgmr.msra.gmra.mrb[40].mxu1 %v4469_v50  ;;  %2265 = vmatmul.mubr.bf16.vlgmr.msra.gmra.mrb[16].mxu0 %v4466_v49  ;;  %v4018_v50 = vld [vmem:[%s4176_s28 + $0x2f0] ss:$8 sps:$4 sm:$0xff]   ;;  %v4023_v49 = vld [vmem:[%s4176_s28 + $0x304] ss:$8 sps:$4 sm:$0xff]  }
 0x17b   : > { %2541 = vmatpush1.bf16.msra.mxu1 %v4012_v45  ;;  %2838 = vmatpush1.bf16.msra.mxu0 %v4012_v45 }
 0x17c   : > { %2542 = vmatprep.subr.bf16.mxu1 %v4017_v46  ;;  %2839 = vmatprep.subr.bf16.mxu0 %v4017_v46 }
 0x17d   : > { %3478 = vmatprep.mubr.msk.bf16.mxu1 %vm561_vm0, %v4477_v54  ;;  %3490 = vmatprep.mubr.msk.bf16.mxu0 %vm561_vm0, %v4474_v53  ;;  %v4021_v53 = vld [vmem:[%s4176_s28 + $0x300] ss:$8 sps:$4 sm:$0xff]   ;;  %v4026_v54 = vld [vmem:[%s4176_s28 + $0x314] ss:$8 sps:$4 sm:$0xff]  }
 0x17f   : > { %2543 = vmatpush1.bf16.msra.mxu1 %v4015_v47  ;;  %2840 = vmatpush1.bf16.msra.mxu0 %v4015_v47 }
 0x180   : > { %2544 = vmatprep.subr.bf16.mxu1 %v4020_v48  ;;  %2841 = vmatprep.subr.bf16.mxu0 %v4020_v48 }
 0x182   : > { %2152 = vmatmul.mubr.bf16.gmra.mrb[44].mxu1 %v4491_v58  ;;  %2275 = vmatmul.mubr.bf16.gmra.mrb[20].mxu0 %v4488_v57  ;;  %v4027_v57 = vld [vmem:[%s4176_s28 + $0x320] ss:$8 sps:$4 sm:$0xff]   ;;  %v4032_v58 = vld [vmem:[%s4176_s28 + $0x334] ss:$8 sps:$4 sm:$0xff]  }
 0x183   : > { %2545 = vmatpush1.bf16.msra.mxu1 %v4018_v50  ;;  %2842 = vmatpush1.bf16.msra.mxu0 %v4018_v50 }
 0x184   : > { %2546 = vmatprep.subr.bf16.mxu1 %v4023_v49  ;;  %2843 = vmatprep.subr.bf16.mxu0 %v4023_v49 }
 0x185   : > { %3601 = vmatprep.mubr.msk.bf16.mxu1 %vm561_vm0, %v4573_v51  ;;  %3647 = vmatprep.mubr.msk.bf16.mxu0 %vm561_vm0, %v4576_v52 }
 0x187   : > { %2547 = vmatpush1.bf16.msra.mxu1 %v4021_v53  ;;  %2844 = vmatpush1.bf16.msra.mxu0 %v4021_v53  ;;  %v4090_v53 = vld [vmem:[%s4196_s6 + $0x360] ss:$8 sps:$4 sm:$0xff]  }
 0x188   : > { %2548 = vmatprep.subr.bf16.mxu1 %v4026_v54  ;;  %2845 = vmatprep.subr.bf16.mxu0 %v4026_v54 }
 0x18b   : > { %2549 = vmatpush1.bf16.msra.mxu1 %v4024_v55  ;;  %2846 = vmatpush1.bf16.msra.mxu0 %v4024_v55 }
 0x18c   : > { %2550 = vmatprep.subr.bf16.mxu1 %v4029_v56  ;;  %2847 = vmatprep.subr.bf16.mxu0 %v4029_v56 }
 0x18f   : > { %2551 = vmatpush1.bf16.msra.mxu1 %v4027_v57  ;;  %2848 = vmatpush1.bf16.msra.mxu0 %v4027_v57  ;;  %v4095_v57 = vld [vmem:[%s4196_s6 + $0x374] ss:$8 sps:$4 sm:$0xff]  }
 0x190   : > { %2552 = vmatprep.subr.bf16.mxu1 %v4032_v58  ;;  %2849 = vmatprep.subr.bf16.mxu0 %v4032_v58 }
 0x193   : > { %2553 = vmatpush1.bf16.msra.mxu1 %v4030_v59  ;;  %2850 = vmatpush1.bf16.msra.mxu0 %v4030_v59  ;;  %v4093_v59 = vld [vmem:[%s4196_s6 + $0x370] ss:$8 sps:$4 sm:$0xff]  }
 0x194   : > { %2554 = vmatprep.subr.bf16.mxu1 %v4035_v60  ;;  %2851 = vmatprep.subr.bf16.mxu0 %v4035_v60  ;;  %v4098_v60 = vld [vmem:[%s4196_s6 + $0x384] ss:$8 sps:$4 sm:$0xff]  }
 0x197   : > { %2555 = vmatpush1.bf16.msra.mxu1 %v4033_v61  ;;  %2852 = vmatpush1.bf16.msra.mxu0 %v4033_v61 }
 0x198   : > { %2556 = vmatprep.subr.bf16.mxu1 %v4038_v62  ;;  %2853 = vmatprep.subr.bf16.mxu0 %v4038_v62 }
 0x199   : > { %v4596_v1 = vpop.f32.mrb[16].mxu1 }
 0x19a   : > { %v4598_v2 = vpop.f32.mrb[17].mxu1 }
 0x19b   : > { %v4600_v3 = vpop.f32.mrb[18].mxu1  ;;  %2557 = vmatpush1.bf16.msra.mxu1 %v4036_v63  ;;  %2854 = vmatpush1.bf16.msra.mxu0 %v4036_v63 }
 0x19c   : > { %v4603_v5 = vpop.f32.mrb[19].mxu1  ;;  %2558 = vmatprep.subr.bf16.mxu1 %v4041_v0  ;;  %2855 = vmatprep.subr.bf16.mxu0 %v4041_v0 }
 0x19f   : > { %2559 = vmatpush1.bf16.msra.mxu1 %v4039_v4  ;;  %2856 = vmatpush1.bf16.msra.mxu0 %v4039_v4 }
 0x1a0   : > { %2560 = vmatprep.subr.bf16.mxu1 %v4044_v6  ;;  %2857 = vmatprep.subr.bf16.mxu0 %v4044_v6 }
 0x1a1   : > { %v4608_v9 = vpop.f32.mrb[20].mxu1 }
 0x1a2   : > { %v4610_v10 = vpop.f32.mrb[21].mxu1 }
 0x1a3   : > { %2561 = vmatpush1.bf16.msra.mxu1 %v4042_v7  ;;  %2858 = vmatpush1.bf16.msra.mxu0 %v4042_v7  ;;  %v4613_v12 = vpop.f32.mrb[22].mxu1 }
 0x1a4   : > { %2562 = vmatprep.subr.bf16.mxu1 %v4047_v8  ;;  %2859 = vmatprep.subr.bf16.mxu0 %v4047_v8  ;;  %v4616_v14 = vpop.f32.mrb[23].mxu1 }
 0x1a7   : > { %2563 = vmatpush1.bf16.msra.mxu1 %v4045_v11  ;;  %2860 = vmatpush1.bf16.msra.mxu0 %v4045_v11  ;;  %v4101_v11 = vld [vmem:[%s4196_s6 + $0x390] ss:$8 sps:$4 sm:$0xff]  }
 0x1a8   : > { %2564 = vmatprep.subr.bf16.mxu1 %v4050_v13  ;;  %2861 = vmatprep.subr.bf16.mxu0 %v4050_v13  ;;  %v4107_v13 = vld [vmem:[%s4196_s6 + $0x3a0] ss:$8 sps:$4 sm:$0xff]  }
 0x1ab   : > { %2565 = vmatpush1.bf16.msra.mxu1 %v4048_v15  ;;  %2862 = vmatpush1.bf16.msra.mxu0 %v4048_v15  ;;  %v4113_v15 = vld [vmem:[%s4196_s6 + $0x3b4] ss:$8 sps:$4 sm:$0xff]  }
 0x1ac   : > { %2566 = vmatprep.subr.bf16.mxu1 %v4053_v16  ;;  %2863 = vmatprep.subr.bf16.mxu0 %v4053_v16  ;;  %v4111_v16 = vld [vmem:[%s4196_s6 + $0x3b0] ss:$8 sps:$4 sm:$0xff]  }
 0x1af   : > { %2567 = vmatpush1.bf16.msra.mxu1 %v4051_v17  ;;  %2864 = vmatpush1.bf16.msra.mxu0 %v4051_v17 }
 0x1b0   : > { %2568 = vmatprep.subr.bf16.mxu1 %v4056_v18  ;;  %2865 = vmatprep.subr.bf16.mxu0 %v4056_v18 }
 0x1b3   : > { %2569 = vmatpush1.bf16.msra.mxu1 %v4054_v19  ;;  %2866 = vmatpush1.bf16.msra.mxu0 %v4054_v19 }
 0x1b4   : > { %2767 = vmatprep.subr.bf16.mxu1 %v4062_v20  ;;  %2890 = vmatprep.subr.bf16.mxu0 %v4062_v20 }
 0x1b6   : > { %2573 = vmatmul.mubr.bf16.vlgmr.msra.gmra.mrb[48].mxu1 %v4625_v21  ;;  %2870 = vmatmul.mubr.bf16.vlgmr.msra.gmra.mrb[24].mxu0 %v4628_v22 }
 0x1b7   : > { %2768 = vmatpush1.bf16.msra.mxu1 %v4060_v23  ;;  %2891 = vmatpush1.bf16.msra.mxu0 %v4060_v23 }
 0x1b8   : > { %2769 = vmatprep.subr.bf16.mxu1 %v4068_v24  ;;  %2892 = vmatprep.subr.bf16.mxu0 %v4068_v24 }
 0x1b9   : > { %3602 = vmatprep.mubr.msk.bf16.mxu1 %vm561_vm0, %v4633_v25  ;;  %3648 = vmatprep.mubr.msk.bf16.mxu0 %vm561_vm0, %v4636_v26 }
 0x1bb   : > { %2770 = vmatpush1.bf16.msra.mxu1 %v4066_v27  ;;  %2893 = vmatpush1.bf16.msra.mxu0 %v4066_v27 }
 0x1bc   : > { %2771 = vmatprep.subr.bf16.mxu1 %v4071_v28  ;;  %2894 = vmatprep.subr.bf16.mxu0 %v4071_v28 }
 0x1be   : > { %2583 = vmatmul.mubr.bf16.gmra.mrb[52].mxu1 %v4647_v29  ;;  %2880 = vmatmul.mubr.bf16.gmra.mrb[28].mxu0 %v4650_v30 }
 0x1bf   : > { %2772 = vmatpush1.bf16.msra.mxu1 %v4069_v31  ;;  %2895 = vmatpush1.bf16.msra.mxu0 %v4069_v31 }
 0x1c0   : > { %2773 = vmatprep.subr.bf16.mxu1 %v4074_v32  ;;  %2896 = vmatprep.subr.bf16.mxu0 %v4074_v32 }
 0x1c1   : > { %3637 = vmatprep.mubr.msk.bf16.mxu1 %vm561_vm0, %v4576_v52  ;;  %3649 = vmatprep.mubr.msk.bf16.mxu0 %vm561_vm0, %v4573_v51 }
 0x1c3   : > { %2774 = vmatpush1.bf16.msra.mxu1 %v4072_v33  ;;  %2897 = vmatpush1.bf16.msra.mxu0 %v4072_v33 }
 0x1c4   : > { %2775 = vmatprep.subr.bf16.mxu1 %v4077_v34  ;;  %2898 = vmatprep.subr.bf16.mxu0 %v4077_v34 }
 0x1c7   : > { %2776 = vmatpush1.bf16.msra.mxu1 %v4075_v35  ;;  %2899 = vmatpush1.bf16.msra.mxu0 %v4075_v35 }
 0x1c8   : > { %2777 = vmatprep.subr.bf16.mxu1 %v4080_v36  ;;  %2900 = vmatprep.subr.bf16.mxu0 %v4080_v36 }
 0x1cb   : > { %2778 = vmatpush1.bf16.msra.mxu1 %v4078_v37  ;;  %2901 = vmatpush1.bf16.msra.mxu0 %v4078_v37 }
 0x1cc   : > { %2779 = vmatprep.subr.bf16.mxu1 %v4083_v38  ;;  %2902 = vmatprep.subr.bf16.mxu0 %v4083_v38 }
 0x1cf   : > { %2780 = vmatpush1.bf16.msra.mxu1 %v4081_v39  ;;  %2903 = vmatpush1.bf16.msra.mxu0 %v4081_v39 }
 0x1d0   : > { %2781 = vmatprep.subr.bf16.mxu1 %v4086_v40  ;;  %2904 = vmatprep.subr.bf16.mxu0 %v4086_v40 }
 0x1d3   : > { %2782 = vmatpush1.bf16.msra.mxu1 %v4084_v41  ;;  %2905 = vmatpush1.bf16.msra.mxu0 %v4084_v41 }
 0x1d4   : > { %2783 = vmatprep.subr.bf16.mxu1 %v4089_v43  ;;  %2906 = vmatprep.subr.bf16.mxu0 %v4089_v43 }
 0x1d5   : > { %v1485_v45 = vpop.f32.mrb[24].mxu1  ;;  %v1608_v46 = vpop.f32.mrb[8].mxu0 }
 0x1d6   : > { %v1504_v47 = vsub.f32 %v4596_v1, %v1485_v45  ;;  %3331 = vst [vmem:[%s4515_s13 + $0x40] sm:$0xff] %v1608_v46  ;;  %v1487_v48 = vpop.f32.mrb[25].mxu1  ;;  %v1610_v50 = vpop.f32.mrb[9].mxu0 }
 0x1d7   : > { %v1505_v49 = vsub.f32 %v4598_v2, %v1487_v48  ;;  %3332 = vst [vmem:[%s4515_s13 + $0x48] sm:$0xff] %v1610_v50  ;;  %v1489_v51 = vpop.f32.mrb[26].mxu1  ;;  %v1612_v52 = vpop.f32.mrb[10].mxu0  ;;  %2784 = vmatpush1.bf16.msra.mxu1 %v4087_v42  ;;  %2907 = vmatpush1.bf16.msra.mxu0 %v4087_v42 }
 0x1d8   : > { %3319 = vst [vmem:[%s4522_s16 + $0x40] sm:$0xff] %v1504_v47  ;;  %v1506_v54 = vsub.f32 %v4600_v3, %v1489_v51  ;;  %3333 = vst [vmem:[%s4515_s13 + $0x50] sm:$0xff] %v1612_v52  ;;  %v1491_v55 = vpop.f32.mrb[27].mxu1  ;;  %v1614_v56 = vpop.f32.mrb[11].mxu0  ;;  %2785 = vmatprep.subr.bf16.mxu1 %v4092_v44  ;;  %2908 = vmatprep.subr.bf16.mxu0 %v4092_v44 }
 0x1d9   : > { %3320 = vst [vmem:[%s4522_s16 + $0x48] sm:$0xff] %v1505_v49  ;;  %v1507_v58 = vsub.f32 %v4603_v5, %v1491_v55  ;;  %3334 = vst [vmem:[%s4515_s13 + $0x58] sm:$0xff] %v1614_v56  ;;  %v4096_v5 = vld [vmem:[%s4196_s6 + $0x380] ss:$8 sps:$4 sm:$0xff]  }
 0x1da   : > { %3321 = vst [vmem:[%s4522_s16 + $0x50] sm:$0xff] %v1506_v54 }
 0x1db   : > { %3322 = vst [vmem:[%s4522_s16 + $0x58] sm:$0xff] %v1507_v58  ;;  %2786 = vmatpush1.bf16.msra.mxu1 %v4090_v53  ;;  %2909 = vmatpush1.bf16.msra.mxu0 %v4090_v53 }
 0x1dc   : > { %2787 = vmatprep.subr.bf16.mxu1 %v4095_v57  ;;  %2910 = vmatprep.subr.bf16.mxu0 %v4095_v57 }
 0x1dd   : > { %v1495_v61 = vpop.f32.mrb[28].mxu1  ;;  %v1618_v62 = vpop.f32.mrb[12].mxu0 }
 0x1de   : > { %v1508_v63 = vsub.f32 %v4608_v9, %v1495_v61  ;;  %3335 = vst [vmem:[%s4515_s13 + $0x60] sm:$0xff] %v1618_v62  ;;  %v1497_v0 = vpop.f32.mrb[29].mxu1  ;;  %v1620_v1 = vpop.f32.mrb[13].mxu0  ;;  %v4103_v9 = vld [vmem:[%s4196_s6 + $0x394] ss:$8 sps:$4 sm:$0xff]  }
 0x1df   : > { %v1509_v2 = vsub.f32 %v4610_v10, %v1497_v0  ;;  %3336 = vst [vmem:[%s4515_s13 + $0x68] sm:$0xff] %v1620_v1  ;;  %v1499_v3 = vpop.f32.mrb[30].mxu1  ;;  %v1622_v4 = vpop.f32.mrb[14].mxu0  ;;  %2788 = vmatpush1.bf16.msra.mxu1 %v4093_v59  ;;  %2911 = vmatpush1.bf16.msra.mxu0 %v4093_v59 }
 0x1e0   : > { %3323 = vst [vmem:[%s4522_s16 + $0x60] sm:$0xff] %v1508_v63  ;;  %v1510_v6 = vsub.f32 %v4613_v12, %v1499_v3  ;;  %3337 = vst [vmem:[%s4515_s13 + $0x70] sm:$0xff] %v1622_v4  ;;  %v1501_v7 = vpop.f32.mrb[31].mxu1  ;;  %v1624_v8 = vpop.f32.mrb[15].mxu0  ;;  %2789 = vmatprep.subr.bf16.mxu1 %v4098_v60  ;;  %2912 = vmatprep.subr.bf16.mxu0 %v4098_v60  ;;  %v4109_v12 = vld [vmem:[%s4196_s6 + $0x3a4] ss:$8 sps:$4 sm:$0xff]  }
 0x1e1   : > { %3324 = vst [vmem:[%s4522_s16 + $0x68] sm:$0xff] %v1509_v2  ;;  %v1511_v10 = vsub.f32 %v4616_v14, %v1501_v7  ;;  %3338 = vst [vmem:[%s4515_s13 + $0x78] sm:$0xff] %v1624_v8 }
 0x1e2   : > { %3325 = vst [vmem:[%s4522_s16 + $0x70] sm:$0xff] %v1510_v6 }
 0x1e3   : > { %3326 = vst [vmem:[%s4522_s16 + $0x78] sm:$0xff] %v1511_v10  ;;  %2790 = vmatpush1.bf16.msra.mxu1 %v4096_v5  ;;  %2913 = vmatpush1.bf16.msra.mxu0 %v4096_v5 }
 0x1e4   : > { %2791 = vmatprep.subr.bf16.mxu1 %v4103_v9  ;;  %2914 = vmatprep.subr.bf16.mxu0 %v4103_v9 }
 0x1e7   : > { %2792 = vmatpush1.bf16.msra.mxu1 %v4101_v11  ;;  %2915 = vmatpush1.bf16.msra.mxu0 %v4101_v11 }
 0x1e8   : > { %2793 = vmatprep.subr.bf16.mxu1 %v4109_v12  ;;  %2916 = vmatprep.subr.bf16.mxu0 %v4109_v12 }
 0x1eb   : > { %2794 = vmatpush1.bf16.msra.mxu1 %v4107_v13  ;;  %2917 = vmatpush1.bf16.msra.mxu0 %v4107_v13 }
 0x1ec   : > { %2795 = vmatprep.subr.bf16.mxu1 %v4113_v15  ;;  %2918 = vmatprep.subr.bf16.mxu0 %v4113_v15 }
 0x1ef   : > { %2796 = vmatpush1.bf16.msra.mxu1 %v4111_v16  ;;  %2919 = vmatpush1.bf16.msra.mxu0 %v4111_v16 }
 0x1f2   : > { %2800 = vmatmul.mubr.bf16.vlgmr.msra.gmra.mrb[56].mxu1 %v4628_v22  ;;  %2923 = vmatmul.mubr.bf16.vlgmr.msra.gmra.mrb[24].mxu0 %v4625_v21 }
 0x1f3   : > { %3638 = vmatprep.mubr.msk.bf16.mxu1 %vm561_vm0, %v4636_v26  ;;  %3650 = vmatprep.mubr.msk.bf16.mxu0 %vm561_vm0, %v4633_v25 }
 0x1fa   : > { %2810 = vmatmul.mubr.bf16.gmra.mrb[60].mxu1 %v4650_v30  ;;  %2933 = vmatmul.mubr.bf16.gmra.mrb[28].mxu0 %v4647_v29 }
 0x211   : > { %v1916_v14 = vpop.f32.mrb[32].mxu1 }
 0x212   : > { %v1918_v17 = vpop.f32.mrb[33].mxu1 }
 0x213   : > { %v1920_v18 = vpop.f32.mrb[34].mxu1 }
 0x214   : > { %v1922_v19 = vpop.f32.mrb[35].mxu1 }
 0x219   : > { %v1926_v20 = vpop.f32.mrb[36].mxu1 }
 0x21a   : > { %v1928_v21 = vpop.f32.mrb[37].mxu1 }
 0x21b   : > { %v1930_v22 = vpop.f32.mrb[38].mxu1 }
 0x21c   : > { %v1932_v23 = vpop.f32.mrb[39].mxu1 }
 0x24d   : > { %v2143_v24 = vpop.f32.mrb[40].mxu1  ;;  %v2266_v26 = vpop.f32.mrb[16].mxu0 }
 0x24e   : > { %v2162_v25 = vsub.f32 %v1916_v14, %v2143_v24  ;;  %3491 = vst [vmem:[%s4515_s13 + $0x80] sm:$0xff] %v2266_v26  ;;  %v2145_v27 = vpop.f32.mrb[41].mxu1  ;;  %v2268_v28 = vpop.f32.mrb[17].mxu0 }
 0x24f   : > { %v2163_v29 = vsub.f32 %v1918_v17, %v2145_v27  ;;  %3492 = vst [vmem:[%s4515_s13 + $0x88] sm:$0xff] %v2268_v28  ;;  %v2147_v30 = vpop.f32.mrb[42].mxu1  ;;  %v2270_v31 = vpop.f32.mrb[18].mxu0 }
 0x250   : > { %3479 = vst [vmem:[%s4522_s16 + $0x80] sm:$0xff] %v2162_v25  ;;  %v2164_v32 = vsub.f32 %v1920_v18, %v2147_v30  ;;  %3493 = vst [vmem:[%s4515_s13 + $0x90] sm:$0xff] %v2270_v31  ;;  %v2149_v33 = vpop.f32.mrb[43].mxu1  ;;  %v2272_v34 = vpop.f32.mrb[19].mxu0 }
 0x251   : > { %3480 = vst [vmem:[%s4522_s16 + $0x88] sm:$0xff] %v2163_v29  ;;  %v2165_v35 = vsub.f32 %v1922_v19, %v2149_v33  ;;  %3494 = vst [vmem:[%s4515_s13 + $0x98] sm:$0xff] %v2272_v34 }
 0x252   : > { %3481 = vst [vmem:[%s4522_s16 + $0x90] sm:$0xff] %v2164_v32 }
 0x253   : > { %3482 = vst [vmem:[%s4522_s16 + $0x98] sm:$0xff] %v2165_v35 }
 0x255   : > { %v2153_v36 = vpop.f32.mrb[44].mxu1  ;;  %v2276_v37 = vpop.f32.mrb[20].mxu0 }
 0x256   : > { %v2166_v38 = vsub.f32 %v1926_v20, %v2153_v36  ;;  %3495 = vst [vmem:[%s4515_s13 + $0xa0] sm:$0xff] %v2276_v37  ;;  %v2155_v39 = vpop.f32.mrb[45].mxu1  ;;  %v2278_v40 = vpop.f32.mrb[21].mxu0 }
 0x257   : > { %v2167_v41 = vsub.f32 %v1928_v21, %v2155_v39  ;;  %3496 = vst [vmem:[%s4515_s13 + $0xa8] sm:$0xff] %v2278_v40  ;;  %v2157_v43 = vpop.f32.mrb[46].mxu1  ;;  %v2280_v42 = vpop.f32.mrb[22].mxu0 }
 0x258   : > { %3483 = vst [vmem:[%s4522_s16 + $0xa0] sm:$0xff] %v2166_v38  ;;  %v2168_v44 = vsub.f32 %v1930_v22, %v2157_v43  ;;  %3497 = vst [vmem:[%s4515_s13 + $0xb0] sm:$0xff] %v2280_v42  ;;  %v2159_v45 = vpop.f32.mrb[47].mxu1  ;;  %v2282_v46 = vpop.f32.mrb[23].mxu0 }
 0x259   : > { %3484 = vst [vmem:[%s4522_s16 + $0xa8] sm:$0xff] %v2167_v41  ;;  %v2169_v47 = vsub.f32 %v1932_v23, %v2159_v45  ;;  %3498 = vst [vmem:[%s4515_s13 + $0xb8] sm:$0xff] %v2282_v46 }
 0x25a   : > { %3485 = vst [vmem:[%s4522_s16 + $0xb0] sm:$0xff] %v2168_v44 }
 0x25b   : > { %3486 = vst [vmem:[%s4522_s16 + $0xb8] sm:$0xff] %v2169_v47 }
 0x289   : > { %v2574_v48 = vpop.f32.mrb[48].mxu1 }
 0x28a   : > { %v2576_v50 = vpop.f32.mrb[49].mxu1 }
 0x28b   : > { %v2578_v49 = vpop.f32.mrb[50].mxu1 }
 0x28c   : > { %v2580_v51 = vpop.f32.mrb[51].mxu1 }
 0x291   : > { %v2584_v52 = vpop.f32.mrb[52].mxu1 }
 0x292   : > { %v2586_v53 = vpop.f32.mrb[53].mxu1 }
 0x293   : > { %v2588_v54 = vpop.f32.mrb[54].mxu1 }
 0x294   : > { %v2590_v55 = vpop.f32.mrb[55].mxu1 }
 0x2c5   : > { %v2801_v56 = vpop.f32.mrb[56].mxu1  ;;  %v2924_v57 = vpop.f32.mrb[24].mxu0 }
 0x2c6   : > { %v2820_v58 = vsub.f32 %v2574_v48, %v2801_v56  ;;  %3651 = vst [vmem:[%s4515_s13 + $0xc0] sm:$0xff] %v2924_v57  ;;  %v2803_v59 = vpop.f32.mrb[57].mxu1  ;;  %v2926_v60 = vpop.f32.mrb[25].mxu0 }
 0x2c7   : > { %v2821_v61 = vsub.f32 %v2576_v50, %v2803_v59  ;;  %3652 = vst [vmem:[%s4515_s13 + $0xc8] sm:$0xff] %v2926_v60  ;;  %v2805_v62 = vpop.f32.mrb[58].mxu1  ;;  %v2928_v63 = vpop.f32.mrb[26].mxu0 }
 0x2c8   : > { %3639 = vst [vmem:[%s4522_s16 + $0xc0] sm:$0xff] %v2820_v58  ;;  %v2822_v0 = vsub.f32 %v2578_v49, %v2805_v62  ;;  %3653 = vst [vmem:[%s4515_s13 + $0xd0] sm:$0xff] %v2928_v63  ;;  %v2807_v1 = vpop.f32.mrb[59].mxu1  ;;  %v2930_v2 = vpop.f32.mrb[27].mxu0 }
 0x2c9   : > { %3640 = vst [vmem:[%s4522_s16 + $0xc8] sm:$0xff] %v2821_v61  ;;  %v2823_v3 = vsub.f32 %v2580_v51, %v2807_v1  ;;  %3654 = vst [vmem:[%s4515_s13 + $0xd8] sm:$0xff] %v2930_v2 }
 0x2ca   : > { %3641 = vst [vmem:[%s4522_s16 + $0xd0] sm:$0xff] %v2822_v0 }
 0x2cb   : > { %3642 = vst [vmem:[%s4522_s16 + $0xd8] sm:$0xff] %v2823_v3 }
 0x2cd   : > { %v2811_v4 = vpop.f32.mrb[60].mxu1  ;;  %v2934_v5 = vpop.f32.mrb[28].mxu0 }
 0x2ce   : > { %v2824_v6 = vsub.f32 %v2584_v52, %v2811_v4  ;;  %3655 = vst [vmem:[%s4515_s13 + $0xe0] sm:$0xff] %v2934_v5  ;;  %v2813_v7 = vpop.f32.mrb[61].mxu1  ;;  %v2936_v8 = vpop.f32.mrb[29].mxu0 }
 0x2cf   : > { %v2825_v9 = vsub.f32 %v2586_v53, %v2813_v7  ;;  %3656 = vst [vmem:[%s4515_s13 + $0xe8] sm:$0xff] %v2936_v8  ;;  %v2815_v10 = vpop.f32.mrb[62].mxu1  ;;  %v2938_v11 = vpop.f32.mrb[30].mxu0 }
 0x2d0   : > { %3643 = vst [vmem:[%s4522_s16 + $0xe0] sm:$0xff] %v2824_v6  ;;  %v2826_v12 = vsub.f32 %v2588_v54, %v2815_v10  ;;  %3657 = vst [vmem:[%s4515_s13 + $0xf0] sm:$0xff] %v2938_v11  ;;  %v2817_v13 = vpop.f32.mrb[63].mxu1  ;;  %v2940_v15 = vpop.f32.mrb[31].mxu0 }
 0x2d1   : > { %3644 = vst [vmem:[%s4522_s16 + $0xe8] sm:$0xff] %v2825_v9  ;;  %v2827_v16 = vsub.f32 %v2590_v55, %v2817_v13  ;;  %3658 = vst [vmem:[%s4515_s13 + $0xf8] sm:$0xff] %v2940_v15 }
 0x2d2   : > { %3645 = vst [vmem:[%s4522_s16 + $0xf0] sm:$0xff] %v2826_v12 }
 0x2d3   : > { %3646 = vst [vmem:[%s4522_s16 + $0xf8] sm:$0xff] %v2827_v16 }
 0x2d4 PF: > { %s16_s18 = sadd.s32 1, %s4120_s18  }
 0x2d5   : > { %p13_p4 = scmp.ge.s32.totalorder %s16_s18, 4  }
 0x2d7   :  { %15 = sbr.rel (!%p13_p4) target bundleno = 1 (0x1), region = 105 }

// kernel: _lambda_.12
= control target key start
LH: loop header
LB: loop body
LE: loop exit
PB: predicated region body
PF: predicated region fallthrough
CT: control target
= control target key end

     0   :  { %s1486_s18 = smov 0   ;;  %s1624_s0 = inlined_call_operand.vmem [shape: bf16[4,16,112], index: 0, kind: input, shape index: {}]   ;;  %s1625_s1 = inlined_call_operand.vmem [shape: bf16[4,16,112], index: 1, kind: input, shape index: {}]   ;;  %s1626_s2 = inlined_call_operand.vmem [shape: bf16[4,112,256], index: 2, kind: input, shape index: {}]   ;;  %s1627_s3 = inlined_call_operand.vmem [shape: bf16[4,112,256], index: 3, kind: input, shape index: {}]   ;;  %s1628_s4 = inlined_call_operand.vmem [shape: f32[4,16,256], index: 4, kind: output, shape index: {0}]   ;;  %s1629_s5 = inlined_call_operand.vmem [shape: f32[4,16,256], index: 5, kind: output, shape index: {1}]  }
   0x1 LB: > { %s1206_s19 = sadd.s32 4294967295, %s1453_s18   ;;  %p1210_p0 = scmp.ge.s32.totalorder %s1453_s18, 1  ;;  %s1453_s18 = sphi %s1486_s18, %s16_s18  }
   0x2   : > { %p228_p1 = scmp.lt.s32.totalorder %s1453_s18, 3 }
   0x4   : > { %p229_p2 = pnand %p1210_p0, %p228_p1 }
   0x5   : > { %s1211_s20 = sshll.u32 (!%p229_p2), %s1206_s19, 1  ;;  %v1455_v0 = vmov (!%p229_p2), 0   ;;  %vm432_vm0 = vcmask (!%p229_p2), 916480  }
   0x6   : > { %232 = sbr.rel (%p229_p2) target bundleno = 348 (0x15c), region = 36  ;;  %p283_p3 = scmp.lt.s32.totalorder (!%p229_p2), %s1211_s20, 3  ;;  %468 = vmatprep.mubr.bf16.mxu1 (!%p229_p2), %v1455_v0  ;;  %640 = vmatprep.mubr.bf16.mxu0 (!%p229_p2), %v1455_v0 }
   0xd   : > { %s1631_s20 = smov (!%p283_p3, %s1211_s20), 3 }
   0xe   : > { %s1349_s21 = smul.u32 112, %s1631_s20  ;;  %s1337_s22 = sshll.u32 %s1631_s20, 3 }
   0xf   : > { %s1503_s25 = scalar_lea.vmem %s1624_s0, %s1337_s22  ;;  %s1525_s9 = scalar_lea.vmem %s1625_s1, %s1337_s22 }
  0x10   : > { %s1508_s28 = scalar_lea.vmem %s1626_s2, %s1349_s21  ;;  %s1520_s6 = scalar_lea.vmem %s1627_s3, %s1349_s21  ;;  %v1380_v16 = vld [vmem:[%s1503_s25] sm:$0xff]   ;;  %v1424_v46 = vld [vmem:[%s1503_s25 + $0x8] sm:$0xff]  }
  0x11   : > { %v1359_v1 = vld [vmem:[%s1508_s28 + $0x4] ss:$8 sps:$4 sm:$0xff]   ;;  %v1361_v2 = vld [vmem:[%s1508_s28] ss:$8 sps:$4 sm:$0xff]   ;;  %v1362_v3 = vld [vmem:[%s1508_s28 + $0x14] ss:$8 sps:$4 sm:$0xff]  }
  0x12   : > { %436 = vmatprep.subr.bf16.mxu1 %v1359_v1  ;;  %608 = vmatprep.subr.bf16.mxu0 %v1359_v1  ;;  %v1364_v4 = vld [vmem:[%s1508_s28 + $0x10] ss:$8 sps:$4 sm:$0xff]   ;;  %v1365_v5 = vld [vmem:[%s1508_s28 + $0x24] ss:$8 sps:$4 sm:$0xff]   ;;  %v1367_v6 = vld [vmem:[%s1508_s28 + $0x20] ss:$8 sps:$4 sm:$0xff]  }
  0x13   : > { %437 = vmatpush1.bf16.msra.mxu1 %v1361_v2  ;;  %609 = vmatpush1.bf16.msra.mxu0 %v1361_v2  ;;  %v1368_v7 = vld [vmem:[%s1508_s28 + $0x34] ss:$8 sps:$4 sm:$0xff]   ;;  %v1370_v8 = vld [vmem:[%s1508_s28 + $0x30] ss:$8 sps:$4 sm:$0xff]   ;;  %v1371_v9 = vld [vmem:[%s1508_s28 + $0x44] ss:$8 sps:$4 sm:$0xff]  }
  0x14   : > { %438 = vmatprep.subr.bf16.mxu1 %v1362_v3  ;;  %610 = vmatprep.subr.bf16.mxu0 %v1362_v3  ;;  %v1373_v10 = vld [vmem:[%s1508_s28 + $0x40] ss:$8 sps:$4 sm:$0xff]   ;;  %v1374_v11 = vld [vmem:[%s1508_s28 + $0x54] ss:$8 sps:$4 sm:$0xff]   ;;  %v1376_v12 = vld [vmem:[%s1508_s28 + $0x50] ss:$8 sps:$4 sm:$0xff]  }
  0x15   : > { %v1377_v13 = vld [vmem:[%s1508_s28 + $0x64] ss:$8 sps:$4 sm:$0xff]   ;;  %v1379_v14 = vld [vmem:[%s1508_s28 + $0x60] ss:$8 sps:$4 sm:$0xff]   ;;  %v1387_v19 = vld [vmem:[%s1520_s6 + $0x14] ss:$8 sps:$4 sm:$0xff]  }
  0x16   : > { %v1383_v15 = vld [vmem:[%s1520_s6 + $0x4] ss:$8 sps:$4 sm:$0xff]   ;;  %v1381_v18 = vld [vmem:[%s1520_s6] ss:$8 sps:$4 sm:$0xff]   ;;  %v1385_v20 = vld [vmem:[%s1520_s6 + $0x10] ss:$8 sps:$4 sm:$0xff]  }
  0x17   : > { %439 = vmatpush1.bf16.msra.mxu1 %v1364_v4  ;;  %611 = vmatpush1.bf16.msra.mxu0 %v1364_v4  ;;  %v1384_v17 = vld [vmem:[%s1525_s9] sm:$0xff]   ;;  %v1393_v23 = vld [vmem:[%s1520_s6 + $0x34] ss:$8 sps:$4 sm:$0xff]   ;;  %v1391_v24 = vld [vmem:[%s1520_s6 + $0x30] ss:$8 sps:$4 sm:$0xff]   ;;  %s1339_s10 = sshll.u32 %s1631_s20, 5 }
  0x18   : > { %440 = vmatprep.subr.bf16.mxu1 %v1365_v5  ;;  %612 = vmatprep.subr.bf16.mxu0 %v1365_v5  ;;  %v1390_v21 = vld [vmem:[%s1520_s6 + $0x24] ss:$8 sps:$4 sm:$0xff]   ;;  %v1388_v22 = vld [vmem:[%s1520_s6 + $0x20] ss:$8 sps:$4 sm:$0xff]   ;;  %v1399_v27 = vld [vmem:[%s1520_s6 + $0x54] ss:$8 sps:$4 sm:$0xff]   ;;  %s1598_s13 = scalar_lea.vmem %s1629_s5, %s1339_s10  ;;  %s1603_s16 = scalar_lea.vmem %s1628_s4, %s1339_s10 }
  0x19   : > { %v1396_v25 = vld [vmem:[%s1520_s6 + $0x44] ss:$8 sps:$4 sm:$0xff]   ;;  %v1394_v26 = vld [vmem:[%s1520_s6 + $0x40] ss:$8 sps:$4 sm:$0xff]   ;;  %v1397_v28 = vld [vmem:[%s1520_s6 + $0x50] ss:$8 sps:$4 sm:$0xff]  }
  0x1a   : > { %v1402_v29 = vld [vmem:[%s1520_s6 + $0x64] ss:$8 sps:$4 sm:$0xff]   ;;  %v1400_v30 = vld [vmem:[%s1520_s6 + $0x60] ss:$8 sps:$4 sm:$0xff]   ;;  %v1405_v31 = vld [vmem:[%s1508_s28 + $0x74] ss:$8 sps:$4 sm:$0xff]  }
  0x1b   : > { %441 = vmatpush1.bf16.msra.mxu1 %v1367_v6  ;;  %613 = vmatpush1.bf16.msra.mxu0 %v1367_v6  ;;  %v1403_v32 = vld [vmem:[%s1508_s28 + $0x70] ss:$8 sps:$4 sm:$0xff]   ;;  %v1408_v33 = vld [vmem:[%s1508_s28 + $0x84] ss:$8 sps:$4 sm:$0xff]   ;;  %v1406_v34 = vld [vmem:[%s1508_s28 + $0x80] ss:$8 sps:$4 sm:$0xff]  }
  0x1c   : > { %442 = vmatprep.subr.bf16.mxu1 %v1368_v7  ;;  %614 = vmatprep.subr.bf16.mxu0 %v1368_v7  ;;  %v1411_v35 = vld [vmem:[%s1508_s28 + $0x94] ss:$8 sps:$4 sm:$0xff]   ;;  %v1409_v36 = vld [vmem:[%s1508_s28 + $0x90] ss:$8 sps:$4 sm:$0xff]   ;;  %v1414_v37 = vld [vmem:[%s1508_s28 + $0xa4] ss:$8 sps:$4 sm:$0xff]  }
  0x1d   : > { %v1412_v38 = vld [vmem:[%s1508_s28 + $0xa0] ss:$8 sps:$4 sm:$0xff]   ;;  %v1417_v39 = vld [vmem:[%s1508_s28 + $0xb4] ss:$8 sps:$4 sm:$0xff]   ;;  %v1415_v40 = vld [vmem:[%s1508_s28 + $0xb0] ss:$8 sps:$4 sm:$0xff]  }
  0x1e   : > { %v1420_v41 = vld [vmem:[%s1508_s28 + $0xc4] ss:$8 sps:$4 sm:$0xff]   ;;  %v1418_v42 = vld [vmem:[%s1508_s28 + $0xc0] ss:$8 sps:$4 sm:$0xff]   ;;  %v1423_v43 = vld [vmem:[%s1508_s28 + $0xd4] ss:$8 sps:$4 sm:$0xff]  }
  0x1f   : > { %443 = vmatpush1.bf16.msra.mxu1 %v1370_v8  ;;  %615 = vmatpush1.bf16.msra.mxu0 %v1370_v8  ;;  %v1421_v44 = vld [vmem:[%s1508_s28 + $0xd0] ss:$8 sps:$4 sm:$0xff]   ;;  %v1427_v45 = vld [vmem:[%s1520_s6 + $0x74] ss:$8 sps:$4 sm:$0xff]   ;;  %v1428_v47 = vld [vmem:[%s1525_s9 + $0x8] sm:$0xff]  }
  0x20   : > { %444 = vmatprep.subr.bf16.mxu1 %v1371_v9  ;;  %616 = vmatprep.subr.bf16.mxu0 %v1371_v9  ;;  %v1425_v48 = vld [vmem:[%s1520_s6 + $0x70] ss:$8 sps:$4 sm:$0xff]   ;;  %v1431_v49 = vld [vmem:[%s1520_s6 + $0x84] ss:$8 sps:$4 sm:$0xff]   ;;  %v1429_v50 = vld [vmem:[%s1520_s6 + $0x80] ss:$8 sps:$4 sm:$0xff]  }
  0x21   : > { %v1434_v51 = vld [vmem:[%s1520_s6 + $0x94] ss:$8 sps:$4 sm:$0xff]   ;;  %v1432_v52 = vld [vmem:[%s1520_s6 + $0x90] ss:$8 sps:$4 sm:$0xff]   ;;  %v1437_v53 = vld [vmem:[%s1520_s6 + $0xa4] ss:$8 sps:$4 sm:$0xff]  }
  0x22   : > { %v1435_v54 = vld [vmem:[%s1520_s6 + $0xa0] ss:$8 sps:$4 sm:$0xff]   ;;  %v1440_v55 = vld [vmem:[%s1520_s6 + $0xb4] ss:$8 sps:$4 sm:$0xff]   ;;  %v1438_v56 = vld [vmem:[%s1520_s6 + $0xb0] ss:$8 sps:$4 sm:$0xff]  }
  0x23   : > { %445 = vmatpush1.bf16.msra.mxu1 %v1373_v10  ;;  %617 = vmatpush1.bf16.msra.mxu0 %v1373_v10  ;;  %v1443_v57 = vld [vmem:[%s1520_s6 + $0xc4] ss:$8 sps:$4 sm:$0xff]   ;;  %v1441_v58 = vld [vmem:[%s1520_s6 + $0xc0] ss:$8 sps:$4 sm:$0xff]   ;;  %v1446_v59 = vld [vmem:[%s1520_s6 + $0xd4] ss:$8 sps:$4 sm:$0xff]  }
  0x24   : > { %446 = vmatprep.subr.bf16.mxu1 %v1374_v11  ;;  %618 = vmatprep.subr.bf16.mxu0 %v1374_v11  ;;  %v1444_v60 = vld [vmem:[%s1520_s6 + $0xd0] ss:$8 sps:$4 sm:$0xff]  }
  0x27   : > { %447 = vmatpush1.bf16.msra.mxu1 %v1376_v12  ;;  %619 = vmatpush1.bf16.msra.mxu0 %v1376_v12 }
  0x28   : > { %448 = vmatprep.subr.bf16.mxu1 %v1377_v13  ;;  %620 = vmatprep.subr.bf16.mxu0 %v1377_v13 }
  0x2b   : > { %449 = vmatpush1.bf16.msra.mxu1 %v1379_v14  ;;  %621 = vmatpush1.bf16.msra.mxu0 %v1379_v14 }
  0x2c   : > { %557 = vmatprep.subr.bf16.mxu1 %v1383_v15  ;;  %651 = vmatprep.subr.bf16.mxu0 %v1383_v15 }
  0x2e   : > { %1242 = vmatmul.mubr.msk.bf16.vlgmr.msra.gmra.mrb[0].mxu1 %vm432_vm0, %v1380_v16  ;;  %1259 = vmatmul.mubr.msk.bf16.vlgmr.msra.gmra.mrb[0].mxu0 %vm432_vm0, %v1384_v17 }
  0x2f   : > { %558 = vmatpush1.bf16.msra.mxu1 %v1381_v18  ;;  %652 = vmatpush1.bf16.msra.mxu0 %v1381_v18 }
  0x30   : > { %559 = vmatprep.subr.bf16.mxu1 %v1387_v19  ;;  %653 = vmatprep.subr.bf16.mxu0 %v1387_v19 }
  0x31   : > { %589 = vmatprep.mubr.bf16.mxu1 %v1455_v0  ;;  %683 = vmatprep.mubr.bf16.mxu0 %v1455_v0 }
  0x33   : > { %560 = vmatpush1.bf16.msra.mxu1 %v1385_v20  ;;  %654 = vmatpush1.bf16.msra.mxu0 %v1385_v20 }
  0x34   : > { %561 = vmatprep.subr.bf16.mxu1 %v1390_v21  ;;  %655 = vmatprep.subr.bf16.mxu0 %v1390_v21 }
  0x37   : > { %562 = vmatpush1.bf16.msra.mxu1 %v1388_v22  ;;  %656 = vmatpush1.bf16.msra.mxu0 %v1388_v22 }
  0x38   : > { %563 = vmatprep.subr.bf16.mxu1 %v1393_v23  ;;  %657 = vmatprep.subr.bf16.mxu0 %v1393_v23 }
  0x3b   : > { %564 = vmatpush1.bf16.msra.mxu1 %v1391_v24  ;;  %658 = vmatpush1.bf16.msra.mxu0 %v1391_v24 }
  0x3c   : > { %565 = vmatprep.subr.bf16.mxu1 %v1396_v25  ;;  %659 = vmatprep.subr.bf16.mxu0 %v1396_v25 }
  0x3f   : > { %566 = vmatpush1.bf16.msra.mxu1 %v1394_v26  ;;  %660 = vmatpush1.bf16.msra.mxu0 %v1394_v26 }
  0x40   : > { %567 = vmatprep.subr.bf16.mxu1 %v1399_v27  ;;  %661 = vmatprep.subr.bf16.mxu0 %v1399_v27 }
  0x43   : > { %568 = vmatpush1.bf16.msra.mxu1 %v1397_v28  ;;  %662 = vmatpush1.bf16.msra.mxu0 %v1397_v28 }
  0x44   : > { %569 = vmatprep.subr.bf16.mxu1 %v1402_v29  ;;  %663 = vmatprep.subr.bf16.mxu0 %v1402_v29 }
  0x47   : > { %570 = vmatpush1.bf16.msra.mxu1 %v1400_v30  ;;  %664 = vmatpush1.bf16.msra.mxu0 %v1400_v30 }
  0x48   : > { %812 = vmatprep.subr.bf16.mxu1 %v1405_v31  ;;  %985 = vmatprep.subr.bf16.mxu0 %v1405_v31 }
  0x4a   : > { %1258 = vmatmul.mubr.msk.bf16.vlgmr.msra.gmra.mrb[4].mxu1 %vm432_vm0, %v1384_v17  ;;  %1260 = vmatmul.mubr.msk.bf16.vlgmr.msra.gmra.mrb[0].mxu0 %vm432_vm0, %v1380_v16 }
  0x4b   : > { %813 = vmatpush1.bf16.msra.mxu1 %v1403_v32  ;;  %986 = vmatpush1.bf16.msra.mxu0 %v1403_v32 }
  0x4c   : > { %814 = vmatprep.subr.bf16.mxu1 %v1408_v33  ;;  %987 = vmatprep.subr.bf16.mxu0 %v1408_v33 }
  0x4d   : > { %844 = vmatprep.mubr.bf16.mxu1 %v1455_v0  ;;  %1017 = vmatprep.mubr.bf16.mxu0 %v1455_v0 }
  0x4f   : > { %815 = vmatpush1.bf16.msra.mxu1 %v1406_v34  ;;  %988 = vmatpush1.bf16.msra.mxu0 %v1406_v34 }
  0x50   : > { %816 = vmatprep.subr.bf16.mxu1 %v1411_v35  ;;  %989 = vmatprep.subr.bf16.mxu0 %v1411_v35 }
  0x53   : > { %817 = vmatpush1.bf16.msra.mxu1 %v1409_v36  ;;  %990 = vmatpush1.bf16.msra.mxu0 %v1409_v36 }
  0x54   : > { %818 = vmatprep.subr.bf16.mxu1 %v1414_v37  ;;  %991 = vmatprep.subr.bf16.mxu0 %v1414_v37 }
  0x57   : > { %819 = vmatpush1.bf16.msra.mxu1 %v1412_v38  ;;  %992 = vmatpush1.bf16.msra.mxu0 %v1412_v38 }
  0x58   : > { %820 = vmatprep.subr.bf16.mxu1 %v1417_v39  ;;  %993 = vmatprep.subr.bf16.mxu0 %v1417_v39 }
  0x5b   : > { %821 = vmatpush1.bf16.msra.mxu1 %v1415_v40  ;;  %994 = vmatpush1.bf16.msra.mxu0 %v1415_v40 }
  0x5c   : > { %822 = vmatprep.subr.bf16.mxu1 %v1420_v41  ;;  %995 = vmatprep.subr.bf16.mxu0 %v1420_v41 }
  0x5f   : > { %823 = vmatpush1.bf16.msra.mxu1 %v1418_v42  ;;  %996 = vmatpush1.bf16.msra.mxu0 %v1418_v42 }
  0x60   : > { %824 = vmatprep.subr.bf16.mxu1 %v1423_v43  ;;  %997 = vmatprep.subr.bf16.mxu0 %v1423_v43 }
  0x63   : > { %825 = vmatpush1.bf16.msra.mxu1 %v1421_v44  ;;  %998 = vmatpush1.bf16.msra.mxu0 %v1421_v44 }
  0x64   : > { %933 = vmatprep.subr.bf16.mxu1 %v1427_v45  ;;  %1028 = vmatprep.subr.bf16.mxu0 %v1427_v45 }
  0x66   : > { %1308 = vmatmul.mubr.msk.bf16.vlgmr.msra.gmra.mrb[8].mxu1 %vm432_vm0, %v1424_v46  ;;  %1329 = vmatmul.mubr.msk.bf16.vlgmr.msra.gmra.mrb[4].mxu0 %vm432_vm0, %v1428_v47 }
  0x67   : > { %934 = vmatpush1.bf16.msra.mxu1 %v1425_v48  ;;  %1029 = vmatpush1.bf16.msra.mxu0 %v1425_v48 }
  0x68   : > { %935 = vmatprep.subr.bf16.mxu1 %v1431_v49  ;;  %1030 = vmatprep.subr.bf16.mxu0 %v1431_v49 }
  0x69   : > { %965 = vmatprep.mubr.bf16.mxu1 %v1455_v0  ;;  %1060 = vmatprep.mubr.bf16.mxu0 %v1455_v0 }
  0x6b   : > { %936 = vmatpush1.bf16.msra.mxu1 %v1429_v50  ;;  %1031 = vmatpush1.bf16.msra.mxu0 %v1429_v50 }
  0x6c   : > { %937 = vmatprep.subr.bf16.mxu1 %v1434_v51  ;;  %1032 = vmatprep.subr.bf16.mxu0 %v1434_v51 }
  0x6f   : > { %938 = vmatpush1.bf16.msra.mxu1 %v1432_v52  ;;  %1033 = vmatpush1.bf16.msra.mxu0 %v1432_v52 }
  0x70   : > { %939 = vmatprep.subr.bf16.mxu1 %v1437_v53  ;;  %1034 = vmatprep.subr.bf16.mxu0 %v1437_v53 }
  0x73   : > { %940 = vmatpush1.bf16.msra.mxu1 %v1435_v54  ;;  %1035 = vmatpush1.bf16.msra.mxu0 %v1435_v54 }
  0x74   : > { %941 = vmatprep.subr.bf16.mxu1 %v1440_v55  ;;  %1036 = vmatprep.subr.bf16.mxu0 %v1440_v55 }
  0x77   : > { %942 = vmatpush1.bf16.msra.mxu1 %v1438_v56  ;;  %1037 = vmatpush1.bf16.msra.mxu0 %v1438_v56 }
  0x78   : > { %943 = vmatprep.subr.bf16.mxu1 %v1443_v57  ;;  %1038 = vmatprep.subr.bf16.mxu0 %v1443_v57 }
  0x7b   : > { %944 = vmatpush1.bf16.msra.mxu1 %v1441_v58  ;;  %1039 = vmatpush1.bf16.msra.mxu0 %v1441_v58 }
  0x7c   : > { %945 = vmatprep.subr.bf16.mxu1 %v1446_v59  ;;  %1040 = vmatprep.subr.bf16.mxu0 %v1446_v59 }
  0x7f   : > { %946 = vmatpush1.bf16.msra.mxu1 %v1444_v60  ;;  %1041 = vmatpush1.bf16.msra.mxu0 %v1444_v60 }
  0x82   : > { %1324 = vmatmul.mubr.msk.bf16.vlgmr.msra.gmra.mrb[12].mxu1 %vm432_vm0, %v1428_v47  ;;  %1330 = vmatmul.mubr.msk.bf16.vlgmr.msra.gmra.mrb[4].mxu0 %vm432_vm0, %v1424_v46 }
 0x101   : > { %v470_v61 = vpop.f32.mrb[0].mxu1 }
 0x102   : > { %v472_v62 = vpop.f32.mrb[1].mxu1 }
 0x103   : > { %v474_v63 = vpop.f32.mrb[2].mxu1 }
 0x104   : > { %v476_v0 = vpop.f32.mrb[3].mxu1 }
 0x11d   : > { %v591_v1 = vpop.f32.mrb[4].mxu1  ;;  %v685_v2 = vpop.f32.mrb[0].mxu0 }
 0x11e   : > { %v600_v3 = vsub.f32 %v470_v61, %v591_v1  ;;  %694 = vst [vmem:[%s1598_s13] sm:$0xff] %v685_v2  ;;  %v593_v4 = vpop.f32.mrb[5].mxu1  ;;  %v687_v5 = vpop.f32.mrb[1].mxu0 }
 0x11f   : > { %v601_v6 = vsub.f32 %v472_v62, %v593_v4  ;;  %695 = vst [vmem:[%s1598_s13 + $0x8] sm:$0xff] %v687_v5  ;;  %v595_v7 = vpop.f32.mrb[6].mxu1  ;;  %v689_v8 = vpop.f32.mrb[2].mxu0 }
 0x120   : > { %604 = vst [vmem:[%s1603_s16] sm:$0xff] %v600_v3  ;;  %v602_v9 = vsub.f32 %v474_v63, %v595_v7  ;;  %696 = vst [vmem:[%s1598_s13 + $0x10] sm:$0xff] %v689_v8  ;;  %v597_v10 = vpop.f32.mrb[7].mxu1  ;;  %v691_v11 = vpop.f32.mrb[3].mxu0 }
 0x121   : > { %605 = vst [vmem:[%s1603_s16 + $0x8] sm:$0xff] %v601_v6  ;;  %v603_v12 = vsub.f32 %v476_v0, %v597_v10  ;;  %697 = vst [vmem:[%s1598_s13 + $0x18] sm:$0xff] %v691_v11 }
 0x122   : > { %606 = vst [vmem:[%s1603_s16 + $0x10] sm:$0xff] %v602_v9 }
 0x123   : > { %607 = vst [vmem:[%s1603_s16 + $0x18] sm:$0xff] %v603_v12 }
 0x139   : > { %v846_v13 = vpop.f32.mrb[8].mxu1 }
 0x13a   : > { %v848_v14 = vpop.f32.mrb[9].mxu1 }
 0x13b   : > { %v850_v15 = vpop.f32.mrb[10].mxu1 }
 0x13c   : > { %v852_v16 = vpop.f32.mrb[11].mxu1 }
 0x155   : > { %v967_v17 = vpop.f32.mrb[12].mxu1  ;;  %v1062_v18 = vpop.f32.mrb[4].mxu0 }
 0x156   : > { %v976_v19 = vsub.f32 %v846_v13, %v967_v17  ;;  %1331 = vst [vmem:[%s1598_s13 + $0x20] sm:$0xff] %v1062_v18  ;;  %v969_v20 = vpop.f32.mrb[13].mxu1  ;;  %v1064_v21 = vpop.f32.mrb[5].mxu0 }
 0x157   : > { %v977_v22 = vsub.f32 %v848_v14, %v969_v20  ;;  %1332 = vst [vmem:[%s1598_s13 + $0x28] sm:$0xff] %v1064_v21  ;;  %v971_v23 = vpop.f32.mrb[14].mxu1  ;;  %v1066_v24 = vpop.f32.mrb[6].mxu0 }
 0x158   : > { %1325 = vst [vmem:[%s1603_s16 + $0x20] sm:$0xff] %v976_v19  ;;  %v978_v25 = vsub.f32 %v850_v15, %v971_v23  ;;  %1333 = vst [vmem:[%s1598_s13 + $0x30] sm:$0xff] %v1066_v24  ;;  %v973_v26 = vpop.f32.mrb[15].mxu1  ;;  %v1068_v27 = vpop.f32.mrb[7].mxu0 }
 0x159   : > { %1326 = vst [vmem:[%s1603_s16 + $0x28] sm:$0xff] %v977_v22  ;;  %v979_v28 = vsub.f32 %v852_v16, %v973_v26  ;;  %1334 = vst [vmem:[%s1598_s13 + $0x38] sm:$0xff] %v1068_v27 }
 0x15a   : > { %1327 = vst [vmem:[%s1603_s16 + $0x30] sm:$0xff] %v978_v25 }
 0x15b   : > { %1328 = vst [vmem:[%s1603_s16 + $0x38] sm:$0xff] %v979_v28 }
 0x15c PF: > { %s16_s18 = sadd.s32 1, %s1453_s18  }
 0x15d   : > { %p13_p4 = scmp.ge.s32.totalorder %s16_s18, 4  }
 0x15f   :  { %15 = sbr.rel (!%p13_p4) target bundleno = 1 (0x1), region = 93 }

// kernel: _lambda_.13
= control target key start
LH: loop header
LB: loop body
LE: loop exit
PB: predicated region body
PF: predicated region fallthrough
CT: control target
= control target key end

     0   :  { %s1803_s18 = smov 0   ;;  %s2005_s0 = inlined_call_operand.vmem [shape: bf16[4,16,168], index: 0, kind: input, shape index: {}]   ;;  %s2006_s1 = inlined_call_operand.vmem [shape: bf16[4,16,168], index: 1, kind: input, shape index: {}]   ;;  %s2007_s2 = inlined_call_operand.vmem [shape: bf16[4,168,256], index: 2, kind: input, shape index: {}]   ;;  %s2008_s3 = inlined_call_operand.vmem [shape: bf16[4,168,256], index: 3, kind: input, shape index: {}]   ;;  %s2009_s4 = inlined_call_operand.vmem [shape: f32[4,16,256], index: 4, kind: output, shape index: {0}]   ;;  %s2010_s5 = inlined_call_operand.vmem [shape: f32[4,16,256], index: 5, kind: output, shape index: {1}]  }
   0x1 LB: > { %s1415_s19 = sadd.s32 4294967295, %s1771_s18   ;;  %p1419_p0 = scmp.ge.s32.totalorder %s1771_s18, 1  ;;  %s1771_s18 = sphi %s1803_s18, %s16_s18  }
   0x2   : > { %p228_p1 = scmp.lt.s32.totalorder %s1771_s18, 3 }
   0x4   : > { %p229_p2 = pnand %p1419_p0, %p228_p1 }
   0x5   : > { %s1420_s20 = sshll.u32 (!%p229_p2), %s1415_s19, 1  ;;  %vm485_vm0 = vcmask (!%p229_p2), 326656   ;;  %vm489_vm1 = vcmask (!%p229_p2), 1043456  }
   0x6   : > { %232 = sbr.rel (%p229_p2) target bundleno = 412 (0x19c), region = 36  ;;  %p283_p3 = scmp.lt.s32.totalorder (!%p229_p2), %s1420_s20, 3 }
   0xd   : > { %s2012_s20 = smov (!%p283_p3, %s1420_s20), 3 }
   0xe   : > { %s1616_s21 = smul.u32 168, %s2012_s20  ;;  %s1604_s22 = sshll.u32 %s2012_s20, 4 }
   0xf   : > { %s1818_s25 = scalar_lea.vmem %s2005_s0, %s1604_s22  ;;  %s1845_s9 = scalar_lea.vmem %s2006_s1, %s1604_s22 }
  0x10   : > { %s1823_s28 = scalar_lea.vmem %s2007_s2, %s1616_s21  ;;  %v1835_v9 = vld [vmem:[%s1818_s25 + $0x4] ss:$8 sps:$4 sm:$0xff]   ;;  %s1840_s6 = scalar_lea.vmem %s2008_s3, %s1616_s21  ;;  %v1868_v27 = vld [vmem:[%s1818_s25] ss:$8 sps:$4 sm:$0xff]   ;;  %v1905_v55 = vld [vmem:[%s1818_s25 + $0x14] ss:$8 sps:$4 sm:$0xff]  }
  0x11   : > { %v1625_v0 = vld [vmem:[%s1823_s28 + $0x4] ss:$8 sps:$4 sm:$0xff]   ;;  %v1627_v1 = vld [vmem:[%s1823_s28] ss:$8 sps:$4 sm:$0xff]   ;;  %v1628_v2 = vld [vmem:[%s1823_s28 + $0x14] ss:$8 sps:$4 sm:$0xff]   ;;  %1461 = vmatprep.mubr.msk.bf16.mxu1 %vm485_vm0, %v1835_v9 }
  0x12   : > { %496 = vmatprep.subr.bf16.mxu1 %v1625_v0  ;;  %713 = vmatprep.subr.bf16.mxu0 %v1625_v0  ;;  %v1630_v3 = vld [vmem:[%s1823_s28 + $0x10] ss:$8 sps:$4 sm:$0xff]   ;;  %v1631_v4 = vld [vmem:[%s1823_s28 + $0x24] ss:$8 sps:$4 sm:$0xff]   ;;  %v1633_v5 = vld [vmem:[%s1823_s28 + $0x20] ss:$8 sps:$4 sm:$0xff]  }
  0x13   : > { %497 = vmatpush1.bf16.msra.mxu1 %v1627_v1  ;;  %714 = vmatpush1.bf16.msra.mxu0 %v1627_v1  ;;  %v1634_v6 = vld [vmem:[%s1823_s28 + $0x34] ss:$8 sps:$4 sm:$0xff]   ;;  %v1636_v7 = vld [vmem:[%s1823_s28 + $0x30] ss:$8 sps:$4 sm:$0xff]   ;;  %v1637_v8 = vld [vmem:[%s1823_s28 + $0x44] ss:$8 sps:$4 sm:$0xff]  }
  0x14   : > { %498 = vmatprep.subr.bf16.mxu1 %v1628_v2  ;;  %715 = vmatprep.subr.bf16.mxu0 %v1628_v2  ;;  %v1639_v10 = vld [vmem:[%s1823_s28 + $0x40] ss:$8 sps:$4 sm:$0xff]   ;;  %v1640_v11 = vld [vmem:[%s1823_s28 + $0x54] ss:$8 sps:$4 sm:$0xff]   ;;  %v1665_v12 = vld [vmem:[%s1845_s9 + $0x4] ss:$8 sps:$4 sm:$0xff]  }
  0x15   : > { %1489 = vmatprep.mubr.msk.bf16.mxu0 %vm485_vm0, %v1665_v12  ;;  %v1642_v13 = vld [vmem:[%s1823_s28 + $0x50] ss:$8 sps:$4 sm:$0xff]   ;;  %v1643_v14 = vld [vmem:[%s1823_s28 + $0x64] ss:$8 sps:$4 sm:$0xff]   ;;  %v1645_v15 = vld [vmem:[%s1823_s28 + $0x60] ss:$8 sps:$4 sm:$0xff]  }
  0x16   : > { %v1646_v16 = vld [vmem:[%s1823_s28 + $0x74] ss:$8 sps:$4 sm:$0xff]   ;;  %v1648_v17 = vld [vmem:[%s1823_s28 + $0x70] ss:$8 sps:$4 sm:$0xff]   ;;  %v1649_v18 = vld [vmem:[%s1823_s28 + $0x84] ss:$8 sps:$4 sm:$0xff]  }
  0x17   : > { %499 = vmatpush1.bf16.msra.mxu1 %v1630_v3  ;;  %716 = vmatpush1.bf16.msra.mxu0 %v1630_v3  ;;  %v1651_v19 = vld [vmem:[%s1823_s28 + $0x80] ss:$8 sps:$4 sm:$0xff]   ;;  %v1652_v20 = vld [vmem:[%s1823_s28 + $0x94] ss:$8 sps:$4 sm:$0xff]   ;;  %v1654_v22 = vld [vmem:[%s1823_s28 + $0x90] ss:$8 sps:$4 sm:$0xff]  }
  0x18   : > { %500 = vmatprep.subr.bf16.mxu1 %v1631_v4  ;;  %717 = vmatprep.subr.bf16.mxu0 %v1631_v4  ;;  %v349_v21 = vld [vmem:[%s1823_s28 + $0xa0] sm:$0xff]  ;;  %v1668_v30 = vld [vmem:[%s1840_s6 + $0x14] ss:$8 sps:$4 sm:$0xff]   ;;  %v1666_v31 = vld [vmem:[%s1840_s6 + $0x10] ss:$8 sps:$4 sm:$0xff]   ;;  %s1606_s10 = sshll.u32 %s2012_s20, 5 }
  0x19   : > { %v1459_v23 = vcombine.high %v349_v21, %v349_v21  ;;  %v1458_v24 = vcombine.low %v349_v21, %v349_v21  ;;  %v1662_v26 = vld [vmem:[%s1840_s6 + $0x4] ss:$8 sps:$4 sm:$0xff]   ;;  %v1871_v28 = vld [vmem:[%s1845_s9] ss:$8 sps:$4 sm:$0xff]   ;;  %v1674_v34 = vld [vmem:[%s1840_s6 + $0x34] ss:$8 sps:$4 sm:$0xff]   ;;  %s1979_s13 = scalar_lea.vmem %s2010_s5, %s1606_s10  ;;  %s1984_s16 = scalar_lea.vmem %s2009_s4, %s1606_s10 }
  0x1a   : > { %v1660_v29 = vld [vmem:[%s1840_s6] ss:$8 sps:$4 sm:$0xff]   ;;  %v1671_v32 = vld [vmem:[%s1840_s6 + $0x24] ss:$8 sps:$4 sm:$0xff]   ;;  %v1672_v35 = vld [vmem:[%s1840_s6 + $0x30] ss:$8 sps:$4 sm:$0xff]  }
  0x1b   : > { %501 = vmatpush1.bf16.msra.mxu1 %v1633_v5  ;;  %718 = vmatpush1.bf16.msra.mxu0 %v1633_v5  ;;  %v491_v25 = vsel %vm489_vm1, %v1458_v24, 0  ;;  %v1669_v33 = vld [vmem:[%s1840_s6 + $0x20] ss:$8 sps:$4 sm:$0xff]   ;;  %v1677_v36 = vld [vmem:[%s1840_s6 + $0x44] ss:$8 sps:$4 sm:$0xff]  }
  0x1c   : > { %502 = vmatprep.subr.bf16.mxu1 %v1634_v6  ;;  %719 = vmatprep.subr.bf16.mxu0 %v1634_v6  ;;  %v1675_v37 = vld [vmem:[%s1840_s6 + $0x40] ss:$8 sps:$4 sm:$0xff]   ;;  %v1680_v38 = vld [vmem:[%s1840_s6 + $0x54] ss:$8 sps:$4 sm:$0xff]   ;;  %v1678_v39 = vld [vmem:[%s1840_s6 + $0x50] ss:$8 sps:$4 sm:$0xff]  }
  0x1d   : > { %v1683_v40 = vld [vmem:[%s1840_s6 + $0x64] ss:$8 sps:$4 sm:$0xff]   ;;  %v1681_v41 = vld [vmem:[%s1840_s6 + $0x60] ss:$8 sps:$4 sm:$0xff]   ;;  %v1686_v42 = vld [vmem:[%s1840_s6 + $0x74] ss:$8 sps:$4 sm:$0xff]  }
  0x1e   : > { %v1684_v43 = vld [vmem:[%s1840_s6 + $0x70] ss:$8 sps:$4 sm:$0xff]   ;;  %v1689_v44 = vld [vmem:[%s1840_s6 + $0x84] ss:$8 sps:$4 sm:$0xff]   ;;  %v1687_v45 = vld [vmem:[%s1840_s6 + $0x80] ss:$8 sps:$4 sm:$0xff]  }
  0x1f   : > { %503 = vmatpush1.bf16.msra.mxu1 %v1636_v7  ;;  %720 = vmatpush1.bf16.msra.mxu0 %v1636_v7  ;;  %v1692_v46 = vld [vmem:[%s1840_s6 + $0x94] ss:$8 sps:$4 sm:$0xff]   ;;  %v370_v47 = vld [vmem:[%s1840_s6 + $0xa0] sm:$0xff]  ;;  %v1690_v48 = vld [vmem:[%s1840_s6 + $0x90] ss:$8 sps:$4 sm:$0xff]  }
  0x20   : > { %504 = vmatprep.subr.bf16.mxu1 %v1637_v8  ;;  %721 = vmatprep.subr.bf16.mxu0 %v1637_v8  ;;  %v1485_v49 = vcombine.high %v370_v47, %v370_v47  ;;  %v1484_v50 = vcombine.low %v370_v47, %v370_v47  ;;  %v1697_v52 = vld [vmem:[%s1823_s28 + $0xac] ss:$8 sps:$4 sm:$0xff]   ;;  %v1695_v53 = vld [vmem:[%s1823_s28 + $0xa8] ss:$8 sps:$4 sm:$0xff]   ;;  %v1700_v54 = vld [vmem:[%s1823_s28 + $0xbc] ss:$8 sps:$4 sm:$0xff]  }
  0x21   : > { %v1908_v56 = vld [vmem:[%s1845_s9 + $0x14] ss:$8 sps:$4 sm:$0xff]   ;;  %v1698_v57 = vld [vmem:[%s1823_s28 + $0xb8] ss:$8 sps:$4 sm:$0xff]   ;;  %v1701_v59 = vld [vmem:[%s1823_s28 + $0xc8] ss:$8 sps:$4 sm:$0xff]  }
  0x22   : > { %v657_v51 = vsel %vm489_vm1, %v1484_v50, 0  ;;  %v1703_v58 = vld [vmem:[%s1823_s28 + $0xcc] ss:$8 sps:$4 sm:$0xff]   ;;  %v1706_v60 = vld [vmem:[%s1823_s28 + $0xdc] ss:$8 sps:$4 sm:$0xff]  }
  0x23   : > { %505 = vmatpush1.bf16.msra.mxu1 %v1639_v10  ;;  %722 = vmatpush1.bf16.msra.mxu0 %v1639_v10  ;;  %v1704_v61 = vld [vmem:[%s1823_s28 + $0xd8] ss:$8 sps:$4 sm:$0xff]   ;;  %v1709_v62 = vld [vmem:[%s1823_s28 + $0xec] ss:$8 sps:$4 sm:$0xff]   ;;  %v1707_v63 = vld [vmem:[%s1823_s28 + $0xe8] ss:$8 sps:$4 sm:$0xff]  }
  0x24   : > { %506 = vmatprep.subr.bf16.mxu1 %v1640_v11  ;;  %723 = vmatprep.subr.bf16.mxu0 %v1640_v11  ;;  %v1712_v0 = vld [vmem:[%s1823_s28 + $0xfc] ss:$8 sps:$4 sm:$0xff]   ;;  %v1710_v1 = vld [vmem:[%s1823_s28 + $0xf8] ss:$8 sps:$4 sm:$0xff]   ;;  %v1715_v2 = vld [vmem:[%s1823_s28 + $0x10c] ss:$8 sps:$4 sm:$0xff]  }
  0x25   : > { %v1713_v3 = vld [vmem:[%s1823_s28 + $0x108] ss:$8 sps:$4 sm:$0xff]   ;;  %v1718_v4 = vld [vmem:[%s1823_s28 + $0x11c] ss:$8 sps:$4 sm:$0xff]   ;;  %v1716_v5 = vld [vmem:[%s1823_s28 + $0x118] ss:$8 sps:$4 sm:$0xff]  }
  0x26   : > { %v1721_v6 = vld [vmem:[%s1823_s28 + $0x12c] ss:$8 sps:$4 sm:$0xff]   ;;  %v1719_v7 = vld [vmem:[%s1823_s28 + $0x128] ss:$8 sps:$4 sm:$0xff]   ;;  %v1724_v8 = vld [vmem:[%s1823_s28 + $0x13c] ss:$8 sps:$4 sm:$0xff]  }
  0x27   : > { %507 = vmatpush1.bf16.msra.mxu1 %v1642_v13  ;;  %724 = vmatpush1.bf16.msra.mxu0 %v1642_v13  ;;  %v1722_v10 = vld [vmem:[%s1823_s28 + $0x138] ss:$8 sps:$4 sm:$0xff]   ;;  %v1739_v21 = vld [vmem:[%s1840_s6 + $0xc8] ss:$8 sps:$4 sm:$0xff]   ;;  %v1747_v24 = vld [vmem:[%s1840_s6 + $0xec] ss:$8 sps:$4 sm:$0xff]  }
  0x28   : > { %508 = vmatprep.subr.bf16.mxu1 %v1643_v14  ;;  %725 = vmatprep.subr.bf16.mxu0 %v1643_v14  ;;  %v1732_v14 = vld [vmem:[%s1840_s6 + $0xac] ss:$8 sps:$4 sm:$0xff]  }
  0x2b   : > { %509 = vmatpush1.bf16.msra.mxu1 %v1645_v15  ;;  %726 = vmatpush1.bf16.msra.mxu0 %v1645_v15  ;;  %v1939_v15 = vld [vmem:[%s1818_s25 + $0x10] ss:$8 sps:$4 sm:$0xff]  }
  0x2c   : > { %510 = vmatprep.subr.bf16.mxu1 %v1646_v16  ;;  %727 = vmatprep.subr.bf16.mxu0 %v1646_v16  ;;  %v1942_v16 = vld [vmem:[%s1845_s9 + $0x10] ss:$8 sps:$4 sm:$0xff]  }
  0x2f   : > { %511 = vmatpush1.bf16.msra.mxu1 %v1648_v17  ;;  %728 = vmatpush1.bf16.msra.mxu0 %v1648_v17  ;;  %v1730_v17 = vld [vmem:[%s1840_s6 + $0xa8] ss:$8 sps:$4 sm:$0xff]  }
  0x30   : > { %512 = vmatprep.subr.bf16.mxu1 %v1649_v18  ;;  %729 = vmatprep.subr.bf16.mxu0 %v1649_v18  ;;  %v1738_v18 = vld [vmem:[%s1840_s6 + $0xbc] ss:$8 sps:$4 sm:$0xff]  }
  0x33   : > { %513 = vmatpush1.bf16.msra.mxu1 %v1651_v19  ;;  %730 = vmatpush1.bf16.msra.mxu0 %v1651_v19  ;;  %v1736_v19 = vld [vmem:[%s1840_s6 + $0xb8] ss:$8 sps:$4 sm:$0xff]  }
  0x34   : > { %514 = vmatprep.subr.bf16.mxu1 %v1652_v20  ;;  %731 = vmatprep.subr.bf16.mxu0 %v1652_v20  ;;  %v1741_v20 = vld [vmem:[%s1840_s6 + $0xcc] ss:$8 sps:$4 sm:$0xff]  }
  0x37   : > { %515 = vmatpush1.bf16.msra.mxu1 %v1654_v22  ;;  %732 = vmatpush1.bf16.msra.mxu0 %v1654_v22  ;;  %v1744_v22 = vld [vmem:[%s1840_s6 + $0xdc] ss:$8 sps:$4 sm:$0xff]  }
  0x38   : > { %1460 = vmatprep.subr.msk.bf16.mxu1 %vm489_vm1, %v1459_v23  ;;  %1488 = vmatprep.subr.msk.bf16.mxu0 %vm489_vm1, %v1459_v23  ;;  %v1742_v23 = vld [vmem:[%s1840_s6 + $0xd8] ss:$8 sps:$4 sm:$0xff]  }
  0x3b   : > { %517 = vmatpush1.bf16.msra.mxu1 %v491_v25  ;;  %734 = vmatpush1.bf16.msra.mxu0 %v491_v25  ;;  %v1745_v25 = vld [vmem:[%s1840_s6 + $0xe8] ss:$8 sps:$4 sm:$0xff]  }
  0x3c   : > { %662 = vmatprep.subr.bf16.mxu1 %v1662_v26  ;;  %756 = vmatprep.subr.bf16.mxu0 %v1662_v26  ;;  %v1750_v26 = vld [vmem:[%s1840_s6 + $0xfc] ss:$8 sps:$4 sm:$0xff]  }
  0x3e   : > { %529 = vmatmul.mubr.bf16.vlgmr.msra.gmra.mrb[0].mxu1 %v1868_v27  ;;  %746 = vmatmul.mubr.bf16.vlgmr.msra.gmra.mrb[0].mxu0 %v1871_v28 }
  0x3f   : > { %663 = vmatpush1.bf16.msra.mxu1 %v1660_v29  ;;  %757 = vmatpush1.bf16.msra.mxu0 %v1660_v29  ;;  %v1751_v29 = vld [vmem:[%s1840_s6 + $0x108] ss:$8 sps:$4 sm:$0xff]  }
  0x40   : > { %664 = vmatprep.subr.bf16.mxu1 %v1668_v30  ;;  %758 = vmatprep.subr.bf16.mxu0 %v1668_v30  ;;  %v1756_v30 = vld [vmem:[%s1840_s6 + $0x11c] ss:$8 sps:$4 sm:$0xff]  }
  0x41   : > { %1487 = vmatprep.mubr.msk.bf16.mxu1 %vm485_vm0, %v1665_v12  ;;  %1491 = vmatprep.mubr.msk.bf16.mxu0 %vm485_vm0, %v1835_v9  ;;  %v1516_v9 = vld [vmem:[%s1823_s28 + $0x148] sm:$0xff] }
  0x42   : > { %v1561_v11 = vcombine.high %v1516_v9, %v1516_v9  ;;  %v1560_v12 = vcombine.low %v1516_v9, %v1516_v9 }
  0x43   : > { %665 = vmatpush1.bf16.msra.mxu1 %v1666_v31  ;;  %759 = vmatpush1.bf16.msra.mxu0 %v1666_v31  ;;  %v1754_v31 = vld [vmem:[%s1840_s6 + $0x118] ss:$8 sps:$4 sm:$0xff]  }
  0x44   : > { %666 = vmatprep.subr.bf16.mxu1 %v1671_v32  ;;  %760 = vmatprep.subr.bf16.mxu0 %v1671_v32  ;;  %v971_v13 = vsel %vm489_vm1, %v1560_v12, 0  ;;  %v1759_v32 = vld [vmem:[%s1840_s6 + $0x12c] ss:$8 sps:$4 sm:$0xff]  }
  0x47   : > { %667 = vmatpush1.bf16.msra.mxu1 %v1669_v33  ;;  %761 = vmatpush1.bf16.msra.mxu0 %v1669_v33  ;;  %v1757_v33 = vld [vmem:[%s1840_s6 + $0x128] ss:$8 sps:$4 sm:$0xff]  }
  0x48   : > { %668 = vmatprep.subr.bf16.mxu1 %v1674_v34  ;;  %762 = vmatprep.subr.bf16.mxu0 %v1674_v34  ;;  %v1762_v34 = vld [vmem:[%s1840_s6 + $0x13c] ss:$8 sps:$4 sm:$0xff]  }
  0x4b   : > { %669 = vmatpush1.bf16.msra.mxu1 %v1672_v35  ;;  %763 = vmatpush1.bf16.msra.mxu0 %v1672_v35  ;;  %v1537_v35 = vld [vmem:[%s1840_s6 + $0x148] sm:$0xff] }
  0x4c   : > { %670 = vmatprep.subr.bf16.mxu1 %v1677_v36  ;;  %764 = vmatprep.subr.bf16.mxu0 %v1677_v36  ;;  %v1760_v36 = vld [vmem:[%s1840_s6 + $0x138] ss:$8 sps:$4 sm:$0xff]  }
  0x4f   : > { %671 = vmatpush1.bf16.msra.mxu1 %v1675_v37  ;;  %765 = vmatpush1.bf16.msra.mxu0 %v1675_v37  ;;  %v1587_v37 = vcombine.high %v1537_v35, %v1537_v35 }
  0x50   : > { %672 = vmatprep.subr.bf16.mxu1 %v1680_v38  ;;  %766 = vmatprep.subr.bf16.mxu0 %v1680_v38  ;;  %v1586_v38 = vcombine.low %v1537_v35, %v1537_v35 }
  0x53   : > { %673 = vmatpush1.bf16.msra.mxu1 %v1678_v39  ;;  %767 = vmatpush1.bf16.msra.mxu0 %v1678_v39  ;;  %v1137_v39 = vsel %vm489_vm1, %v1586_v38, 0 }
  0x54   : > { %674 = vmatprep.subr.bf16.mxu1 %v1683_v40  ;;  %768 = vmatprep.subr.bf16.mxu0 %v1683_v40 }
  0x57   : > { %675 = vmatpush1.bf16.msra.mxu1 %v1681_v41  ;;  %769 = vmatpush1.bf16.msra.mxu0 %v1681_v41 }
  0x58   : > { %676 = vmatprep.subr.bf16.mxu1 %v1686_v42  ;;  %770 = vmatprep.subr.bf16.mxu0 %v1686_v42 }
  0x5b   : > { %677 = vmatpush1.bf16.msra.mxu1 %v1684_v43  ;;  %771 = vmatpush1.bf16.msra.mxu0 %v1684_v43 }
  0x5c   : > { %678 = vmatprep.subr.bf16.mxu1 %v1689_v44  ;;  %772 = vmatprep.subr.bf16.mxu0 %v1689_v44 }
  0x5f   : > { %679 = vmatpush1.bf16.msra.mxu1 %v1687_v45  ;;  %773 = vmatpush1.bf16.msra.mxu0 %v1687_v45 }
  0x60   : > { %680 = vmatprep.subr.bf16.mxu1 %v1692_v46  ;;  %774 = vmatprep.subr.bf16.mxu0 %v1692_v46 }
  0x63   : > { %681 = vmatpush1.bf16.msra.mxu1 %v1690_v48  ;;  %775 = vmatpush1.bf16.msra.mxu0 %v1690_v48 }
  0x64   : > { %1486 = vmatprep.subr.msk.bf16.mxu1 %vm489_vm1, %v1485_v49  ;;  %1490 = vmatprep.subr.msk.bf16.mxu0 %vm489_vm1, %v1485_v49 }
  0x67   : > { %683 = vmatpush1.bf16.msra.mxu1 %v657_v51  ;;  %777 = vmatpush1.bf16.msra.mxu0 %v657_v51 }
  0x68   : > { %976 = vmatprep.subr.bf16.mxu1 %v1697_v52  ;;  %1194 = vmatprep.subr.bf16.mxu0 %v1697_v52 }
  0x6a   : > { %695 = vmatmul.mubr.bf16.vlgmr.msra.gmra.mrb[4].mxu1 %v1871_v28  ;;  %789 = vmatmul.mubr.bf16.vlgmr.msra.gmra.mrb[0].mxu0 %v1868_v27  ;;  %v1748_v27 = vld [vmem:[%s1840_s6 + $0xf8] ss:$8 sps:$4 sm:$0xff]   ;;  %v1753_v28 = vld [vmem:[%s1840_s6 + $0x10c] ss:$8 sps:$4 sm:$0xff]  }
  0x6b   : > { %977 = vmatpush1.bf16.msra.mxu1 %v1695_v53  ;;  %1195 = vmatpush1.bf16.msra.mxu0 %v1695_v53 }
  0x6c   : > { %978 = vmatprep.subr.bf16.mxu1 %v1700_v54  ;;  %1196 = vmatprep.subr.bf16.mxu0 %v1700_v54 }
  0x6d   : > { %1563 = vmatprep.mubr.msk.bf16.mxu1 %vm485_vm0, %v1905_v55  ;;  %1595 = vmatprep.mubr.msk.bf16.mxu0 %vm485_vm0, %v1908_v56 }
  0x6f   : > { %979 = vmatpush1.bf16.msra.mxu1 %v1698_v57  ;;  %1197 = vmatpush1.bf16.msra.mxu0 %v1698_v57 }
  0x70   : > { %980 = vmatprep.subr.bf16.mxu1 %v1703_v58  ;;  %1198 = vmatprep.subr.bf16.mxu0 %v1703_v58 }
  0x73   : > { %981 = vmatpush1.bf16.msra.mxu1 %v1701_v59  ;;  %1199 = vmatpush1.bf16.msra.mxu0 %v1701_v59 }
  0x74   : > { %982 = vmatprep.subr.bf16.mxu1 %v1706_v60  ;;  %1200 = vmatprep.subr.bf16.mxu0 %v1706_v60 }
  0x77   : > { %983 = vmatpush1.bf16.msra.mxu1 %v1704_v61  ;;  %1201 = vmatpush1.bf16.msra.mxu0 %v1704_v61 }
  0x78   : > { %984 = vmatprep.subr.bf16.mxu1 %v1709_v62  ;;  %1202 = vmatprep.subr.bf16.mxu0 %v1709_v62 }
  0x7b   : > { %985 = vmatpush1.bf16.msra.mxu1 %v1707_v63  ;;  %1203 = vmatpush1.bf16.msra.mxu0 %v1707_v63 }
  0x7c   : > { %986 = vmatprep.subr.bf16.mxu1 %v1712_v0  ;;  %1204 = vmatprep.subr.bf16.mxu0 %v1712_v0 }
  0x7f   : > { %987 = vmatpush1.bf16.msra.mxu1 %v1710_v1  ;;  %1205 = vmatpush1.bf16.msra.mxu0 %v1710_v1 }
  0x80   : > { %988 = vmatprep.subr.bf16.mxu1 %v1715_v2  ;;  %1206 = vmatprep.subr.bf16.mxu0 %v1715_v2 }
  0x83   : > { %989 = vmatpush1.bf16.msra.mxu1 %v1713_v3  ;;  %1207 = vmatpush1.bf16.msra.mxu0 %v1713_v3 }
  0x84   : > { %990 = vmatprep.subr.bf16.mxu1 %v1718_v4  ;;  %1208 = vmatprep.subr.bf16.mxu0 %v1718_v4 }
  0x87   : > { %991 = vmatpush1.bf16.msra.mxu1 %v1716_v5  ;;  %1209 = vmatpush1.bf16.msra.mxu0 %v1716_v5 }
  0x88   : > { %992 = vmatprep.subr.bf16.mxu1 %v1721_v6  ;;  %1210 = vmatprep.subr.bf16.mxu0 %v1721_v6 }
  0x8b   : > { %993 = vmatpush1.bf16.msra.mxu1 %v1719_v7  ;;  %1211 = vmatpush1.bf16.msra.mxu0 %v1719_v7 }
  0x8c   : > { %994 = vmatprep.subr.bf16.mxu1 %v1724_v8  ;;  %1212 = vmatprep.subr.bf16.mxu0 %v1724_v8 }
  0x8f   : > { %995 = vmatpush1.bf16.msra.mxu1 %v1722_v10  ;;  %1213 = vmatpush1.bf16.msra.mxu0 %v1722_v10 }
  0x90   : > { %1562 = vmatprep.subr.msk.bf16.mxu1 %vm489_vm1, %v1561_v11  ;;  %1594 = vmatprep.subr.msk.bf16.mxu0 %vm489_vm1, %v1561_v11 }
  0x93   : > { %997 = vmatpush1.bf16.msra.mxu1 %v971_v13  ;;  %1215 = vmatpush1.bf16.msra.mxu0 %v971_v13 }
  0x94   : > { %1142 = vmatprep.subr.bf16.mxu1 %v1732_v14  ;;  %1237 = vmatprep.subr.bf16.mxu0 %v1732_v14 }
  0x96   : > { %1009 = vmatmul.mubr.bf16.vlgmr.msra.gmra.mrb[8].mxu1 %v1939_v15  ;;  %1227 = vmatmul.mubr.bf16.vlgmr.msra.gmra.mrb[4].mxu0 %v1942_v16 }
  0x97   : > { %1143 = vmatpush1.bf16.msra.mxu1 %v1730_v17  ;;  %1238 = vmatpush1.bf16.msra.mxu0 %v1730_v17 }
  0x98   : > { %1144 = vmatprep.subr.bf16.mxu1 %v1738_v18  ;;  %1239 = vmatprep.subr.bf16.mxu0 %v1738_v18 }
  0x99   : > { %1589 = vmatprep.mubr.msk.bf16.mxu1 %vm485_vm0, %v1908_v56  ;;  %1597 = vmatprep.mubr.msk.bf16.mxu0 %vm485_vm0, %v1905_v55 }
  0x9b   : > { %1145 = vmatpush1.bf16.msra.mxu1 %v1736_v19  ;;  %1240 = vmatpush1.bf16.msra.mxu0 %v1736_v19 }
  0x9c   : > { %1146 = vmatprep.subr.bf16.mxu1 %v1741_v20  ;;  %1241 = vmatprep.subr.bf16.mxu0 %v1741_v20 }
  0x9f   : > { %1147 = vmatpush1.bf16.msra.mxu1 %v1739_v21  ;;  %1242 = vmatpush1.bf16.msra.mxu0 %v1739_v21 }
  0xa0   : > { %1148 = vmatprep.subr.bf16.mxu1 %v1744_v22  ;;  %1243 = vmatprep.subr.bf16.mxu0 %v1744_v22 }
  0xa3   : > { %1149 = vmatpush1.bf16.msra.mxu1 %v1742_v23  ;;  %1244 = vmatpush1.bf16.msra.mxu0 %v1742_v23 }
  0xa4   : > { %1150 = vmatprep.subr.bf16.mxu1 %v1747_v24  ;;  %1245 = vmatprep.subr.bf16.mxu0 %v1747_v24 }
  0xa7   : > { %1151 = vmatpush1.bf16.msra.mxu1 %v1745_v25  ;;  %1246 = vmatpush1.bf16.msra.mxu0 %v1745_v25 }
  0xa8   : > { %1152 = vmatprep.subr.bf16.mxu1 %v1750_v26  ;;  %1247 = vmatprep.subr.bf16.mxu0 %v1750_v26 }
  0xab   : > { %1153 = vmatpush1.bf16.msra.mxu1 %v1748_v27  ;;  %1248 = vmatpush1.bf16.msra.mxu0 %v1748_v27 }
  0xac   : > { %1154 = vmatprep.subr.bf16.mxu1 %v1753_v28  ;;  %1249 = vmatprep.subr.bf16.mxu0 %v1753_v28 }
  0xaf   : > { %1155 = vmatpush1.bf16.msra.mxu1 %v1751_v29  ;;  %1250 = vmatpush1.bf16.msra.mxu0 %v1751_v29 }
  0xb0   : > { %1156 = vmatprep.subr.bf16.mxu1 %v1756_v30  ;;  %1251 = vmatprep.subr.bf16.mxu0 %v1756_v30 }
  0xb3   : > { %1157 = vmatpush1.bf16.msra.mxu1 %v1754_v31  ;;  %1252 = vmatpush1.bf16.msra.mxu0 %v1754_v31 }
  0xb4   : > { %1158 = vmatprep.subr.bf16.mxu1 %v1759_v32  ;;  %1253 = vmatprep.subr.bf16.mxu0 %v1759_v32 }
  0xb7   : > { %1159 = vmatpush1.bf16.msra.mxu1 %v1757_v33  ;;  %1254 = vmatpush1.bf16.msra.mxu0 %v1757_v33 }
  0xb8   : > { %1160 = vmatprep.subr.bf16.mxu1 %v1762_v34  ;;  %1255 = vmatprep.subr.bf16.mxu0 %v1762_v34 }
  0xbb   : > { %1161 = vmatpush1.bf16.msra.mxu1 %v1760_v36  ;;  %1256 = vmatpush1.bf16.msra.mxu0 %v1760_v36 }
  0xbc   : > { %1588 = vmatprep.subr.msk.bf16.mxu1 %vm489_vm1, %v1587_v37  ;;  %1596 = vmatprep.subr.msk.bf16.mxu0 %vm489_vm1, %v1587_v37 }
  0xbf   : > { %1163 = vmatpush1.bf16.msra.mxu1 %v1137_v39  ;;  %1258 = vmatpush1.bf16.msra.mxu0 %v1137_v39 }
  0xc2   : > { %1175 = vmatmul.mubr.bf16.vlgmr.msra.gmra.mrb[12].mxu1 %v1942_v16  ;;  %1270 = vmatmul.mubr.bf16.vlgmr.msra.gmra.mrb[4].mxu0 %v1939_v15 }
 0x111   : > { %v530_v40 = vpop.f32.mrb[0].mxu1 }
 0x112   : > { %v532_v41 = vpop.f32.mrb[1].mxu1 }
 0x113   : > { %v534_v42 = vpop.f32.mrb[2].mxu1 }
 0x114   : > { %v536_v43 = vpop.f32.mrb[3].mxu1 }
 0x13d   : > { %v696_v44 = vpop.f32.mrb[4].mxu1  ;;  %v790_v45 = vpop.f32.mrb[0].mxu0 }
 0x13e   : > { %v705_v46 = vsub.f32 %v530_v40, %v696_v44  ;;  %799 = vst [vmem:[%s1979_s13] sm:$0xff] %v790_v45  ;;  %v698_v47 = vpop.f32.mrb[5].mxu1  ;;  %v792_v48 = vpop.f32.mrb[1].mxu0 }
 0x13f   : > { %v706_v49 = vsub.f32 %v532_v41, %v698_v47  ;;  %800 = vst [vmem:[%s1979_s13 + $0x8] sm:$0xff] %v792_v48  ;;  %v700_v50 = vpop.f32.mrb[6].mxu1  ;;  %v794_v51 = vpop.f32.mrb[2].mxu0 }
 0x140   : > { %709 = vst [vmem:[%s1984_s16] sm:$0xff] %v705_v46  ;;  %v707_v52 = vsub.f32 %v534_v42, %v700_v50  ;;  %801 = vst [vmem:[%s1979_s13 + $0x10] sm:$0xff] %v794_v51  ;;  %v702_v53 = vpop.f32.mrb[7].mxu1  ;;  %v796_v54 = vpop.f32.mrb[3].mxu0 }
 0x141   : > { %710 = vst [vmem:[%s1984_s16 + $0x8] sm:$0xff] %v706_v49  ;;  %v708_v55 = vsub.f32 %v536_v43, %v702_v53  ;;  %802 = vst [vmem:[%s1979_s13 + $0x18] sm:$0xff] %v796_v54 }
 0x142   : > { %711 = vst [vmem:[%s1984_s16 + $0x10] sm:$0xff] %v707_v52 }
 0x143   : > { %712 = vst [vmem:[%s1984_s16 + $0x18] sm:$0xff] %v708_v55 }
 0x169   : > { %v1010_v56 = vpop.f32.mrb[8].mxu1 }
 0x16a   : > { %v1012_v57 = vpop.f32.mrb[9].mxu1 }
 0x16b   : > { %v1014_v58 = vpop.f32.mrb[10].mxu1 }
 0x16c   : > { %v1016_v59 = vpop.f32.mrb[11].mxu1 }
 0x195   : > { %v1176_v60 = vpop.f32.mrb[12].mxu1  ;;  %v1271_v61 = vpop.f32.mrb[4].mxu0 }
 0x196   : > { %v1185_v62 = vsub.f32 %v1010_v56, %v1176_v60  ;;  %1598 = vst [vmem:[%s1979_s13 + $0x20] sm:$0xff] %v1271_v61  ;;  %v1178_v63 = vpop.f32.mrb[13].mxu1  ;;  %v1273_v0 = vpop.f32.mrb[5].mxu0 }
 0x197   : > { %v1186_v1 = vsub.f32 %v1012_v57, %v1178_v63  ;;  %1599 = vst [vmem:[%s1979_s13 + $0x28] sm:$0xff] %v1273_v0  ;;  %v1180_v2 = vpop.f32.mrb[14].mxu1  ;;  %v1275_v3 = vpop.f32.mrb[6].mxu0 }
 0x198   : > { %1590 = vst [vmem:[%s1984_s16 + $0x20] sm:$0xff] %v1185_v62  ;;  %v1187_v4 = vsub.f32 %v1014_v58, %v1180_v2  ;;  %1600 = vst [vmem:[%s1979_s13 + $0x30] sm:$0xff] %v1275_v3  ;;  %v1182_v5 = vpop.f32.mrb[15].mxu1  ;;  %v1277_v6 = vpop.f32.mrb[7].mxu0 }
 0x199   : > { %1591 = vst [vmem:[%s1984_s16 + $0x28] sm:$0xff] %v1186_v1  ;;  %v1188_v7 = vsub.f32 %v1016_v59, %v1182_v5  ;;  %1601 = vst [vmem:[%s1979_s13 + $0x38] sm:$0xff] %v1277_v6 }
 0x19a   : > { %1592 = vst [vmem:[%s1984_s16 + $0x30] sm:$0xff] %v1187_v4 }
 0x19b   : > { %1593 = vst [vmem:[%s1984_s16 + $0x38] sm:$0xff] %v1188_v7 }
 0x19c PF: > { %s16_s18 = sadd.s32 1, %s1771_s18  }
 0x19d   : > { %p13_p4 = scmp.ge.s32.totalorder %s16_s18, 4  }
 0x19f   :  { %15 = sbr.rel (!%p13_p4) target bundleno = 1 (0x1), region = 93 }

// kernel: _lambda_.14
= control target key start
LH: loop header
LB: loop body
LE: loop exit
PB: predicated region body
PF: predicated region fallthrough
CT: control target
= control target key end

     0   :  { %s832_s18 = smov 0   ;;  %s907_s0 = inlined_call_operand.vmem [shape: bf16[2,8,72], index: 0, kind: input, shape index: {}]   ;;  %s908_s1 = inlined_call_operand.vmem [shape: bf16[2,8,72], index: 1, kind: input, shape index: {}]   ;;  %s909_s2 = inlined_call_operand.vmem [shape: bf16[2,72,128], index: 2, kind: input, shape index: {}]   ;;  %s910_s3 = inlined_call_operand.vmem [shape: bf16[2,72,128], index: 3, kind: input, shape index: {}]   ;;  %s911_s4 = inlined_call_operand.vmem [shape: f32[2,8,128], index: 4, kind: output, shape index: {0}]   ;;  %s912_s5 = inlined_call_operand.vmem [shape: f32[2,8,128], index: 5, kind: output, shape index: {1}]  }
   0x1 LB: > { %s660_s19 = sadd.s32 4294967295, %s798_s18   ;;  %p664_p0 = scmp.ge.s32.totalorder %s798_s18, 1  ;;  %s798_s18 = sphi %s832_s18, %s16_s18  }
   0x2   : > { %p218_p1 = scmp.lt.s32.totalorder %s798_s18, 3 }
   0x4   : > { %p219_p2 = pnand %p664_p0, %p218_p1 }
   0x5   : > { %p262_p3 = scmp.lt.s32.totalorder (!%p219_p2), %s660_s19, 1  ;;  %v800_v0 = vmov (!%p219_p2), 0.0   ;;  %vm801_vm0 = vmmov (!%p219_p2), 0   ;;  %vm340_vm1 = vcmask (!%p219_p2), 1043456   ;;  %vm336_vm2 = vcmask (!%p219_p2), 588800  }
   0x6   : > { %222 = sbr.rel (%p219_p2) target bundleno = 272 (0x110), region = 36  ;;  %711 = vmatprep.subr.bf16.mxu1 (!%p219_p2), %v800_v0  ;;  %739 = vmatprep.subr.bf16.mxu0 (!%p219_p2), %v800_v0 }
   0x7   : > { %721 = vmatprep.mubr.msk.bf16.mxu1 (!%p219_p2), %vm801_vm0, %v800_v0  ;;  %749 = vmatprep.mubr.msk.bf16.mxu0 (!%p219_p2), %vm801_vm0, %v800_v0 }
   0xd   : > { %s914_s19 = smov (!%p262_p3, %s660_s19), 1 }
   0xe   : > { %s771_s20 = smul.u32 36, %s914_s19  ;;  %s665_s27 = sshll.u32 %s914_s19, 2 }
   0xf   : > { %s265_s30 = scalar_lea.vmem %s907_s0, %s665_s27  ;;  %s269_s8 = scalar_lea.vmem %s908_s1, %s665_s27 }
  0x10   : > { %s274_s23 = scalar_lea.vmem %s909_s2, %s771_s20  ;;  %s855_s26 = scalar_lea.vmem %s910_s3, %s771_s20  ;;  %v289_v7 = vld [vmem:[%s265_s30] sm:$0xf] }
  0x11   : > { %v782_v1 = vld [vmem:[%s274_s23] sm:$0xff]   ;;  %v783_v2 = vld [vmem:[%s274_s23 + $0x8] sm:$0xff]   ;;  %v784_v3 = vld [vmem:[%s274_s23 + $0x10] sm:$0xff]   ;;  %s669_s9 = sshll.u32 %s914_s19, 3 }
  0x12   : > { %712 = vmatpush3.bf16.msra.mxu1 %v782_v1  ;;  %740 = vmatpush3.bf16.msra.mxu0 %v782_v1  ;;  %v785_v4 = vld [vmem:[%s274_s23 + $0x18] sm:$0xff]   ;;  %v786_v5 = vld [vmem:[%s274_s23 + $0x20] ss:$0 sps:$4 sm:$0xff]   ;;  %v788_v10 = vld [vmem:[%s855_s26 + $0x8] sm:$0xff]   ;;  %s287_s12 = scalar_lea.vmem %s912_s5, %s669_s9  ;;  %s283_s15 = scalar_lea.vmem %s911_s4, %s669_s9 }
  0x13   : > { %713 = vmatprep.subr.bf16.mxu1 %v800_v0  ;;  %741 = vmatprep.subr.bf16.mxu0 %v800_v0  ;;  %v342_v6 = vsel %vm340_vm1, %v786_v5, 0  ;;  %v787_v8 = vld [vmem:[%s855_s26] sm:$0xff]   ;;  %v789_v11 = vld [vmem:[%s855_s26 + $0x10] sm:$0xff]   ;;  %v790_v12 = vld [vmem:[%s855_s26 + $0x18] sm:$0xff]  }
  0x14   : > { %v290_v9 = vld [vmem:[%s269_s8] sm:$0xf] }
  0x15   : > { %v791_v13 = vld [vmem:[%s855_s26 + $0x20] ss:$0 sps:$4 sm:$0xff]  }
  0x16   : > { %714 = vmatpush3.bf16.msra.mxu1 %v783_v2  ;;  %742 = vmatpush3.bf16.msra.mxu0 %v783_v2  ;;  %v415_v14 = vsel %vm340_vm1, %v791_v13, 0 }
  0x17   : > { %715 = vmatprep.subr.bf16.mxu1 %v800_v0  ;;  %743 = vmatprep.subr.bf16.mxu0 %v800_v0 }
  0x1a   : > { %716 = vmatpush3.bf16.msra.mxu1 %v784_v3  ;;  %744 = vmatpush3.bf16.msra.mxu0 %v784_v3 }
  0x1b   : > { %717 = vmatprep.subr.bf16.mxu1 %v800_v0  ;;  %745 = vmatprep.subr.bf16.mxu0 %v800_v0 }
  0x1e   : > { %718 = vmatpush3.bf16.msra.mxu1 %v785_v4  ;;  %746 = vmatpush3.bf16.msra.mxu0 %v785_v4 }
  0x1f   : > { %719 = vmatprep.subr.bf16.mxu1 %v800_v0  ;;  %747 = vmatprep.subr.bf16.mxu0 %v800_v0 }
  0x22   : > { %720 = vmatpush3.bf16.msra.mxu1 %v342_v6  ;;  %748 = vmatpush3.bf16.msra.mxu0 %v342_v6 }
  0x23   : > { %725 = vmatprep.subr.bf16.mxu1 %v800_v0  ;;  %753 = vmatprep.subr.bf16.mxu0 %v800_v0 }
  0x25   : > { %722 = vmatmul.mubr.msk.bf16.vlgmr.msra.gmra.mrb[0].mxu1 %vm336_vm2, %v289_v7  ;;  %750 = vmatmul.mubr.msk.bf16.vlgmr.msra.gmra.mrb[0].mxu0 %vm336_vm2, %v290_v9 }
  0x26   : > { %726 = vmatpush3.bf16.msra.mxu1 %v787_v8  ;;  %754 = vmatpush3.bf16.msra.mxu0 %v787_v8 }
  0x27   : > { %727 = vmatprep.subr.bf16.mxu1 %v800_v0  ;;  %755 = vmatprep.subr.bf16.mxu0 %v800_v0 }
  0x28   : > { %735 = vmatprep.mubr.msk.bf16.mxu1 %vm801_vm0, %v800_v0  ;;  %763 = vmatprep.mubr.msk.bf16.mxu0 %vm801_vm0, %v800_v0 }
  0x2a   : > { %728 = vmatpush3.bf16.msra.mxu1 %v788_v10  ;;  %756 = vmatpush3.bf16.msra.mxu0 %v788_v10 }
  0x2b   : > { %729 = vmatprep.subr.bf16.mxu1 %v800_v0  ;;  %757 = vmatprep.subr.bf16.mxu0 %v800_v0 }
  0x2e   : > { %730 = vmatpush3.bf16.msra.mxu1 %v789_v11  ;;  %758 = vmatpush3.bf16.msra.mxu0 %v789_v11 }
  0x2f   : > { %731 = vmatprep.subr.bf16.mxu1 %v800_v0  ;;  %759 = vmatprep.subr.bf16.mxu0 %v800_v0 }
  0x32   : > { %732 = vmatpush3.bf16.msra.mxu1 %v790_v12  ;;  %760 = vmatpush3.bf16.msra.mxu0 %v790_v12 }
  0x33   : > { %733 = vmatprep.subr.bf16.mxu1 %v800_v0  ;;  %761 = vmatprep.subr.bf16.mxu0 %v800_v0 }
  0x36   : > { %734 = vmatpush3.bf16.msra.mxu1 %v415_v14  ;;  %762 = vmatpush3.bf16.msra.mxu0 %v415_v14 }
  0x39   : > { %736 = vmatmul.mubr.msk.bf16.vlgmr.msra.gmra.mrb[4].mxu1 %vm336_vm2, %v290_v9  ;;  %764 = vmatmul.mubr.msk.bf16.vlgmr.msra.gmra.mrb[0].mxu0 %vm336_vm2, %v289_v7 }
  0xf8   : > { %v378_v15 = vpop.f32.mrb[0].mxu1 }
  0xf9   : > { %v723_v16 = vpop.f32.mrb[1].mxu1 }
  0xfa   : > { %v381_v17 = vpop.f32.mrb[2].mxu1 }
  0xfb   : > { %v724_v18 = vpop.f32.mrb[3].mxu1 }
 0x10c   : > { %v451_v19 = vpop.f32.mrb[4].mxu1  ;;  %v533_v20 = vpop.f32.mrb[0].mxu0 }
 0x10d   : > { %v457_v21 = vsub.f32 %v378_v15, %v451_v19  ;;  %539 = vst [vmem:[%s287_s12] sm:$0xff] %v533_v20  ;;  %v737_v22 = vpop.f32.mrb[5].mxu1  ;;  %v765_v23 = vpop.f32.mrb[1].mxu0 }
 0x10e   : > { %v454_v24 = vpop.f32.mrb[6].mxu1  ;;  %v536_v25 = vpop.f32.mrb[2].mxu0 }
 0x10f   : > { %458 = vst [vmem:[%s283_s15] sm:$0xff] %v457_v21  ;;  %v738_v26 = vpop.f32.mrb[7].mxu1  ;;  %v766_v27 = vpop.f32.mrb[3].mxu0 }
 0x110 PF: > { %s16_s18 = sadd.s32 1, %s798_s18  }
 0x111   : > { %p13_p4 = scmp.ge.s32.totalorder %s16_s18, 4  }
 0x113   :  { %15 = sbr.rel (!%p13_p4) target bundleno = 1 (0x1), region = 87 }

// kernel: _lambda_.15
= control target key start
LH: loop header
LB: loop body
LE: loop exit
PB: predicated region body
PF: predicated region fallthrough
CT: control target
= control target key end

     0   :  { %s874_s18 = smov 0   ;;  %s940_s0 = inlined_call_operand.vmem [shape: bf16[2,8,96], index: 0, kind: input, shape index: {}]   ;;  %s941_s1 = inlined_call_operand.vmem [shape: bf16[2,8,96], index: 1, kind: input, shape index: {}]   ;;  %s942_s2 = inlined_call_operand.vmem [shape: bf16[2,96,256], index: 2, kind: input, shape index: {}]   ;;  %s943_s3 = inlined_call_operand.vmem [shape: bf16[2,96,256], index: 3, kind: input, shape index: {}]   ;;  %s944_s4 = inlined_call_operand.vmem [shape: f32[2,8,256], index: 4, kind: output, shape index: {0}]   ;;  %s945_s5 = inlined_call_operand.vmem [shape: f32[2,8,256], index: 5, kind: output, shape index: {1}]  }
   0x1 LB: > { %s740_s19 = sadd.s32 4294967295, %s841_s18   ;;  %p744_p0 = scmp.ge.s32.totalorder %s841_s18, 1  ;;  %s841_s18 = sphi %s874_s18, %s16_s18  }
   0x2   : > { %p218_p1 = scmp.lt.s32.totalorder %s841_s18, 3 }
   0x4   : > { %p219_p2 = pnand %p744_p0, %p218_p1 }
   0x5   : > { %p264_p3 = scmp.lt.s32.totalorder (!%p219_p2), %s740_s19, 1  ;;  %v843_v0 = vmov (!%p219_p2), 0   ;;  %vm379_vm0 = vcmask (!%p219_p2), 785408  }
   0x6   : > { %222 = sbr.rel (%p219_p2) target bundleno = 282 (0x11a), region = 36  ;;  %415 = vmatprep.mubr.bf16.mxu1 (!%p219_p2), %v843_v0  ;;  %564 = vmatprep.mubr.bf16.mxu0 (!%p219_p2), %v843_v0 }
   0xd   : > { %s947_s19 = smov (!%p264_p3, %s740_s19), 1 }
   0xe   : > { %s789_s20 = smul.u32 96, %s947_s19  ;;  %s745_s27 = sshll.u32 %s947_s19, 2 }
   0xf   : > { %s267_s30 = scalar_lea.vmem %s940_s0, %s745_s27  ;;  %s271_s8 = scalar_lea.vmem %s941_s1, %s745_s27 }
  0x10   : > { %s888_s23 = scalar_lea.vmem %s942_s2, %s789_s20  ;;  %s899_s26 = scalar_lea.vmem %s943_s3, %s789_s20  ;;  %v293_v14 = vld [vmem:[%s267_s30] sm:$0xf] }
  0x11   : > { %v799_v1 = vld [vmem:[%s888_s23 + $0x4] ss:$8 sps:$4 sm:$0xff]   ;;  %v801_v2 = vld [vmem:[%s888_s23] ss:$8 sps:$4 sm:$0xff]   ;;  %v802_v3 = vld [vmem:[%s888_s23 + $0x14] ss:$8 sps:$4 sm:$0xff]  }
  0x12   : > { %383 = vmatprep.subr.bf16.mxu1 %v799_v1  ;;  %532 = vmatprep.subr.bf16.mxu0 %v799_v1  ;;  %v804_v4 = vld [vmem:[%s888_s23 + $0x10] ss:$8 sps:$4 sm:$0xff]   ;;  %v805_v5 = vld [vmem:[%s888_s23 + $0x24] ss:$8 sps:$4 sm:$0xff]   ;;  %v807_v6 = vld [vmem:[%s888_s23 + $0x20] ss:$8 sps:$4 sm:$0xff]  }
  0x13   : > { %384 = vmatpush1.bf16.msra.mxu1 %v801_v2  ;;  %533 = vmatpush1.bf16.msra.mxu0 %v801_v2  ;;  %v808_v7 = vld [vmem:[%s888_s23 + $0x34] ss:$8 sps:$4 sm:$0xff]   ;;  %v810_v8 = vld [vmem:[%s888_s23 + $0x30] ss:$8 sps:$4 sm:$0xff]   ;;  %v811_v9 = vld [vmem:[%s888_s23 + $0x44] ss:$8 sps:$4 sm:$0xff]  }
  0x14   : > { %385 = vmatprep.subr.bf16.mxu1 %v802_v3  ;;  %534 = vmatprep.subr.bf16.mxu0 %v802_v3  ;;  %v813_v10 = vld [vmem:[%s888_s23 + $0x40] ss:$8 sps:$4 sm:$0xff]   ;;  %v814_v11 = vld [vmem:[%s888_s23 + $0x54] ss:$8 sps:$4 sm:$0xff]   ;;  %v816_v12 = vld [vmem:[%s888_s23 + $0x50] ss:$8 sps:$4 sm:$0xff]  }
  0x15   : > { %v819_v13 = vld [vmem:[%s899_s26 + $0x4] ss:$8 sps:$4 sm:$0xff]   ;;  %v817_v15 = vld [vmem:[%s899_s26] ss:$8 sps:$4 sm:$0xff]   ;;  %v822_v17 = vld [vmem:[%s899_s26 + $0x14] ss:$8 sps:$4 sm:$0xff]  }
  0x16   : > { %v294_v16 = vld [vmem:[%s271_s8] sm:$0xf]  ;;  %v820_v18 = vld [vmem:[%s899_s26 + $0x10] ss:$8 sps:$4 sm:$0xff]   ;;  %v825_v19 = vld [vmem:[%s899_s26 + $0x24] ss:$8 sps:$4 sm:$0xff]  }
  0x17   : > { %386 = vmatpush1.bf16.msra.mxu1 %v804_v4  ;;  %535 = vmatpush1.bf16.msra.mxu0 %v804_v4  ;;  %v823_v20 = vld [vmem:[%s899_s26 + $0x20] ss:$8 sps:$4 sm:$0xff]   ;;  %v828_v21 = vld [vmem:[%s899_s26 + $0x34] ss:$8 sps:$4 sm:$0xff]   ;;  %v826_v22 = vld [vmem:[%s899_s26 + $0x30] ss:$8 sps:$4 sm:$0xff]  }
  0x18   : > { %387 = vmatprep.subr.bf16.mxu1 %v805_v5  ;;  %536 = vmatprep.subr.bf16.mxu0 %v805_v5  ;;  %v831_v23 = vld [vmem:[%s899_s26 + $0x44] ss:$8 sps:$4 sm:$0xff]   ;;  %v829_v24 = vld [vmem:[%s899_s26 + $0x40] ss:$8 sps:$4 sm:$0xff]   ;;  %v834_v25 = vld [vmem:[%s899_s26 + $0x54] ss:$8 sps:$4 sm:$0xff]  }
  0x19   : > { %v832_v26 = vld [vmem:[%s899_s26 + $0x50] ss:$8 sps:$4 sm:$0xff]   ;;  %s783_s9 = sshll.u32 %s947_s19, 4 }
  0x1a   : > { %s291_s12 = scalar_lea.vmem %s945_s5, %s783_s9  ;;  %s286_s15 = scalar_lea.vmem %s944_s4, %s783_s9 }
  0x1b   : > { %388 = vmatpush1.bf16.msra.mxu1 %v807_v6  ;;  %537 = vmatpush1.bf16.msra.mxu0 %v807_v6 }
  0x1c   : > { %389 = vmatprep.subr.bf16.mxu1 %v808_v7  ;;  %538 = vmatprep.subr.bf16.mxu0 %v808_v7 }
  0x1f   : > { %390 = vmatpush1.bf16.msra.mxu1 %v810_v8  ;;  %539 = vmatpush1.bf16.msra.mxu0 %v810_v8 }
  0x20   : > { %391 = vmatprep.subr.bf16.mxu1 %v811_v9  ;;  %540 = vmatprep.subr.bf16.mxu0 %v811_v9 }
  0x23   : > { %392 = vmatpush1.bf16.msra.mxu1 %v813_v10  ;;  %541 = vmatpush1.bf16.msra.mxu0 %v813_v10 }
  0x24   : > { %393 = vmatprep.subr.bf16.mxu1 %v814_v11  ;;  %542 = vmatprep.subr.bf16.mxu0 %v814_v11 }
  0x27   : > { %394 = vmatpush1.bf16.msra.mxu1 %v816_v12  ;;  %543 = vmatpush1.bf16.msra.mxu0 %v816_v12 }
  0x28   : > { %487 = vmatprep.subr.bf16.mxu1 %v819_v13  ;;  %573 = vmatprep.subr.bf16.mxu0 %v819_v13 }
  0x2a   : > { %765 = vmatmul.mubr.msk.bf16.vlgmr.msra.gmra.mrb[0].mxu1 %vm379_vm0, %v293_v14  ;;  %779 = vmatmul.mubr.msk.bf16.vlgmr.msra.gmra.mrb[0].mxu0 %vm379_vm0, %v294_v16 }
  0x2b   : > { %488 = vmatpush1.bf16.msra.mxu1 %v817_v15  ;;  %574 = vmatpush1.bf16.msra.mxu0 %v817_v15 }
  0x2c   : > { %489 = vmatprep.subr.bf16.mxu1 %v822_v17  ;;  %575 = vmatprep.subr.bf16.mxu0 %v822_v17 }
  0x2d   : > { %519 = vmatprep.mubr.bf16.mxu1 %v843_v0  ;;  %605 = vmatprep.mubr.bf16.mxu0 %v843_v0 }
  0x2f   : > { %490 = vmatpush1.bf16.msra.mxu1 %v820_v18  ;;  %576 = vmatpush1.bf16.msra.mxu0 %v820_v18 }
  0x30   : > { %491 = vmatprep.subr.bf16.mxu1 %v825_v19  ;;  %577 = vmatprep.subr.bf16.mxu0 %v825_v19 }
  0x33   : > { %492 = vmatpush1.bf16.msra.mxu1 %v823_v20  ;;  %578 = vmatpush1.bf16.msra.mxu0 %v823_v20 }
  0x34   : > { %493 = vmatprep.subr.bf16.mxu1 %v828_v21  ;;  %579 = vmatprep.subr.bf16.mxu0 %v828_v21 }
  0x37   : > { %494 = vmatpush1.bf16.msra.mxu1 %v826_v22  ;;  %580 = vmatpush1.bf16.msra.mxu0 %v826_v22 }
  0x38   : > { %495 = vmatprep.subr.bf16.mxu1 %v831_v23  ;;  %581 = vmatprep.subr.bf16.mxu0 %v831_v23 }
  0x3b   : > { %496 = vmatpush1.bf16.msra.mxu1 %v829_v24  ;;  %582 = vmatpush1.bf16.msra.mxu0 %v829_v24 }
  0x3c   : > { %497 = vmatprep.subr.bf16.mxu1 %v834_v25  ;;  %583 = vmatprep.subr.bf16.mxu0 %v834_v25 }
  0x3f   : > { %498 = vmatpush1.bf16.msra.mxu1 %v832_v26  ;;  %584 = vmatpush1.bf16.msra.mxu0 %v832_v26 }
  0x42   : > { %778 = vmatmul.mubr.msk.bf16.vlgmr.msra.gmra.mrb[4].mxu1 %vm379_vm0, %v294_v16  ;;  %780 = vmatmul.mubr.msk.bf16.vlgmr.msra.gmra.mrb[0].mxu0 %vm379_vm0, %v293_v14 }
  0xfd   : > { %v417_v27 = vpop.f32.mrb[0].mxu1 }
  0xfe   : > { %v419_v28 = vpop.f32.mrb[1].mxu1 }
  0xff   : > { %v421_v29 = vpop.f32.mrb[2].mxu1 }
 0x100   : > { %v422_v30 = vpop.f32.mrb[3].mxu1 }
 0x115   : > { %v521_v31 = vpop.f32.mrb[4].mxu1  ;;  %v607_v32 = vpop.f32.mrb[0].mxu0 }
 0x116   : > { %v528_v33 = vsub.f32 %v417_v27, %v521_v31  ;;  %614 = vst [vmem:[%s291_s12] sm:$0xff] %v607_v32  ;;  %v523_v34 = vpop.f32.mrb[5].mxu1  ;;  %v609_v35 = vpop.f32.mrb[1].mxu0 }
 0x117   : > { %v529_v36 = vsub.f32 %v419_v28, %v523_v34  ;;  %615 = vst [vmem:[%s291_s12 + $0x8] sm:$0xff] %v609_v35  ;;  %v525_v37 = vpop.f32.mrb[6].mxu1  ;;  %v611_v38 = vpop.f32.mrb[2].mxu0 }
 0x118   : > { %530 = vst [vmem:[%s286_s15] sm:$0xff] %v528_v33  ;;  %v526_v39 = vpop.f32.mrb[7].mxu1  ;;  %v612_v40 = vpop.f32.mrb[3].mxu0 }
 0x119   : > { %531 = vst [vmem:[%s286_s15 + $0x8] sm:$0xff] %v529_v36 }
 0x11a PF: > { %s16_s18 = sadd.s32 1, %s841_s18  }
 0x11b   : > { %p13_p4 = scmp.ge.s32.totalorder %s16_s18, 4  }
 0x11d   :  { %15 = sbr.rel (!%p13_p4) target bundleno = 1 (0x1), region = 87 }

// kernel: _lambda_.16
= control target key start
LH: loop header
LB: loop body
LE: loop exit
PB: predicated region body
PF: predicated region fallthrough
CT: control target
= control target key end

     0   :  { %v309_v0 = vmov 0   ;;  %vm18_vm0 = vcmask 7168   ;;  %v310_v17 = vmov 0.0   ;;  %vm218_vm1 = vcmask 523264   ;;  %s640_s1 = inlined_call_operand.vmem [shape: f32[128,1], index: 1, kind: input, shape index: {}]   ;;  %s641_s3 = inlined_call_operand.vmem [shape: f32[128,1], index: 3, kind: output, shape index: {}]   ;;  %s642_s0 = inlined_call_operand.vmem [shape: f32[128,64], index: 0, kind: input, shape index: {}]   ;;  %s643_s2 = inlined_call_operand.vmem [shape: f32[1,64], index: 2, kind: input, shape index: {}]  }
   0x1   :  { %308 = vset.pattern.permute.xlu1 %v309_v0  ;;  %307 = vset.pattern.permute.xlu0 %v309_v0  ;;  %v53_v1 = vld [vmem:[%s640_s1 + $0x10] sm:$0xff]  ;;  %v51_v2 = vld [vmem:[%s640_s1] sm:$0xff]  ;;  %v54_v3 = vld [vmem:[%s640_s1 + $0x18] sm:$0xff]  ;;  %19 = vst.msk [vmem:[%s641_s3] sm:$0xff] %vm18_vm0, %v310_v17 }
   0x2   :  { %79 = vperm.xlu1 %308, %v53_v1   ;;  %69 = vperm.xlu0 %307, %v51_v2   ;;  %v52_v4 = vld [vmem:[%s640_s1 + $0x8] sm:$0xff]  ;;  %v55_v6 = vld [vmem:[%s640_s1 + $0x20] sm:$0xff]  ;;  %v58_v7 = vld [vmem:[%s640_s1 + $0x38] sm:$0xff]  ;;  %20 = vst.msk [vmem:[%s641_s3 + $0x8] sm:$0xff] %vm18_vm0, %v310_v17 }
   0x3   :  { %v56_v5 = vld [vmem:[%s640_s1 + $0x28] sm:$0xff]  ;;  %v57_v8 = vld [vmem:[%s640_s1 + $0x30] sm:$0xff]  ;;  %v59_v10 = vld [vmem:[%s640_s1 + $0x40] sm:$0xff]  ;;  %21 = vst.msk [vmem:[%s641_s3 + $0x10] sm:$0xff] %vm18_vm0, %v310_v17 }
   0x4   :  { %v60_v9 = vld [vmem:[%s640_s1 + $0x48] sm:$0xff]  ;;  %v62_v11 = vld [vmem:[%s640_s1 + $0x58] sm:$0xff]  ;;  %v61_v12 = vld [vmem:[%s640_s1 + $0x50] sm:$0xff]  ;;  %22 = vst.msk [vmem:[%s641_s3 + $0x18] sm:$0xff] %vm18_vm0, %v310_v17 }
   0x5   :  { %v64_v13 = vld [vmem:[%s640_s1 + $0x68] sm:$0xff]  ;;  %v63_v14 = vld [vmem:[%s640_s1 + $0x60] sm:$0xff]  ;;  %v66_v15 = vld [vmem:[%s640_s1 + $0x78] sm:$0xff]  ;;  %23 = vst.msk [vmem:[%s641_s3 + $0x20] sm:$0xff] %vm18_vm0, %v310_v17 }
   0x6   :  { %84 = vperm.xlu1 %308, %v54_v3   ;;  %74 = vperm.xlu0 %307, %v52_v4   ;;  %v65_v16 = vld [vmem:[%s640_s1 + $0x70] sm:$0xff]  ;;  %24 = vst.msk [vmem:[%s641_s3 + $0x28] sm:$0xff] %vm18_vm0, %v310_v17  ;;  %25 = vst.msk [vmem:[%s641_s3 + $0x30] sm:$0xff] %vm18_vm0, %v310_v17  ;;  %v35_v19 = vld [vmem:[%s642_s0] sm:$0xff] }
   0x7   :  { %26 = vst.msk [vmem:[%s641_s3 + $0x38] sm:$0xff] %vm18_vm0, %v310_v17  ;;  %27 = vst.msk [vmem:[%s641_s3 + $0x40] sm:$0xff] %vm18_vm0, %v310_v17  ;;  %v37_v18 = vld [vmem:[%s642_s0 + $0x10] sm:$0xff]  ;;  %v38_v24 = vld [vmem:[%s642_s0 + $0x18] sm:$0xff] }
   0x8   :  { %28 = vst.msk [vmem:[%s641_s3 + $0x48] sm:$0xff] %vm18_vm0, %v310_v17  ;;  %29 = vst.msk [vmem:[%s641_s3 + $0x50] sm:$0xff] %vm18_vm0, %v310_v17  ;;  %v36_v25 = vld [vmem:[%s642_s0 + $0x8] sm:$0xff]  ;;  %v458_v26 = vld [vmem:[%s643_s2] ss:$0 sm:$0xff] }
   0x9   :  { %30 = vst.msk [vmem:[%s641_s3 + $0x58] sm:$0xff] %vm18_vm0, %v310_v17  ;;  %31 = vst.msk [vmem:[%s641_s3 + $0x60] sm:$0xff] %vm18_vm0, %v310_v17  ;;  %v40_v35 = vld [vmem:[%s642_s0 + $0x28] sm:$0xff]  ;;  %v39_v36 = vld [vmem:[%s642_s0 + $0x20] sm:$0xff] }
   0xa   :  { %94 = vperm.xlu1 %308, %v56_v5   ;;  %89 = vperm.xlu0 %307, %v55_v6   ;;  %32 = vst.msk [vmem:[%s641_s3 + $0x68] sm:$0xff] %vm18_vm0, %v310_v17  ;;  %33 = vst.msk [vmem:[%s641_s3 + $0x70] sm:$0xff] %vm18_vm0, %v310_v17  ;;  %v42_v46 = vld [vmem:[%s642_s0 + $0x38] sm:$0xff]  ;;  %v41_v47 = vld [vmem:[%s642_s0 + $0x30] sm:$0xff] }
   0xb   :  { %34 = vst.msk [vmem:[%s641_s3 + $0x78] sm:$0xff] %vm18_vm0, %v310_v17  ;;  %v44_v57 = vld [vmem:[%s642_s0 + $0x48] sm:$0xff]  ;;  %v43_v58 = vld [vmem:[%s642_s0 + $0x40] sm:$0xff]  ;;  %v46_v5 = vld [vmem:[%s642_s0 + $0x58] sm:$0xff] }
   0xc   :  { %v45_v6 = vld [vmem:[%s642_s0 + $0x50] sm:$0xff]  ;;  %v48_v17 = vld [vmem:[%s642_s0 + $0x68] sm:$0xff] }
   0xe   :  { %104 = vperm.xlu1 %308, %v58_v7   ;;  %99 = vperm.xlu0 %307, %v57_v8  }
  0x12   :  { %114 = vperm.xlu1 %308, %v60_v9   ;;  %109 = vperm.xlu0 %307, %v59_v10  }
  0x16   :  { %124 = vperm.xlu1 %308, %v62_v11   ;;  %119 = vperm.xlu0 %307, %v61_v12  }
  0x1a   :  { %134 = vperm.xlu1 %308, %v64_v13   ;;  %129 = vperm.xlu0 %307, %v63_v14  }
  0x1e   :  { %144 = vperm.xlu1 %308, %v66_v15   ;;  %139 = vperm.xlu0 %307, %v65_v16  }
  0x81   :  { %v80_v20 = vpop.permute.xlu1 %79  ;;  %v70_v21 = vpop.permute.xlu0 %69 }
  0x82   :  { %v149_v22 = vadd.f32 %v80_v20, %v37_v18  ;;  %v147_v23 = vadd.f32 %v70_v21, %v35_v19  ;;  %v47_v18 = vld [vmem:[%s642_s0 + $0x60] sm:$0xff] }
  0x84   :  { %v165_v27 = vmax.f32 %v149_v22, 0.0  ;;  %v163_v28 = vmax.f32 %v147_v23, 0.0 }
  0x85   :  { %v85_v29 = vpop.permute.xlu1 %84  ;;  %v75_v30 = vpop.permute.xlu0 %74 }
  0x86   :  { %v150_v31 = vadd.f32 %v85_v29, %v38_v24  ;;  %v148_v32 = vadd.f32 %v75_v30, %v36_v25  ;;  %v186_v33 = vmul.f32 %v458_v26, %v163_v28  ;;  %v188_v34 = vmul.f32 %v458_v26, %v165_v27  ;;  %v50_v30 = vld [vmem:[%s642_s0 + $0x78] sm:$0xff] }
  0x88   :  { %v166_v37 = vmax.f32 %v150_v31, 0.0  ;;  %v164_v38 = vmax.f32 %v148_v32, 0.0  ;;  %v219_v39 = vsel %vm218_vm1, %v186_v33, 0.0  ;;  %v225_v45 = vsel %vm218_vm1, %v188_v34, 0.0  ;;  %v49_v31 = vld [vmem:[%s642_s0 + $0x70] sm:$0xff] }
  0x89   :  { %v95_v40 = vpop.permute.xlu1 %94  ;;  %v90_v41 = vpop.permute.xlu0 %89  ;;  %220 = vadd.xlane.f32.xlu0 %v219_v39 }
  0x8a   :  { %v152_v42 = vadd.f32 %v95_v40, %v40_v35  ;;  %v151_v43 = vadd.f32 %v90_v41, %v39_v36  ;;  %v187_v44 = vmul.f32 %v458_v26, %v164_v38  ;;  %v189_v48 = vmul.f32 %v458_v26, %v166_v37 }
  0x8c   :  { %v168_v49 = vmax.f32 %v152_v42, 0.0  ;;  %v167_v50 = vmax.f32 %v151_v43, 0.0  ;;  %v222_v51 = vsel %vm218_vm1, %v187_v44, 0.0  ;;  %v228_v59 = vsel %vm218_vm1, %v189_v48, 0.0 }
  0x8d   :  { %v105_v52 = vpop.permute.xlu1 %104  ;;  %v100_v53 = vpop.permute.xlu0 %99  ;;  %223 = vadd.xlane.f32.xlu1 %v222_v51  ;;  %226 = vadd.xlane.f32.xlu0 %v225_v45 }
  0x8e   :  { %v154_v54 = vadd.f32 %v105_v52, %v42_v46  ;;  %v153_v55 = vadd.f32 %v100_v53, %v41_v47  ;;  %v190_v56 = vmul.f32 %v458_v26, %v167_v50  ;;  %v191_v63 = vmul.f32 %v458_v26, %v168_v49  ;;  %v202_v52 = vld [vmem:[%s641_s3] sm:$0xff] }
  0x90   :  { %v170_v60 = vmax.f32 %v154_v54, 0.0  ;;  %v169_v61 = vmax.f32 %v153_v55, 0.0  ;;  %v231_v62 = vsel %vm218_vm1, %v190_v56, 0.0  ;;  %v234_v11 = vsel %vm218_vm1, %v191_v63, 0.0  ;;  %v203_v55 = vld [vmem:[%s641_s3 + $0x8] sm:$0xff]  ;;  %v204_v56 = vld [vmem:[%s641_s3 + $0x10] sm:$0xff] }
  0x91   :  { %v115_v0 = vpop.permute.xlu1 %114  ;;  %v110_v1 = vpop.permute.xlu0 %109  ;;  %232 = vadd.xlane.f32.xlu1 %v231_v62  ;;  %229 = vadd.xlane.f32.xlu0 %v228_v59 }
  0x92   :  { %v156_v2 = vadd.f32 %v115_v0, %v44_v57  ;;  %v155_v3 = vadd.f32 %v110_v1, %v43_v58  ;;  %v192_v4 = vmul.f32 %v458_v26, %v169_v61  ;;  %v193_v7 = vmul.f32 %v458_v26, %v170_v60  ;;  %v206_v60 = vld [vmem:[%s641_s3 + $0x20] sm:$0xff]  ;;  %v205_v61 = vld [vmem:[%s641_s3 + $0x18] sm:$0xff] }
  0x94   :  { %v172_v8 = vmax.f32 %v156_v2, 0.0  ;;  %v171_v9 = vmax.f32 %v155_v3, 0.0  ;;  %v237_v10 = vsel %vm218_vm1, %v192_v4, 0.0  ;;  %v240_v19 = vsel %vm218_vm1, %v193_v7, 0.0  ;;  %v208_v2 = vld [vmem:[%s641_s3 + $0x30] sm:$0xff]  ;;  %v207_v3 = vld [vmem:[%s641_s3 + $0x28] sm:$0xff] }
  0x95   :  { %v125_v12 = vpop.permute.xlu1 %124  ;;  %v120_v13 = vpop.permute.xlu0 %119  ;;  %238 = vadd.xlane.f32.xlu1 %v237_v10  ;;  %235 = vadd.xlane.f32.xlu0 %v234_v11 }
  0x96   :  { %v158_v14 = vadd.f32 %v125_v12, %v46_v5  ;;  %v157_v15 = vadd.f32 %v120_v13, %v45_v6  ;;  %v194_v16 = vmul.f32 %v458_v26, %v171_v9  ;;  %v195_v23 = vmul.f32 %v458_v26, %v172_v8  ;;  %v210_v8 = vld [vmem:[%s641_s3 + $0x40] sm:$0xff]  ;;  %v209_v9 = vld [vmem:[%s641_s3 + $0x38] sm:$0xff] }
  0x98   :  { %v174_v20 = vmax.f32 %v158_v14, 0.0  ;;  %v173_v21 = vmax.f32 %v157_v15, 0.0  ;;  %v243_v22 = vsel %vm218_vm1, %v194_v16, 0.0  ;;  %v246_v36 = vsel %vm218_vm1, %v195_v23, 0.0  ;;  %v212_v14 = vld [vmem:[%s641_s3 + $0x50] sm:$0xff]  ;;  %v211_v15 = vld [vmem:[%s641_s3 + $0x48] sm:$0xff] }
  0x99   :  { %v135_v24 = vpop.permute.xlu1 %134  ;;  %v130_v25 = vpop.permute.xlu0 %129  ;;  %244 = vadd.xlane.f32.xlu1 %v243_v22  ;;  %241 = vadd.xlane.f32.xlu0 %v240_v19 }
  0x9a   :  { %v160_v27 = vadd.f32 %v135_v24, %v48_v17  ;;  %v159_v28 = vadd.f32 %v130_v25, %v47_v18  ;;  %v196_v29 = vmul.f32 %v458_v26, %v173_v21  ;;  %v197_v32 = vmul.f32 %v458_v26, %v174_v20  ;;  %v214_v20 = vld [vmem:[%s641_s3 + $0x60] sm:$0xff]  ;;  %v213_v21 = vld [vmem:[%s641_s3 + $0x58] sm:$0xff] }
  0x9c   :  { %v176_v33 = vmax.f32 %v160_v27, 0.0  ;;  %v175_v34 = vmax.f32 %v159_v28, 0.0  ;;  %v249_v35 = vsel %vm218_vm1, %v196_v29, 0.0  ;;  %v252_v42 = vsel %vm218_vm1, %v197_v32, 0.0  ;;  %v216_v27 = vld [vmem:[%s641_s3 + $0x70] sm:$0xff]  ;;  %v215_v28 = vld [vmem:[%s641_s3 + $0x68] sm:$0xff] }
  0x9d   :  { %v145_v37 = vpop.permute.xlu1 %144  ;;  %v140_v38 = vpop.permute.xlu0 %139  ;;  %250 = vadd.xlane.f32.xlu1 %v249_v35  ;;  %247 = vadd.xlane.f32.xlu0 %v246_v36 }
  0x9e   :  { %v162_v39 = vadd.f32 %v145_v37, %v50_v30  ;;  %v161_v40 = vadd.f32 %v140_v38, %v49_v31  ;;  %v198_v41 = vmul.f32 %v458_v26, %v175_v34  ;;  %v199_v46 = vmul.f32 %v458_v26, %v176_v33  ;;  %v217_v33 = vld [vmem:[%s641_s3 + $0x78] sm:$0xff] }
  0xa0   :  { %v178_v43 = vmax.f32 %v162_v39, 0.0  ;;  %v177_v44 = vmax.f32 %v161_v40, 0.0  ;;  %v255_v45 = vsel %vm218_vm1, %v198_v41, 0.0  ;;  %v258_v49 = vsel %vm218_vm1, %v199_v46, 0.0 }
  0xa1   :  { %256 = vadd.xlane.f32.xlu1 %v255_v45  ;;  %253 = vadd.xlane.f32.xlu0 %v252_v42 }
  0xa2   :  { %v200_v47 = vmul.f32 %v458_v26, %v177_v44  ;;  %v201_v50 = vmul.f32 %v458_v26, %v178_v43 }
  0xa4   :  { %v261_v48 = vsel %vm218_vm1, %v200_v47, 0.0  ;;  %v264_v51 = vsel %vm218_vm1, %v201_v50, 0.0 }
  0xa5   :  { %262 = vadd.xlane.f32.xlu1 %v261_v48  ;;  %259 = vadd.xlane.f32.xlu0 %v258_v49 }
  0xa9   :  { %265 = vadd.xlane.f32.xlu0 %v264_v51 }
 0x116   :  { %v221_v53 = vpop.xlane.xlu0 %220 }
 0x117   :  { %v267_v54 = vadd.f32 %v221_v53, %v202_v52 }
 0x119   :  { %284 = vst.msk [vmem:[%s641_s3] sm:$0xff] %vm18_vm0, %v267_v54 }
 0x11a   :  { %v224_v26 = vpop.xlane.xlu1 %223  ;;  %v227_v57 = vpop.xlane.xlu0 %226 }
 0x11b   :  { %v268_v58 = vadd.f32 %v224_v26, %v203_v55  ;;  %v269_v59 = vadd.f32 %v227_v57, %v204_v56 }
 0x11d   :  { %285 = vst.msk [vmem:[%s641_s3 + $0x8] sm:$0xff] %vm18_vm0, %v268_v58  ;;  %286 = vst.msk [vmem:[%s641_s3 + $0x10] sm:$0xff] %vm18_vm0, %v269_v59 }
 0x11e   :  { %v233_v62 = vpop.xlane.xlu1 %232  ;;  %v230_v63 = vpop.xlane.xlu0 %229 }
 0x11f   :  { %v271_v0 = vadd.f32 %v233_v62, %v206_v60  ;;  %v270_v1 = vadd.f32 %v230_v63, %v205_v61 }
 0x121   :  { %288 = vst.msk [vmem:[%s641_s3 + $0x20] sm:$0xff] %vm18_vm0, %v271_v0  ;;  %287 = vst.msk [vmem:[%s641_s3 + $0x18] sm:$0xff] %vm18_vm0, %v270_v1 }
 0x122   :  { %v239_v4 = vpop.xlane.xlu1 %238  ;;  %v236_v5 = vpop.xlane.xlu0 %235 }
 0x123   :  { %v273_v6 = vadd.f32 %v239_v4, %v208_v2  ;;  %v272_v7 = vadd.f32 %v236_v5, %v207_v3 }
 0x125   :  { %290 = vst.msk [vmem:[%s641_s3 + $0x30] sm:$0xff] %vm18_vm0, %v273_v6  ;;  %289 = vst.msk [vmem:[%s641_s3 + $0x28] sm:$0xff] %vm18_vm0, %v272_v7 }
 0x126   :  { %v245_v10 = vpop.xlane.xlu1 %244  ;;  %v242_v11 = vpop.xlane.xlu0 %241 }
 0x127   :  { %v275_v12 = vadd.f32 %v245_v10, %v210_v8  ;;  %v274_v13 = vadd.f32 %v242_v11, %v209_v9 }
 0x129   :  { %292 = vst.msk [vmem:[%s641_s3 + $0x40] sm:$0xff] %vm18_vm0, %v275_v12  ;;  %291 = vst.msk [vmem:[%s641_s3 + $0x38] sm:$0xff] %vm18_vm0, %v274_v13 }
 0x12a   :  { %v251_v16 = vpop.xlane.xlu1 %250  ;;  %v248_v17 = vpop.xlane.xlu0 %247 }
 0x12b   :  { %v277_v18 = vadd.f32 %v251_v16, %v212_v14  ;;  %v276_v19 = vadd.f32 %v248_v17, %v211_v15 }
 0x12d   :  { %294 = vst.msk [vmem:[%s641_s3 + $0x50] sm:$0xff] %vm18_vm0, %v277_v18  ;;  %293 = vst.msk [vmem:[%s641_s3 + $0x48] sm:$0xff] %vm18_vm0, %v276_v19 }
 0x12e   :  { %v257_v22 = vpop.xlane.xlu1 %256  ;;  %v254_v23 = vpop.xlane.xlu0 %253 }
 0x12f   :  { %v279_v24 = vadd.f32 %v257_v22, %v214_v20  ;;  %v278_v25 = vadd.f32 %v254_v23, %v213_v21 }
 0x131   :  { %296 = vst.msk [vmem:[%s641_s3 + $0x60] sm:$0xff] %vm18_vm0, %v279_v24  ;;  %295 = vst.msk [vmem:[%s641_s3 + $0x58] sm:$0xff] %vm18_vm0, %v278_v25 }
 0x132   :  { %v263_v29 = vpop.xlane.xlu1 %262  ;;  %v260_v30 = vpop.xlane.xlu0 %259 }
 0x133   :  { %v281_v31 = vadd.f32 %v263_v29, %v216_v27  ;;  %v280_v32 = vadd.f32 %v260_v30, %v215_v28 }
 0x135   :  { %298 = vst.msk [vmem:[%s641_s3 + $0x70] sm:$0xff] %vm18_vm0, %v281_v31  ;;  %297 = vst.msk [vmem:[%s641_s3 + $0x68] sm:$0xff] %vm18_vm0, %v280_v32 }
 0x136   :  { %v266_v34 = vpop.xlane.xlu0 %265 }
 0x137   :  { %v282_v35 = vadd.f32 %v266_v34, %v217_v33 }
 0x139   :  { %299 = vst.msk [vmem:[%s641_s3 + $0x78] sm:$0xff] %vm18_vm0, %v282_v35 }

// kernel: _lambda_.17
= control target key start
LH: loop header
LB: loop body
LE: loop exit
PB: predicated region body
PF: predicated region fallthrough
CT: control target
= control target key end

     0   :  { %v154_v0 = vmov 0.0|0.0   ;;  %vm155_vm0 = vmmov 0   ;;  %v156_v4 = vmov 0.0   ;;  %vm30_vm1 = vcmask 523264   ;;  %s210_s1 = inlined_call_operand.vmem [shape: f32[64,128], index: 1, kind: input, shape index: {}]   ;;  %s211_s0 = inlined_call_operand.vmem [shape: f32[2,64], index: 0, kind: input, shape index: {}]   ;;  %s212_s2 = inlined_call_operand.vmem [shape: f32[1,128], index: 2, kind: input, shape index: {}]   ;;  %s213_s3 = inlined_call_operand.vmem [shape: f32[2,128], index: 3, kind: output, shape index: {}]  }
   0x1   :  { %139 = vmatprep.subr.bf16.mxu0 %v154_v0  ;;  %v15_v1 = vld [vmem:[%s210_s1] sm:$0xff]  ;;  %v16_v2 = vld [vmem:[%s210_s1 + $0x8] sm:$0xff]  ;;  %v17_v3 = vld [vmem:[%s210_s1 + $0x10] sm:$0xff]  ;;  %136 = vmatprep.mubr.msk.f32.mxu0 %vm155_vm0, %v156_v4 }
   0x2   :  { %v140_v5 = vpack.c.bf16 %v16_v2, %v15_v1  ;;  %v18_v6 = vld [vmem:[%s210_s1 + $0x18] sm:$0xff]  ;;  %v19_v8 = vld [vmem:[%s210_s1 + $0x20] sm:$0xff]  ;;  %v20_v9 = vld [vmem:[%s210_s1 + $0x28] sm:$0xff] }
   0x3   :  { %v143_v7 = vpack.c.bf16 %v18_v6, %v17_v3  ;;  %v146_v10 = vpack.c.bf16 %v20_v9, %v19_v8  ;;  %v21_v11 = vld [vmem:[%s210_s1 + $0x30] sm:$0xff]  ;;  %v22_v12 = vld [vmem:[%s210_s1 + $0x38] sm:$0xff]  ;;  %v14_v14 = vld [vmem:[%s211_s0] sm:$0x3] }
   0x4   :  { %141 = vmatpush3.bf16.msra.mxu0 %v140_v5  ;;  %v149_v13 = vpack.c.bf16 %v22_v12, %v21_v11  ;;  %v109_v15 = vld [vmem:[%s212_s2] ss:$0 sm:$0xff] }
   0x5   :  { %142 = vmatprep.subr.bf16.mxu0 %v154_v0 }
   0x8   :  { %144 = vmatpush3.bf16.msra.mxu0 %v143_v7 }
   0x9   :  { %145 = vmatprep.subr.bf16.mxu0 %v154_v0 }
   0xc   :  { %147 = vmatpush3.bf16.msra.mxu0 %v146_v10 }
   0xd   :  { %148 = vmatprep.subr.bf16.mxu0 %v154_v0 }
  0x10   :  { %150 = vmatpush3.bf16.msra.mxu0 %v149_v13 }
  0x13   :  { %137 = vmatmul.mubr.msk.f32.vlgmr.msra.gmra.mrb[0].mxu0 %vm30_vm1, %v14_v14 }
  0xe6   :  { %v100_v16 = vpop.f32.mrb[0].mxu0 }
  0xe7   :  { %v101_v17 = vadd.f32 %v109_v15, %v100_v16  ;;  %v138_v18 = vpop.f32.mrb[1].mxu0 }
  0xe9   :  { %104 = vst [vmem:[%s213_s3] sm:$0x3] %v101_v17 }

</bundles_post_ra>
